<compile_context>
chip_gen: v7x
topology: tpu7x:2x2x1
jax: 0.10.0
libtpu: 0.0.40
codegen_flags: <defaults>
</compile_context>

<pallas_src>
import numpy as np
import jax
import jax.numpy as jnp
from jax.experimental import pallas as pl
from jax.experimental.pallas import tpu as pltpu


_INV_SQRT2 = 0.7071067811865476


def _erf(x):
    # Abramowitz & Stegun 7.1.26 rational approximation, |err| <= 1.5e-7 (~f32 eps),
    # built from exp/mul/add/where only, so exact-GELU semantics stay inside the
    # fused kernel without relying on an erf primitive lowering in Mosaic.
    p = 0.3275911
    a1, a2, a3, a4, a5 = 0.254829592, -0.284496736, 1.421413741, -1.453152027, 1.061405429
    sgn = jnp.where(x < 0.0, -1.0, 1.0)
    ax = jnp.abs(x)
    t = 1.0 / (1.0 + p * ax)
    poly = ((((a5 * t + a4) * t + a3) * t + a2) * t + a1) * t
    return sgn * (1.0 - poly * jnp.exp(-ax * ax))


def _gelu(x):
    # exact GELU (matches torch.nn.GELU(approximate='none') to ~1e-7)
    return 0.5 * x * (1.0 + _erf(x * _INV_SQRT2))


def _sigmoid(x):
    return 1.0 / (1.0 + jnp.exp(-x))


def _rowvec_matmul(v, w):
    # (1, K) @ (K, N) with K, N <= 8: VPU multiply-accumulate — the MXU push/pop
    # latency dominates such tiny matmuls (perf-review item).
    out = v[:, 0:1] * w[0:1, :]
    for k in range(1, w.shape[0]):
        out = out + v[:, k:k + 1] * w[k:k + 1, :]
    return out


def _even_rows(a):
    # (2n, X, C) -> (n, X, C): rows 0, 2, 4, ...
    # Pure split of the leading (major) dim + major-dim index: layout-trivial,
    # no sublane/lane data movement.
    n2 = a.shape[0] // 2
    return a.reshape(n2, 2, a.shape[1], a.shape[2])[:, 0]


def _fe_block(x3, x_flat, pad_ref, w_dw, w_se1, w_se2, w_pw):
    # FeatExtract conv branch + residual (no pool):
    #   x + conv1x1( SE( GELU( dwconv3x3(x) ) ) )
    # x3: (H, W, C) value; x_flat: (H*W, C) same data; pad_ref: (H+2, W+2, C) scratch.
    H, W, C = x3.shape
    # zero halo built in VMEM scratch (no jnp.pad round-trip through HBM)
    pad_ref[...] = jnp.zeros(pad_ref.shape, pad_ref.dtype)
    pad_ref[1:H + 1, 1:W + 1, :] = x3
    acc = jnp.zeros((H, W, C), jnp.float32)
    for di in range(3):
        for dj in range(3):
            acc = acc + pad_ref[di:di + H, dj:dj + W, :] * w_dw[di, dj].reshape(1, 1, C)
    g = _gelu(acc).reshape(H * W, C)                        # depthwise 3x3 + GELU
    m = jnp.mean(g, axis=0, keepdims=True)                  # SE squeeze: (1, C)
    h = _gelu(_rowvec_matmul(m, w_se1))                     # SE fc1 + GELU: (1, R)
    s = _sigmoid(_rowvec_matmul(h, w_se2))                  # SE fc2 + sigmoid: (1, C)
    y = jnp.dot(g * s, w_pw, preferred_element_type=jnp.float32)   # 1x1 conv (no bias)
    return x_flat + y                                       # residual


def _pred_module_kernel(x_ref, s1_ref, s2_ref,
                        dw1_ref, se1a_ref, se1b_ref, pw1_ref,
                        cp_w_ref, cp_b_ref,
                        dw2_ref, se2a_ref, se2b_ref, pw2_ref,
                        cr_w_ref, cr_b_ref,
                        o_ref,
                        padA_ref, padB_ref):
    _, H, W, C = x_ref.shape
    H2, W2 = H // 2, W // 2
    Ho, Wo = H // 4, W // 4
    C2 = cp_w_ref.shape[1]

    x3 = x_ref[0]                                           # (H, W, C)

    # ---- FE1: x + conv(x) --------------------------------------------------
    y = _fe_block(x3, x3.reshape(H * W, C), padA_ref,
                  dw1_ref[...], se1a_ref[...], se1b_ref[...], pw1_ref[...])

    # ---- MaxPool(3, 2, 1), fully in-kernel ----------------------------------
    padA_ref[...] = jnp.full(padA_ref.shape, -jnp.inf, padA_ref.dtype)
    padA_ref[1:H + 1, 1:W + 1, :] = y.reshape(H, W, C)
    # window-row max with in-kernel row decimation (padded rows 2i, 2i+1, 2i+2)
    r0 = _even_rows(padA_ref[0:H, :, :])
    r1 = _even_rows(padA_ref[1:H + 1, :, :])
    r2 = _even_rows(padA_ref[2:H + 2, :, :])
    vmax = jnp.maximum(jnp.maximum(r0, r1), r2)             # (H2, W+2, C)
    # sliding column max (stride 1) ...
    cmax = jnp.maximum(jnp.maximum(vmax[:, 0:W, :], vmax[:, 1:W + 1, :]),
                       vmax[:, 2:W + 2, :])                 # (H2, W, C)
    # ... then the stride-2 column selection as a constant 0/1 matmul on the MXU
    pooled = jnp.dot(s1_ref[...], cmax.reshape(H2 * W, C),
                     preferred_element_type=jnp.float32)    # (H2*W2, C)

    # ---- conv_point: 1x1, dim -> dim//2, with bias ---------------------------
    cp = jnp.dot(pooled, cp_w_ref[...],
                 preferred_element_type=jnp.float32) + cp_b_ref[...]   # (H2*W2, C2)

    # ---- FE2 (keep_dim=True) + GELU ------------------------------------------
    z = _gelu(_fe_block(cp.reshape(H2, W2, C2), cp, padB_ref,
                        dw2_ref[...], se2a_ref[...], se2b_ref[...], pw2_ref[...]))

    # ---- conv_red: 3x3, stride 2, pad 1, C2 -> 1 channel, with bias ----------
    padB_ref[...] = jnp.zeros(padB_ref.shape, padB_ref.dtype)
    padB_ref[1:H2 + 1, 1:W2 + 1, :] = z.reshape(H2, W2, C2)
    w_cr = cr_w_ref[...]                                    # (3, 3, C2, 1)
    acc = jnp.zeros((Ho * W2, 1), jnp.float32)
    for di in range(3):
        rdi = _even_rows(padB_ref[di:di + H2, :, :])        # (Ho, W2+2, C2): rows 2i+di
        for dj in range(3):
            tap = rdi[:, dj:dj + W2, :].reshape(Ho * W2, C2)
            # channel reduction on the MXU (no per-tap cross-lane XLU sum)
            acc = acc + jnp.dot(tap, w_cr[di, dj], preferred_element_type=jnp.float32)
    # stride-2 column selection (MXU) + bias
    out = jnp.dot(s2_ref[...], acc, preferred_element_type=jnp.float32) + cr_b_ref[0]
    o_ref[0] = out.astype(o_ref.dtype)


def _col_decimator(nrows, ncols):
    # 0/1 selector: from a row-major flattened (nrows, ncols) grid, pick entries
    # at (i, 2j).  Lets the kernel do the stride-2 column selection as a single
    # MXU matmul (row decimation is a free major-dim reshape).
    nco = ncols // 2
    sel = np.zeros((nrows * nco, nrows * ncols), np.float32)
    for i in range(nrows):
        for j in range(nco):
            sel[i * nco + j, i * ncols + 2 * j] = 1.0
    return jnp.asarray(sel)


def pred_module_forward(x_nchw, params):
    """x_nchw: (B, dim, H, W) -> (B, 1, H//4, W//4), matching pred_module."""
    B, C, H, W = x_nchw.shape
    assert H % 4 == 0 and W % 4 == 0
    C2 = params["cp_w"].shape[1]
    H2, W2, Ho, Wo = H // 2, W // 2, H // 4, W // 4

    # NCHW -> NHWC once at the boundary (channels-last = TPU lane dim).
    x = jnp.transpose(x_nchw, (0, 2, 3, 1))

    s1 = _col_decimator(H2, W)    # (H2*W2, H2*W)  : MaxPool stride-2 columns
    s2 = _col_decimator(Ho, W2)   # (Ho*Wo, Ho*W2) : conv_red stride-2 columns

    operands = (
        x, s1, s2,
        params["fe1"]["dw_w"], params["fe1"]["se_w1"],
        params["fe1"]["se_w2"], params["fe1"]["pw_w"],
        params["cp_w"], params["cp_b"].reshape(1, C2),
        params["fe2"]["dw_w"], params["fe2"]["se_w1"],
        params["fe2"]["se_w2"], params["fe2"]["pw_w"],
        params["cr_w"].reshape(3, 3, C2, 1), params["cr_b"],
    )

    def _const_spec(a):
        nd = a.ndim
        return pl.BlockSpec(a.shape, lambda b, _nd=nd: (0,) * _nd)

    in_specs = [pl.BlockSpec((1, H, W, C), lambda b: (b, 0, 0, 0))]
    in_specs += [_const_spec(a) for a in operands[1:-1]]
    in_specs += [pl.BlockSpec(memory_space=pltpu.MemorySpace.SMEM)]  # conv_red bias scalar

    out = pl.pallas_call(
        _pred_module_kernel,
        out_shape=jax.ShapeDtypeStruct((B, Ho * Wo, 1), x.dtype),
        grid=(B,),
        in_specs=in_specs,
        out_specs=pl.BlockSpec((1, Ho * Wo, 1), lambda b: (b, 0, 0)),
        scratch_shapes=[
            pltpu.VMEM((H + 2, W + 2, C), jnp.float32),      # FE1 zero halo / MaxPool -inf halo
            pltpu.VMEM((H2 + 2, W2 + 2, C2), jnp.float32),   # FE2 zero halo / conv_red zero halo
        ],
        compiler_params=pltpu.CompilerParams(dimension_semantics=("parallel",)),
    )(*operands)

    return out.reshape(B, Ho, Wo)[:, None, :, :]             # -> NCHW (B, 1, H//4, W//4)


def init_params(key, dim):
    ks = jax.random.split(key, 12)

    def u(k, shape, fan_in):
        bound = 1.0 / jnp.sqrt(jnp.float32(fan_in))
        return jax.random.uniform(k, shape, jnp.float32, -bound, bound)

    d2 = dim // 2
    r1 = int(dim * 0.25)
    r2 = int(d2 * 0.25)
    return {
        "fe1": {"dw_w": u(ks[0], (3, 3, dim), 9),
                "se_w1": u(ks[1], (dim, r1), dim),
                "se_w2": u(ks[2], (r1, dim), r1),
                "pw_w": u(ks[3], (dim, dim), dim)},
        "cp_w": u(ks[4], (dim, d2), dim),
        "cp_b": u(ks[5], (d2,), dim),
        "fe2": {"dw_w": u(ks[6], (3, 3, d2), 9),
                "se_w1": u(ks[7], (d2, r2), d2),
                "se_w2": u(ks[8], (r2, d2), r2),
                "pw_w": u(ks[9], (d2, d2), d2)},
        "cr_w": u(ks[10], (3, 3, d2), 9 * d2),
        "cr_b": u(ks[11], (1,), 9 * d2),
    }


if __name__ == "__main__":
    key = jax.random.PRNGKey(0)
    kx, kp = jax.random.split(key)
    dim, B, H, W = 8, 2, 16, 16
    x = jax.random.normal(kx, (B, dim, H, W), jnp.float32)   # NCHW, like the PyTorch module
    params = init_params(kp, dim)

    fwd = jax.jit(pred_module_forward)
    out = fwd(x, params)
    jax.block_until_ready(out)
    assert out.shape == (B, 1, H // 4, W // 4), out.shape
    assert bool(jnp.all(jnp.isfinite(out)))
    print("KERNEL_OK")
</pallas_src>

<mosaic_0001>
module attributes {stable_mosaic.version = 11 : i64} {
  func.func @_pred_module_kernel(%arg0: i32, %arg1: memref<1x16x16x8xf32, #tpu.memory_space<vmem>>, %arg2: memref<64x128xf32, #tpu.memory_space<vmem>>, %arg3: memref<16x32xf32, #tpu.memory_space<vmem>>, %arg4: memref<3x3x8xf32, #tpu.memory_space<vmem>>, %arg5: memref<8x2xf32, #tpu.memory_space<vmem>>, %arg6: memref<2x8xf32, #tpu.memory_space<vmem>>, %arg7: memref<8x8xf32, #tpu.memory_space<vmem>>, %arg8: memref<8x4xf32, #tpu.memory_space<vmem>>, %arg9: memref<1x4xf32, #tpu.memory_space<vmem>>, %arg10: memref<3x3x4xf32, #tpu.memory_space<vmem>>, %arg11: memref<4x1xf32, #tpu.memory_space<vmem>>, %arg12: memref<1x4xf32, #tpu.memory_space<vmem>>, %arg13: memref<4x4xf32, #tpu.memory_space<vmem>>, %arg14: memref<3x3x4x1xf32, #tpu.memory_space<vmem>>, %arg15: memref<1xf32, #tpu.memory_space<smem>>, %arg16: memref<1x16x1xf32, #tpu.memory_space<vmem>>, %arg17: memref<18x18x8xf32, #tpu.memory_space<vmem>>, %arg18: memref<10x10x4xf32, #tpu.memory_space<vmem>>) attributes {dimension_semantics = [#tpu.dimension_semantics<parallel>], iteration_bounds = array<i64: 2>, scalar_prefetch = 0 : i64, scratch_operands = 2 : i64, tpu.core_type = #tpu.core_type<tc>, window_params = [{transform_indices = @transform_0, window_bounds = array<i64: 1, 16, 16, 8>}, {pipeline_mode = #tpu.pipeline_mode<synchronous>, transform_indices = @transform_1, window_bounds = array<i64: 64, 128>}, {pipeline_mode = #tpu.pipeline_mode<synchronous>, transform_indices = @transform_2, window_bounds = array<i64: 16, 32>}, {pipeline_mode = #tpu.pipeline_mode<synchronous>, transform_indices = @transform_3, window_bounds = array<i64: 3, 3, 8>}, {pipeline_mode = #tpu.pipeline_mode<synchronous>, transform_indices = @transform_4, window_bounds = array<i64: 8, 2>}, {pipeline_mode = #tpu.pipeline_mode<synchronous>, transform_indices = @transform_5, window_bounds = array<i64: 2, 8>}, {pipeline_mode = #tpu.pipeline_mode<synchronous>, transform_indices = @transform_6, window_bounds = array<i64: 8, 8>}, {pipeline_mode = #tpu.pipeline_mode<synchronous>, transform_indices = @transform_7, window_bounds = array<i64: 8, 4>}, {pipeline_mode = #tpu.pipeline_mode<synchronous>, transform_indices = @transform_8, window_bounds = array<i64: 1, 4>}, {pipeline_mode = #tpu.pipeline_mode<synchronous>, transform_indices = @transform_9, window_bounds = array<i64: 3, 3, 4>}, {pipeline_mode = #tpu.pipeline_mode<synchronous>, transform_indices = @transform_10, window_bounds = array<i64: 4, 1>}, {pipeline_mode = #tpu.pipeline_mode<synchronous>, transform_indices = @transform_11, window_bounds = array<i64: 1, 4>}, {pipeline_mode = #tpu.pipeline_mode<synchronous>, transform_indices = @transform_12, window_bounds = array<i64: 4, 4>}, {pipeline_mode = #tpu.pipeline_mode<synchronous>, transform_indices = @transform_13, window_bounds = array<i64: 3, 3, 4, 1>}, {transform_indices = @transform_14, window_bounds = array<i64: 1>}, {transform_indices = @transform_15, window_bounds = array<i64: 1, 16, 1>}]} {
    %c0 = arith.constant 0 : index
    %c0_0 = arith.constant 0 : index
    %c0_1 = arith.constant 0 : index
    %c0_2 = arith.constant 0 : index
    %0 = vector.load %arg1[%c0, %c0_0, %c0_1, %c0_2] : memref<1x16x16x8xf32, #tpu.memory_space<vmem>>, vector<1x16x16x8xf32>
    %1 = vector.shape_cast %0 : vector<1x16x16x8xf32> to vector<16x16x8xf32>
    %2 = vector.shape_cast %1 : vector<16x16x8xf32> to vector<256x8xf32>
    %c0_3 = arith.constant 0 : index
    %c0_4 = arith.constant 0 : index
    %c0_5 = arith.constant 0 : index
    %3 = vector.load %arg4[%c0_3, %c0_4, %c0_5] : memref<3x3x8xf32, #tpu.memory_space<vmem>>, vector<3x3x8xf32>
    %c0_6 = arith.constant 0 : index
    %c0_7 = arith.constant 0 : index
    %4 = vector.load %arg5[%c0_6, %c0_7] : memref<8x2xf32, #tpu.memory_space<vmem>>, vector<8x2xf32>
    %c0_8 = arith.constant 0 : index
    %c0_9 = arith.constant 0 : index
    %5 = vector.load %arg6[%c0_8, %c0_9] : memref<2x8xf32, #tpu.memory_space<vmem>>, vector<2x8xf32>
    %c0_10 = arith.constant 0 : index
    %c0_11 = arith.constant 0 : index
    %6 = vector.load %arg7[%c0_10, %c0_11] : memref<8x8xf32, #tpu.memory_space<vmem>>, vector<8x8xf32>
    %cst = arith.constant 0.000000e+00 : f32
    %7 = vector.broadcast %cst : f32 to vector<18x18x8xf32>
    %c0_12 = arith.constant 0 : index
    %c0_13 = arith.constant 0 : index
    %c0_14 = arith.constant 0 : index
    %8 = vector.load %arg17[%c0_12, %c0_13, %c0_14] : memref<18x18x8xf32, #tpu.memory_space<vmem>>, vector<18x18x8xf32>
    tpu.vector_store %arg17[%c0_12, %c0_13, %c0_14], %7 {strides = array<i32>} : memref<18x18x8xf32, #tpu.memory_space<vmem>>, vector<18x18x8xf32>,
    %c1 = arith.constant 1 : index
    %c1_15 = arith.constant 1 : index
    %c0_16 = arith.constant 0 : index
    %9 = vector.load %arg17[%c1, %c1_15, %c0_16] : memref<18x18x8xf32, #tpu.memory_space<vmem>>, vector<16x16x8xf32>
    tpu.vector_store %arg17[%c1, %c1_15, %c0_16], %1 {strides = array<i32>} : memref<18x18x8xf32, #tpu.memory_space<vmem>>, vector<16x16x8xf32>,
    %cst_17 = arith.constant 0.000000e+00 : f32
    %10 = vector.broadcast %cst_17 : f32 to vector<16x16x8xf32>
    %c0_18 = arith.constant 0 : index
    %c0_19 = arith.constant 0 : index
    %c0_20 = arith.constant 0 : index
    %11 = vector.load %arg17[%c0_18, %c0_19, %c0_20] : memref<18x18x8xf32, #tpu.memory_space<vmem>>, vector<16x16x8xf32>
    %12 = vector.extract_strided_slice %3 {offsets = [0, 0, 0], sizes = [1, 1, 8], strides = [1, 1, 1]} : vector<3x3x8xf32> to vector<1x1x8xf32>
    %13 = vector.shape_cast %12 : vector<1x1x8xf32> to vector<8xf32>
    %14 = vector.shape_cast %13 : vector<8xf32> to vector<1x1x8xf32>
    %15 = vector.broadcast %14 : vector<1x1x8xf32> to vector<16x16x8xf32>
    %16 = arith.mulf %11, %15 : vector<16x16x8xf32>
    %17 = arith.addf %10, %16 : vector<16x16x8xf32>
    %c0_21 = arith.constant 0 : index
    %c1_22 = arith.constant 1 : index
    %c0_23 = arith.constant 0 : index
    %18 = vector.load %arg17[%c0_21, %c1_22, %c0_23] : memref<18x18x8xf32, #tpu.memory_space<vmem>>, vector<16x16x8xf32>
    %19 = vector.extract_strided_slice %3 {offsets = [0, 1, 0], sizes = [1, 1, 8], strides = [1, 1, 1]} : vector<3x3x8xf32> to vector<1x1x8xf32>
    %20 = vector.shape_cast %19 : vector<1x1x8xf32> to vector<8xf32>
    %21 = vector.shape_cast %20 : vector<8xf32> to vector<1x1x8xf32>
    %22 = vector.broadcast %21 : vector<1x1x8xf32> to vector<16x16x8xf32>
    %23 = arith.mulf %18, %22 : vector<16x16x8xf32>
    %24 = arith.addf %17, %23 : vector<16x16x8xf32>
    %c0_24 = arith.constant 0 : index
    %c2 = arith.constant 2 : index
    %c0_25 = arith.constant 0 : index
    %25 = vector.load %arg17[%c0_24, %c2, %c0_25] : memref<18x18x8xf32, #tpu.memory_space<vmem>>, vector<16x16x8xf32>
    %26 = vector.extract_strided_slice %3 {offsets = [0, 2, 0], sizes = [1, 1, 8], strides = [1, 1, 1]} : vector<3x3x8xf32> to vector<1x1x8xf32>
    %27 = vector.shape_cast %26 : vector<1x1x8xf32> to vector<8xf32>
    %28 = vector.shape_cast %27 : vector<8xf32> to vector<1x1x8xf32>
    %29 = vector.broadcast %28 : vector<1x1x8xf32> to vector<16x16x8xf32>
    %30 = arith.mulf %25, %29 : vector<16x16x8xf32>
    %31 = arith.addf %24, %30 : vector<16x16x8xf32>
    %c1_26 = arith.constant 1 : index
    %c0_27 = arith.constant 0 : index
    %c0_28 = arith.constant 0 : index
    %32 = vector.load %arg17[%c1_26, %c0_27, %c0_28] : memref<18x18x8xf32, #tpu.memory_space<vmem>>, vector<16x16x8xf32>
    %33 = vector.extract_strided_slice %3 {offsets = [1, 0, 0], sizes = [1, 1, 8], strides = [1, 1, 1]} : vector<3x3x8xf32> to vector<1x1x8xf32>
    %34 = vector.shape_cast %33 : vector<1x1x8xf32> to vector<8xf32>
    %35 = vector.shape_cast %34 : vector<8xf32> to vector<1x1x8xf32>
    %36 = vector.broadcast %35 : vector<1x1x8xf32> to vector<16x16x8xf32>
    %37 = arith.mulf %32, %36 : vector<16x16x8xf32>
    %38 = arith.addf %31, %37 : vector<16x16x8xf32>
    %c1_29 = arith.constant 1 : index
    %c1_30 = arith.constant 1 : index
    %c0_31 = arith.constant 0 : index
    %39 = vector.load %arg17[%c1_29, %c1_30, %c0_31] : memref<18x18x8xf32, #tpu.memory_space<vmem>>, vector<16x16x8xf32>
    %40 = vector.extract_strided_slice %3 {offsets = [1, 1, 0], sizes = [1, 1, 8], strides = [1, 1, 1]} : vector<3x3x8xf32> to vector<1x1x8xf32>
    %41 = vector.shape_cast %40 : vector<1x1x8xf32> to vector<8xf32>
    %42 = vector.shape_cast %41 : vector<8xf32> to vector<1x1x8xf32>
    %43 = vector.broadcast %42 : vector<1x1x8xf32> to vector<16x16x8xf32>
    %44 = arith.mulf %39, %43 : vector<16x16x8xf32>
    %45 = arith.addf %38, %44 : vector<16x16x8xf32>
    %c1_32 = arith.constant 1 : index
    %c2_33 = arith.constant 2 : index
    %c0_34 = arith.constant 0 : index
    %46 = vector.load %arg17[%c1_32, %c2_33, %c0_34] : memref<18x18x8xf32, #tpu.memory_space<vmem>>, vector<16x16x8xf32>
    %47 = vector.extract_strided_slice %3 {offsets = [1, 2, 0], sizes = [1, 1, 8], strides = [1, 1, 1]} : vector<3x3x8xf32> to vector<1x1x8xf32>
    %48 = vector.shape_cast %47 : vector<1x1x8xf32> to vector<8xf32>
    %49 = vector.shape_cast %48 : vector<8xf32> to vector<1x1x8xf32>
    %50 = vector.broadcast %49 : vector<1x1x8xf32> to vector<16x16x8xf32>
    %51 = arith.mulf %46, %50 : vector<16x16x8xf32>
    %52 = arith.addf %45, %51 : vector<16x16x8xf32>
    %c2_35 = arith.constant 2 : index
    %c0_36 = arith.constant 0 : index
    %c0_37 = arith.constant 0 : index
    %53 = vector.load %arg17[%c2_35, %c0_36, %c0_37] : memref<18x18x8xf32, #tpu.memory_space<vmem>>, vector<16x16x8xf32>
    %54 = vector.extract_strided_slice %3 {offsets = [2, 0, 0], sizes = [1, 1, 8], strides = [1, 1, 1]} : vector<3x3x8xf32> to vector<1x1x8xf32>
    %55 = vector.shape_cast %54 : vector<1x1x8xf32> to vector<8xf32>
    %56 = vector.shape_cast %55 : vector<8xf32> to vector<1x1x8xf32>
    %57 = vector.broadcast %56 : vector<1x1x8xf32> to vector<16x16x8xf32>
    %58 = arith.mulf %53, %57 : vector<16x16x8xf32>
    %59 = arith.addf %52, %58 : vector<16x16x8xf32>
    %c2_38 = arith.constant 2 : index
    %c1_39 = arith.constant 1 : index
    %c0_40 = arith.constant 0 : index
    %60 = vector.load %arg17[%c2_38, %c1_39, %c0_40] : memref<18x18x8xf32, #tpu.memory_space<vmem>>, vector<16x16x8xf32>
    %61 = vector.extract_strided_slice %3 {offsets = [2, 1, 0], sizes = [1, 1, 8], strides = [1, 1, 1]} : vector<3x3x8xf32> to vector<1x1x8xf32>
    %62 = vector.shape_cast %61 : vector<1x1x8xf32> to vector<8xf32>
    %63 = vector.shape_cast %62 : vector<8xf32> to vector<1x1x8xf32>
    %64 = vector.broadcast %63 : vector<1x1x8xf32> to vector<16x16x8xf32>
    %65 = arith.mulf %60, %64 : vector<16x16x8xf32>
    %66 = arith.addf %59, %65 : vector<16x16x8xf32>
    %c2_41 = arith.constant 2 : index
    %c2_42 = arith.constant 2 : index
    %c0_43 = arith.constant 0 : index
    %67 = vector.load %arg17[%c2_41, %c2_42, %c0_43] : memref<18x18x8xf32, #tpu.memory_space<vmem>>, vector<16x16x8xf32>
    %68 = vector.extract_strided_slice %3 {offsets = [2, 2, 0], sizes = [1, 1, 8], strides = [1, 1, 1]} : vector<3x3x8xf32> to vector<1x1x8xf32>
    %69 = vector.shape_cast %68 : vector<1x1x8xf32> to vector<8xf32>
    %70 = vector.shape_cast %69 : vector<8xf32> to vector<1x1x8xf32>
    %71 = vector.broadcast %70 : vector<1x1x8xf32> to vector<16x16x8xf32>
    %72 = arith.mulf %67, %71 : vector<16x16x8xf32>
    %73 = arith.addf %66, %72 : vector<16x16x8xf32>
    %cst_44 = arith.constant 5.000000e-01 : f32
    %74 = vector.broadcast %cst_44 : f32 to vector<16x16x8xf32>
    %75 = arith.mulf %74, %73 : vector<16x16x8xf32>
    %cst_45 = arith.constant 0.707106769 : f32
    %76 = vector.broadcast %cst_45 : f32 to vector<16x16x8xf32>
    %77 = arith.mulf %73, %76 : vector<16x16x8xf32>
    %cst_46 = arith.constant 0.000000e+00 : f32
    %78 = vector.broadcast %cst_46 : f32 to vector<16x16x8xf32>
    %79 = arith.cmpf olt, %77, %78 : vector<16x16x8xf32>
    %cst_47 = arith.constant -1.000000e+00 : f32
    %cst_48 = arith.constant 1.000000e+00 : f32
    %80 = vector.broadcast %cst_47 : f32 to vector<16x16x8xf32>
    %81 = vector.broadcast %cst_48 : f32 to vector<16x16x8xf32>
    %82 = arith.select %79, %80, %81 : vector<16x16x8xi1>, vector<16x16x8xf32>
    %83 = math.absf %77 : vector<16x16x8xf32>
    %cst_49 = arith.constant 0.327591091 : f32
    %84 = vector.broadcast %cst_49 : f32 to vector<16x16x8xf32>
    %85 = arith.mulf %84, %83 : vector<16x16x8xf32>
    %cst_50 = arith.constant 1.000000e+00 : f32
    %86 = vector.broadcast %cst_50 : f32 to vector<16x16x8xf32>
    %87 = arith.addf %86, %85 : vector<16x16x8xf32>
    %cst_51 = arith.constant 1.000000e+00 : f32
    %88 = vector.broadcast %cst_51 : f32 to vector<16x16x8xf32>
    %89 = arith.divf %88, %87 : vector<16x16x8xf32>
    %cst_52 = arith.constant 1.06140542 : f32
    %90 = vector.broadcast %cst_52 : f32 to vector<16x16x8xf32>
    %91 = arith.mulf %90, %89 : vector<16x16x8xf32>
    %cst_53 = arith.constant -1.45315206 : f32
    %92 = vector.broadcast %cst_53 : f32 to vector<16x16x8xf32>
    %93 = arith.addf %91, %92 : vector<16x16x8xf32>
    %94 = arith.mulf %93, %89 : vector<16x16x8xf32>
    %cst_54 = arith.constant 1.42141378 : f32
    %95 = vector.broadcast %cst_54 : f32 to vector<16x16x8xf32>
    %96 = arith.addf %94, %95 : vector<16x16x8xf32>
    %97 = arith.mulf %96, %89 : vector<16x16x8xf32>
    %cst_55 = arith.constant -0.284496725 : f32
    %98 = vector.broadcast %cst_55 : f32 to vector<16x16x8xf32>
    %99 = arith.addf %97, %98 : vector<16x16x8xf32>
    %100 = arith.mulf %99, %89 : vector<16x16x8xf32>
    %cst_56 = arith.constant 0.254829586 : f32
    %101 = vector.broadcast %cst_56 : f32 to vector<16x16x8xf32>
    %102 = arith.addf %100, %101 : vector<16x16x8xf32>
    %103 = arith.mulf %102, %89 : vector<16x16x8xf32>
    %cst_57 = arith.constant 0.000000e+00 : f32
    %104 = vector.broadcast %cst_57 : f32 to vector<16x16x8xf32>
    %105 = arith.subf %104, %83 : vector<16x16x8xf32>
    %106 = arith.mulf %105, %83 : vector<16x16x8xf32>
    %107 = math.exp %106 : vector<16x16x8xf32>
    %108 = arith.mulf %103, %107 : vector<16x16x8xf32>
    %cst_58 = arith.constant 1.000000e+00 : f32
    %109 = vector.broadcast %cst_58 : f32 to vector<16x16x8xf32>
    %110 = arith.subf %109, %108 : vector<16x16x8xf32>
    %111 = arith.mulf %82, %110 : vector<16x16x8xf32>
    %cst_59 = arith.constant 1.000000e+00 : f32
    %112 = vector.broadcast %cst_59 : f32 to vector<16x16x8xf32>
    %113 = arith.addf %112, %111 : vector<16x16x8xf32>
    %114 = arith.mulf %75, %113 : vector<16x16x8xf32>
    %115 = vector.shape_cast %114 : vector<16x16x8xf32> to vector<256x8xf32>
    %cst_60 = arith.constant dense<0.000000e+00> : vector<8xf32>
    %116 = vector.multi_reduction <add>, %115, %cst_60 [0] : vector<256x8xf32> to vector<8xf32>
    %117 = vector.shape_cast %116 : vector<8xf32> to vector<1x8xf32>
    %cst_61 = arith.constant 2.560000e+02 : f32
    %118 = vector.broadcast %cst_61 : f32 to vector<1x8xf32>
    %119 = arith.divf %117, %118 : vector<1x8xf32>
    %120 = vector.extract_strided_slice %119 {offsets = [0, 0], sizes = [1, 1], strides = [1, 1]} : vector<1x8xf32> to vector<1x1xf32>
    %121 = vector.extract_strided_slice %4 {offsets = [0, 0], sizes = [1, 2], strides = [1, 1]} : vector<8x2xf32> to vector<1x2xf32>
    %122 = vector.broadcast %120 : vector<1x1xf32> to vector<1x2xf32>
    %123 = arith.mulf %122, %121 : vector<1x2xf32>
    %124 = vector.extract_strided_slice %119 {offsets = [0, 1], sizes = [1, 1], strides = [1, 1]} : vector<1x8xf32> to vector<1x1xf32>
    %125 = vector.extract_strided_slice %4 {offsets = [1, 0], sizes = [1, 2], strides = [1, 1]} : vector<8x2xf32> to vector<1x2xf32>
    %126 = vector.broadcast %124 : vector<1x1xf32> to vector<1x2xf32>
    %127 = arith.mulf %126, %125 : vector<1x2xf32>
    %128 = arith.addf %123, %127 : vector<1x2xf32>
    %129 = vector.extract_strided_slice %119 {offsets = [0, 2], sizes = [1, 1], strides = [1, 1]} : vector<1x8xf32> to vector<1x1xf32>
    %130 = vector.extract_strided_slice %4 {offsets = [2, 0], sizes = [1, 2], strides = [1, 1]} : vector<8x2xf32> to vector<1x2xf32>
    %131 = vector.broadcast %129 : vector<1x1xf32> to vector<1x2xf32>
    %132 = arith.mulf %131, %130 : vector<1x2xf32>
    %133 = arith.addf %128, %132 : vector<1x2xf32>
    %134 = vector.extract_strided_slice %119 {offsets = [0, 3], sizes = [1, 1], strides = [1, 1]} : vector<1x8xf32> to vector<1x1xf32>
    %135 = vector.extract_strided_slice %4 {offsets = [3, 0], sizes = [1, 2], strides = [1, 1]} : vector<8x2xf32> to vector<1x2xf32>
    %136 = vector.broadcast %134 : vector<1x1xf32> to vector<1x2xf32>
    %137 = arith.mulf %136, %135 : vector<1x2xf32>
    %138 = arith.addf %133, %137 : vector<1x2xf32>
    %139 = vector.extract_strided_slice %119 {offsets = [0, 4], sizes = [1, 1], strides = [1, 1]} : vector<1x8xf32> to vector<1x1xf32>
    %140 = vector.extract_strided_slice %4 {offsets = [4, 0], sizes = [1, 2], strides = [1, 1]} : vector<8x2xf32> to vector<1x2xf32>
    %141 = vector.broadcast %139 : vector<1x1xf32> to vector<1x2xf32>
    %142 = arith.mulf %141, %140 : vector<1x2xf32>
    %143 = arith.addf %138, %142 : vector<1x2xf32>
    %144 = vector.extract_strided_slice %119 {offsets = [0, 5], sizes = [1, 1], strides = [1, 1]} : vector<1x8xf32> to vector<1x1xf32>
    %145 = vector.extract_strided_slice %4 {offsets = [5, 0], sizes = [1, 2], strides = [1, 1]} : vector<8x2xf32> to vector<1x2xf32>
    %146 = vector.broadcast %144 : vector<1x1xf32> to vector<1x2xf32>
    %147 = arith.mulf %146, %145 : vector<1x2xf32>
    %148 = arith.addf %143, %147 : vector<1x2xf32>
    %149 = vector.extract_strided_slice %119 {offsets = [0, 6], sizes = [1, 1], strides = [1, 1]} : vector<1x8xf32> to vector<1x1xf32>
    %150 = vector.extract_strided_slice %4 {offsets = [6, 0], sizes = [1, 2], strides = [1, 1]} : vector<8x2xf32> to vector<1x2xf32>
    %151 = vector.broadcast %149 : vector<1x1xf32> to vector<1x2xf32>
    %152 = arith.mulf %151, %150 : vector<1x2xf32>
    %153 = arith.addf %148, %152 : vector<1x2xf32>
    %154 = vector.extract_strided_slice %119 {offsets = [0, 7], sizes = [1, 1], strides = [1, 1]} : vector<1x8xf32> to vector<1x1xf32>
    %155 = vector.extract_strided_slice %4 {offsets = [7, 0], sizes = [1, 2], strides = [1, 1]} : vector<8x2xf32> to vector<1x2xf32>
    %156 = vector.broadcast %154 : vector<1x1xf32> to vector<1x2xf32>
    %157 = arith.mulf %156, %155 : vector<1x2xf32>
    %158 = arith.addf %153, %157 : vector<1x2xf32>
    %cst_62 = arith.constant 5.000000e-01 : f32
    %159 = vector.broadcast %cst_62 : f32 to vector<1x2xf32>
    %160 = arith.mulf %159, %158 : vector<1x2xf32>
    %cst_63 = arith.constant 0.707106769 : f32
    %161 = vector.broadcast %cst_63 : f32 to vector<1x2xf32>
    %162 = arith.mulf %158, %161 : vector<1x2xf32>
    %cst_64 = arith.constant 0.000000e+00 : f32
    %163 = vector.broadcast %cst_64 : f32 to vector<1x2xf32>
    %164 = arith.cmpf olt, %162, %163 : vector<1x2xf32>
    %cst_65 = arith.constant -1.000000e+00 : f32
    %cst_66 = arith.constant 1.000000e+00 : f32
    %165 = vector.broadcast %cst_65 : f32 to vector<1x2xf32>
    %166 = vector.broadcast %cst_66 : f32 to vector<1x2xf32>
    %167 = arith.select %164, %165, %166 : vector<1x2xi1>, vector<1x2xf32>
    %168 = math.absf %162 : vector<1x2xf32>
    %cst_67 = arith.constant 0.327591091 : f32
    %169 = vector.broadcast %cst_67 : f32 to vector<1x2xf32>
    %170 = arith.mulf %169, %168 : vector<1x2xf32>
    %cst_68 = arith.constant 1.000000e+00 : f32
    %171 = vector.broadcast %cst_68 : f32 to vector<1x2xf32>
    %172 = arith.addf %171, %170 : vector<1x2xf32>
    %cst_69 = arith.constant 1.000000e+00 : f32
    %173 = vector.broadcast %cst_69 : f32 to vector<1x2xf32>
    %174 = arith.divf %173, %172 : vector<1x2xf32>
    %cst_70 = arith.constant 1.06140542 : f32
    %175 = vector.broadcast %cst_70 : f32 to vector<1x2xf32>
    %176 = arith.mulf %175, %174 : vector<1x2xf32>
    %cst_71 = arith.constant -1.45315206 : f32
    %177 = vector.broadcast %cst_71 : f32 to vector<1x2xf32>
    %178 = arith.addf %176, %177 : vector<1x2xf32>
    %179 = arith.mulf %178, %174 : vector<1x2xf32>
    %cst_72 = arith.constant 1.42141378 : f32
    %180 = vector.broadcast %cst_72 : f32 to vector<1x2xf32>
    %181 = arith.addf %179, %180 : vector<1x2xf32>
    %182 = arith.mulf %181, %174 : vector<1x2xf32>
    %cst_73 = arith.constant -0.284496725 : f32
    %183 = vector.broadcast %cst_73 : f32 to vector<1x2xf32>
    %184 = arith.addf %182, %183 : vector<1x2xf32>
    %185 = arith.mulf %184, %174 : vector<1x2xf32>
    %cst_74 = arith.constant 0.254829586 : f32
    %186 = vector.broadcast %cst_74 : f32 to vector<1x2xf32>
    %187 = arith.addf %185, %186 : vector<1x2xf32>
    %188 = arith.mulf %187, %174 : vector<1x2xf32>
    %cst_75 = arith.constant 0.000000e+00 : f32
    %189 = vector.broadcast %cst_75 : f32 to vector<1x2xf32>
    %190 = arith.subf %189, %168 : vector<1x2xf32>
    %191 = arith.mulf %190, %168 : vector<1x2xf32>
    %192 = math.exp %191 : vector<1x2xf32>
    %193 = arith.mulf %188, %192 : vector<1x2xf32>
    %cst_76 = arith.constant 1.000000e+00 : f32
    %194 = vector.broadcast %cst_76 : f32 to vector<1x2xf32>
    %195 = arith.subf %194, %193 : vector<1x2xf32>
    %196 = arith.mulf %167, %195 : vector<1x2xf32>
    %cst_77 = arith.constant 1.000000e+00 : f32
    %197 = vector.broadcast %cst_77 : f32 to vector<1x2xf32>
    %198 = arith.addf %197, %196 : vector<1x2xf32>
    %199 = arith.mulf %160, %198 : vector<1x2xf32>
    %200 = vector.extract_strided_slice %199 {offsets = [0, 0], sizes = [1, 1], strides = [1, 1]} : vector<1x2xf32> to vector<1x1xf32>
    %201 = vector.extract_strided_slice %5 {offsets = [0, 0], sizes = [1, 8], strides = [1, 1]} : vector<2x8xf32> to vector<1x8xf32>
    %202 = vector.broadcast %200 : vector<1x1xf32> to vector<1x8xf32>
    %203 = arith.mulf %202, %201 : vector<1x8xf32>
    %204 = vector.extract_strided_slice %199 {offsets = [0, 1], sizes = [1, 1], strides = [1, 1]} : vector<1x2xf32> to vector<1x1xf32>
    %205 = vector.extract_strided_slice %5 {offsets = [1, 0], sizes = [1, 8], strides = [1, 1]} : vector<2x8xf32> to vector<1x8xf32>
    %206 = vector.broadcast %204 : vector<1x1xf32> to vector<1x8xf32>
    %207 = arith.mulf %206, %205 : vector<1x8xf32>
    %208 = arith.addf %203, %207 : vector<1x8xf32>
    %cst_78 = arith.constant 0.000000e+00 : f32
    %209 = vector.broadcast %cst_78 : f32 to vector<1x8xf32>
    %210 = arith.subf %209, %208 : vector<1x8xf32>
    %211 = math.exp %210 : vector<1x8xf32>
    %cst_79 = arith.constant 1.000000e+00 : f32
    %212 = vector.broadcast %cst_79 : f32 to vector<1x8xf32>
    %213 = arith.addf %212, %211 : vector<1x8xf32>
    %cst_80 = arith.constant 1.000000e+00 : f32
    %214 = vector.broadcast %cst_80 : f32 to vector<1x8xf32>
    %215 = arith.divf %214, %213 : vector<1x8xf32>
    %216 = vector.broadcast %215 : vector<1x8xf32> to vector<256x8xf32>
    %217 = arith.mulf %115, %216 : vector<256x8xf32>
    %cst_81 = arith.constant dense<0.000000e+00> : vector<256x8xf32>
    %218 = tpu.matmul %217, %6, %cst_81 {dimension_numbers = #tpu.dot_dimension_numbers<[1], [0], [0], [1], [0, 0, 1, 1], [], []>} : vector<256x8xf32>, vector<8x8xf32>, vector<256x8xf32> -> vector<256x8xf32>
    %219 = arith.addf %2, %218 : vector<256x8xf32>
    %cst_82 = arith.constant 0xFF800000 : f32
    %220 = vector.broadcast %cst_82 : f32 to vector<18x18x8xf32>
    %c0_83 = arith.constant 0 : index
    %c0_84 = arith.constant 0 : index
    %c0_85 = arith.constant 0 : index
    %221 = vector.load %arg17[%c0_83, %c0_84, %c0_85] : memref<18x18x8xf32, #tpu.memory_space<vmem>>, vector<18x18x8xf32>
    tpu.vector_store %arg17[%c0_83, %c0_84, %c0_85], %220 {strides = array<i32>} : memref<18x18x8xf32, #tpu.memory_space<vmem>>, vector<18x18x8xf32>,
    %222 = vector.shape_cast %219 : vector<256x8xf32> to vector<16x16x8xf32>
    %c1_86 = arith.constant 1 : index
    %c1_87 = arith.constant 1 : index
    %c0_88 = arith.constant 0 : index
    %223 = vector.load %arg17[%c1_86, %c1_87, %c0_88] : memref<18x18x8xf32, #tpu.memory_space<vmem>>, vector<16x16x8xf32>
    tpu.vector_store %arg17[%c1_86, %c1_87, %c0_88], %222 {strides = array<i32>} : memref<18x18x8xf32, #tpu.memory_space<vmem>>, vector<16x16x8xf32>,
    %c0_89 = arith.constant 0 : index
    %c0_90 = arith.constant 0 : index
    %c0_91 = arith.constant 0 : index
    %224 = vector.load %arg17[%c0_89, %c0_90, %c0_91] : memref<18x18x8xf32, #tpu.memory_space<vmem>>, vector<16x18x8xf32>
    %225 = vector.shape_cast %224 : vector<16x18x8xf32> to vector<8x2x18x8xf32>
    %226 = vector.extract_strided_slice %225 {offsets = [0, 0, 0, 0], sizes = [8, 1, 18, 8], strides = [1, 1, 1, 1]} : vector<8x2x18x8xf32> to vector<8x1x18x8xf32>
    %227 = vector.shape_cast %226 : vector<8x1x18x8xf32> to vector<8x18x8xf32>
    %c1_92 = arith.constant 1 : index
    %c0_93 = arith.constant 0 : index
    %c0_94 = arith.constant 0 : index
    %228 = vector.load %arg17[%c1_92, %c0_93, %c0_94] : memref<18x18x8xf32, #tpu.memory_space<vmem>>, vector<16x18x8xf32>
    %229 = vector.shape_cast %228 : vector<16x18x8xf32> to vector<8x2x18x8xf32>
    %230 = vector.extract_strided_slice %229 {offsets = [0, 0, 0, 0], sizes = [8, 1, 18, 8], strides = [1, 1, 1, 1]} : vector<8x2x18x8xf32> to vector<8x1x18x8xf32>
    %231 = vector.shape_cast %230 : vector<8x1x18x8xf32> to vector<8x18x8xf32>
    %c2_95 = arith.constant 2 : index
    %c0_96 = arith.constant 0 : index
    %c0_97 = arith.constant 0 : index
    %232 = vector.load %arg17[%c2_95, %c0_96, %c0_97] : memref<18x18x8xf32, #tpu.memory_space<vmem>>, vector<16x18x8xf32>
    %233 = vector.shape_cast %232 : vector<16x18x8xf32> to vector<8x2x18x8xf32>
    %234 = vector.extract_strided_slice %233 {offsets = [0, 0, 0, 0], sizes = [8, 1, 18, 8], strides = [1, 1, 1, 1]} : vector<8x2x18x8xf32> to vector<8x1x18x8xf32>
    %235 = vector.shape_cast %234 : vector<8x1x18x8xf32> to vector<8x18x8xf32>
    %236 = arith.maximumf %227, %231 : vector<8x18x8xf32>
    %237 = arith.maximumf %236, %235 : vector<8x18x8xf32>
    %238 = vector.extract_strided_slice %237 {offsets = [0, 0, 0], sizes = [8, 16, 8], strides = [1, 1, 1]} : vector<8x18x8xf32> to vector<8x16x8xf32>
    %239 = vector.extract_strided_slice %237 {offsets = [0, 1, 0], sizes = [8, 16, 8], strides = [1, 1, 1]} : vector<8x18x8xf32> to vector<8x16x8xf32>
    %240 = arith.maximumf %238, %239 : vector<8x16x8xf32>
    %241 = vector.extract_strided_slice %237 {offsets = [0, 2, 0], sizes = [8, 16, 8], strides = [1, 1, 1]} : vector<8x18x8xf32> to vector<8x16x8xf32>
    %242 = arith.maximumf %240, %241 : vector<8x16x8xf32>
    %c0_98 = arith.constant 0 : index
    %c0_99 = arith.constant 0 : index
    %243 = vector.load %arg2[%c0_98, %c0_99] : memref<64x128xf32, #tpu.memory_space<vmem>>, vector<64x128xf32>
    %244 = vector.shape_cast %242 : vector<8x16x8xf32> to vector<128x8xf32>
    %cst_100 = arith.constant dense<0.000000e+00> : vector<64x8xf32>
    %245 = tpu.matmul %243, %244, %cst_100 {dimension_numbers = #tpu.dot_dimension_numbers<[1], [0], [0], [1], [0, 0, 1, 1], [], []>} : vector<64x128xf32>, vector<128x8xf32>, vector<64x8xf32> -> vector<64x8xf32>
    %c0_101 = arith.constant 0 : index
    %c0_102 = arith.constant 0 : index
    %246 = vector.load %arg8[%c0_101, %c0_102] : memref<8x4xf32, #tpu.memory_space<vmem>>, vector<8x4xf32>
    %cst_103 = arith.constant dense<0.000000e+00> : vector<64x4xf32>
    %247 = tpu.matmul %245, %246, %cst_103 {dimension_numbers = #tpu.dot_dimension_numbers<[1], [0], [0], [1], [0, 0, 1, 1], [], []>} : vector<64x8xf32>, vector<8x4xf32>, vector<64x4xf32> -> vector<64x4xf32>
    %c0_104 = arith.constant 0 : index
    %c0_105 = arith.constant 0 : index
    %248 = vector.load %arg9[%c0_104, %c0_105] : memref<1x4xf32, #tpu.memory_space<vmem>>, vector<1x4xf32>
    %249 = vector.broadcast %248 : vector<1x4xf32> to vector<64x4xf32>
    %250 = arith.addf %247, %249 : vector<64x4xf32>
    %251 = vector.shape_cast %250 : vector<64x4xf32> to vector<8x8x4xf32>
    %c0_106 = arith.constant 0 : index
    %c0_107 = arith.constant 0 : index
    %c0_108 = arith.constant 0 : index
    %252 = vector.load %arg10[%c0_106, %c0_107, %c0_108] : memref<3x3x4xf32, #tpu.memory_space<vmem>>, vector<3x3x4xf32>
    %c0_109 = arith.constant 0 : index
    %c0_110 = arith.constant 0 : index
    %253 = vector.load %arg11[%c0_109, %c0_110] : memref<4x1xf32, #tpu.memory_space<vmem>>, vector<4x1xf32>
    %c0_111 = arith.constant 0 : index
    %c0_112 = arith.constant 0 : index
    %254 = vector.load %arg12[%c0_111, %c0_112] : memref<1x4xf32, #tpu.memory_space<vmem>>, vector<1x4xf32>
    %c0_113 = arith.constant 0 : index
    %c0_114 = arith.constant 0 : index
    %255 = vector.load %arg13[%c0_113, %c0_114] : memref<4x4xf32, #tpu.memory_space<vmem>>, vector<4x4xf32>
    %cst_115 = arith.constant 0.000000e+00 : f32
    %256 = vector.broadcast %cst_115 : f32 to vector<10x10x4xf32>
    %c0_116 = arith.constant 0 : index
    %c0_117 = arith.constant 0 : index
    %c0_118 = arith.constant 0 : index
    %257 = vector.load %arg18[%c0_116, %c0_117, %c0_118] : memref<10x10x4xf32, #tpu.memory_space<vmem>>, vector<10x10x4xf32>
    tpu.vector_store %arg18[%c0_116, %c0_117, %c0_118], %256 {strides = array<i32>} : memref<10x10x4xf32, #tpu.memory_space<vmem>>, vector<10x10x4xf32>,
    %c1_119 = arith.constant 1 : index
    %c1_120 = arith.constant 1 : index
    %c0_121 = arith.constant 0 : index
    %258 = vector.load %arg18[%c1_119, %c1_120, %c0_121] : memref<10x10x4xf32, #tpu.memory_space<vmem>>, vector<8x8x4xf32>
    tpu.vector_store %arg18[%c1_119, %c1_120, %c0_121], %251 {strides = array<i32>} : memref<10x10x4xf32, #tpu.memory_space<vmem>>, vector<8x8x4xf32>,
    %cst_122 = arith.constant 0.000000e+00 : f32
    %259 = vector.broadcast %cst_122 : f32 to vector<8x8x4xf32>
    %c0_123 = arith.constant 0 : index
    %c0_124 = arith.constant 0 : index
    %c0_125 = arith.constant 0 : index
    %260 = vector.load %arg18[%c0_123, %c0_124, %c0_125] : memref<10x10x4xf32, #tpu.memory_space<vmem>>, vector<8x8x4xf32>
    %261 = vector.extract_strided_slice %252 {offsets = [0, 0, 0], sizes = [1, 1, 4], strides = [1, 1, 1]} : vector<3x3x4xf32> to vector<1x1x4xf32>
    %262 = vector.shape_cast %261 : vector<1x1x4xf32> to vector<4xf32>
    %263 = vector.shape_cast %262 : vector<4xf32> to vector<1x1x4xf32>
    %264 = vector.broadcast %263 : vector<1x1x4xf32> to vector<8x8x4xf32>
    %265 = arith.mulf %260, %264 : vector<8x8x4xf32>
    %266 = arith.addf %259, %265 : vector<8x8x4xf32>
    %c0_126 = arith.constant 0 : index
    %c1_127 = arith.constant 1 : index
    %c0_128 = arith.constant 0 : index
    %267 = vector.load %arg18[%c0_126, %c1_127, %c0_128] : memref<10x10x4xf32, #tpu.memory_space<vmem>>, vector<8x8x4xf32>
    %268 = vector.extract_strided_slice %252 {offsets = [0, 1, 0], sizes = [1, 1, 4], strides = [1, 1, 1]} : vector<3x3x4xf32> to vector<1x1x4xf32>
    %269 = vector.shape_cast %268 : vector<1x1x4xf32> to vector<4xf32>
    %270 = vector.shape_cast %269 : vector<4xf32> to vector<1x1x4xf32>
    %271 = vector.broadcast %270 : vector<1x1x4xf32> to vector<8x8x4xf32>
    %272 = arith.mulf %267, %271 : vector<8x8x4xf32>
    %273 = arith.addf %266, %272 : vector<8x8x4xf32>
    %c0_129 = arith.constant 0 : index
    %c2_130 = arith.constant 2 : index
    %c0_131 = arith.constant 0 : index
    %274 = vector.load %arg18[%c0_129, %c2_130, %c0_131] : memref<10x10x4xf32, #tpu.memory_space<vmem>>, vector<8x8x4xf32>
    %275 = vector.extract_strided_slice %252 {offsets = [0, 2, 0], sizes = [1, 1, 4], strides = [1, 1, 1]} : vector<3x3x4xf32> to vector<1x1x4xf32>
    %276 = vector.shape_cast %275 : vector<1x1x4xf32> to vector<4xf32>
    %277 = vector.shape_cast %276 : vector<4xf32> to vector<1x1x4xf32>
    %278 = vector.broadcast %277 : vector<1x1x4xf32> to vector<8x8x4xf32>
    %279 = arith.mulf %274, %278 : vector<8x8x4xf32>
    %280 = arith.addf %273, %279 : vector<8x8x4xf32>
    %c1_132 = arith.constant 1 : index
    %c0_133 = arith.constant 0 : index
    %c0_134 = arith.constant 0 : index
    %281 = vector.load %arg18[%c1_132, %c0_133, %c0_134] : memref<10x10x4xf32, #tpu.memory_space<vmem>>, vector<8x8x4xf32>
    %282 = vector.extract_strided_slice %252 {offsets = [1, 0, 0], sizes = [1, 1, 4], strides = [1, 1, 1]} : vector<3x3x4xf32> to vector<1x1x4xf32>
    %283 = vector.shape_cast %282 : vector<1x1x4xf32> to vector<4xf32>
    %284 = vector.shape_cast %283 : vector<4xf32> to vector<1x1x4xf32>
    %285 = vector.broadcast %284 : vector<1x1x4xf32> to vector<8x8x4xf32>
    %286 = arith.mulf %281, %285 : vector<8x8x4xf32>
    %287 = arith.addf %280, %286 : vector<8x8x4xf32>
    %c1_135 = arith.constant 1 : index
    %c1_136 = arith.constant 1 : index
    %c0_137 = arith.constant 0 : index
    %288 = vector.load %arg18[%c1_135, %c1_136, %c0_137] : memref<10x10x4xf32, #tpu.memory_space<vmem>>, vector<8x8x4xf32>
    %289 = vector.extract_strided_slice %252 {offsets = [1, 1, 0], sizes = [1, 1, 4], strides = [1, 1, 1]} : vector<3x3x4xf32> to vector<1x1x4xf32>
    %290 = vector.shape_cast %289 : vector<1x1x4xf32> to vector<4xf32>
    %291 = vector.shape_cast %290 : vector<4xf32> to vector<1x1x4xf32>
    %292 = vector.broadcast %291 : vector<1x1x4xf32> to vector<8x8x4xf32>
    %293 = arith.mulf %288, %292 : vector<8x8x4xf32>
    %294 = arith.addf %287, %293 : vector<8x8x4xf32>
    %c1_138 = arith.constant 1 : index
    %c2_139 = arith.constant 2 : index
    %c0_140 = arith.constant 0 : index
    %295 = vector.load %arg18[%c1_138, %c2_139, %c0_140] : memref<10x10x4xf32, #tpu.memory_space<vmem>>, vector<8x8x4xf32>
    %296 = vector.extract_strided_slice %252 {offsets = [1, 2, 0], sizes = [1, 1, 4], strides = [1, 1, 1]} : vector<3x3x4xf32> to vector<1x1x4xf32>
    %297 = vector.shape_cast %296 : vector<1x1x4xf32> to vector<4xf32>
    %298 = vector.shape_cast %297 : vector<4xf32> to vector<1x1x4xf32>
    %299 = vector.broadcast %298 : vector<1x1x4xf32> to vector<8x8x4xf32>
    %300 = arith.mulf %295, %299 : vector<8x8x4xf32>
    %301 = arith.addf %294, %300 : vector<8x8x4xf32>
    %c2_141 = arith.constant 2 : index
    %c0_142 = arith.constant 0 : index
    %c0_143 = arith.constant 0 : index
    %302 = vector.load %arg18[%c2_141, %c0_142, %c0_143] : memref<10x10x4xf32, #tpu.memory_space<vmem>>, vector<8x8x4xf32>
    %303 = vector.extract_strided_slice %252 {offsets = [2, 0, 0], sizes = [1, 1, 4], strides = [1, 1, 1]} : vector<3x3x4xf32> to vector<1x1x4xf32>
    %304 = vector.shape_cast %303 : vector<1x1x4xf32> to vector<4xf32>
    %305 = vector.shape_cast %304 : vector<4xf32> to vector<1x1x4xf32>
    %306 = vector.broadcast %305 : vector<1x1x4xf32> to vector<8x8x4xf32>
    %307 = arith.mulf %302, %306 : vector<8x8x4xf32>
    %308 = arith.addf %301, %307 : vector<8x8x4xf32>
    %c2_144 = arith.constant 2 : index
    %c1_145 = arith.constant 1 : index
    %c0_146 = arith.constant 0 : index
    %309 = vector.load %arg18[%c2_144, %c1_145, %c0_146] : memref<10x10x4xf32, #tpu.memory_space<vmem>>, vector<8x8x4xf32>
    %310 = vector.extract_strided_slice %252 {offsets = [2, 1, 0], sizes = [1, 1, 4], strides = [1, 1, 1]} : vector<3x3x4xf32> to vector<1x1x4xf32>
    %311 = vector.shape_cast %310 : vector<1x1x4xf32> to vector<4xf32>
    %312 = vector.shape_cast %311 : vector<4xf32> to vector<1x1x4xf32>
    %313 = vector.broadcast %312 : vector<1x1x4xf32> to vector<8x8x4xf32>
    %314 = arith.mulf %309, %313 : vector<8x8x4xf32>
    %315 = arith.addf %308, %314 : vector<8x8x4xf32>
    %c2_147 = arith.constant 2 : index
    %c2_148 = arith.constant 2 : index
    %c0_149 = arith.constant 0 : index
    %316 = vector.load %arg18[%c2_147, %c2_148, %c0_149] : memref<10x10x4xf32, #tpu.memory_space<vmem>>, vector<8x8x4xf32>
    %317 = vector.extract_strided_slice %252 {offsets = [2, 2, 0], sizes = [1, 1, 4], strides = [1, 1, 1]} : vector<3x3x4xf32> to vector<1x1x4xf32>
    %318 = vector.shape_cast %317 : vector<1x1x4xf32> to vector<4xf32>
    %319 = vector.shape_cast %318 : vector<4xf32> to vector<1x1x4xf32>
    %320 = vector.broadcast %319 : vector<1x1x4xf32> to vector<8x8x4xf32>
    %321 = arith.mulf %316, %320 : vector<8x8x4xf32>
    %322 = arith.addf %315, %321 : vector<8x8x4xf32>
    %cst_150 = arith.constant 5.000000e-01 : f32
    %323 = vector.broadcast %cst_150 : f32 to vector<8x8x4xf32>
    %324 = arith.mulf %323, %322 : vector<8x8x4xf32>
    %cst_151 = arith.constant 0.707106769 : f32
    %325 = vector.broadcast %cst_151 : f32 to vector<8x8x4xf32>
    %326 = arith.mulf %322, %325 : vector<8x8x4xf32>
    %cst_152 = arith.constant 0.000000e+00 : f32
    %327 = vector.broadcast %cst_152 : f32 to vector<8x8x4xf32>
    %328 = arith.cmpf olt, %326, %327 : vector<8x8x4xf32>
    %cst_153 = arith.constant -1.000000e+00 : f32
    %cst_154 = arith.constant 1.000000e+00 : f32
    %329 = vector.broadcast %cst_153 : f32 to vector<8x8x4xf32>
    %330 = vector.broadcast %cst_154 : f32 to vector<8x8x4xf32>
    %331 = arith.select %328, %329, %330 : vector<8x8x4xi1>, vector<8x8x4xf32>
    %332 = math.absf %326 : vector<8x8x4xf32>
    %cst_155 = arith.constant 0.327591091 : f32
    %333 = vector.broadcast %cst_155 : f32 to vector<8x8x4xf32>
    %334 = arith.mulf %333, %332 : vector<8x8x4xf32>
    %cst_156 = arith.constant 1.000000e+00 : f32
    %335 = vector.broadcast %cst_156 : f32 to vector<8x8x4xf32>
    %336 = arith.addf %335, %334 : vector<8x8x4xf32>
    %cst_157 = arith.constant 1.000000e+00 : f32
    %337 = vector.broadcast %cst_157 : f32 to vector<8x8x4xf32>
    %338 = arith.divf %337, %336 : vector<8x8x4xf32>
    %cst_158 = arith.constant 1.06140542 : f32
    %339 = vector.broadcast %cst_158 : f32 to vector<8x8x4xf32>
    %340 = arith.mulf %339, %338 : vector<8x8x4xf32>
    %cst_159 = arith.constant -1.45315206 : f32
    %341 = vector.broadcast %cst_159 : f32 to vector<8x8x4xf32>
    %342 = arith.addf %340, %341 : vector<8x8x4xf32>
    %343 = arith.mulf %342, %338 : vector<8x8x4xf32>
    %cst_160 = arith.constant 1.42141378 : f32
    %344 = vector.broadcast %cst_160 : f32 to vector<8x8x4xf32>
    %345 = arith.addf %343, %344 : vector<8x8x4xf32>
    %346 = arith.mulf %345, %338 : vector<8x8x4xf32>
    %cst_161 = arith.constant -0.284496725 : f32
    %347 = vector.broadcast %cst_161 : f32 to vector<8x8x4xf32>
    %348 = arith.addf %346, %347 : vector<8x8x4xf32>
    %349 = arith.mulf %348, %338 : vector<8x8x4xf32>
    %cst_162 = arith.constant 0.254829586 : f32
    %350 = vector.broadcast %cst_162 : f32 to vector<8x8x4xf32>
    %351 = arith.addf %349, %350 : vector<8x8x4xf32>
    %352 = arith.mulf %351, %338 : vector<8x8x4xf32>
    %cst_163 = arith.constant 0.000000e+00 : f32
    %353 = vector.broadcast %cst_163 : f32 to vector<8x8x4xf32>
    %354 = arith.subf %353, %332 : vector<8x8x4xf32>
    %355 = arith.mulf %354, %332 : vector<8x8x4xf32>
    %356 = math.exp %355 : vector<8x8x4xf32>
    %357 = arith.mulf %352, %356 : vector<8x8x4xf32>
    %cst_164 = arith.constant 1.000000e+00 : f32
    %358 = vector.broadcast %cst_164 : f32 to vector<8x8x4xf32>
    %359 = arith.subf %358, %357 : vector<8x8x4xf32>
    %360 = arith.mulf %331, %359 : vector<8x8x4xf32>
    %cst_165 = arith.constant 1.000000e+00 : f32
    %361 = vector.broadcast %cst_165 : f32 to vector<8x8x4xf32>
    %362 = arith.addf %361, %360 : vector<8x8x4xf32>
    %363 = arith.mulf %324, %362 : vector<8x8x4xf32>
    %364 = vector.shape_cast %363 : vector<8x8x4xf32> to vector<64x4xf32>
    %cst_166 = arith.constant dense<0.000000e+00> : vector<4xf32>
    %365 = vector.multi_reduction <add>, %364, %cst_166 [0] : vector<64x4xf32> to vector<4xf32>
    %366 = vector.shape_cast %365 : vector<4xf32> to vector<1x4xf32>
    %cst_167 = arith.constant 6.400000e+01 : f32
    %367 = vector.broadcast %cst_167 : f32 to vector<1x4xf32>
    %368 = arith.divf %366, %367 : vector<1x4xf32>
    %369 = vector.extract_strided_slice %368 {offsets = [0, 0], sizes = [1, 1], strides = [1, 1]} : vector<1x4xf32> to vector<1x1xf32>
    %370 = vector.extract_strided_slice %253 {offsets = [0, 0], sizes = [1, 1], strides = [1, 1]} : vector<4x1xf32> to vector<1x1xf32>
    %371 = arith.mulf %369, %370 : vector<1x1xf32>
    %372 = vector.extract_strided_slice %368 {offsets = [0, 1], sizes = [1, 1], strides = [1, 1]} : vector<1x4xf32> to vector<1x1xf32>
    %373 = vector.extract_strided_slice %253 {offsets = [1, 0], sizes = [1, 1], strides = [1, 1]} : vector<4x1xf32> to vector<1x1xf32>
    %374 = arith.mulf %372, %373 : vector<1x1xf32>
    %375 = arith.addf %371, %374 : vector<1x1xf32>
    %376 = vector.extract_strided_slice %368 {offsets = [0, 2], sizes = [1, 1], strides = [1, 1]} : vector<1x4xf32> to vector<1x1xf32>
    %377 = vector.extract_strided_slice %253 {offsets = [2, 0], sizes = [1, 1], strides = [1, 1]} : vector<4x1xf32> to vector<1x1xf32>
    %378 = arith.mulf %376, %377 : vector<1x1xf32>
    %379 = arith.addf %375, %378 : vector<1x1xf32>
    %380 = vector.extract_strided_slice %368 {offsets = [0, 3], sizes = [1, 1], strides = [1, 1]} : vector<1x4xf32> to vector<1x1xf32>
    %381 = vector.extract_strided_slice %253 {offsets = [3, 0], sizes = [1, 1], strides = [1, 1]} : vector<4x1xf32> to vector<1x1xf32>
    %382 = arith.mulf %380, %381 : vector<1x1xf32>
    %383 = arith.addf %379, %382 : vector<1x1xf32>
    %cst_168 = arith.constant 5.000000e-01 : f32
    %384 = vector.broadcast %cst_168 : f32 to vector<1x1xf32>
    %385 = arith.mulf %384, %383 : vector<1x1xf32>
    %cst_169 = arith.constant 0.707106769 : f32
    %386 = vector.broadcast %cst_169 : f32 to vector<1x1xf32>
    %387 = arith.mulf %383, %386 : vector<1x1xf32>
    %cst_170 = arith.constant 0.000000e+00 : f32
    %388 = vector.broadcast %cst_170 : f32 to vector<1x1xf32>
    %389 = arith.cmpf olt, %387, %388 : vector<1x1xf32>
    %cst_171 = arith.constant -1.000000e+00 : f32
    %cst_172 = arith.constant 1.000000e+00 : f32
    %390 = vector.broadcast %cst_171 : f32 to vector<1x1xf32>
    %391 = vector.broadcast %cst_172 : f32 to vector<1x1xf32>
    %392 = arith.select %389, %390, %391 : vector<1x1xi1>, vector<1x1xf32>
    %393 = math.absf %387 : vector<1x1xf32>
    %cst_173 = arith.constant 0.327591091 : f32
    %394 = vector.broadcast %cst_173 : f32 to vector<1x1xf32>
    %395 = arith.mulf %394, %393 : vector<1x1xf32>
    %cst_174 = arith.constant 1.000000e+00 : f32
    %396 = vector.broadcast %cst_174 : f32 to vector<1x1xf32>
    %397 = arith.addf %396, %395 : vector<1x1xf32>
    %cst_175 = arith.constant 1.000000e+00 : f32
    %398 = vector.broadcast %cst_175 : f32 to vector<1x1xf32>
    %399 = arith.divf %398, %397 : vector<1x1xf32>
    %cst_176 = arith.constant 1.06140542 : f32
    %400 = vector.broadcast %cst_176 : f32 to vector<1x1xf32>
    %401 = arith.mulf %400, %399 : vector<1x1xf32>
    %cst_177 = arith.constant -1.45315206 : f32
    %402 = vector.broadcast %cst_177 : f32 to vector<1x1xf32>
    %403 = arith.addf %401, %402 : vector<1x1xf32>
    %404 = arith.mulf %403, %399 : vector<1x1xf32>
    %cst_178 = arith.constant 1.42141378 : f32
    %405 = vector.broadcast %cst_178 : f32 to vector<1x1xf32>
    %406 = arith.addf %404, %405 : vector<1x1xf32>
    %407 = arith.mulf %406, %399 : vector<1x1xf32>
    %cst_179 = arith.constant -0.284496725 : f32
    %408 = vector.broadcast %cst_179 : f32 to vector<1x1xf32>
    %409 = arith.addf %407, %408 : vector<1x1xf32>
    %410 = arith.mulf %409, %399 : vector<1x1xf32>
    %cst_180 = arith.constant 0.254829586 : f32
    %411 = vector.broadcast %cst_180 : f32 to vector<1x1xf32>
    %412 = arith.addf %410, %411 : vector<1x1xf32>
    %413 = arith.mulf %412, %399 : vector<1x1xf32>
    %cst_181 = arith.constant 0.000000e+00 : f32
    %414 = vector.broadcast %cst_181 : f32 to vector<1x1xf32>
    %415 = arith.subf %414, %393 : vector<1x1xf32>
    %416 = arith.mulf %415, %393 : vector<1x1xf32>
    %417 = math.exp %416 : vector<1x1xf32>
    %418 = arith.mulf %413, %417 : vector<1x1xf32>
    %cst_182 = arith.constant 1.000000e+00 : f32
    %419 = vector.broadcast %cst_182 : f32 to vector<1x1xf32>
    %420 = arith.subf %419, %418 : vector<1x1xf32>
    %421 = arith.mulf %392, %420 : vector<1x1xf32>
    %cst_183 = arith.constant 1.000000e+00 : f32
    %422 = vector.broadcast %cst_183 : f32 to vector<1x1xf32>
    %423 = arith.addf %422, %421 : vector<1x1xf32>
    %424 = arith.mulf %385, %423 : vector<1x1xf32>
    %425 = vector.broadcast %424 : vector<1x1xf32> to vector<1x4xf32>
    %426 = arith.mulf %425, %254 : vector<1x4xf32>
    %cst_184 = arith.constant 0.000000e+00 : f32
    %427 = vector.broadcast %cst_184 : f32 to vector<1x4xf32>
    %428 = arith.subf %427, %426 : vector<1x4xf32>
    %429 = math.exp %428 : vector<1x4xf32>
    %cst_185 = arith.constant 1.000000e+00 : f32
    %430 = vector.broadcast %cst_185 : f32 to vector<1x4xf32>
    %431 = arith.addf %430, %429 : vector<1x4xf32>
    %cst_186 = arith.constant 1.000000e+00 : f32
    %432 = vector.broadcast %cst_186 : f32 to vector<1x4xf32>
    %433 = arith.divf %432, %431 : vector<1x4xf32>
    %434 = vector.broadcast %433 : vector<1x4xf32> to vector<64x4xf32>
    %435 = arith.mulf %364, %434 : vector<64x4xf32>
    %cst_187 = arith.constant dense<0.000000e+00> : vector<64x4xf32>
    %436 = tpu.matmul %435, %255, %cst_187 {dimension_numbers = #tpu.dot_dimension_numbers<[1], [0], [0], [1], [0, 0, 1, 1], [], []>} : vector<64x4xf32>, vector<4x4xf32>, vector<64x4xf32> -> vector<64x4xf32>
    %437 = arith.addf %250, %436 : vector<64x4xf32>
    %cst_188 = arith.constant 5.000000e-01 : f32
    %438 = vector.broadcast %cst_188 : f32 to vector<64x4xf32>
    %439 = arith.mulf %438, %437 : vector<64x4xf32>
    %cst_189 = arith.constant 0.707106769 : f32
    %440 = vector.broadcast %cst_189 : f32 to vector<64x4xf32>
    %441 = arith.mulf %437, %440 : vector<64x4xf32>
    %cst_190 = arith.constant 0.000000e+00 : f32
    %442 = vector.broadcast %cst_190 : f32 to vector<64x4xf32>
    %443 = arith.cmpf olt, %441, %442 : vector<64x4xf32>
    %cst_191 = arith.constant -1.000000e+00 : f32
    %cst_192 = arith.constant 1.000000e+00 : f32
    %444 = vector.broadcast %cst_191 : f32 to vector<64x4xf32>
    %445 = vector.broadcast %cst_192 : f32 to vector<64x4xf32>
    %446 = arith.select %443, %444, %445 : vector<64x4xi1>, vector<64x4xf32>
    %447 = math.absf %441 : vector<64x4xf32>
    %cst_193 = arith.constant 0.327591091 : f32
    %448 = vector.broadcast %cst_193 : f32 to vector<64x4xf32>
    %449 = arith.mulf %448, %447 : vector<64x4xf32>
    %cst_194 = arith.constant 1.000000e+00 : f32
    %450 = vector.broadcast %cst_194 : f32 to vector<64x4xf32>
    %451 = arith.addf %450, %449 : vector<64x4xf32>
    %cst_195 = arith.constant 1.000000e+00 : f32
    %452 = vector.broadcast %cst_195 : f32 to vector<64x4xf32>
    %453 = arith.divf %452, %451 : vector<64x4xf32>
    %cst_196 = arith.constant 1.06140542 : f32
    %454 = vector.broadcast %cst_196 : f32 to vector<64x4xf32>
    %455 = arith.mulf %454, %453 : vector<64x4xf32>
    %cst_197 = arith.constant -1.45315206 : f32
    %456 = vector.broadcast %cst_197 : f32 to vector<64x4xf32>
    %457 = arith.addf %455, %456 : vector<64x4xf32>
    %458 = arith.mulf %457, %453 : vector<64x4xf32>
    %cst_198 = arith.constant 1.42141378 : f32
    %459 = vector.broadcast %cst_198 : f32 to vector<64x4xf32>
    %460 = arith.addf %458, %459 : vector<64x4xf32>
    %461 = arith.mulf %460, %453 : vector<64x4xf32>
    %cst_199 = arith.constant -0.284496725 : f32
    %462 = vector.broadcast %cst_199 : f32 to vector<64x4xf32>
    %463 = arith.addf %461, %462 : vector<64x4xf32>
    %464 = arith.mulf %463, %453 : vector<64x4xf32>
    %cst_200 = arith.constant 0.254829586 : f32
    %465 = vector.broadcast %cst_200 : f32 to vector<64x4xf32>
    %466 = arith.addf %464, %465 : vector<64x4xf32>
    %467 = arith.mulf %466, %453 : vector<64x4xf32>
    %cst_201 = arith.constant 0.000000e+00 : f32
    %468 = vector.broadcast %cst_201 : f32 to vector<64x4xf32>
    %469 = arith.subf %468, %447 : vector<64x4xf32>
    %470 = arith.mulf %469, %447 : vector<64x4xf32>
    %471 = math.exp %470 : vector<64x4xf32>
    %472 = arith.mulf %467, %471 : vector<64x4xf32>
    %cst_202 = arith.constant 1.000000e+00 : f32
    %473 = vector.broadcast %cst_202 : f32 to vector<64x4xf32>
    %474 = arith.subf %473, %472 : vector<64x4xf32>
    %475 = arith.mulf %446, %474 : vector<64x4xf32>
    %cst_203 = arith.constant 1.000000e+00 : f32
    %476 = vector.broadcast %cst_203 : f32 to vector<64x4xf32>
    %477 = arith.addf %476, %475 : vector<64x4xf32>
    %478 = arith.mulf %439, %477 : vector<64x4xf32>
    %cst_204 = arith.constant 0.000000e+00 : f32
    %479 = vector.broadcast %cst_204 : f32 to vector<10x10x4xf32>
    %c0_205 = arith.constant 0 : index
    %c0_206 = arith.constant 0 : index
    %c0_207 = arith.constant 0 : index
    %480 = vector.load %arg18[%c0_205, %c0_206, %c0_207] : memref<10x10x4xf32, #tpu.memory_space<vmem>>, vector<10x10x4xf32>
    tpu.vector_store %arg18[%c0_205, %c0_206, %c0_207], %479 {strides = array<i32>} : memref<10x10x4xf32, #tpu.memory_space<vmem>>, vector<10x10x4xf32>,
    %481 = vector.shape_cast %478 : vector<64x4xf32> to vector<8x8x4xf32>
    %c1_208 = arith.constant 1 : index
    %c1_209 = arith.constant 1 : index
    %c0_210 = arith.constant 0 : index
    %482 = vector.load %arg18[%c1_208, %c1_209, %c0_210] : memref<10x10x4xf32, #tpu.memory_space<vmem>>, vector<8x8x4xf32>
    tpu.vector_store %arg18[%c1_208, %c1_209, %c0_210], %481 {strides = array<i32>} : memref<10x10x4xf32, #tpu.memory_space<vmem>>, vector<8x8x4xf32>,
    %c0_211 = arith.constant 0 : index
    %c0_212 = arith.constant 0 : index
    %c0_213 = arith.constant 0 : index
    %c0_214 = arith.constant 0 : index
    %483 = vector.load %arg14[%c0_211, %c0_212, %c0_213, %c0_214] : memref<3x3x4x1xf32, #tpu.memory_space<vmem>>, vector<3x3x4x1xf32>
    %cst_215 = arith.constant 0.000000e+00 : f32
    %484 = vector.broadcast %cst_215 : f32 to vector<32x1xf32>
    %c0_216 = arith.constant 0 : index
    %c0_217 = arith.constant 0 : index
    %c0_218 = arith.constant 0 : index
    %485 = vector.load %arg18[%c0_216, %c0_217, %c0_218] : memref<10x10x4xf32, #tpu.memory_space<vmem>>, vector<8x10x4xf32>
    %486 = vector.shape_cast %485 : vector<8x10x4xf32> to vector<4x2x10x4xf32>
    %487 = vector.extract_strided_slice %486 {offsets = [0, 0, 0, 0], sizes = [4, 1, 10, 4], strides = [1, 1, 1, 1]} : vector<4x2x10x4xf32> to vector<4x1x10x4xf32>
    %488 = vector.shape_cast %487 : vector<4x1x10x4xf32> to vector<4x10x4xf32>
    %489 = vector.extract_strided_slice %488 {offsets = [0, 0, 0], sizes = [4, 8, 4], strides = [1, 1, 1]} : vector<4x10x4xf32> to vector<4x8x4xf32>
    %490 = vector.shape_cast %489 : vector<4x8x4xf32> to vector<32x4xf32>
    %491 = vector.extract_strided_slice %483 {offsets = [0, 0, 0, 0], sizes = [1, 1, 4, 1], strides = [1, 1, 1, 1]} : vector<3x3x4x1xf32> to vector<1x1x4x1xf32>
    %492 = vector.shape_cast %491 : vector<1x1x4x1xf32> to vector<4x1xf32>
    %cst_219 = arith.constant dense<0.000000e+00> : vector<32x1xf32>
    %493 = tpu.matmul %490, %492, %cst_219 {dimension_numbers = #tpu.dot_dimension_numbers<[1], [0], [0], [1], [0, 0, 1, 1], [], []>} : vector<32x4xf32>, vector<4x1xf32>, vector<32x1xf32> -> vector<32x1xf32>
    %494 = arith.addf %484, %493 : vector<32x1xf32>
    %495 = vector.extract_strided_slice %488 {offsets = [0, 1, 0], sizes = [4, 8, 4], strides = [1, 1, 1]} : vector<4x10x4xf32> to vector<4x8x4xf32>
    %496 = vector.shape_cast %495 : vector<4x8x4xf32> to vector<32x4xf32>
    %497 = vector.extract_strided_slice %483 {offsets = [0, 1, 0, 0], sizes = [1, 1, 4, 1], strides = [1, 1, 1, 1]} : vector<3x3x4x1xf32> to vector<1x1x4x1xf32>
    %498 = vector.shape_cast %497 : vector<1x1x4x1xf32> to vector<4x1xf32>
    %cst_220 = arith.constant dense<0.000000e+00> : vector<32x1xf32>
    %499 = tpu.matmul %496, %498, %cst_220 {dimension_numbers = #tpu.dot_dimension_numbers<[1], [0], [0], [1], [0, 0, 1, 1], [], []>} : vector<32x4xf32>, vector<4x1xf32>, vector<32x1xf32> -> vector<32x1xf32>
    %500 = arith.addf %494, %499 : vector<32x1xf32>
    %501 = vector.extract_strided_slice %488 {offsets = [0, 2, 0], sizes = [4, 8, 4], strides = [1, 1, 1]} : vector<4x10x4xf32> to vector<4x8x4xf32>
    %502 = vector.shape_cast %501 : vector<4x8x4xf32> to vector<32x4xf32>
    %503 = vector.extract_strided_slice %483 {offsets = [0, 2, 0, 0], sizes = [1, 1, 4, 1], strides = [1, 1, 1, 1]} : vector<3x3x4x1xf32> to vector<1x1x4x1xf32>
    %504 = vector.shape_cast %503 : vector<1x1x4x1xf32> to vector<4x1xf32>
    %cst_221 = arith.constant dense<0.000000e+00> : vector<32x1xf32>
    %505 = tpu.matmul %502, %504, %cst_221 {dimension_numbers = #tpu.dot_dimension_numbers<[1], [0], [0], [1], [0, 0, 1, 1], [], []>} : vector<32x4xf32>, vector<4x1xf32>, vector<32x1xf32> -> vector<32x1xf32>
    %506 = arith.addf %500, %505 : vector<32x1xf32>
    %c1_222 = arith.constant 1 : index
    %c0_223 = arith.constant 0 : index
    %c0_224 = arith.constant 0 : index
    %507 = vector.load %arg18[%c1_222, %c0_223, %c0_224] : memref<10x10x4xf32, #tpu.memory_space<vmem>>, vector<8x10x4xf32>
    %508 = vector.shape_cast %507 : vector<8x10x4xf32> to vector<4x2x10x4xf32>
    %509 = vector.extract_strided_slice %508 {offsets = [0, 0, 0, 0], sizes = [4, 1, 10, 4], strides = [1, 1, 1, 1]} : vector<4x2x10x4xf32> to vector<4x1x10x4xf32>
    %510 = vector.shape_cast %509 : vector<4x1x10x4xf32> to vector<4x10x4xf32>
    %511 = vector.extract_strided_slice %510 {offsets = [0, 0, 0], sizes = [4, 8, 4], strides = [1, 1, 1]} : vector<4x10x4xf32> to vector<4x8x4xf32>
    %512 = vector.shape_cast %511 : vector<4x8x4xf32> to vector<32x4xf32>
    %513 = vector.extract_strided_slice %483 {offsets = [1, 0, 0, 0], sizes = [1, 1, 4, 1], strides = [1, 1, 1, 1]} : vector<3x3x4x1xf32> to vector<1x1x4x1xf32>
    %514 = vector.shape_cast %513 : vector<1x1x4x1xf32> to vector<4x1xf32>
    %cst_225 = arith.constant dense<0.000000e+00> : vector<32x1xf32>
    %515 = tpu.matmul %512, %514, %cst_225 {dimension_numbers = #tpu.dot_dimension_numbers<[1], [0], [0], [1], [0, 0, 1, 1], [], []>} : vector<32x4xf32>, vector<4x1xf32>, vector<32x1xf32> -> vector<32x1xf32>
    %516 = arith.addf %506, %515 : vector<32x1xf32>
    %517 = vector.extract_strided_slice %510 {offsets = [0, 1, 0], sizes = [4, 8, 4], strides = [1, 1, 1]} : vector<4x10x4xf32> to vector<4x8x4xf32>
    %518 = vector.shape_cast %517 : vector<4x8x4xf32> to vector<32x4xf32>
    %519 = vector.extract_strided_slice %483 {offsets = [1, 1, 0, 0], sizes = [1, 1, 4, 1], strides = [1, 1, 1, 1]} : vector<3x3x4x1xf32> to vector<1x1x4x1xf32>
    %520 = vector.shape_cast %519 : vector<1x1x4x1xf32> to vector<4x1xf32>
    %cst_226 = arith.constant dense<0.000000e+00> : vector<32x1xf32>
    %521 = tpu.matmul %518, %520, %cst_226 {dimension_numbers = #tpu.dot_dimension_numbers<[1], [0], [0], [1], [0, 0, 1, 1], [], []>} : vector<32x4xf32>, vector<4x1xf32>, vector<32x1xf32> -> vector<32x1xf32>
    %522 = arith.addf %516, %521 : vector<32x1xf32>
    %523 = vector.extract_strided_slice %510 {offsets = [0, 2, 0], sizes = [4, 8, 4], strides = [1, 1, 1]} : vector<4x10x4xf32> to vector<4x8x4xf32>
    %524 = vector.shape_cast %523 : vector<4x8x4xf32> to vector<32x4xf32>
    %525 = vector.extract_strided_slice %483 {offsets = [1, 2, 0, 0], sizes = [1, 1, 4, 1], strides = [1, 1, 1, 1]} : vector<3x3x4x1xf32> to vector<1x1x4x1xf32>
    %526 = vector.shape_cast %525 : vector<1x1x4x1xf32> to vector<4x1xf32>
    %cst_227 = arith.constant dense<0.000000e+00> : vector<32x1xf32>
    %527 = tpu.matmul %524, %526, %cst_227 {dimension_numbers = #tpu.dot_dimension_numbers<[1], [0], [0], [1], [0, 0, 1, 1], [], []>} : vector<32x4xf32>, vector<4x1xf32>, vector<32x1xf32> -> vector<32x1xf32>
    %528 = arith.addf %522, %527 : vector<32x1xf32>
    %c2_228 = arith.constant 2 : index
    %c0_229 = arith.constant 0 : index
    %c0_230 = arith.constant 0 : index
    %529 = vector.load %arg18[%c2_228, %c0_229, %c0_230] : memref<10x10x4xf32, #tpu.memory_space<vmem>>, vector<8x10x4xf32>
    %530 = vector.shape_cast %529 : vector<8x10x4xf32> to vector<4x2x10x4xf32>
    %531 = vector.extract_strided_slice %530 {offsets = [0, 0, 0, 0], sizes = [4, 1, 10, 4], strides = [1, 1, 1, 1]} : vector<4x2x10x4xf32> to vector<4x1x10x4xf32>
    %532 = vector.shape_cast %531 : vector<4x1x10x4xf32> to vector<4x10x4xf32>
    %533 = vector.extract_strided_slice %532 {offsets = [0, 0, 0], sizes = [4, 8, 4], strides = [1, 1, 1]} : vector<4x10x4xf32> to vector<4x8x4xf32>
    %534 = vector.shape_cast %533 : vector<4x8x4xf32> to vector<32x4xf32>
    %535 = vector.extract_strided_slice %483 {offsets = [2, 0, 0, 0], sizes = [1, 1, 4, 1], strides = [1, 1, 1, 1]} : vector<3x3x4x1xf32> to vector<1x1x4x1xf32>
    %536 = vector.shape_cast %535 : vector<1x1x4x1xf32> to vector<4x1xf32>
    %cst_231 = arith.constant dense<0.000000e+00> : vector<32x1xf32>
    %537 = tpu.matmul %534, %536, %cst_231 {dimension_numbers = #tpu.dot_dimension_numbers<[1], [0], [0], [1], [0, 0, 1, 1], [], []>} : vector<32x4xf32>, vector<4x1xf32>, vector<32x1xf32> -> vector<32x1xf32>
    %538 = arith.addf %528, %537 : vector<32x1xf32>
    %539 = vector.extract_strided_slice %532 {offsets = [0, 1, 0], sizes = [4, 8, 4], strides = [1, 1, 1]} : vector<4x10x4xf32> to vector<4x8x4xf32>
    %540 = vector.shape_cast %539 : vector<4x8x4xf32> to vector<32x4xf32>
    %541 = vector.extract_strided_slice %483 {offsets = [2, 1, 0, 0], sizes = [1, 1, 4, 1], strides = [1, 1, 1, 1]} : vector<3x3x4x1xf32> to vector<1x1x4x1xf32>
    %542 = vector.shape_cast %541 : vector<1x1x4x1xf32> to vector<4x1xf32>
    %cst_232 = arith.constant dense<0.000000e+00> : vector<32x1xf32>
    %543 = tpu.matmul %540, %542, %cst_232 {dimension_numbers = #tpu.dot_dimension_numbers<[1], [0], [0], [1], [0, 0, 1, 1], [], []>} : vector<32x4xf32>, vector<4x1xf32>, vector<32x1xf32> -> vector<32x1xf32>
    %544 = arith.addf %538, %543 : vector<32x1xf32>
    %545 = vector.extract_strided_slice %532 {offsets = [0, 2, 0], sizes = [4, 8, 4], strides = [1, 1, 1]} : vector<4x10x4xf32> to vector<4x8x4xf32>
    %546 = vector.shape_cast %545 : vector<4x8x4xf32> to vector<32x4xf32>
    %547 = vector.extract_strided_slice %483 {offsets = [2, 2, 0, 0], sizes = [1, 1, 4, 1], strides = [1, 1, 1, 1]} : vector<3x3x4x1xf32> to vector<1x1x4x1xf32>
    %548 = vector.shape_cast %547 : vector<1x1x4x1xf32> to vector<4x1xf32>
    %cst_233 = arith.constant dense<0.000000e+00> : vector<32x1xf32>
    %549 = tpu.matmul %546, %548, %cst_233 {dimension_numbers = #tpu.dot_dimension_numbers<[1], [0], [0], [1], [0, 0, 1, 1], [], []>} : vector<32x4xf32>, vector<4x1xf32>, vector<32x1xf32> -> vector<32x1xf32>
    %550 = arith.addf %544, %549 : vector<32x1xf32>
    %c0_234 = arith.constant 0 : index
    %c0_235 = arith.constant 0 : index
    %551 = vector.load %arg3[%c0_234, %c0_235] : memref<16x32xf32, #tpu.memory_space<vmem>>, vector<16x32xf32>
    %cst_236 = arith.constant dense<0.000000e+00> : vector<16x1xf32>
    %552 = tpu.matmul %551, %550, %cst_236 {dimension_numbers = #tpu.dot_dimension_numbers<[1], [0], [0], [1], [0, 0, 1, 1], [], []>} : vector<16x32xf32>, vector<32x1xf32>, vector<16x1xf32> -> vector<16x1xf32>
    %c0_237 = arith.constant 0 : index
    %553 = memref.load %arg15[%c0_237] : memref<1xf32, #tpu.memory_space<smem>>
    %554 = vector.broadcast %553 : f32 to vector<16x1xf32>
    %555 = arith.addf %552, %554 : vector<16x1xf32>
    %c0_238 = arith.constant 0 : index
    %c0_239 = arith.constant 0 : index
    %c0_240 = arith.constant 0 : index
    %556 = vector.load %arg16[%c0_238, %c0_239, %c0_240] : memref<1x16x1xf32, #tpu.memory_space<vmem>>, vector<1x16x1xf32>
    %557 = vector.shape_cast %556 : vector<1x16x1xf32> to vector<16x1xf32>
    %558 = vector.shape_cast %555 : vector<16x1xf32> to vector<1x16x1xf32>
    tpu.vector_store %arg16[%c0_238, %c0_239, %c0_240], %558 {strides = array<i32>} : memref<1x16x1xf32, #tpu.memory_space<vmem>>, vector<1x16x1xf32>,
    return
  }
  func.func @transform_0(%arg0: i32) -> (i32, i32, i32, i32) {
    %c0_i32 = arith.constant 0 : i32
    %c0_i32_0 = arith.constant 0 : i32
    %c0_i32_1 = arith.constant 0 : i32
    %c0_i32_2 = arith.constant 0 : i32
    return %arg0, %c0_i32, %c0_i32_0, %c0_i32_1 : i32, i32, i32, i32
  }
  func.func @transform_1(%arg0: i32) -> (i32, i32) {
    %c0_i32 = arith.constant 0 : i32
    %c0_i32_0 = arith.constant 0 : i32
    %c0_i32_1 = arith.constant 0 : i32
    return %c0_i32, %c0_i32_0 : i32, i32
  }
  func.func @transform_2(%arg0: i32) -> (i32, i32) {
    %c0_i32 = arith.constant 0 : i32
    %c0_i32_0 = arith.constant 0 : i32
    %c0_i32_1 = arith.constant 0 : i32
    return %c0_i32, %c0_i32_0 : i32, i32
  }
  func.func @transform_3(%arg0: i32) -> (i32, i32, i32) {
    %c0_i32 = arith.constant 0 : i32
    %c0_i32_0 = arith.constant 0 : i32
    %c0_i32_1 = arith.constant 0 : i32
    %c0_i32_2 = arith.constant 0 : i32
    return %c0_i32, %c0_i32_0, %c0_i32_1 : i32, i32, i32
  }
  func.func @transform_4(%arg0: i32) -> (i32, i32) {
    %c0_i32 = arith.constant 0 : i32
    %c0_i32_0 = arith.constant 0 : i32
    %c0_i32_1 = arith.constant 0 : i32
    return %c0_i32, %c0_i32_0 : i32, i32
  }
  func.func @transform_5(%arg0: i32) -> (i32, i32) {
    %c0_i32 = arith.constant 0 : i32
    %c0_i32_0 = arith.constant 0 : i32
    %c0_i32_1 = arith.constant 0 : i32
    return %c0_i32, %c0_i32_0 : i32, i32
  }
  func.func @transform_6(%arg0: i32) -> (i32, i32) {
    %c0_i32 = arith.constant 0 : i32
    %c0_i32_0 = arith.constant 0 : i32
    %c0_i32_1 = arith.constant 0 : i32
    return %c0_i32, %c0_i32_0 : i32, i32
  }
  func.func @transform_7(%arg0: i32) -> (i32, i32) {
    %c0_i32 = arith.constant 0 : i32
    %c0_i32_0 = arith.constant 0 : i32
    %c0_i32_1 = arith.constant 0 : i32
    return %c0_i32, %c0_i32_0 : i32, i32
  }
  func.func @transform_8(%arg0: i32) -> (i32, i32) {
    %c0_i32 = arith.constant 0 : i32
    %c0_i32_0 = arith.constant 0 : i32
    %c0_i32_1 = arith.constant 0 : i32
    return %c0_i32, %c0_i32_0 : i32, i32
  }
  func.func @transform_9(%arg0: i32) -> (i32, i32, i32) {
    %c0_i32 = arith.constant 0 : i32
    %c0_i32_0 = arith.constant 0 : i32
    %c0_i32_1 = arith.constant 0 : i32
    %c0_i32_2 = arith.constant 0 : i32
    return %c0_i32, %c0_i32_0, %c0_i32_1 : i32, i32, i32
  }
  func.func @transform_10(%arg0: i32) -> (i32, i32) {
    %c0_i32 = arith.constant 0 : i32
    %c0_i32_0 = arith.constant 0 : i32
    %c0_i32_1 = arith.constant 0 : i32
    return %c0_i32, %c0_i32_0 : i32, i32
  }
  func.func @transform_11(%arg0: i32) -> (i32, i32) {
    %c0_i32 = arith.constant 0 : i32
    %c0_i32_0 = arith.constant 0 : i32
    %c0_i32_1 = arith.constant 0 : i32
    return %c0_i32, %c0_i32_0 : i32, i32
  }
  func.func @transform_12(%arg0: i32) -> (i32, i32) {
    %c0_i32 = arith.constant 0 : i32
    %c0_i32_0 = arith.constant 0 : i32
    %c0_i32_1 = arith.constant 0 : i32
    return %c0_i32, %c0_i32_0 : i32, i32
  }
  func.func @transform_13(%arg0: i32) -> (i32, i32, i32, i32) {
    %c0_i32 = arith.constant 0 : i32
    %c0_i32_0 = arith.constant 0 : i32
    %c0_i32_1 = arith.constant 0 : i32
    %c0_i32_2 = arith.constant 0 : i32
    %c0_i32_3 = arith.constant 0 : i32
    return %c0_i32, %c0_i32_0, %c0_i32_1, %c0_i32_2 : i32, i32, i32, i32
  }
  func.func @transform_14(%arg0: i32) -> i32 {
    %c0_i32 = arith.constant 0 : i32
    %c0_i32_0 = arith.constant 0 : i32
    return %c0_i32 : i32
  }
  func.func @transform_15(%arg0: i32) -> (i32, i32, i32) {
    %c0_i32 = arith.constant 0 : i32
    %c0_i32_0 = arith.constant 0 : i32
    %c0_i32_1 = arith.constant 0 : i32
    return %arg0, %c0_i32, %c0_i32_0 : i32, i32, i32
  }
}

</mosaic_0001>

<bundles_post_ra>
// kernel: pred_module_forward.1
= control target key start
LH: loop header
LB: loop body
LE: loop exit
PB: predicated region body
PF: predicated region fallthrough
CT: control target
= control target key end

     0   :  { %s6621_s20 = smov 0   ;;  %s10831_s0 = inlined_call_operand.vmem [shape: f32[2,16,16,8], index: 0, kind: input, shape index: {}]   ;;  %s10832_s1 = inlined_call_operand.vmem [shape: f32[64,128], index: 1, kind: input, shape index: {}]   ;;  %s10833_s2 = inlined_call_operand.vmem [shape: f32[16,32], index: 2, kind: input, shape index: {}]   ;;  %s10834_s3 = inlined_call_operand.vmem [shape: f32[3,3,8], index: 3, kind: input, shape index: {}]   ;;  %s10835_s4 = inlined_call_operand.vmem [shape: f32[8,2], index: 4, kind: input, shape index: {}]   ;;  %s10836_s5 = inlined_call_operand.vmem [shape: f32[2,8], index: 5, kind: input, shape index: {}]   ;;  %s10837_s6 = inlined_call_operand.vmem [shape: f32[8,8], index: 6, kind: input, shape index: {}]   ;;  %s10838_s7 = inlined_call_operand.vmem [shape: f32[8,4], index: 7, kind: input, shape index: {}]   ;;  %s10839_s8 = inlined_call_operand.vmem [shape: f32[1,4], index: 8, kind: input, shape index: {}]   ;;  %s10840_s9 = inlined_call_operand.vmem [shape: f32[3,3,4], index: 9, kind: input, shape index: {}]   ;;  %s10841_s10 = inlined_call_operand.vmem [shape: f32[4,1], index: 10, kind: input, shape index: {}]   ;;  %s10842_s11 = inlined_call_operand.vmem [shape: f32[1,4], index: 11, kind: input, shape index: {}]   ;;  %s10843_s12 = inlined_call_operand.vmem [shape: f32[4,4], index: 12, kind: input, shape index: {}]   ;;  %s10844_s13 = inlined_call_operand.vmem [shape: f32[3,3,4,1], index: 13, kind: input, shape index: {}]   ;;  %s10845_s14 = inlined_call_operand.<no memory space> [shape: f32[1], index: 14, kind: input, shape index: {}]   ;;  %s10846_s15 = inlined_call_operand.vmem [shape: f32[2,16,1], index: 15, kind: output, shape index: {}]  }
   0x1   :  { %20 = sst [smem:[#allocation4]] %s10845_s14 }
   0x2 LB: > { %s5753_s21 = sadd.s32 4294967295, %s6519_s20   ;;  %p5757_p0 = scmp.ge.s32.totalorder %s6519_s20, 1  ;;  %s6519_s20 = sphi %s6621_s20, %s26_s20  }
   0x3   : > { %p438_p1 = scmp.lt.s32.totalorder %s6519_s20, 3 }
   0x5   : > { %p439_p2 = pnand %p5757_p0, %p438_p1 }
   0x7   : > { %442 = sbr.rel (%p439_p2) target bundleno = 2873 (0xb39), region = 80 }
   0xe   : > { %p486_p3 = scmp.lt.s32.totalorder %s5753_s21, 1  ;;  %vm10981_vm0 = vcmask 64512   ;;  %v6521_v0 = vmov 2   ;;  %v10849_v1 = vmov 1   ;;  %vm10980_vm1 = vcmask 58368   ;;  %s6532_s29 = smov 1  }
   0xf   : > { %6295 = vset.pattern.permute.xlu1 %v6521_v0  ;;  %6293 = vset.pattern.permute.xlu0 %v10849_v1  ;;  %v10847_v2 = vmov 0.0   ;;  %v655_v35 = vlaneseq  ;;  %v528_v38 = vld [vmem:[%s10834_s3] sm:$0x7]  ;;  %v529_v39 = vld [vmem:[%s10834_s3 + $0x4] sm:$0x7]  ;;  %s6533_s30 = smov 2  }
  0x10   : > { %s12029_s21 = smov (!%p486_p3, %s5753_s21), 1  ;;  %535 = vst.msk [vmem:[#allocation2] sm:$0xff] %vm10981_vm0, %v10847_v2  ;;  %536 = vst.msk [vmem:[#allocation2 + $0x8] sm:$0xff] %vm10981_vm0, %v10847_v2  ;;  %v530_v42 = vld [vmem:[%s10834_s3 + $0x8] sm:$0x7]  ;;  %s6534_s16 = smov 3  }
  0x11   : > { %538 = vst.msk [vmem:[#allocation2 + $0x10] sm:$0x3] %vm10980_vm1, %v10847_v2  ;;  %541 = vst.msk [vmem:[#allocation2 + $0x28] sm:$0x3] %vm10980_vm1, %v10847_v2  ;;  %s5861_s14 = sshll.u32 %s12029_s21, 8  ;;  %v656_v36 = vshrl.u32 %v655_v35, 7 }
  0x12   : > { %539 = vst.msk [vmem:[#allocation2 + $0x18] sm:$0xff] %vm10981_vm0, %v10847_v2  ;;  %540 = vst.msk [vmem:[#allocation2 + $0x20] sm:$0xff] %vm10981_vm0, %v10847_v2  ;;  %s6744_s24 = scalar_lea.vmem %s10831_s0, %s5861_s14  ;;  %s6535_s26 = smov 127  }
  0x13   : > { %542 = vst.msk [vmem:[#allocation2 + $0x30] sm:$0xff] %vm10981_vm0, %v10847_v2  ;;  %543 = vst.msk [vmem:[#allocation2 + $0x38] sm:$0xff] %vm10981_vm0, %v10847_v2  ;;  %v6747_v3 = vld [vmem:[%s6744_s24] sm:$0xff]  ;;  %v6750_v4 = vld [vmem:[%s6744_s24 + $0x8] sm:$0xff]  ;;  %v6906_v37 = vsub.s32 0, %v656_v36  ;;  %v6914_v40 = vsub.s32 1, %v656_v36 }
  0x14   : > { %544 = vst.msk [vmem:[#allocation2 + $0x40] sm:$0x3] %vm10980_vm1, %v10847_v2  ;;  %547 = vst.msk [vmem:[#allocation2 + $0x58] sm:$0x3] %vm10980_vm1, %v10847_v2  ;;  %v6753_v5 = vld [vmem:[%s6744_s24 + $0x10] sm:$0xff]  ;;  %v6756_v6 = vld [vmem:[%s6744_s24 + $0x18] sm:$0xff] }
  0x15   : > { %545 = vst.msk [vmem:[#allocation2 + $0x48] sm:$0xff] %vm10981_vm0, %v10847_v2  ;;  %546 = vst.msk [vmem:[#allocation2 + $0x50] sm:$0xff] %vm10981_vm0, %v10847_v2  ;;  %v6759_v7 = vld [vmem:[%s6744_s24 + $0x20] sm:$0xff]  ;;  %v6762_v8 = vld [vmem:[%s6744_s24 + $0x28] sm:$0xff]  ;;  %v6916_v41 = vsub.s32 2, %v656_v36  ;;  %v6922_v43 = vrot.slane %v528_v38, %v6906_v37  ;;  %v6925_v47 = vrot.slane %v529_v39, %v6906_v37  ;;  %v6928_v51 = vrot.slane %v528_v38, %v6914_v40  ;;  %s6536_s27 = smov 126  }
  0x16   : > { %548 = vst.msk [vmem:[#allocation2 + $0x60] sm:$0xff] %vm10981_vm0, %v10847_v2  ;;  %549 = vst.msk [vmem:[#allocation2 + $0x68] sm:$0xff] %vm10981_vm0, %v10847_v2  ;;  %v6771_v9 = vld [vmem:[%s6744_s24 + $0x30] sm:$0xff]  ;;  %v6774_v10 = vld [vmem:[%s6744_s24 + $0x38] sm:$0xff]  ;;  %v6934_v56 = vrot.slane %v529_v39, %v6914_v40  ;;  %v6940_v58 = vrot.slane %v530_v42, %v6906_v37  ;;  %v6943_v59 = vrot.slane %v530_v42, %v6914_v40  ;;  %s6537_s28 = smov 125  }
  0x17   : > { %550 = vst.msk [vmem:[#allocation2 + $0x70] sm:$0x3] %vm10980_vm1, %v10847_v2  ;;  %553 = vst.msk [vmem:[#allocation2 + $0x88] sm:$0x3] %vm10980_vm1, %v10847_v2  ;;  %v6777_v11 = vld [vmem:[%s6744_s24 + $0x40] sm:$0xff]  ;;  %v6786_v12 = vld [vmem:[%s6744_s24 + $0x48] sm:$0xff]  ;;  %v6931_v52 = vrot.slane %v528_v38, %v6916_v41  ;;  %v6937_v57 = vrot.slane %v529_v39, %v6916_v41  ;;  %v6959_v36 = vrot.slane %v530_v42, %v6916_v41 }
  0x18   : > { %551 = vst.msk [vmem:[#allocation2 + $0x78] sm:$0xff] %vm10981_vm0, %v10847_v2  ;;  %552 = vst.msk [vmem:[#allocation2 + $0x80] sm:$0xff] %vm10981_vm0, %v10847_v2  ;;  %v6789_v13 = vld [vmem:[%s6744_s24 + $0x50] sm:$0xff]  ;;  %v6792_v14 = vld [vmem:[%s6744_s24 + $0x58] sm:$0xff] }
  0x19   : > { %554 = vst.msk [vmem:[#allocation2 + $0x90] sm:$0xff] %vm10981_vm0, %v10847_v2  ;;  %555 = vst.msk [vmem:[#allocation2 + $0x98] sm:$0xff] %vm10981_vm0, %v10847_v2  ;;  %v6801_v15 = vld [vmem:[%s6744_s24 + $0x60] sm:$0xff]  ;;  %v6804_v16 = vld [vmem:[%s6744_s24 + $0x68] sm:$0xff] }
  0x1a   : > { %556 = vst.msk [vmem:[#allocation2 + $0xa0] sm:$0x3] %vm10980_vm1, %v10847_v2  ;;  %559 = vst.msk [vmem:[#allocation2 + $0xb8] sm:$0x3] %vm10980_vm1, %v10847_v2  ;;  %v6807_v17 = vld [vmem:[%s6744_s24 + $0x70] sm:$0xff]  ;;  %v6816_v18 = vld [vmem:[%s6744_s24 + $0x78] sm:$0xff] }
  0x1b   : > { %557 = vst.msk [vmem:[#allocation2 + $0xa8] sm:$0xff] %vm10981_vm0, %v10847_v2  ;;  %558 = vst.msk [vmem:[#allocation2 + $0xb0] sm:$0xff] %vm10981_vm0, %v10847_v2  ;;  %v6819_v19 = vld [vmem:[%s6744_s24 + $0x80] sm:$0xff]  ;;  %v6822_v20 = vld [vmem:[%s6744_s24 + $0x88] sm:$0xff] }
  0x1c   : > { %560 = vst.msk [vmem:[#allocation2 + $0xc0] sm:$0xff] %vm10981_vm0, %v10847_v2  ;;  %561 = vst.msk [vmem:[#allocation2 + $0xc8] sm:$0xff] %vm10981_vm0, %v10847_v2  ;;  %v6831_v21 = vld [vmem:[%s6744_s24 + $0x90] sm:$0xff]  ;;  %v6834_v22 = vld [vmem:[%s6744_s24 + $0x98] sm:$0xff] }
  0x1d   : > { %562 = vst.msk [vmem:[#allocation2 + $0xd0] sm:$0x3] %vm10980_vm1, %v10847_v2  ;;  %565 = vst.msk [vmem:[#allocation2 + $0xe8] sm:$0x3] %vm10980_vm1, %v10847_v2  ;;  %v6837_v23 = vld [vmem:[%s6744_s24 + $0xa0] sm:$0xff]  ;;  %v6846_v24 = vld [vmem:[%s6744_s24 + $0xa8] sm:$0xff] }
  0x1e   : > { %563 = vst.msk [vmem:[#allocation2 + $0xd8] sm:$0xff] %vm10981_vm0, %v10847_v2  ;;  %564 = vst.msk [vmem:[#allocation2 + $0xe0] sm:$0xff] %vm10981_vm0, %v10847_v2  ;;  %v6849_v25 = vld [vmem:[%s6744_s24 + $0xb0] sm:$0xff]  ;;  %v6852_v26 = vld [vmem:[%s6744_s24 + $0xb8] sm:$0xff] }
  0x1f   : > { %566 = vst.msk [vmem:[#allocation2 + $0xf0] sm:$0xff] %vm10981_vm0, %v10847_v2  ;;  %567 = vst.msk [vmem:[#allocation2 + $0xf8] sm:$0xff] %vm10981_vm0, %v10847_v2  ;;  %v6861_v27 = vld [vmem:[%s6744_s24 + $0xc0] sm:$0xff]  ;;  %v6864_v28 = vld [vmem:[%s6744_s24 + $0xc8] sm:$0xff] }
  0x20   : > { %568 = vst.msk [vmem:[#allocation2 + $0x100] sm:$0x3] %vm10980_vm1, %v10847_v2  ;;  %571 = vst.msk [vmem:[#allocation2 + $0x118] sm:$0x3] %vm10980_vm1, %v10847_v2  ;;  %v6867_v29 = vld [vmem:[%s6744_s24 + $0xd0] sm:$0xff]  ;;  %v6876_v30 = vld [vmem:[%s6744_s24 + $0xd8] sm:$0xff] }
  0x21   : > { %569 = vst.msk [vmem:[#allocation2 + $0x108] sm:$0xff] %vm10981_vm0, %v10847_v2  ;;  %570 = vst.msk [vmem:[#allocation2 + $0x110] sm:$0xff] %vm10981_vm0, %v10847_v2  ;;  %v6879_v31 = vld [vmem:[%s6744_s24 + $0xe0] sm:$0xff]  ;;  %v6882_v32 = vld [vmem:[%s6744_s24 + $0xe8] sm:$0xff] }
  0x22   : > { %572 = vst.msk [vmem:[#allocation2 + $0x120] sm:$0xff] %vm10981_vm0, %v10847_v2  ;;  %573 = vst.msk [vmem:[#allocation2 + $0x128] sm:$0xff] %vm10981_vm0, %v10847_v2  ;;  %v6891_v33 = vld [vmem:[%s6744_s24 + $0xf0] sm:$0xff]  ;;  %v6894_v34 = vld [vmem:[%s6744_s24 + $0xf8] sm:$0xff] }
  0x23   : > { %574 = vst.msk [vmem:[#allocation2 + $0x130] sm:$0x3] %vm10980_vm1, %v10847_v2  ;;  %577 = vst.msk [vmem:[#allocation2 + $0x148] sm:$0x3] %vm10980_vm1, %v10847_v2  ;;  %v623_v44 = vld [vmem:[#allocation2] sm:$0xff]  ;;  %v624_v45 = vld [vmem:[#allocation2 + $0x8] sm:$0xff] }
  0x24   : > { %575 = vst.msk [vmem:[#allocation2 + $0x138] sm:$0xff] %vm10981_vm0, %v10847_v2  ;;  %576 = vst.msk [vmem:[#allocation2 + $0x140] sm:$0xff] %vm10981_vm0, %v10847_v2  ;;  %v6950_v63 = vmul.f32 %v6922_v43, %v623_v44  ;;  %v6953_v0 = vmul.f32 %v6922_v43, %v624_v45 }
  0x25   : > { %578 = vst.msk [vmem:[#allocation2 + $0x150] sm:$0xff] %vm10981_vm0, %v10847_v2  ;;  %579 = vst.msk [vmem:[#allocation2 + $0x158] sm:$0xff] %vm10981_vm0, %v10847_v2 }
  0x26   : > { %580 = vst.msk [vmem:[#allocation2 + $0x160] sm:$0x3] %vm10980_vm1, %v10847_v2  ;;  %583 = vst.msk [vmem:[#allocation2 + $0x178] sm:$0x3] %vm10980_vm1, %v10847_v2 }
  0x27   : > { %581 = vst.msk [vmem:[#allocation2 + $0x168] sm:$0xff] %vm10981_vm0, %v10847_v2  ;;  %582 = vst.msk [vmem:[#allocation2 + $0x170] sm:$0xff] %vm10981_vm0, %v10847_v2 }
  0x28   : > { %584 = vst.msk [vmem:[#allocation2 + $0x180] sm:$0xff] %vm10981_vm0, %v10847_v2  ;;  %585 = vst.msk [vmem:[#allocation2 + $0x188] sm:$0xff] %vm10981_vm0, %v10847_v2 }
  0x29   : > { %586 = vst.msk [vmem:[#allocation2 + $0x190] sm:$0x3] %vm10980_vm1, %v10847_v2  ;;  %589 = vst.msk [vmem:[#allocation2 + $0x1a8] sm:$0x3] %vm10980_vm1, %v10847_v2 }
  0x2a   : > { %587 = vst.msk [vmem:[#allocation2 + $0x198] sm:$0xff] %vm10981_vm0, %v10847_v2  ;;  %588 = vst.msk [vmem:[#allocation2 + $0x1a0] sm:$0xff] %vm10981_vm0, %v10847_v2 }
  0x2b   : > { %11116 = vst [vmem:[#allocation5_spill] sm:$0xff] %v6747_v3  ;;  %11117 = vst [vmem:[#allocation6_spill] sm:$0xff] %v6750_v4 }
  0x2c   : > { %11118 = vst [vmem:[#allocation7_spill] sm:$0xff] %v6753_v5  ;;  %11119 = vst [vmem:[#allocation8_spill] sm:$0xff] %v6756_v6 }
  0x2d   : > { %11120 = vst [vmem:[#allocation9_spill] sm:$0xff] %v6759_v7  ;;  %11121 = vst [vmem:[#allocation10_spill] sm:$0xff] %v6762_v8 }
  0x2e   : > { %591 = vst.msk [vmem:[#allocation2 + $0x19] sm:$0xff] %vm10981_vm0, %v6747_v3  ;;  %592 = vst.msk [vmem:[#allocation2 + $0x21] sm:$0xff] %vm10981_vm0, %v6750_v4 }
  0x2f   : > { %593 = vst.msk [vmem:[#allocation2 + $0x31] sm:$0xff] %vm10981_vm0, %v6753_v5  ;;  %11122 = vst [vmem:[#allocation11_spill] sm:$0xff] %v6771_v9 }
  0x30   : > { %11123 = vst [vmem:[#allocation12_spill] sm:$0xff] %v6774_v10  ;;  %11124 = vst [vmem:[#allocation13_spill] sm:$0xff] %v6777_v11 }
  0x31   : > { %594 = vst.msk [vmem:[#allocation2 + $0x39] sm:$0xff] %vm10981_vm0, %v6756_v6  ;;  %595 = vst.msk [vmem:[#allocation2 + $0x49] sm:$0xff] %vm10981_vm0, %v6759_v7  ;;  %v723_v6 = vld [vmem:[#allocation2 + $0x1] sm:$0xff] }
  0x32   : > { %596 = vst.msk [vmem:[#allocation2 + $0x51] sm:$0xff] %vm10981_vm0, %v6762_v8  ;;  %11125 = vst [vmem:[#allocation14_spill] sm:$0xff] %v6786_v12 }
  0x33   : > { %11126 = vst [vmem:[#allocation15_spill] sm:$0xff] %v6789_v13  ;;  %11127 = vst [vmem:[#allocation16_spill] sm:$0xff] %v6792_v14 }
  0x34   : > { %597 = vst.msk [vmem:[#allocation2 + $0x61] sm:$0xff] %vm10981_vm0, %v6771_v9  ;;  %598 = vst.msk [vmem:[#allocation2 + $0x69] sm:$0xff] %vm10981_vm0, %v6774_v10 }
  0x35   : > { %599 = vst.msk [vmem:[#allocation2 + $0x79] sm:$0xff] %vm10981_vm0, %v6777_v11  ;;  %11128 = vst [vmem:[#allocation17_spill] sm:$0xff] %v6801_v15  ;;  %v625_v46 = vld [vmem:[#allocation2 + $0x18] sm:$0xff]  ;;  %v626_v48 = vld [vmem:[#allocation2 + $0x20] sm:$0xff] }
  0x36   : > { %11129 = vst [vmem:[#allocation18_spill] sm:$0xff] %v6804_v16  ;;  %11130 = vst [vmem:[#allocation19_spill] sm:$0xff] %v6807_v17  ;;  %v627_v49 = vld [vmem:[#allocation2 + $0x30] sm:$0xff]  ;;  %v6956_v35 = vmul.f32 %v6922_v43, %v625_v46  ;;  %v6968_v1 = vmul.f32 %v6922_v43, %v626_v48 }
  0x37   : > { %600 = vst.msk [vmem:[#allocation2 + $0x81] sm:$0xff] %vm10981_vm0, %v6786_v12  ;;  %601 = vst.msk [vmem:[#allocation2 + $0x91] sm:$0xff] %vm10981_vm0, %v6789_v13  ;;  %v6971_v44 = vmul.f32 %v6922_v43, %v627_v49 }
  0x38   : > { %602 = vst.msk [vmem:[#allocation2 + $0x99] sm:$0xff] %vm10981_vm0, %v6792_v14  ;;  %11131 = vst [vmem:[#allocation20_spill] sm:$0xff] %v6816_v18  ;;  %v628_v50 = vld [vmem:[#allocation2 + $0x38] sm:$0xff]  ;;  %v629_v53 = vld [vmem:[#allocation2 + $0x48] sm:$0xff] }
  0x39   : > { %11132 = vst [vmem:[#allocation21_spill] sm:$0xff] %v6819_v19  ;;  %11133 = vst [vmem:[#allocation22_spill] sm:$0xff] %v6822_v20  ;;  %v630_v54 = vld [vmem:[#allocation2 + $0x50] sm:$0xff]  ;;  %v6974_v45 = vmul.f32 %v6922_v43, %v628_v50 }
  0x3a   : > { %603 = vst.msk [vmem:[#allocation2 + $0xa9] sm:$0xff] %vm10981_vm0, %v6801_v15  ;;  %604 = vst.msk [vmem:[#allocation2 + $0xb1] sm:$0xff] %vm10981_vm0, %v6804_v16 }
  0x3b   : > { %605 = vst.msk [vmem:[#allocation2 + $0xc1] sm:$0xff] %vm10981_vm0, %v6807_v17  ;;  %11134 = vst [vmem:[#allocation23_spill] sm:$0xff] %v6831_v21  ;;  %v631_v55 = vld [vmem:[#allocation2 + $0x60] sm:$0xff]  ;;  %v632_v60 = vld [vmem:[#allocation2 + $0x68] sm:$0xff] }
  0x3c   : > { %11135 = vst [vmem:[#allocation24_spill] sm:$0xff] %v6834_v22  ;;  %11136 = vst [vmem:[#allocation25_spill] sm:$0xff] %v6837_v23  ;;  %v6945_v61 = vld [vmem:[#allocation2 + $0x78] sm:$0xff] }
  0x3d   : > { %606 = vst.msk [vmem:[#allocation2 + $0xc9] sm:$0xff] %vm10981_vm0, %v6816_v18  ;;  %607 = vst.msk [vmem:[#allocation2 + $0xd9] sm:$0xff] %vm10981_vm0, %v6819_v19 }
  0x3e   : > { %608 = vst.msk [vmem:[#allocation2 + $0xe1] sm:$0xff] %vm10981_vm0, %v6822_v20  ;;  %11137 = vst [vmem:[#allocation26_spill] sm:$0xff] %v6846_v24  ;;  %v6947_v62 = vld [vmem:[#allocation2 + $0x80] sm:$0xff]  ;;  %v6961_v38 = vld [vmem:[#allocation2 + $0x90] sm:$0xff] }
  0x3f   : > { %11138 = vst [vmem:[#allocation27_spill] sm:$0xff] %v6849_v25  ;;  %11139 = vst [vmem:[#allocation28_spill] sm:$0xff] %v6852_v26  ;;  %v6963_v39 = vld [vmem:[#allocation2 + $0x98] sm:$0xff]  ;;  %v7012_v13 = vmul.f32 %v6922_v43, %v6947_v62  ;;  %v7025_v11 = vmul.f32 %v6922_v43, %v6961_v38 }
  0x40   : > { %609 = vst.msk [vmem:[#allocation2 + $0xf1] sm:$0xff] %vm10981_vm0, %v6831_v21  ;;  %610 = vst.msk [vmem:[#allocation2 + $0xf9] sm:$0xff] %vm10981_vm0, %v6834_v22 }
  0x41   : > { %611 = vst.msk [vmem:[#allocation2 + $0x109] sm:$0xff] %vm10981_vm0, %v6837_v23  ;;  %11140 = vst [vmem:[#allocation29_spill] sm:$0xff] %v6861_v27  ;;  %v6965_v2 = vld [vmem:[#allocation2 + $0xa8] sm:$0xff]  ;;  %v6979_v42 = vld [vmem:[#allocation2 + $0xb0] sm:$0xff] }
  0x42   : > { %11141 = vst [vmem:[#allocation30_spill] sm:$0xff] %v6864_v28  ;;  %11142 = vst [vmem:[#allocation31_spill] sm:$0xff] %v6867_v29  ;;  %v7033_v12 = vmul.f32 %v6922_v43, %v6965_v2  ;;  %v7046_v10 = vmul.f32 %v6922_v43, %v6979_v42 }
  0x43   : > { %612 = vst.msk [vmem:[#allocation2 + $0x111] sm:$0xff] %vm10981_vm0, %v6846_v24  ;;  %613 = vst.msk [vmem:[#allocation2 + $0x121] sm:$0xff] %vm10981_vm0, %v6849_v25  ;;  %v7008_v25 = vmul.f32 %v6922_v43, %v6945_v61  ;;  %v7029_v24 = vmul.f32 %v6922_v43, %v6963_v39 }
  0x44   : > { %614 = vst.msk [vmem:[#allocation2 + $0x129] sm:$0xff] %vm10981_vm0, %v6852_v26  ;;  %11143 = vst [vmem:[#allocation32_spill] sm:$0xff] %v6876_v30 }
  0x45   : > { %11144 = vst [vmem:[#allocation33_spill] sm:$0xff] %v6879_v31  ;;  %11145 = vst [vmem:[#allocation34_spill] sm:$0xff] %v6882_v32 }
  0x46   : > { %615 = vst.msk [vmem:[#allocation2 + $0x139] sm:$0xff] %vm10981_vm0, %v6861_v27  ;;  %616 = vst.msk [vmem:[#allocation2 + $0x141] sm:$0xff] %vm10981_vm0, %v6864_v28  ;;  %v7004_v28 = vmul.f32 %v6922_v43, %v632_v60 }
  0x47   : > { %617 = vst.msk [vmem:[#allocation2 + $0x151] sm:$0xff] %vm10981_vm0, %v6867_v29  ;;  %11146 = vst [vmem:[#allocation35_spill] sm:$0xff] %v6891_v33  ;;  %v6995_v29 = vmul.f32 %v6925_v47, %v626_v48  ;;  %v7001_v27 = vld [vmem:[#allocation2 + $0xf0] sm:$0xff]  ;;  %v7015_v48 = vmul.f32 %v6925_v47, %v627_v49  ;;  %v7017_v26 = vld [vmem:[#allocation2 + $0xf8] sm:$0xff]  ;;  %v7036_v49 = vmul.f32 %v6925_v47, %v628_v50 }
  0x48   : > { %11147 = vst [vmem:[#allocation36_spill] sm:$0xff] %v6894_v34  ;;  %618 = vst.msk [vmem:[#allocation2 + $0x159] sm:$0xff] %vm10981_vm0, %v6876_v30  ;;  %v6999_v30 = vld [vmem:[#allocation2 + $0xe0] sm:$0xff]  ;;  %v7019_v14 = vld [vmem:[#allocation2 + $0x108] sm:$0xff]  ;;  %v7057_v50 = vmul.f32 %v6925_v47, %v629_v53  ;;  %v7073_v18 = vmul.f32 %v6922_v43, %v7001_v27  ;;  %v7084_v16 = vmul.f32 %v6922_v43, %v7017_v26 }
  0x49   : > { %619 = vst.msk [vmem:[#allocation2 + $0x169] sm:$0xff] %vm10981_vm0, %v6879_v31  ;;  %620 = vst.msk [vmem:[#allocation2 + $0x171] sm:$0xff] %vm10981_vm0, %v6882_v32  ;;  %v6989_v31 = vmul.f32 %v6922_v43, %v630_v54  ;;  %v6992_v32 = vmul.f32 %v6922_v43, %v631_v55  ;;  %v7069_v5 = vmul.f32 %v6922_v43, %v6999_v30 }
  0x4a   : > { %621 = vst.msk [vmem:[#allocation2 + $0x181] sm:$0xff] %vm10981_vm0, %v6891_v33  ;;  %622 = vst.msk [vmem:[#allocation2 + $0x189] sm:$0xff] %vm10981_vm0, %v6894_v34  ;;  %v6983_v33 = vld [vmem:[#allocation2 + $0xc8] sm:$0xff]  ;;  %v6986_v34 = vmul.f32 %v6922_v43, %v629_v53  ;;  %v7021_v23 = vld [vmem:[#allocation2 + $0x110] sm:$0xff]  ;;  %v7076_v53 = vmul.f32 %v6925_v47, %v630_v54  ;;  %v7088_v4 = vmul.f32 %v6922_v43, %v7019_v14 }
  0x4b   : > { %11148 = vst [vmem:[#allocation37_spill] sm:$0xff] %v6906_v37  ;;  %11149 = vst [vmem:[#allocation38_spill] sm:$0xff] %v6914_v40  ;;  %v6977_v40 = vmul.f32 %v6925_v47, %v625_v46  ;;  %v6997_v46 = vld [vmem:[#allocation2 + $0xd8] sm:$0xff]  ;;  %v7038_v21 = vld [vmem:[#allocation2 + $0x120] sm:$0xff]  ;;  %v7054_v7 = vmul.f32 %v6922_v43, %v6983_v33  ;;  %v7092_v37 = vmul.f32 %v6922_v43, %v7021_v23 }
  0x4c   : > { %11150 = vst [vmem:[#allocation39_spill] sm:$0xff] %v6916_v41  ;;  %11151 = vst [vmem:[#allocation40_spill] sm:$0xff] %v6925_v47  ;;  %v6981_v41 = vld [vmem:[#allocation2 + $0xc0] sm:$0xff]  ;;  %v7040_v9 = vld [vmem:[#allocation2 + $0x128] sm:$0xff]  ;;  %v7065_v17 = vmul.f32 %v6922_v43, %v6997_v46  ;;  %v7095_v54 = vmul.f32 %v6925_v47, %v631_v55  ;;  %v7116_v55 = vmul.f32 %v6925_v47, %v632_v60 }
  0x4d   : > { %11152 = vst [vmem:[#allocation41_spill] sm:$0xff] %v6931_v52  ;;  %11153 = vst [vmem:[#allocation42_spill] sm:$0xff] %v6934_v56  ;;  %v7042_v22 = vld [vmem:[#allocation2 + $0x138] sm:$0xff]  ;;  %v7050_v19 = vmul.f32 %v6922_v43, %v6981_v41  ;;  %v7059_v20 = vld [vmem:[#allocation2 + $0x140] sm:$0xff]  ;;  %v7135_v60 = vmul.f32 %v6925_v47, %v6945_v61  ;;  %v7154_v61 = vmul.f32 %v6925_v47, %v6947_v62 }
  0x4e   : > { %11154 = vst [vmem:[#allocation43_spill] sm:$0xff] %v6937_v57  ;;  %11155 = vst [vmem:[#allocation44_spill] sm:$0xff] %v6940_v58  ;;  %v7061_v8 = vld [vmem:[#allocation2 + $0x150] sm:$0xff]  ;;  %v7101_v58 = vmul.f32 %v6922_v43, %v7038_v21  ;;  %v7105_v57 = vmul.f32 %v6922_v43, %v7040_v9  ;;  %v7109_v56 = vmul.f32 %v6922_v43, %v7042_v22 }
  0x4f   : > { %11156 = vst [vmem:[#allocation45_spill] sm:$0xff] %v6943_v59  ;;  %11157 = vst [vmem:[#allocation46_spill] sm:$0xff] %v6959_v36  ;;  %v7078_v15 = vld [vmem:[#allocation2 + $0x158] sm:$0xff]  ;;  %v724_v36 = vld [vmem:[#allocation2 + $0x9] sm:$0xff]  ;;  %v7172_v62 = vmul.f32 %v6925_v47, %v6961_v38 }
  0x50   : > { %11158 = vst [vmem:[#allocation47_spill] sm:$0xff] %v6965_v2  ;;  %11159 = vst [vmem:[#allocation48_spill] sm:$0xff] %v6977_v40  ;;  %v7080_v3 = vld [vmem:[#allocation2 + $0x168] sm:$0xff]  ;;  %v7097_v59 = vld [vmem:[#allocation2 + $0x170] sm:$0xff] }
  0x51   : > { %11160 = vst [vmem:[#allocation49_spill] sm:$0xff] %v6979_v42  ;;  %11161 = vst [vmem:[#allocation50_spill] sm:$0xff] %v6981_v41  ;;  %v7130_v40 = vld [vmem:[#allocation2 + $0x49] sm:$0xff]  ;;  %v7190_v38 = vld [vmem:[#allocation2 + $0xc1] sm:$0xff] }
  0x52   : > { %11162 = vst [vmem:[#allocation51_spill] sm:$0xff] %v6983_v33  ;;  %11163 = vst [vmem:[#allocation52_spill] sm:$0xff] %v6995_v29  ;;  %v7128_v29 = vld [vmem:[#allocation2 + $0x39] sm:$0xff]  ;;  %v7224_v42 = vld [vmem:[#allocation2 + $0x121] sm:$0xff] }
  0x53   : > { %11164 = vst [vmem:[#allocation53_spill] sm:$0xff] %v6997_v46  ;;  %11165 = vst [vmem:[#allocation54_spill] sm:$0xff] %v6999_v30  ;;  %v7194_v30 = vld [vmem:[#allocation2 + $0xd9] sm:$0xff]  ;;  %v7239_v2 = vld [vmem:[#allocation2 + $0x141] sm:$0xff] }
  0x54   : > { %11166 = vst [vmem:[#allocation55_spill] sm:$0xff] %v7001_v27  ;;  %11167 = vst [vmem:[#allocation56_spill] sm:$0xff] %v7015_v48  ;;  %v7126_v48 = vld [vmem:[#allocation2 + $0x31] sm:$0xff]  ;;  %v764_v27 = vmul.f32 %v6928_v51, %v7128_v29  ;;  %v7209_v33 = vld [vmem:[#allocation2 + $0xf9] sm:$0xff] }
  0x55   : > { %11168 = vst [vmem:[#allocation57_spill] sm:$0xff] %v7017_v26  ;;  %11169 = vst [vmem:[#allocation58_spill] sm:$0xff] %v7019_v14  ;;  %v763_v26 = vmul.f32 %v6928_v51, %v7126_v48 }
  0x56   : > { %11170 = vst [vmem:[#allocation59_spill] sm:$0xff] %v7021_v23  ;;  %11171 = vst [vmem:[#allocation60_spill] sm:$0xff] %v7036_v49  ;;  %v7124_v49 = vmul.f32 %v6922_v43, %v7061_v8  ;;  %v7164_v23 = vld [vmem:[#allocation2 + $0x91] sm:$0xff]  ;;  %v7274_v52 = vadd.f32 %v764_v27, %v6974_v45 }
  0x57   : > { %11172 = vst [vmem:[#allocation61_spill] sm:$0xff] %v7038_v21  ;;  %11173 = vst [vmem:[#allocation62_spill] sm:$0xff] %v7040_v9  ;;  %v7147_v9 = vld [vmem:[#allocation2 + $0x61] sm:$0xff]  ;;  %v7149_v21 = vld [vmem:[#allocation2 + $0x69] sm:$0xff] }
  0x58   : > { %11174 = vst [vmem:[#allocation63_spill] sm:$0xff] %v7042_v22  ;;  %11175 = vst [vmem:[#allocation64_spill] sm:$0xff] %v7057_v50  ;;  %v7113_v50 = vld [vmem:[#allocation2 + $0x21] sm:$0xff]  ;;  %v759_v22 = vmul.f32 %v6928_v51, %v723_v6  ;;  %v760_v6 = vmul.f32 %v6928_v51, %v724_v36 }
  0x59   : > { %11176 = vst [vmem:[#allocation65_spill] sm:$0xff] %v7059_v20  ;;  %11177 = vst [vmem:[#allocation66_spill] sm:$0xff] %v7061_v8  ;;  %v7143_v8 = vmul.f32 %v6922_v43, %v7080_v3  ;;  %v762_v36 = vmul.f32 %v6928_v51, %v7113_v50 }
  0x5a   : > { %11178 = vst [vmem:[#allocation67_spill] sm:$0xff] %v7076_v53  ;;  %11179 = vst [vmem:[#allocation68_spill] sm:$0xff] %v7078_v15  ;;  %v7111_v53 = vld [vmem:[#allocation2 + $0x19] sm:$0xff] }
  0x5b   : > { %11180 = vst [vmem:[#allocation69_spill] sm:$0xff] %v7080_v3  ;;  %11181 = vst [vmem:[#allocation70_spill] sm:$0xff] %v7095_v54  ;;  %v7120_v54 = vmul.f32 %v6922_v43, %v7059_v20  ;;  %v7145_v20 = vld [vmem:[#allocation2 + $0x51] sm:$0xff]  ;;  %v7162_v3 = vld [vmem:[#allocation2 + $0x81] sm:$0xff]  ;;  %v761_v14 = vmul.f32 %v6928_v51, %v7111_v53 }
  0x5c   : > { %11182 = vst [vmem:[#allocation71_spill] sm:$0xff] %v7097_v59  ;;  %11183 = vst [vmem:[#allocation72_spill] sm:$0xff] %v7111_v53  ;;  %v765_v53 = vmul.f32 %v6928_v51, %v7130_v40  ;;  %v766_v46 = vmul.f32 %v6928_v51, %v7145_v20 }
  0x5d   : > { %11184 = vst [vmem:[#allocation73_spill] sm:$0xff] %v7113_v50  ;;  %11185 = vst [vmem:[#allocation74_spill] sm:$0xff] %v7116_v55  ;;  %v7139_v55 = vmul.f32 %v6922_v43, %v7078_v15  ;;  %v7160_v15 = vld [vmem:[#allocation2 + $0x79] sm:$0xff]  ;;  %v7188_v50 = vmul.f32 %v6925_v47, %v6963_v39  ;;  %v7205_v39 = vld [vmem:[#allocation2 + $0xe1] sm:$0xff] }
  0x5e   : > { %11186 = vst [vmem:[#allocation75_spill] sm:$0xff] %v7126_v48  ;;  %11187 = vst [vmem:[#allocation76_spill] sm:$0xff] %v7128_v29  ;;  %v767_v48 = vmul.f32 %v6928_v51, %v7147_v9  ;;  %v768_v29 = vmul.f32 %v6928_v51, %v7149_v21  ;;  %v769_v41 = vmul.f32 %v6928_v51, %v7160_v15 }
  0x5f   : > { %11188 = vst [vmem:[#allocation77_spill] sm:$0xff] %v7130_v40  ;;  %11189 = vst [vmem:[#allocation78_spill] sm:$0xff] %v7135_v60  ;;  %v7158_v60 = vmul.f32 %v6922_v43, %v7097_v59  ;;  %v7176_v43 = vld [vmem:[#allocation2 + $0xa9] sm:$0xff]  ;;  %v7178_v59 = vld [vmem:[#allocation2 + $0xb1] sm:$0xff]  ;;  %v7203_v40 = vadd.f32 %v759_v22, %v6950_v63  ;;  %v7292_v45 = vadd.f32 %v766_v46, %v6989_v31 }
  0x60   : > { %11190 = vst [vmem:[#allocation79_spill] sm:$0xff] %v7145_v20  ;;  %11191 = vst [vmem:[#allocation80_spill] sm:$0xff] %v7147_v9  ;;  %v770_v20 = vmul.f32 %v6928_v51, %v7162_v3  ;;  %v771_v9 = vmul.f32 %v6928_v51, %v7164_v23  ;;  %v7220_v22 = vld [vmem:[#allocation2 + $0x109] sm:$0xff]  ;;  %v7222_v63 = vld [vmem:[#allocation2 + $0x111] sm:$0xff] }
  0x61   : > { %11192 = vst [vmem:[#allocation81_spill] sm:$0xff] %v7149_v21  ;;  %11193 = vst [vmem:[#allocation82_spill] sm:$0xff] %v7154_v61  ;;  %v7174_v61 = vld [vmem:[#allocation2 + $0x99] sm:$0xff]  ;;  %v7218_v21 = vadd.f32 %v760_v6, %v6953_v0  ;;  %v7235_v0 = vld [vmem:[#allocation2 + $0x129] sm:$0xff] }
  0x62   : > { %11194 = vst [vmem:[#allocation83_spill] sm:$0xff] %v7160_v15  ;;  %11195 = vst [vmem:[#allocation84_spill] sm:$0xff] %v7162_v3  ;;  %v772_v47 = vmul.f32 %v6928_v51, %v7174_v61  ;;  %v773_v15 = vmul.f32 %v6928_v51, %v7176_v43  ;;  %v774_v3 = vmul.f32 %v6928_v51, %v7178_v59  ;;  %v7237_v6 = vld [vmem:[#allocation2 + $0x139] sm:$0xff]  ;;  %v824_v46 = vld [vmem:[#allocation2 + $0xa] sm:$0xff] }
  0x63   : > { %11196 = vst [vmem:[#allocation85_spill] sm:$0xff] %v7164_v23  ;;  %11197 = vst [vmem:[#allocation86_spill] sm:$0xff] %v7172_v62  ;;  %v7192_v62 = vld [vmem:[#allocation2 + $0xc9] sm:$0xff]  ;;  %v7233_v23 = vadd.f32 %v761_v14, %v6956_v35  ;;  %v7250_v14 = vld [vmem:[#allocation2 + $0x151] sm:$0xff] }
  0x64   : > { %11198 = vst [vmem:[#allocation87_spill] sm:$0xff] %v7174_v61  ;;  %11199 = vst [vmem:[#allocation88_spill] sm:$0xff] %v7176_v43  ;;  %v776_v61 = vmul.f32 %v6928_v51, %v7192_v62  ;;  %v777_v43 = vmul.f32 %v6928_v51, %v7194_v30  ;;  %v7252_v35 = vld [vmem:[#allocation2 + $0x159] sm:$0xff]  ;;  %v7312_v31 = vadd.f32 %v772_v47, %v7029_v24  ;;  %v7355_v24 = vld [vmem:[#allocation2 + $0x6a] sm:$0xff] }
  0x65   : > { %11200 = vst [vmem:[#allocation89_spill] sm:$0xff] %v7178_v59  ;;  %11201 = vst [vmem:[#allocation90_spill] sm:$0xff] %v7188_v50  ;;  %v7207_v50 = vld [vmem:[#allocation2 + $0xf1] sm:$0xff]  ;;  %v7248_v59 = vadd.f32 %v762_v36, %v6968_v1  ;;  %v781_v36 = vmul.f32 %v6928_v51, %v7220_v22 }
  0x66   : > { %11202 = vst [vmem:[#allocation91_spill] sm:$0xff] %v7190_v38  ;;  %11203 = vst [vmem:[#allocation92_spill] sm:$0xff] %v7192_v62  ;;  %v780_v62 = vmul.f32 %v6928_v51, %v7209_v33  ;;  %v7265_v1 = vld [vmem:[#allocation2 + $0x171] sm:$0xff] }
  0x67   : > { %11204 = vst [vmem:[#allocation93_spill] sm:$0xff] %v7194_v30  ;;  %11205 = vst [vmem:[#allocation94_spill] sm:$0xff] %v7203_v40  ;;  %v778_v40 = vmul.f32 %v6928_v51, %v7205_v39  ;;  %v7263_v30 = vadd.f32 %v763_v26, %v6971_v44  ;;  %v785_v26 = vmul.f32 %v6928_v51, %v7237_v6 }
  0x68   : > { %11206 = vst [vmem:[#allocation95_spill] sm:$0xff] %v7205_v39  ;;  %11207 = vst [vmem:[#allocation96_spill] sm:$0xff] %v7207_v50  ;;  %v783_v39 = vmul.f32 %v6928_v51, %v7224_v42  ;;  %v786_v44 = vmul.f32 %v6928_v51, %v7239_v2 }
  0x69   : > { %11208 = vst [vmem:[#allocation97_spill] sm:$0xff] %v7209_v33  ;;  %11209 = vst [vmem:[#allocation98_spill] sm:$0xff] %v7218_v21  ;;  %v775_v21 = vmul.f32 %v6928_v51, %v7190_v38  ;;  %v779_v38 = vmul.f32 %v6928_v51, %v7207_v50  ;;  %v784_v33 = vmul.f32 %v6928_v51, %v7235_v0  ;;  %v7452_v50 = vld [vmem:[#allocation2 + $0x16a] sm:$0xff] }
  0x6a   : > { %11210 = vst [vmem:[#allocation99_spill] sm:$0xff] %v7220_v22  ;;  %11211 = vst [vmem:[#allocation100_spill] sm:$0xff] %v7222_v63  ;;  %v7283_v22 = vadd.f32 %v765_v53, %v6986_v34  ;;  %v7300_v34 = vadd.f32 %v768_v29, %v7004_v28  ;;  %v7303_v53 = vadd.f32 %v769_v41, %v7008_v25  ;;  %v7373_v41 = vld [vmem:[#allocation2 + $0x92] sm:$0xff] }
  0x6b   : > { %11212 = vst [vmem:[#allocation101_spill] sm:$0xff] %v7224_v42  ;;  %11213 = vst [vmem:[#allocation102_spill] sm:$0xff] %v7233_v23  ;;  %v7254_v23 = vld [vmem:[#allocation2 + $0x169] sm:$0xff]  ;;  %v788_v42 = vmul.f32 %v6928_v51, %v7252_v35  ;;  %v7320_v28 = vadd.f32 %v774_v3, %v7046_v10  ;;  %v7323_v25 = vadd.f32 %v775_v21, %v7050_v19  ;;  %v7351_v19 = vld [vmem:[#allocation2 + $0x52] sm:$0xff] }
  0x6c   : > { %11214 = vst [vmem:[#allocation103_spill] sm:$0xff] %v7235_v0  ;;  %11215 = vst [vmem:[#allocation104_spill] sm:$0xff] %v7237_v6  ;;  %v789_v27 = vmul.f32 %v6928_v51, %v7254_v23  ;;  %v790_v6 = vmul.f32 %v6928_v51, %v7265_v1  ;;  %v7340_v3 = vadd.f32 %v778_v40, %v7069_v5  ;;  %v7353_v21 = vld [vmem:[#allocation2 + $0x62] sm:$0xff]  ;;  %v7448_v0 = vld [vmem:[#allocation2 + $0x152] sm:$0xff] }
  0x6d   : > { %11216 = vst [vmem:[#allocation105_spill] sm:$0xff] %v7239_v2  ;;  %11217 = vst [vmem:[#allocation106_spill] sm:$0xff] %v7248_v59  ;;  %v782_v59 = vmul.f32 %v6928_v51, %v7222_v63  ;;  %v787_v63 = vmul.f32 %v6928_v51, %v7250_v14  ;;  %v7297_v2 = vadd.f32 %v767_v48, %v6992_v32  ;;  %v823_v32 = vld [vmem:[#allocation2 + $0x2] sm:$0xff]  ;;  %v7317_v48 = vld [vmem:[#allocation2 + $0x1a] sm:$0xff] }
  0x6e   : > { %11218 = vst [vmem:[#allocation107_spill] sm:$0xff] %v7250_v14  ;;  %11219 = vst [vmem:[#allocation108_spill] sm:$0xff] %v7252_v35  ;;  %v7306_v35 = vadd.f32 %v770_v20, %v7012_v13  ;;  %v7315_v51 = vadd.f32 %v773_v15, %v7033_v12  ;;  %v7326_v13 = vadd.f32 %v776_v61, %v7054_v7  ;;  %v7333_v12 = vld [vmem:[#allocation2 + $0x32] sm:$0xff]  ;;  %v7335_v15 = vld [vmem:[#allocation2 + $0x3a] sm:$0xff] }
  0x6f   : > { %11220 = vst [vmem:[#allocation109_spill] sm:$0xff] %v7254_v23  ;;  %11221 = vst [vmem:[#allocation110_spill] sm:$0xff] %v7265_v1  ;;  %v7309_v23 = vadd.f32 %v771_v9, %v7025_v11  ;;  %v7329_v9 = vadd.f32 %v777_v43, %v7065_v17  ;;  %v7331_v11 = vld [vmem:[#allocation2 + $0x22] sm:$0xff]  ;;  %v7337_v20 = vld [vmem:[#allocation2 + $0x4a] sm:$0xff]  ;;  %v7343_v10 = vadd.f32 %v779_v38, %v7073_v18 }
  0x70   : > { %11222 = vst [vmem:[#allocation111_spill] sm:$0xff] %v7317_v48  ;;  %11223 = vst [vmem:[#allocation112_spill] sm:$0xff] %v7331_v11  ;;  %v7346_v7 = vadd.f32 %v780_v62, %v7084_v16  ;;  %v7349_v17 = vadd.f32 %v781_v36, %v7088_v4  ;;  %v7358_v29 = vadd.f32 %v782_v59, %v7092_v37  ;;  %v7369_v4 = vld [vmem:[#allocation2 + $0x7a] sm:$0xff]  ;;  %v7371_v40 = vld [vmem:[#allocation2 + $0x82] sm:$0xff] }
  0x71   : > { %11224 = vst [vmem:[#allocation113_spill] sm:$0xff] %v7333_v12  ;;  %11225 = vst [vmem:[#allocation114_spill] sm:$0xff] %v7335_v15  ;;  %v7361_v5 = vadd.f32 %v783_v39, %v7101_v58  ;;  %v7364_v18 = vadd.f32 %v784_v33, %v7105_v57  ;;  %v7367_v16 = vadd.f32 %v785_v26, %v7109_v56  ;;  %v7387_v56 = vld [vmem:[#allocation2 + $0x9a] sm:$0xff]  ;;  %v7389_v57 = vld [vmem:[#allocation2 + $0xaa] sm:$0xff] }
  0x72   : > { %11226 = vst [vmem:[#allocation115_spill] sm:$0xff] %v7337_v20  ;;  %11227 = vst [vmem:[#allocation116_spill] sm:$0xff] %v7346_v7  ;;  %v7376_v47 = vadd.f32 %v786_v44, %v7120_v54  ;;  %v7379_v37 = vadd.f32 %v787_v63, %v7124_v49  ;;  %v7382_v58 = vadd.f32 %v788_v42, %v7139_v55  ;;  %v7391_v59 = vld [vmem:[#allocation2 + $0xb2] sm:$0xff]  ;;  %v7396_v54 = vld [vmem:[#allocation2 + $0xc2] sm:$0xff] }
  0x73   : > { %11228 = vst [vmem:[#allocation117_spill] sm:$0xff] %v7349_v17  ;;  %11229 = vst [vmem:[#allocation118_spill] sm:$0xff] %v7351_v19  ;;  %v7385_v33 = vadd.f32 %v789_v27, %v7143_v8  ;;  %v7394_v61 = vadd.f32 %v790_v6, %v7158_v60  ;;  %v7398_v62 = vld [vmem:[#allocation2 + $0xca] sm:$0xff]  ;;  %v7400_v49 = vld [vmem:[#allocation2 + $0xda] sm:$0xff] }
  0x74   : > { %11230 = vst [vmem:[#allocation119_spill] sm:$0xff] %v7353_v21  ;;  %11231 = vst [vmem:[#allocation120_spill] sm:$0xff] %v7355_v24  ;;  %v11250_v42 = vld [vmem:[#allocation41_spill] sm:$0xff]  ;;  %v7406_v38 = vld [vmem:[#allocation2 + $0xe2] sm:$0xff] }
  0x75   : > { %11232 = vst [vmem:[#allocation121_spill] sm:$0xff] %v7358_v29  ;;  %11233 = vst [vmem:[#allocation122_spill] sm:$0xff] %v7361_v5  ;;  %v859_v55 = vmul.f32 %v11250_v42, %v823_v32  ;;  %v860_v8 = vmul.f32 %v11250_v42, %v824_v46  ;;  %v861_v43 = vmul.f32 %v11250_v42, %v7317_v48  ;;  %v7408_v39 = vld [vmem:[#allocation2 + $0xf2] sm:$0xff]  ;;  %v7410_v63 = vld [vmem:[#allocation2 + $0xfa] sm:$0xff] }
  0x76   : > { %11234 = vst [vmem:[#allocation123_spill] sm:$0xff] %v7364_v18  ;;  %11235 = vst [vmem:[#allocation124_spill] sm:$0xff] %v7367_v16  ;;  %v862_v60 = vmul.f32 %v11250_v42, %v7331_v11  ;;  %v863_v6 = vmul.f32 %v11250_v42, %v7333_v12  ;;  %v864_v36 = vmul.f32 %v11250_v42, %v7335_v15  ;;  %v7420_v44 = vld [vmem:[#allocation2 + $0x10a] sm:$0xff]  ;;  %v7422_v27 = vld [vmem:[#allocation2 + $0x112] sm:$0xff] }
  0x77   : > { %11236 = vst [vmem:[#allocation125_spill] sm:$0xff] %v7369_v4  ;;  %11237 = vst [vmem:[#allocation126_spill] sm:$0xff] %v7371_v40  ;;  %v865_v26 = vmul.f32 %v11250_v42, %v7337_v20  ;;  %v7424_v32 = vld [vmem:[#allocation2 + $0x122] sm:$0xff]  ;;  %v866_v46 = vmul.f32 %v11250_v42, %v7351_v19  ;;  %v867_v11 = vmul.f32 %v11250_v42, %v7353_v21  ;;  %v7434_v48 = vld [vmem:[#allocation2 + $0x12a] sm:$0xff] }
  0x78   : > { %11238 = vst [vmem:[#allocation127_spill] sm:$0xff] %v7373_v41  ;;  %11239 = vst [vmem:[#allocation128_spill] sm:$0xff] %v7376_v47  ;;  %v868_v12 = vmul.f32 %v11250_v42, %v7355_v24  ;;  %v869_v15 = vmul.f32 %v11250_v42, %v7369_v4  ;;  %v7436_v20 = vld [vmem:[#allocation2 + $0x13a] sm:$0xff]  ;;  %v7438_v1 = vld [vmem:[#allocation2 + $0x142] sm:$0xff]  ;;  %v870_v14 = vmul.f32 %v11250_v42, %v7371_v40 }
  0x79   : > { %11240 = vst [vmem:[#allocation129_spill] sm:$0xff] %v7379_v37  ;;  %11241 = vst [vmem:[#allocation130_spill] sm:$0xff] %v7382_v58  ;;  %v871_v19 = vmul.f32 %v11250_v42, %v7373_v41  ;;  %v872_v21 = vmul.f32 %v11250_v42, %v7387_v56  ;;  %v873_v24 = vmul.f32 %v11250_v42, %v7389_v57  ;;  %v7450_v4 = vld [vmem:[#allocation2 + $0x15a] sm:$0xff] }
  0x7a   : > { %11242 = vst [vmem:[#allocation131_spill] sm:$0xff] %v7385_v33  ;;  %11243 = vst [vmem:[#allocation132_spill] sm:$0xff] %v7387_v56  ;;  %v875_v40 = vmul.f32 %v11250_v42, %v7396_v54  ;;  %v876_v41 = vmul.f32 %v11250_v42, %v7398_v62  ;;  %v877_v56 = vmul.f32 %v11250_v42, %v7400_v49  ;;  %v7462_v33 = vld [vmem:[#allocation2 + $0x172] sm:$0xff] }
  0x7b   : > { %11244 = vst [vmem:[#allocation133_spill] sm:$0xff] %v7389_v57  ;;  %11245 = vst [vmem:[#allocation134_spill] sm:$0xff] %v7391_v59  ;;  %v878_v57 = vmul.f32 %v11250_v42, %v7406_v38  ;;  %v879_v58 = vmul.f32 %v11250_v42, %v7408_v39  ;;  %v884_v37 = vmul.f32 %v11250_v42, %v7434_v48  ;;  %v11264_v47 = vld [vmem:[#allocation94_spill] sm:$0xff] }
  0x7c   : > { %11246 = vst [vmem:[#allocation135_spill] sm:$0xff] %v7394_v61  ;;  %11247 = vst [vmem:[#allocation136_spill] sm:$0xff] %v7396_v54  ;;  %v874_v61 = vmul.f32 %v11250_v42, %v7391_v59  ;;  %v880_v59 = vmul.f32 %v11250_v42, %v7410_v63  ;;  %v881_v54 = vmul.f32 %v11250_v42, %v7420_v44  ;;  %v11265_v16 = vld [vmem:[#allocation98_spill] sm:$0xff] }
  0x7d   : > { %11248 = vst [vmem:[#allocation137_spill] sm:$0xff] %v7398_v62  ;;  %11249 = vst [vmem:[#allocation138_spill] sm:$0xff] %v7400_v49  ;;  %v882_v62 = vmul.f32 %v11250_v42, %v7422_v27  ;;  %v883_v49 = vmul.f32 %v11250_v42, %v7424_v32  ;;  %v892_v18 = vadd.f32 %v860_v8, %v11265_v16  ;;  %v11267_v29 = vld [vmem:[#allocation106_spill] sm:$0xff]  ;;  %v7528_v8 = vld [vmem:[#allocation2 + $0x180] sm:$0xff] }
  0x7e   : > { %11251 = vst [vmem:[#allocation41_spill] sm:$0xff] %v7406_v38  ;;  %11252 = vst [vmem:[#allocation139_spill] sm:$0xff] %v7408_v39  ;;  %v885_v38 = vmul.f32 %v11250_v42, %v7436_v20  ;;  %v886_v39 = vmul.f32 %v11250_v42, %v7438_v1  ;;  %v895_v17 = vadd.f32 %v863_v6, %v7263_v30 }
  0x7f   : > { %11253 = vst [vmem:[#allocation140_spill] sm:$0xff] %v7410_v63  ;;  %11254 = vst [vmem:[#allocation141_spill] sm:$0xff] %v7420_v44  ;;  %v887_v63 = vmul.f32 %v11250_v42, %v7448_v0  ;;  %v888_v44 = vmul.f32 %v11250_v42, %v7450_v4  ;;  %v898_v7 = vadd.f32 %v866_v46, %v7292_v45  ;;  %v11290_v46 = vld [vmem:[#allocation58_spill] sm:$0xff] }
  0x80   : > { %11255 = vst [vmem:[#allocation142_spill] sm:$0xff] %v7422_v27  ;;  %11256 = vst [vmem:[#allocation143_spill] sm:$0xff] %v7424_v32  ;;  %v889_v27 = vmul.f32 %v11250_v42, %v7452_v50  ;;  %v890_v32 = vmul.f32 %v11250_v42, %v7462_v33  ;;  %v900_v42 = vadd.f32 %v868_v12, %v7300_v34  ;;  %v11270_v12 = vld [vmem:[#allocation121_spill] sm:$0xff] }
  0x81   : > { %11257 = vst [vmem:[#allocation144_spill] sm:$0xff] %v7434_v48  ;;  %11258 = vst [vmem:[#allocation145_spill] sm:$0xff] %v7436_v20  ;;  %v891_v48 = vadd.f32 %v859_v55, %v11264_v47  ;;  %v11266_v20 = vld [vmem:[#allocation102_spill] sm:$0xff]  ;;  %v901_v47 = vadd.f32 %v869_v15, %v7303_v53  ;;  %v902_v16 = vadd.f32 %v870_v14, %v7306_v35  ;;  %v11269_v35 = vld [vmem:[#allocation117_spill] sm:$0xff] }
  0x82   : > { %11259 = vst [vmem:[#allocation146_spill] sm:$0xff] %v7438_v1  ;;  %11260 = vst [vmem:[#allocation147_spill] sm:$0xff] %v7448_v0  ;;  %v893_v5 = vadd.f32 %v861_v43, %v11266_v20  ;;  %v894_v1 = vadd.f32 %v862_v60, %v11267_v29  ;;  %v896_v0 = vadd.f32 %v864_v36, %v7274_v52  ;;  %v11271_v15 = vld [vmem:[#allocation122_spill] sm:$0xff]  ;;  %v11284_v43 = vld [vmem:[#allocation51_spill] sm:$0xff] }
  0x83   : > { %11261 = vst [vmem:[#allocation148_spill] sm:$0xff] %v7450_v4  ;;  %11262 = vst [vmem:[#allocation149_spill] sm:$0xff] %v7452_v50  ;;  %v897_v4 = vadd.f32 %v865_v26, %v7283_v22  ;;  %v899_v50 = vadd.f32 %v867_v11, %v7297_v2  ;;  %v903_v20 = vadd.f32 %v871_v19, %v7309_v23  ;;  %v11268_v11 = vld [vmem:[#allocation116_spill] sm:$0xff]  ;;  %v11272_v19 = vld [vmem:[#allocation123_spill] sm:$0xff] }
  0x84   : > { %11263 = vst [vmem:[#allocation150_spill] sm:$0xff] %v7462_v33  ;;  %v904_v29 = vadd.f32 %v872_v21, %v7312_v31  ;;  %v905_v30 = vadd.f32 %v873_v24, %v7315_v51  ;;  %v906_v52 = vadd.f32 %v874_v61, %v7320_v28  ;;  %v907_v22 = vadd.f32 %v875_v40, %v7323_v25  ;;  %v11273_v21 = vld [vmem:[#allocation124_spill] sm:$0xff]  ;;  %v11275_v40 = vld [vmem:[#allocation129_spill] sm:$0xff]  ;;  %v11282_v55 = vld [vmem:[#allocation50_spill] sm:$0xff] }
  0x85   : > { %v908_v45 = vadd.f32 %v876_v41, %v7326_v13  ;;  %v909_v2 = vadd.f32 %v877_v56, %v7329_v9  ;;  %v910_v34 = vadd.f32 %v878_v57, %v7340_v3  ;;  %v911_v53 = vadd.f32 %v879_v58, %v7343_v10  ;;  %v11274_v24 = vld [vmem:[#allocation128_spill] sm:$0xff]  ;;  %v11276_v41 = vld [vmem:[#allocation130_spill] sm:$0xff]  ;;  %v11277_v56 = vld [vmem:[#allocation131_spill] sm:$0xff]  ;;  %11283 = vst [vmem:[#allocation94_spill] sm:$0xff] %v7528_v8 }
  0x86   : > { %v912_v14 = vadd.f32 %v880_v59, %v11268_v11  ;;  %v913_v23 = vadd.f32 %v881_v54, %v11269_v35  ;;  %v914_v31 = vadd.f32 %v882_v62, %v11270_v12  ;;  %v915_v51 = vadd.f32 %v883_v49, %v11271_v15  ;;  %v11278_v58 = vld [vmem:[#allocation135_spill] sm:$0xff]  ;;  %v11280_v61 = vld [vmem:[#allocation40_spill] sm:$0xff]  ;;  %v11281_v62 = vld [vmem:[#allocation49_spill] sm:$0xff] }
  0x87   : > { %v916_v28 = vadd.f32 %v884_v37, %v11272_v19  ;;  %v917_v25 = vadd.f32 %v885_v38, %v11273_v21  ;;  %v918_v13 = vadd.f32 %v886_v39, %v11274_v24  ;;  %v919_v9 = vadd.f32 %v887_v63, %v11275_v40  ;;  %v11279_v59 = vld [vmem:[#allocation47_spill] sm:$0xff]  ;;  %v11285_v39 = vld [vmem:[#allocation53_spill] sm:$0xff]  ;;  %v11286_v60 = vld [vmem:[#allocation54_spill] sm:$0xff] }
  0x88   : > { %v920_v3 = vadd.f32 %v888_v44, %v11276_v41  ;;  %v921_v10 = vadd.f32 %v889_v27, %v11277_v56  ;;  %v922_v57 = vadd.f32 %v890_v32, %v11278_v58  ;;  %v971_v54 = vmul.f32 %v11280_v61, %v11279_v59  ;;  %v11287_v36 = vld [vmem:[#allocation55_spill] sm:$0xff]  ;;  %v7538_v44 = vld [vmem:[#allocation2 + $0x188] sm:$0xff]  ;;  %v11289_v27 = vld [vmem:[#allocation57_spill] sm:$0xff] }
  0x89   : > { %v972_v49 = vmul.f32 %v11280_v61, %v11281_v62  ;;  %v973_v37 = vmul.f32 %v11280_v61, %v11282_v55  ;;  %v974_v38 = vmul.f32 %v11280_v61, %v11284_v43  ;;  %v975_v63 = vmul.f32 %v11280_v61, %v11285_v39  ;;  %11288 = vst [vmem:[#allocation98_spill] sm:$0xff] %v7538_v44  ;;  %v11291_v35 = vld [vmem:[#allocation59_spill] sm:$0xff]  ;;  %v11292_v15 = vld [vmem:[#allocation61_spill] sm:$0xff]  ;;  %v11293_v21 = vld [vmem:[#allocation62_spill] sm:$0xff] }
  0x8a   : > { %v976_v6 = vmul.f32 %v11280_v61, %v11286_v60  ;;  %v977_v26 = vmul.f32 %v11280_v61, %v11287_v36  ;;  %v978_v32 = vmul.f32 %v11280_v61, %v11289_v27  ;;  %v979_v11 = vmul.f32 %v11280_v61, %v11290_v46  ;;  %v11294_v40 = vld [vmem:[#allocation63_spill] sm:$0xff]  ;;  %v11295_v56 = vld [vmem:[#allocation65_spill] sm:$0xff]  ;;  %v11296_v59 = vld [vmem:[#allocation66_spill] sm:$0xff] }
  0x8b   : > { %v980_v12 = vmul.f32 %v11280_v61, %v11291_v35  ;;  %v981_v19 = vmul.f32 %v11280_v61, %v11292_v15  ;;  %v982_v24 = vmul.f32 %v11280_v61, %v11293_v21  ;;  %v983_v41 = vmul.f32 %v11280_v61, %v11294_v40  ;;  %v11297_v55 = vld [vmem:[#allocation68_spill] sm:$0xff]  ;;  %v11298_v39 = vld [vmem:[#allocation69_spill] sm:$0xff]  ;;  %v11299_v36 = vld [vmem:[#allocation71_spill] sm:$0xff] }
  0x8c   : > { %v984_v58 = vmul.f32 %v11280_v61, %v11295_v56  ;;  %v985_v62 = vmul.f32 %v11280_v61, %v11296_v59  ;;  %v986_v43 = vmul.f32 %v11280_v61, %v11297_v55  ;;  %v987_v60 = vmul.f32 %v11280_v61, %v11298_v39  ;;  %v11300_v15 = vld [vmem:[#allocation48_spill] sm:$0xff] }
  0x8d   : > { %v988_v27 = vmul.f32 %v11280_v61, %v11299_v36  ;;  %v989_v46 = vmul.f32 %v11280_v61, %v7528_v8  ;;  %v990_v35 = vmul.f32 %v11280_v61, %v7538_v44  ;;  %v7567_v21 = vadd.f32 %v11300_v15, %v891_v48  ;;  %v11302_v40 = vld [vmem:[#allocation52_spill] sm:$0xff]  ;;  %v11307_v44 = vld [vmem:[#allocation67_spill] sm:$0xff]  ;;  %v11308_v15 = vld [vmem:[#allocation70_spill] sm:$0xff] }
  0x8e   : > { %v7570_v56 = vadd.f32 %v11302_v40, %v892_v18  ;;  %v11304_v59 = vld [vmem:[#allocation56_spill] sm:$0xff]  ;;  %v7582_v61 = vadd.f32 %v11307_v44, %v896_v0  ;;  %v7585_v48 = vadd.f32 %v11308_v15, %v897_v4  ;;  %v11310_v40 = vld [vmem:[#allocation78_spill] sm:$0xff]  ;;  %v7602_v0 = vadd.f32 %v971_v54, %v903_v20 }
  0x8f   : > { %11301 = vst [vmem:[#allocation102_spill] sm:$0xff] %v7567_v21  ;;  %v7573_v55 = vadd.f32 %v11304_v59, %v893_v5  ;;  %v11305_v33 = vld [vmem:[#allocation60_spill] sm:$0xff]  ;;  %v11309_v21 = vld [vmem:[#allocation74_spill] sm:$0xff]  ;;  %v7604_v44 = vadd.f32 %v972_v49, %v904_v29  ;;  %v7606_v4 = vadd.f32 %v973_v37, %v905_v30  ;;  %v7616_v15 = vadd.f32 %v978_v32, %v910_v34  ;;  %v11324_v49 = vld [vmem:[#allocation73_spill] sm:$0xff] }
  0x90   : > { %11303 = vst [vmem:[#allocation106_spill] sm:$0xff] %v7570_v56  ;;  %v7576_v39 = vadd.f32 %v11305_v33, %v894_v1  ;;  %v11306_v36 = vld [vmem:[#allocation64_spill] sm:$0xff]  ;;  %v7588_v18 = vadd.f32 %v11309_v21, %v898_v7  ;;  %v7591_v56 = vadd.f32 %v11310_v40, %v899_v50  ;;  %v11311_v5 = vld [vmem:[#allocation82_spill] sm:$0xff]  ;;  %v7608_v7 = vadd.f32 %v974_v38, %v906_v52  ;;  %v11328_v38 = vld [vmem:[#allocation79_spill] sm:$0xff] }
  0x91   : > { %v7579_v8 = vadd.f32 %v11306_v36, %v895_v17  ;;  %v7594_v59 = vadd.f32 %v11311_v5, %v900_v42  ;;  %v11312_v1 = vld [vmem:[#allocation86_spill] sm:$0xff]  ;;  %v7610_v21 = vadd.f32 %v975_v63, %v907_v22  ;;  %v7612_v50 = vadd.f32 %v976_v6, %v908_v45  ;;  %v11326_v37 = vld [vmem:[#allocation76_spill] sm:$0xff]  ;;  %v11330_v6 = vld [vmem:[#allocation81_spill] sm:$0xff] }
  0x92   : > { %v7597_v33 = vadd.f32 %v11312_v1, %v901_v47  ;;  %v11313_v17 = vld [vmem:[#allocation90_spill] sm:$0xff]  ;;  %v7614_v42 = vadd.f32 %v977_v26, %v909_v2  ;;  %v7618_v47 = vadd.f32 %v979_v11, %v911_v53  ;;  %v7622_v20 = vadd.f32 %v981_v19, %v913_v23  ;;  %v11322_v23 = vld [vmem:[#allocation72_spill] sm:$0xff]  ;;  %v11331_v32 = vld [vmem:[#allocation83_spill] sm:$0xff] }
  0x93   : > { %v7600_v36 = vadd.f32 %v11313_v17, %v902_v16  ;;  %v7620_v16 = vadd.f32 %v980_v12, %v912_v14  ;;  %v7624_v29 = vadd.f32 %v982_v24, %v914_v31  ;;  %v7626_v30 = vadd.f32 %v983_v41, %v915_v51  ;;  %v11323_v54 = vld [vmem:[#allocation42_spill] sm:$0xff]  ;;  %v11332_v12 = vld [vmem:[#allocation84_spill] sm:$0xff]  ;;  %v11333_v24 = vld [vmem:[#allocation85_spill] sm:$0xff] }
  0x94   : > { %v7628_v52 = vadd.f32 %v984_v58, %v916_v28  ;;  %v7630_v22 = vadd.f32 %v985_v62, %v917_v25  ;;  %v7632_v45 = vadd.f32 %v986_v43, %v918_v13  ;;  %v7634_v2 = vadd.f32 %v987_v60, %v919_v9  ;;  %v11325_v28 = vld [vmem:[#allocation75_spill] sm:$0xff]  ;;  %v11327_v9 = vld [vmem:[#allocation77_spill] sm:$0xff]  ;;  %v11335_v43 = vld [vmem:[#allocation88_spill] sm:$0xff] }
  0x95   : > { %11314 = vst [vmem:[#allocation116_spill] sm:$0xff] %v7626_v30  ;;  %v7636_v34 = vadd.f32 %v988_v27, %v920_v3  ;;  %v7638_v53 = vadd.f32 %v989_v46, %v921_v10  ;;  %v7640_v14 = vadd.f32 %v990_v35, %v922_v57  ;;  %v1059_v31 = vmul.f32 %v11323_v54, %v11322_v23  ;;  %v11329_v57 = vld [vmem:[#allocation80_spill] sm:$0xff]  ;;  %v11334_v58 = vld [vmem:[#allocation87_spill] sm:$0xff]  ;;  %v11336_v27 = vld [vmem:[#allocation89_spill] sm:$0xff] }
  0x96   : > { %11315 = vst [vmem:[#allocation117_spill] sm:$0xff] %v7628_v52  ;;  %11316 = vst [vmem:[#allocation121_spill] sm:$0xff] %v7630_v22  ;;  %v1060_v51 = vmul.f32 %v11323_v54, %v11324_v49  ;;  %v1061_v25 = vmul.f32 %v11323_v54, %v11325_v28  ;;  %v1062_v13 = vmul.f32 %v11323_v54, %v11326_v37  ;;  %v11337_v35 = vld [vmem:[#allocation91_spill] sm:$0xff]  ;;  %v11339_v1 = vld [vmem:[#allocation92_spill] sm:$0xff] }
  0x97   : > { %11317 = vst [vmem:[#allocation122_spill] sm:$0xff] %v7632_v45  ;;  %11318 = vst [vmem:[#allocation123_spill] sm:$0xff] %v7634_v2  ;;  %v1063_v3 = vmul.f32 %v11323_v54, %v11327_v9  ;;  %v1064_v10 = vmul.f32 %v11323_v54, %v11328_v38  ;;  %v1065_v63 = vmul.f32 %v11323_v54, %v11329_v57  ;;  %v7672_v5 = vld [vmem:[#allocation2 + $0x181] sm:$0xff]  ;;  %v11340_v23 = vld [vmem:[#allocation93_spill] sm:$0xff] }
  0x98   : > { %11319 = vst [vmem:[#allocation124_spill] sm:$0xff] %v7636_v34  ;;  %11320 = vst [vmem:[#allocation128_spill] sm:$0xff] %v7638_v53  ;;  %v1066_v26 = vmul.f32 %v11323_v54, %v11330_v6  ;;  %v1067_v11 = vmul.f32 %v11323_v54, %v11331_v32  ;;  %v1068_v19 = vmul.f32 %v11323_v54, %v11332_v12  ;;  %v11341_v28 = vld [vmem:[#allocation95_spill] sm:$0xff]  ;;  %v11342_v9 = vld [vmem:[#allocation96_spill] sm:$0xff] }
  0x99   : > { %11321 = vst [vmem:[#allocation129_spill] sm:$0xff] %v7640_v14  ;;  %v1069_v41 = vmul.f32 %v11323_v54, %v11333_v24  ;;  %v1070_v62 = vmul.f32 %v11323_v54, %v11334_v58  ;;  %v1071_v60 = vmul.f32 %v11323_v54, %v11335_v43  ;;  %v1072_v46 = vmul.f32 %v11323_v54, %v11336_v27  ;;  %v7682_v57 = vld [vmem:[#allocation2 + $0x189] sm:$0xff]  ;;  %v11345_v12 = vld [vmem:[#allocation99_spill] sm:$0xff]  ;;  %v11354_v22 = vld [vmem:[#allocation110_spill] sm:$0xff] }
  0x9a   : > { %v1073_v40 = vmul.f32 %v11323_v54, %v11337_v35  ;;  %11338 = vst [vmem:[#allocation130_spill] sm:$0xff] %v7672_v5  ;;  %v1074_v17 = vmul.f32 %v11323_v54, %v11339_v1  ;;  %v1075_v49 = vmul.f32 %v11323_v54, %v11340_v23  ;;  %v1076_v37 = vmul.f32 %v11323_v54, %v11341_v28  ;;  %v11344_v6 = vld [vmem:[#allocation97_spill] sm:$0xff]  ;;  %v11346_v58 = vld [vmem:[#allocation100_spill] sm:$0xff]  ;;  %v11348_v1 = vld [vmem:[#allocation103_spill] sm:$0xff] }
  0x9b   : > { %v1077_v38 = vmul.f32 %v11323_v54, %v11342_v9  ;;  %11343 = vst [vmem:[#allocation131_spill] sm:$0xff] %v7682_v57  ;;  %v1078_v32 = vmul.f32 %v11323_v54, %v11344_v6  ;;  %v1079_v24 = vmul.f32 %v11323_v54, %v11345_v12  ;;  %v1080_v43 = vmul.f32 %v11323_v54, %v11346_v58  ;;  %v11347_v27 = vld [vmem:[#allocation101_spill] sm:$0xff]  ;;  %v11349_v28 = vld [vmem:[#allocation104_spill] sm:$0xff]  ;;  %v11351_v34 = vld [vmem:[#allocation107_spill] sm:$0xff] }
  0x9c   : > { %v1081_v35 = vmul.f32 %v11323_v54, %v11347_v27  ;;  %v1082_v23 = vmul.f32 %v11323_v54, %v11348_v1  ;;  %v1083_v9 = vmul.f32 %v11323_v54, %v11349_v28  ;;  %v11350_v14 = vld [vmem:[#allocation105_spill] sm:$0xff]  ;;  %v1085_v6 = vmul.f32 %v11323_v54, %v11351_v34  ;;  %v11352_v2 = vld [vmem:[#allocation108_spill] sm:$0xff]  ;;  %v11355_v52 = vld [vmem:[#allocation102_spill] sm:$0xff] }
  0x9d   : > { %v1084_v53 = vmul.f32 %v11323_v54, %v11350_v14  ;;  %v1086_v12 = vmul.f32 %v11323_v54, %v11352_v2  ;;  %v11353_v45 = vld [vmem:[#allocation109_spill] sm:$0xff]  ;;  %v1088_v27 = vmul.f32 %v11323_v54, %v11354_v22  ;;  %v1089_v1 = vmul.f32 %v11323_v54, %v7672_v5  ;;  %v11356_v30 = vld [vmem:[#allocation106_spill] sm:$0xff] }
  0x9e   : > { %v1087_v58 = vmul.f32 %v11323_v54, %v11353_v45  ;;  %v1090_v28 = vmul.f32 %v11323_v54, %v7682_v57  ;;  %v7711_v14 = vadd.f32 %v1059_v31, %v11355_v52  ;;  %v7714_v34 = vadd.f32 %v1060_v51, %v11356_v30  ;;  %v11398_v57 = vld [vmem:[#allocation143_spill] sm:$0xff] }
  0x9f   : > { %v7717_v2 = vadd.f32 %v1061_v25, %v7573_v55  ;;  %v7720_v45 = vadd.f32 %v1062_v13, %v7576_v39  ;;  %v7723_v22 = vadd.f32 %v1063_v3, %v7579_v8  ;;  %v7726_v5 = vadd.f32 %v1064_v10, %v7582_v61 }
  0xa0   : > { %v7729_v54 = vadd.f32 %v1065_v63, %v7585_v48  ;;  %v7732_v52 = vadd.f32 %v1066_v26, %v7588_v18  ;;  %v7735_v30 = vadd.f32 %v1067_v11, %v7591_v56  ;;  %v7738_v55 = vadd.f32 %v1068_v19, %v7594_v59  ;;  %v11371_v26 = vld [vmem:[#allocation129_spill] sm:$0xff]  ;;  %v11374_v19 = vld [vmem:[#allocation43_spill] sm:$0xff] }
  0xa1   : > { %v7741_v39 = vadd.f32 %v1069_v41, %v7597_v33  ;;  %v7744_v8 = vadd.f32 %v1070_v62, %v7600_v36  ;;  %v7747_v61 = vadd.f32 %v1071_v60, %v7602_v0  ;;  %v7750_v48 = vadd.f32 %v1072_v46, %v7604_v44  ;;  %v11375_v62 = vld [vmem:[#allocation112_spill] sm:$0xff]  ;;  %v11376_v46 = vld [vmem:[#allocation113_spill] sm:$0xff] }
  0xa2   : > { %v7753_v18 = vadd.f32 %v1073_v40, %v7606_v4  ;;  %v7756_v56 = vadd.f32 %v1074_v17, %v7608_v7  ;;  %v7759_v59 = vadd.f32 %v1075_v49, %v7610_v21  ;;  %v7762_v33 = vadd.f32 %v1076_v37, %v7612_v50  ;;  %v11357_v50 = vld [vmem:[#allocation116_spill] sm:$0xff]  ;;  %v11377_v17 = vld [vmem:[#allocation114_spill] sm:$0xff]  ;;  %v11378_v37 = vld [vmem:[#allocation115_spill] sm:$0xff] }
  0xa3   : > { %v7765_v36 = vadd.f32 %v1077_v38, %v7614_v42  ;;  %v7768_v0 = vadd.f32 %v1078_v32, %v7616_v15  ;;  %v7771_v44 = vadd.f32 %v1079_v24, %v7618_v47  ;;  %v7774_v4 = vadd.f32 %v1080_v43, %v7620_v16  ;;  %v11359_v42 = vld [vmem:[#allocation117_spill] sm:$0xff]  ;;  %v11363_v47 = vld [vmem:[#allocation122_spill] sm:$0xff]  ;;  %v11365_v16 = vld [vmem:[#allocation123_spill] sm:$0xff] }
  0xa4   : > { %v7777_v7 = vadd.f32 %v1081_v35, %v7622_v20  ;;  %v7780_v21 = vadd.f32 %v1082_v23, %v7624_v29  ;;  %v7783_v31 = vadd.f32 %v1083_v9, %v11357_v50  ;;  %v7786_v51 = vadd.f32 %v1084_v53, %v11359_v42  ;;  %v11361_v15 = vld [vmem:[#allocation121_spill] sm:$0xff]  ;;  %v11367_v20 = vld [vmem:[#allocation124_spill] sm:$0xff]  ;;  %v11373_v53 = vld [vmem:[#allocation111_spill] sm:$0xff] }
  0xa5   : > { %v7789_v25 = vadd.f32 %v1085_v6, %v11361_v15  ;;  %v7792_v13 = vadd.f32 %v1086_v12, %v11363_v47  ;;  %v7795_v3 = vadd.f32 %v1087_v58, %v11365_v16  ;;  %v7798_v10 = vadd.f32 %v1088_v27, %v11367_v20  ;;  %v11369_v29 = vld [vmem:[#allocation128_spill] sm:$0xff]  ;;  %v11379_v32 = vld [vmem:[#allocation118_spill] sm:$0xff]  ;;  %v11380_v43 = vld [vmem:[#allocation119_spill] sm:$0xff] }
  0xa6   : > { %11358 = vst [vmem:[#allocation135_spill] sm:$0xff] %v7783_v31  ;;  %11360 = vst [vmem:[#allocation47_spill] sm:$0xff] %v7786_v51  ;;  %v7801_v63 = vadd.f32 %v1089_v1, %v11369_v29  ;;  %v7804_v11 = vadd.f32 %v1090_v28, %v11371_v26  ;;  %v1159_v41 = vmul.f32 %v11374_v19, %v11373_v53  ;;  %v11381_v23 = vld [vmem:[#allocation120_spill] sm:$0xff]  ;;  %v11382_v6 = vld [vmem:[#allocation125_spill] sm:$0xff] }
  0xa7   : > { %11362 = vst [vmem:[#allocation40_spill] sm:$0xff] %v7789_v25  ;;  %11364 = vst [vmem:[#allocation49_spill] sm:$0xff] %v7792_v13  ;;  %v1160_v60 = vmul.f32 %v11374_v19, %v11375_v62  ;;  %v1161_v40 = vmul.f32 %v11374_v19, %v11376_v46  ;;  %v1162_v49 = vmul.f32 %v11374_v19, %v11377_v17  ;;  %v11383_v58 = vld [vmem:[#allocation126_spill] sm:$0xff]  ;;  %v11384_v1 = vld [vmem:[#allocation127_spill] sm:$0xff] }
  0xa8   : > { %11366 = vst [vmem:[#allocation50_spill] sm:$0xff] %v7795_v3  ;;  %11368 = vst [vmem:[#allocation51_spill] sm:$0xff] %v7798_v10  ;;  %v1163_v38 = vmul.f32 %v11374_v19, %v11378_v37  ;;  %v1164_v24 = vmul.f32 %v11374_v19, %v11379_v32  ;;  %v1165_v35 = vmul.f32 %v11374_v19, %v11380_v43  ;;  %v11385_v50 = vld [vmem:[#allocation132_spill] sm:$0xff]  ;;  %v11386_v15 = vld [vmem:[#allocation133_spill] sm:$0xff] }
  0xa9   : > { %11370 = vst [vmem:[#allocation53_spill] sm:$0xff] %v7801_v63  ;;  %11372 = vst [vmem:[#allocation54_spill] sm:$0xff] %v7804_v11  ;;  %v1166_v9 = vmul.f32 %v11374_v19, %v11381_v23  ;;  %v1167_v12 = vmul.f32 %v11374_v19, %v11382_v6  ;;  %v1168_v27 = vmul.f32 %v11374_v19, %v11383_v58  ;;  %v11387_v16 = vld [vmem:[#allocation134_spill] sm:$0xff]  ;;  %v11388_v29 = vld [vmem:[#allocation136_spill] sm:$0xff] }
  0xaa   : > { %v1169_v28 = vmul.f32 %v11374_v19, %v11384_v1  ;;  %v1170_v42 = vmul.f32 %v11374_v19, %v11385_v50  ;;  %v1171_v47 = vmul.f32 %v11374_v19, %v11386_v15  ;;  %v1172_v20 = vmul.f32 %v11374_v19, %v11387_v16  ;;  %v7836_v53 = vld [vmem:[#allocation2 + $0x182] sm:$0xff]  ;;  %v11390_v62 = vld [vmem:[#allocation137_spill] sm:$0xff]  ;;  %v11391_v17 = vld [vmem:[#allocation138_spill] sm:$0xff] }
  0xab   : > { %v1173_v26 = vmul.f32 %v11374_v19, %v11388_v29  ;;  %11389 = vst [vmem:[#allocation55_spill] sm:$0xff] %v7836_v53  ;;  %v1174_v46 = vmul.f32 %v11374_v19, %v11390_v62  ;;  %v1175_v37 = vmul.f32 %v11374_v19, %v11391_v17  ;;  %v11392_v32 = vld [vmem:[#allocation41_spill] sm:$0xff]  ;;  %v11393_v23 = vld [vmem:[#allocation139_spill] sm:$0xff]  ;;  %v11395_v1 = vld [vmem:[#allocation140_spill] sm:$0xff]  ;;  %v1181_v17 = vmul.f32 %v11374_v19, %v11398_v57 }
  0xac   : > { %v1176_v43 = vmul.f32 %v11374_v19, %v11392_v32  ;;  %v1177_v6 = vmul.f32 %v11374_v19, %v11393_v23  ;;  %v7846_v58 = vld [vmem:[#allocation2 + $0x18a] sm:$0xff]  ;;  %v1178_v50 = vmul.f32 %v11374_v19, %v11395_v1  ;;  %v11397_v29 = vld [vmem:[#allocation142_spill] sm:$0xff]  ;;  %v11402_v13 = vld [vmem:[#allocation147_spill] sm:$0xff] }
  0xad   : > { %11394 = vst [vmem:[#allocation57_spill] sm:$0xff] %v7846_v58  ;;  %v11396_v15 = vld [vmem:[#allocation141_spill] sm:$0xff]  ;;  %v1180_v62 = vmul.f32 %v11374_v19, %v11397_v29  ;;  %v11399_v11 = vld [vmem:[#allocation144_spill] sm:$0xff]  ;;  %v11401_v10 = vld [vmem:[#allocation146_spill] sm:$0xff]  ;;  %v1185_v1 = vmul.f32 %v11374_v19, %v11402_v13  ;;  %v7878_v13 = vadd.f32 %v1160_v60, %v7714_v34  ;;  %v7899_v34 = vadd.f32 %v1167_v12, %v7735_v30 }
  0xae   : > { %v1179_v16 = vmul.f32 %v11374_v19, %v11396_v15  ;;  %v1182_v32 = vmul.f32 %v11374_v19, %v11399_v11  ;;  %v11400_v63 = vld [vmem:[#allocation145_spill] sm:$0xff]  ;;  %v1184_v3 = vmul.f32 %v11374_v19, %v11401_v10  ;;  %v11403_v25 = vld [vmem:[#allocation148_spill] sm:$0xff]  ;;  %v11405_v31 = vld [vmem:[#allocation150_spill] sm:$0xff]  ;;  %v1189_v11 = vmul.f32 %v11374_v19, %v7836_v53 }
  0xaf   : > { %v1183_v23 = vmul.f32 %v11374_v19, %v11400_v63  ;;  %v1186_v15 = vmul.f32 %v11374_v19, %v11403_v25  ;;  %v11404_v51 = vld [vmem:[#allocation149_spill] sm:$0xff]  ;;  %v1188_v57 = vmul.f32 %v11374_v19, %v11405_v31  ;;  %v1190_v63 = vmul.f32 %v11374_v19, %v7846_v58  ;;  %v1226_v60 = vld [vmem:[#allocation2 + $0x48] sm:$0xff]  ;;  %v1247_v58 = vld [vmem:[#allocation2 + $0x140] sm:$0xff] }
  0xb0   : > { %v1187_v29 = vmul.f32 %v11374_v19, %v11404_v51  ;;  %v7875_v10 = vadd.f32 %v1159_v41, %v7711_v14  ;;  %v7881_v25 = vadd.f32 %v1161_v40, %v7717_v2  ;;  %v7884_v51 = vadd.f32 %v1162_v49, %v7720_v45  ;;  %v1224_v30 = vld [vmem:[#allocation2 + $0x30] sm:$0xff]  ;;  %v1225_v41 = vld [vmem:[#allocation2 + $0x38] sm:$0xff]  ;;  %v1228_v40 = vld [vmem:[#allocation2 + $0x60] sm:$0xff] }
  0xb1   : > { %v7887_v31 = vadd.f32 %v1163_v38, %v7723_v22  ;;  %v7890_v53 = vadd.f32 %v1164_v24, %v7726_v5  ;;  %v7893_v19 = vadd.f32 %v1165_v35, %v7729_v54  ;;  %v7896_v14 = vadd.f32 %v1166_v9, %v7732_v52  ;;  %v1229_v49 = vld [vmem:[#allocation2 + $0x68] sm:$0xff]  ;;  %v1231_v24 = vld [vmem:[#allocation2 + $0x80] sm:$0xff]  ;;  %v1232_v35 = vld [vmem:[#allocation2 + $0x90] sm:$0xff] }
  0xb2   : > { %v7902_v2 = vadd.f32 %v1168_v27, %v7738_v55  ;;  %v7905_v45 = vadd.f32 %v1169_v28, %v7741_v39  ;;  %v7908_v22 = vadd.f32 %v1170_v42, %v7744_v8  ;;  %v7911_v5 = vadd.f32 %v1171_v47, %v7747_v61  ;;  %v11408_v9 = vld [vmem:[#allocation135_spill] sm:$0xff]  ;;  %v1234_v42 = vld [vmem:[#allocation2 + $0xa8] sm:$0xff]  ;;  %v1235_v47 = vld [vmem:[#allocation2 + $0xb0] sm:$0xff] }
  0xb3   : > { %v7914_v54 = vadd.f32 %v1172_v20, %v7750_v48  ;;  %v7917_v52 = vadd.f32 %v1173_v26, %v7753_v18  ;;  %v7920_v55 = vadd.f32 %v1174_v46, %v7756_v56  ;;  %v7923_v39 = vadd.f32 %v1175_v37, %v7759_v59  ;;  %v1227_v48 = vld [vmem:[#allocation2 + $0x50] sm:$0xff]  ;;  %v11416_v26 = vld [vmem:[#allocation50_spill] sm:$0xff] }
  0xb4   : > { %v7926_v8 = vadd.f32 %v1176_v43, %v7762_v33  ;;  %v7929_v61 = vadd.f32 %v1177_v6, %v7765_v36  ;;  %v7932_v18 = vadd.f32 %v1178_v50, %v7768_v0  ;;  %v7935_v38 = vadd.f32 %v1179_v16, %v7771_v44  ;;  %v1230_v33 = vld [vmem:[#allocation2 + $0x78] sm:$0xff]  ;;  %v11410_v0 = vld [vmem:[#allocation47_spill] sm:$0xff]  ;;  %v11412_v44 = vld [vmem:[#allocation40_spill] sm:$0xff] }
  0xb5   : > { %v7938_v56 = vadd.f32 %v1180_v62, %v7774_v4  ;;  %v7941_v59 = vadd.f32 %v1181_v17, %v7777_v7  ;;  %v7944_v36 = vadd.f32 %v1182_v32, %v7780_v21  ;;  %v7947_v12 = vadd.f32 %v1183_v23, %v11408_v9  ;;  %v1233_v4 = vld [vmem:[#allocation2 + $0x98] sm:$0xff]  ;;  %v11414_v7 = vld [vmem:[#allocation49_spill] sm:$0xff]  ;;  %v11418_v21 = vld [vmem:[#allocation51_spill] sm:$0xff] }
  0xb6   : > { %v7950_v27 = vadd.f32 %v1184_v3, %v11410_v0  ;;  %v7953_v28 = vadd.f32 %v1185_v1, %v11412_v44  ;;  %v7956_v20 = vadd.f32 %v1186_v15, %v11414_v7  ;;  %v7959_v46 = vadd.f32 %v1187_v29, %v11416_v26  ;;  %v11420_v43 = vld [vmem:[#allocation53_spill] sm:$0xff]  ;;  %v1236_v3 = vld [vmem:[#allocation2 + $0xc0] sm:$0xff]  ;;  %v1237_v50 = vld [vmem:[#allocation2 + $0xc8] sm:$0xff] }
  0xb7   : > { %11406 = vst [vmem:[#allocation58_spill] sm:$0xff] %v7941_v59  ;;  %11407 = vst [vmem:[#allocation59_spill] sm:$0xff] %v7944_v36  ;;  %v7962_v37 = vadd.f32 %v1188_v57, %v11418_v21  ;;  %v7965_v6 = vadd.f32 %v1189_v11, %v11420_v43  ;;  %v1238_v16 = vld [vmem:[#allocation2 + $0xd8] sm:$0xff]  ;;  %v1239_v32 = vld [vmem:[#allocation2 + $0xe0] sm:$0xff] }
  0xb8   : > { %11409 = vst [vmem:[#allocation61_spill] sm:$0xff] %v7947_v12  ;;  %11411 = vst [vmem:[#allocation62_spill] sm:$0xff] %v7950_v27  ;;  %v11422_v62 = vld [vmem:[#allocation54_spill] sm:$0xff]  ;;  %v1240_v23 = vld [vmem:[#allocation2 + $0xf0] sm:$0xff] }
  0xb9   : > { %11413 = vst [vmem:[#allocation63_spill] sm:$0xff] %v7953_v28  ;;  %11415 = vst [vmem:[#allocation65_spill] sm:$0xff] %v7956_v20  ;;  %v7968_v17 = vadd.f32 %v1190_v63, %v11422_v62  ;;  %v1241_v1 = vld [vmem:[#allocation2 + $0xf8] sm:$0xff]  ;;  %v11424_v15 = vld [vmem:[#allocation44_spill] sm:$0xff] }
  0xba   : > { %11417 = vst [vmem:[#allocation66_spill] sm:$0xff] %v7959_v46  ;;  %11419 = vst [vmem:[#allocation68_spill] sm:$0xff] %v7962_v37  ;;  %v1260_v9 = vmul.f32 %v11424_v15, %v1224_v30  ;;  %v1261_v29 = vmul.f32 %v11424_v15, %v1225_v41  ;;  %v1262_v0 = vmul.f32 %v11424_v15, %v1226_v60  ;;  %v1242_v57 = vld [vmem:[#allocation2 + $0x108] sm:$0xff]  ;;  %v1243_v44 = vld [vmem:[#allocation2 + $0x110] sm:$0xff] }
  0xbb   : > { %11421 = vst [vmem:[#allocation69_spill] sm:$0xff] %v7965_v6  ;;  %11423 = vst [vmem:[#allocation71_spill] sm:$0xff] %v7968_v17  ;;  %v1244_v7 = vld [vmem:[#allocation2 + $0x120] sm:$0xff]  ;;  %v1263_v11 = vmul.f32 %v11424_v15, %v1227_v48  ;;  %v1264_v26 = vmul.f32 %v11424_v15, %v1228_v40  ;;  %v1265_v21 = vmul.f32 %v11424_v15, %v1229_v49  ;;  %v1245_v43 = vld [vmem:[#allocation2 + $0x128] sm:$0xff] }
  0xbc   : > { %v1266_v63 = vmul.f32 %v11424_v15, %v1230_v33  ;;  %v1246_v62 = vld [vmem:[#allocation2 + $0x138] sm:$0xff]  ;;  %v1267_v30 = vmul.f32 %v11424_v15, %v1231_v24  ;;  %v1268_v41 = vmul.f32 %v11424_v15, %v1232_v35  ;;  %v1269_v60 = vmul.f32 %v11424_v15, %v1233_v4  ;;  %v1248_v6 = vld [vmem:[#allocation2 + $0x150] sm:$0xff]  ;;  %v1250_v48 = vld [vmem:[#allocation2 + $0x168] sm:$0xff] }
  0xbd   : > { %v1270_v17 = vmul.f32 %v11424_v15, %v1234_v42  ;;  %v1249_v37 = vld [vmem:[#allocation2 + $0x158] sm:$0xff]  ;;  %v1271_v40 = vmul.f32 %v11424_v15, %v1235_v47  ;;  %v1272_v49 = vmul.f32 %v11424_v15, %v1236_v3  ;;  %v1273_v33 = vmul.f32 %v11424_v15, %v1237_v50  ;;  %v1251_v20 = vld [vmem:[#allocation2 + $0x170] sm:$0xff]  ;;  %v1255_v27 = vld [vmem:[#allocation2 + $0x1a0] sm:$0xff] }
  0xbe   : > { %v1274_v46 = vmul.f32 %v11424_v15, %v1238_v16  ;;  %v1254_v28 = vld [vmem:[#allocation2 + $0x198] sm:$0xff]  ;;  %v1275_v24 = vmul.f32 %v11424_v15, %v1239_v32  ;;  %v1276_v35 = vmul.f32 %v11424_v15, %v1240_v23  ;;  %v1277_v4 = vmul.f32 %v11424_v15, %v1241_v1 }
  0xbf   : > { %v1278_v42 = vmul.f32 %v11424_v15, %v1242_v57  ;;  %v1279_v12 = vmul.f32 %v11424_v15, %v1243_v44  ;;  %v1280_v47 = vmul.f32 %v11424_v15, %v1244_v7  ;;  %v1281_v3 = vmul.f32 %v11424_v15, %v1245_v43  ;;  %v11425_v57 = vld [vmem:[#allocation94_spill] sm:$0xff] }
  0xc0   : > { %v1282_v50 = vmul.f32 %v11424_v15, %v1246_v62  ;;  %v1283_v16 = vmul.f32 %v11424_v15, %v1247_v58  ;;  %v1284_v36 = vmul.f32 %v11424_v15, %v1248_v6  ;;  %v1285_v32 = vmul.f32 %v11424_v15, %v1249_v37  ;;  %v11426_v44 = vld [vmem:[#allocation98_spill] sm:$0xff] }
  0xc1   : > { %v1286_v23 = vmul.f32 %v11424_v15, %v1250_v48  ;;  %v1287_v1 = vmul.f32 %v11424_v15, %v1251_v20  ;;  %v1288_v59 = vmul.f32 %v11424_v15, %v11425_v57  ;;  %v1289_v7 = vmul.f32 %v11424_v15, %v11426_v44  ;;  %v1340_v44 = vld [vmem:[#allocation2 + $0xf1] sm:$0xff] }
  0xc2   : > { %v1290_v43 = vmul.f32 %v11424_v15, %v1254_v28  ;;  %v1291_v62 = vmul.f32 %v11424_v15, %v1255_v27  ;;  %v8005_v58 = vadd.f32 %v1260_v9, %v7875_v10  ;;  %v8008_v6 = vadd.f32 %v1261_v29, %v7878_v13  ;;  %v1325_v28 = vld [vmem:[#allocation2 + $0x39] sm:$0xff]  ;;  %v1326_v15 = vld [vmem:[#allocation2 + $0x49] sm:$0xff] }
  0xc3   : > { %v8011_v37 = vadd.f32 %v1262_v0, %v7881_v25  ;;  %v8014_v20 = vadd.f32 %v1263_v11, %v7884_v51  ;;  %v8017_v48 = vadd.f32 %v1264_v26, %v7887_v31  ;;  %v8020_v57 = vadd.f32 %v1265_v21, %v7890_v53  ;;  %v1329_v9 = vld [vmem:[#allocation2 + $0x69] sm:$0xff]  ;;  %v1331_v0 = vld [vmem:[#allocation2 + $0x81] sm:$0xff]  ;;  %v1332_v11 = vld [vmem:[#allocation2 + $0x91] sm:$0xff] }
  0xc4   : > { %v8023_v27 = vadd.f32 %v1266_v63, %v7893_v19  ;;  %v8026_v10 = vadd.f32 %v1267_v30, %v7896_v14  ;;  %v8029_v13 = vadd.f32 %v1268_v41, %v7899_v34  ;;  %v8032_v25 = vadd.f32 %v1269_v60, %v7902_v2  ;;  %v1324_v34 = vld [vmem:[#allocation2 + $0x31] sm:$0xff]  ;;  %v1334_v41 = vld [vmem:[#allocation2 + $0xa9] sm:$0xff] }
  0xc5   : > { %v8035_v51 = vadd.f32 %v1270_v17, %v7905_v45  ;;  %v8038_v31 = vadd.f32 %v1271_v40, %v7908_v22  ;;  %v8041_v53 = vadd.f32 %v1272_v49, %v7911_v5  ;;  %v8044_v19 = vadd.f32 %v1273_v33, %v7914_v54  ;;  %v1327_v54 = vld [vmem:[#allocation2 + $0x51] sm:$0xff]  ;;  %v1328_v17 = vld [vmem:[#allocation2 + $0x61] sm:$0xff] }
  0xc6   : > { %v8047_v14 = vadd.f32 %v1274_v46, %v7917_v52  ;;  %v8050_v2 = vadd.f32 %v1275_v24, %v7920_v55  ;;  %v8053_v45 = vadd.f32 %v1276_v35, %v7923_v39  ;;  %v8056_v22 = vadd.f32 %v1277_v4, %v7926_v8  ;;  %v11427_v39 = vld [vmem:[#allocation58_spill] sm:$0xff]  ;;  %v11431_v21 = vld [vmem:[#allocation61_spill] sm:$0xff]  ;;  %v11441_v35 = vld [vmem:[#allocation68_spill] sm:$0xff] }
  0xc7   : > { %v8059_v5 = vadd.f32 %v1278_v42, %v7929_v61  ;;  %v8062_v52 = vadd.f32 %v1279_v12, %v7932_v18  ;;  %v8065_v46 = vadd.f32 %v1280_v47, %v7935_v38  ;;  %v8068_v55 = vadd.f32 %v1281_v3, %v7938_v56  ;;  %v1330_v8 = vld [vmem:[#allocation2 + $0x79] sm:$0xff]  ;;  %v1335_v60 = vld [vmem:[#allocation2 + $0xb1] sm:$0xff]  ;;  %v1336_v47 = vld [vmem:[#allocation2 + $0xc1] sm:$0xff] }
  0xc8   : > { %v8071_v29 = vadd.f32 %v1282_v50, %v11427_v39  ;;  %v11429_v61 = vld [vmem:[#allocation59_spill] sm:$0xff]  ;;  %v8077_v63 = vadd.f32 %v1284_v36, %v11431_v21  ;;  %v11433_v18 = vld [vmem:[#allocation62_spill] sm:$0xff]  ;;  %v11437_v40 = vld [vmem:[#allocation65_spill] sm:$0xff]  ;;  %v8092_v4 = vadd.f32 %v1289_v7, %v11441_v35 }
  0xc9   : > { %v8074_v26 = vadd.f32 %v1283_v16, %v11429_v61  ;;  %v8080_v12 = vadd.f32 %v1285_v32, %v11433_v18  ;;  %v11435_v38 = vld [vmem:[#allocation63_spill] sm:$0xff]  ;;  %v8086_v49 = vadd.f32 %v1287_v1, %v11437_v40  ;;  %v11439_v33 = vld [vmem:[#allocation66_spill] sm:$0xff]  ;;  %v11443_v36 = vld [vmem:[#allocation69_spill] sm:$0xff] }
  0xca   : > { %11428 = vst [vmem:[#allocation48_spill] sm:$0xff] %v8071_v29  ;;  %11432 = vst [vmem:[#allocation56_spill] sm:$0xff] %v8077_v63  ;;  %v8083_v30 = vadd.f32 %v1286_v23, %v11435_v38  ;;  %v1333_v56 = vld [vmem:[#allocation2 + $0x99] sm:$0xff]  ;;  %v8089_v24 = vadd.f32 %v1288_v59, %v11439_v33  ;;  %v8095_v42 = vadd.f32 %v1290_v43, %v11443_v36  ;;  %v1337_v3 = vld [vmem:[#allocation2 + $0xc9] sm:$0xff] }
  0xcb   : > { %11430 = vst [vmem:[#allocation52_spill] sm:$0xff] %v8074_v26  ;;  %11434 = vst [vmem:[#allocation60_spill] sm:$0xff] %v8080_v12  ;;  %v1338_v50 = vld [vmem:[#allocation2 + $0xd9] sm:$0xff]  ;;  %v1339_v23 = vld [vmem:[#allocation2 + $0xe1] sm:$0xff] }
  0xcc   : > { %11436 = vst [vmem:[#allocation64_spill] sm:$0xff] %v8083_v30  ;;  %11438 = vst [vmem:[#allocation67_spill] sm:$0xff] %v8086_v49  ;;  %v11445_v16 = vld [vmem:[#allocation71_spill] sm:$0xff]  ;;  %v11447_v1 = vld [vmem:[#allocation45_spill] sm:$0xff] }
  0xcd   : > { %11440 = vst [vmem:[#allocation70_spill] sm:$0xff] %v8089_v24  ;;  %11442 = vst [vmem:[#allocation74_spill] sm:$0xff] %v8092_v4  ;;  %v8098_v32 = vadd.f32 %v1291_v62, %v11445_v16  ;;  %v1341_v39 = vld [vmem:[#allocation2 + $0xf9] sm:$0xff]  ;;  %v1360_v61 = vmul.f32 %v11447_v1, %v1324_v34  ;;  %v1361_v59 = vmul.f32 %v11447_v1, %v1325_v28  ;;  %v1342_v7 = vld [vmem:[#allocation2 + $0x109] sm:$0xff] }
  0xce   : > { %11444 = vst [vmem:[#allocation78_spill] sm:$0xff] %v8095_v42  ;;  %v1362_v21 = vmul.f32 %v11447_v1, %v1326_v15  ;;  %v1343_v18 = vld [vmem:[#allocation2 + $0x111] sm:$0xff]  ;;  %v1344_v38 = vld [vmem:[#allocation2 + $0x121] sm:$0xff]  ;;  %v1363_v43 = vmul.f32 %v11447_v1, %v1327_v54  ;;  %v1364_v40 = vmul.f32 %v11447_v1, %v1328_v17  ;;  %v1365_v33 = vmul.f32 %v11447_v1, %v1329_v9  ;;  %v1345_v35 = vld [vmem:[#allocation2 + $0x129] sm:$0xff] }
  0xcf   : > { %11446 = vst [vmem:[#allocation82_spill] sm:$0xff] %v8098_v32  ;;  %v1366_v62 = vmul.f32 %v11447_v1, %v1330_v8  ;;  %v1346_v36 = vld [vmem:[#allocation2 + $0x139] sm:$0xff]  ;;  %v1347_v16 = vld [vmem:[#allocation2 + $0x141] sm:$0xff]  ;;  %v1367_v34 = vmul.f32 %v11447_v1, %v1331_v0  ;;  %v1368_v28 = vmul.f32 %v11447_v1, %v1332_v11  ;;  %v1369_v15 = vmul.f32 %v11447_v1, %v1333_v56  ;;  %v1348_v42 = vld [vmem:[#allocation2 + $0x151] sm:$0xff] }
  0xd0   : > { %v1370_v32 = vmul.f32 %v11447_v1, %v1334_v41  ;;  %v1349_v4 = vld [vmem:[#allocation2 + $0x159] sm:$0xff]  ;;  %v1350_v54 = vld [vmem:[#allocation2 + $0x169] sm:$0xff]  ;;  %v1371_v17 = vmul.f32 %v11447_v1, %v1335_v60  ;;  %v1372_v9 = vmul.f32 %v11447_v1, %v1336_v47  ;;  %v1373_v8 = vmul.f32 %v11447_v1, %v1337_v3  ;;  %v1351_v49 = vld [vmem:[#allocation2 + $0x171] sm:$0xff] }
  0xd1   : > { %v1374_v24 = vmul.f32 %v11447_v1, %v1338_v50  ;;  %v1354_v30 = vld [vmem:[#allocation2 + $0x199] sm:$0xff]  ;;  %v1375_v0 = vmul.f32 %v11447_v1, %v1339_v23  ;;  %v1376_v11 = vmul.f32 %v11447_v1, %v1340_v44  ;;  %v1377_v56 = vmul.f32 %v11447_v1, %v1341_v39  ;;  %v1355_v12 = vld [vmem:[#allocation2 + $0x1a1] sm:$0xff] }
  0xd2   : > { %v1378_v41 = vmul.f32 %v11447_v1, %v1342_v7  ;;  %v1379_v63 = vmul.f32 %v11447_v1, %v1343_v18  ;;  %v1380_v60 = vmul.f32 %v11447_v1, %v1344_v38  ;;  %v1381_v47 = vmul.f32 %v11447_v1, %v1345_v35  ;;  %v11448_v7 = vld [vmem:[#allocation130_spill] sm:$0xff]  ;;  %v11449_v18 = vld [vmem:[#allocation131_spill] sm:$0xff] }
  0xd3   : > { %v1382_v3 = vmul.f32 %v11447_v1, %v1346_v36  ;;  %v1383_v50 = vmul.f32 %v11447_v1, %v1347_v16  ;;  %v1384_v26 = vmul.f32 %v11447_v1, %v1348_v42  ;;  %v1385_v23 = vmul.f32 %v11447_v1, %v1349_v4 }
  0xd4   : > { %v1386_v44 = vmul.f32 %v11447_v1, %v1350_v54  ;;  %v1387_v39 = vmul.f32 %v11447_v1, %v1351_v49  ;;  %v1388_v29 = vmul.f32 %v11447_v1, %v11448_v7  ;;  %v1389_v38 = vmul.f32 %v11447_v1, %v11449_v18  ;;  %v1440_v18 = vld [vmem:[#allocation2 + $0xf2] sm:$0xff] }
  0xd5   : > { %v1390_v35 = vmul.f32 %v11447_v1, %v1354_v30  ;;  %v1391_v36 = vmul.f32 %v11447_v1, %v1355_v12  ;;  %v8135_v16 = vadd.f32 %v1360_v61, %v8005_v58  ;;  %v8138_v42 = vadd.f32 %v1361_v59, %v8008_v6  ;;  %v1425_v30 = vld [vmem:[#allocation2 + $0x3a] sm:$0xff]  ;;  %v1426_v1 = vld [vmem:[#allocation2 + $0x4a] sm:$0xff] }
  0xd6   : > { %v8141_v4 = vadd.f32 %v1362_v21, %v8011_v37  ;;  %v8144_v49 = vadd.f32 %v1363_v43, %v8014_v20  ;;  %v8147_v54 = vadd.f32 %v1364_v40, %v8017_v48  ;;  %v8150_v7 = vadd.f32 %v1365_v33, %v8020_v57  ;;  %v1429_v61 = vld [vmem:[#allocation2 + $0x6a] sm:$0xff]  ;;  %v1431_v21 = vld [vmem:[#allocation2 + $0x82] sm:$0xff]  ;;  %v1432_v43 = vld [vmem:[#allocation2 + $0x92] sm:$0xff] }
  0xd7   : > { %v8153_v12 = vadd.f32 %v1366_v62, %v8023_v27  ;;  %v8156_v58 = vadd.f32 %v1367_v34, %v8026_v10  ;;  %v8159_v6 = vadd.f32 %v1368_v28, %v8029_v13  ;;  %v8162_v37 = vadd.f32 %v1369_v15, %v8032_v25  ;;  %v1424_v13 = vld [vmem:[#allocation2 + $0x32] sm:$0xff]  ;;  %v11452_v33 = vld [vmem:[#allocation56_spill] sm:$0xff] }
  0xd8   : > { %v8165_v20 = vadd.f32 %v1370_v32, %v8035_v51  ;;  %v8168_v48 = vadd.f32 %v1371_v17, %v8038_v31  ;;  %v8171_v57 = vadd.f32 %v1372_v9, %v8041_v53  ;;  %v8174_v27 = vadd.f32 %v1373_v8, %v8044_v19  ;;  %v1427_v19 = vld [vmem:[#allocation2 + $0x52] sm:$0xff]  ;;  %v1428_v32 = vld [vmem:[#allocation2 + $0x62] sm:$0xff]  ;;  %v1434_v28 = vld [vmem:[#allocation2 + $0xaa] sm:$0xff] }
  0xd9   : > { %v8177_v10 = vadd.f32 %v1374_v24, %v8047_v14  ;;  %v8180_v25 = vadd.f32 %v1375_v0, %v8050_v2  ;;  %v8183_v51 = vadd.f32 %v1376_v11, %v8053_v45  ;;  %v8186_v31 = vadd.f32 %v1377_v56, %v8056_v22  ;;  %v11450_v45 = vld [vmem:[#allocation48_spill] sm:$0xff]  ;;  %v1430_v22 = vld [vmem:[#allocation2 + $0x7a] sm:$0xff]  ;;  %v1435_v15 = vld [vmem:[#allocation2 + $0xb2] sm:$0xff] }
  0xda   : > { %v8189_v53 = vadd.f32 %v1378_v41, %v8059_v5  ;;  %v8192_v14 = vadd.f32 %v1379_v63, %v8062_v52  ;;  %v8195_v24 = vadd.f32 %v1380_v60, %v8065_v46  ;;  %v8198_v2 = vadd.f32 %v1381_v47, %v8068_v55  ;;  %v11451_v5 = vld [vmem:[#allocation52_spill] sm:$0xff]  ;;  %v1433_v55 = vld [vmem:[#allocation2 + $0x9a] sm:$0xff] }
  0xdb   : > { %v8201_v59 = vadd.f32 %v1382_v3, %v11450_v45  ;;  %v8204_v40 = vadd.f32 %v1383_v50, %v11451_v5  ;;  %v8207_v62 = vadd.f32 %v1384_v26, %v11452_v33  ;;  %v11454_v52 = vld [vmem:[#allocation60_spill] sm:$0xff]  ;;  %v11458_v17 = vld [vmem:[#allocation67_spill] sm:$0xff]  ;;  %v11460_v8 = vld [vmem:[#allocation70_spill] sm:$0xff] }
  0xdc   : > { %v8210_v63 = vadd.f32 %v1385_v23, %v11454_v52  ;;  %v11456_v46 = vld [vmem:[#allocation64_spill] sm:$0xff]  ;;  %v8216_v9 = vadd.f32 %v1387_v39, %v11458_v17  ;;  %v8219_v0 = vadd.f32 %v1388_v29, %v11460_v8  ;;  %v11462_v11 = vld [vmem:[#allocation74_spill] sm:$0xff] }
  0xdd   : > { %11453 = vst [vmem:[#allocation86_spill] sm:$0xff] %v8207_v62  ;;  %v8213_v34 = vadd.f32 %v1386_v44, %v11456_v46  ;;  %v8222_v56 = vadd.f32 %v1389_v38, %v11462_v11  ;;  %v11464_v26 = vld [vmem:[#allocation78_spill] sm:$0xff]  ;;  %v1436_v60 = vld [vmem:[#allocation2 + $0xc2] sm:$0xff]  ;;  %v1437_v47 = vld [vmem:[#allocation2 + $0xca] sm:$0xff] }
  0xde   : > { %11455 = vst [vmem:[#allocation90_spill] sm:$0xff] %v8210_v63  ;;  %11459 = vst [vmem:[#allocation42_spill] sm:$0xff] %v8216_v9  ;;  %v8225_v41 = vadd.f32 %v1390_v35, %v11464_v26  ;;  %v1438_v3 = vld [vmem:[#allocation2 + $0xda] sm:$0xff]  ;;  %v1439_v44 = vld [vmem:[#allocation2 + $0xe2] sm:$0xff] }
  0xdf   : > { %11457 = vst [vmem:[#allocation72_spill] sm:$0xff] %v8213_v34  ;;  %11461 = vst [vmem:[#allocation73_spill] sm:$0xff] %v8219_v0  ;;  %v11466_v50 = vld [vmem:[#allocation82_spill] sm:$0xff]  ;;  %v1442_v38 = vld [vmem:[#allocation2 + $0x10a] sm:$0xff] }
  0xe0   : > { %11463 = vst [vmem:[#allocation75_spill] sm:$0xff] %v8222_v56  ;;  %11465 = vst [vmem:[#allocation76_spill] sm:$0xff] %v8225_v41  ;;  %v8228_v23 = vadd.f32 %v1391_v36, %v11466_v50  ;;  %v1441_v45 = vld [vmem:[#allocation2 + $0xfa] sm:$0xff]  ;;  %v1443_v52 = vld [vmem:[#allocation2 + $0x112] sm:$0xff] }
  0xe1   : > { %v11468_v39 = vld [vmem:[#allocation46_spill] sm:$0xff]  ;;  %v1444_v46 = vld [vmem:[#allocation2 + $0x122] sm:$0xff]  ;;  %v1445_v11 = vld [vmem:[#allocation2 + $0x12a] sm:$0xff] }
  0xe2   : > { %11467 = vst [vmem:[#allocation77_spill] sm:$0xff] %v8228_v23  ;;  %v1460_v5 = vmul.f32 %v11468_v39, %v1424_v13  ;;  %v1461_v29 = vmul.f32 %v11468_v39, %v1425_v30  ;;  %v1462_v33 = vmul.f32 %v11468_v39, %v1426_v1  ;;  %v1463_v35 = vmul.f32 %v11468_v39, %v1427_v19  ;;  %v1446_v26 = vld [vmem:[#allocation2 + $0x13a] sm:$0xff]  ;;  %v1447_v50 = vld [vmem:[#allocation2 + $0x142] sm:$0xff]  ;;  %v1448_v41 = vld [vmem:[#allocation2 + $0x152] sm:$0xff] }
  0xe3   : > { %v1464_v17 = vmul.f32 %v11468_v39, %v1428_v32  ;;  %v1465_v8 = vmul.f32 %v11468_v39, %v1429_v61  ;;  %v1466_v36 = vmul.f32 %v11468_v39, %v1430_v22  ;;  %v1467_v13 = vmul.f32 %v11468_v39, %v1431_v21  ;;  %v1449_v56 = vld [vmem:[#allocation2 + $0x15a] sm:$0xff]  ;;  %v1450_v19 = vld [vmem:[#allocation2 + $0x16a] sm:$0xff]  ;;  %v1451_v9 = vld [vmem:[#allocation2 + $0x172] sm:$0xff] }
  0xe4   : > { %v1468_v30 = vmul.f32 %v11468_v39, %v1432_v43  ;;  %v1469_v1 = vmul.f32 %v11468_v39, %v1433_v55  ;;  %v1470_v23 = vmul.f32 %v11468_v39, %v1434_v28  ;;  %v1471_v32 = vmul.f32 %v11468_v39, %v1435_v15  ;;  %v1454_v34 = vld [vmem:[#allocation2 + $0x19a] sm:$0xff] }
  0xe5   : > { %v1472_v61 = vmul.f32 %v11468_v39, %v1436_v60  ;;  %v1473_v22 = vmul.f32 %v11468_v39, %v1437_v47  ;;  %v1474_v0 = vmul.f32 %v11468_v39, %v1438_v3  ;;  %v1475_v21 = vmul.f32 %v11468_v39, %v1439_v44 }
  0xe6   : > { %v1476_v43 = vmul.f32 %v11468_v39, %v1440_v18  ;;  %v1477_v55 = vmul.f32 %v11468_v39, %v1441_v45  ;;  %v1478_v28 = vmul.f32 %v11468_v39, %v1442_v38  ;;  %v1479_v63 = vmul.f32 %v11468_v39, %v1443_v52  ;;  %v11469_v38 = vld [vmem:[#allocation55_spill] sm:$0xff] }
  0xe7   : > { %v1480_v15 = vmul.f32 %v11468_v39, %v1444_v46  ;;  %v1481_v60 = vmul.f32 %v11468_v39, %v1445_v11  ;;  %v1482_v47 = vmul.f32 %v11468_v39, %v1446_v26  ;;  %v1483_v3 = vmul.f32 %v11468_v39, %v1447_v50  ;;  %v11471_v46 = vld [vmem:[#allocation57_spill] sm:$0xff] }
  0xe8   : > { %v1484_v62 = vmul.f32 %v11468_v39, %v1448_v41  ;;  %v1485_v44 = vmul.f32 %v11468_v39, %v1449_v56  ;;  %v1486_v18 = vmul.f32 %v11468_v39, %v1450_v19  ;;  %v8258_v45 = vmul.f32 %v11468_v39, %v1451_v9 }
  0xe9   : > { %v8262_v52 = vmul.f32 %v11468_v39, %v11469_v38  ;;  %v8266_v11 = vmul.f32 %v11468_v39, %v11471_v46  ;;  %v8269_v26 = vmul.f32 %v11468_v39, %v1454_v34  ;;  %v1492_v41 = vadd.f32 %v1460_v5, %v8135_v16 }
  0xea   : > { %v1493_v56 = vadd.f32 %v1461_v29, %v8138_v42  ;;  %v1494_v50 = vadd.f32 %v1462_v33, %v8141_v4  ;;  %v1495_v9 = vadd.f32 %v1463_v35, %v8144_v49  ;;  %v1496_v19 = vadd.f32 %v1464_v17, %v8147_v54  ;;  %v1455_v17 = vld [vmem:[#allocation2 + $0x1a2] sm:$0xff] }
  0xeb   : > { %11470 = vst [vmem:[#allocation79_spill] sm:$0xff] %v8262_v52  ;;  %11472 = vst [vmem:[#allocation80_spill] sm:$0xff] %v8266_v11  ;;  %v1497_v38 = vadd.f32 %v1465_v8, %v8150_v7  ;;  %v1498_v52 = vadd.f32 %v1466_v36, %v8153_v12  ;;  %v1499_v46 = vadd.f32 %v1467_v13, %v8156_v58  ;;  %v8297_v5 = vmul.f32 0.5, %v1492_v41 }
  0xec   : > { %v1500_v11 = vadd.f32 %v1468_v30, %v8159_v6  ;;  %v1501_v34 = vadd.f32 %v1469_v1, %v8162_v37  ;;  %v1502_v16 = vadd.f32 %v1470_v23, %v8165_v20  ;;  %v1503_v42 = vadd.f32 %v1471_v32, %v8168_v48  ;;  %v11473_v23 = vld [vmem:[#allocation86_spill] sm:$0xff] }
  0xed   : > { %v1504_v4 = vadd.f32 %v1472_v61, %v8171_v57  ;;  %v1505_v49 = vadd.f32 %v1473_v22, %v8174_v27  ;;  %v1506_v54 = vadd.f32 %v1474_v0, %v8177_v10  ;;  %v1507_v7 = vadd.f32 %v1475_v21, %v8180_v25  ;;  %v11474_v0 = vld [vmem:[#allocation90_spill] sm:$0xff]  ;;  %11475 = vst [vmem:[#allocation81_spill] sm:$0xff] %v8297_v5 }
  0xee   : > { %v1508_v12 = vadd.f32 %v1476_v43, %v8183_v51  ;;  %v1509_v58 = vadd.f32 %v1477_v55, %v8186_v31  ;;  %v1510_v6 = vadd.f32 %v1478_v28, %v8189_v53  ;;  %v1511_v37 = vadd.f32 %v1479_v63, %v8192_v14 }
  0xef   : > { %v1512_v20 = vadd.f32 %v1480_v15, %v8195_v24  ;;  %v1513_v48 = vadd.f32 %v1481_v60, %v8198_v2  ;;  %v1514_v57 = vadd.f32 %v1482_v47, %v8201_v59  ;;  %v1515_v27 = vadd.f32 %v1483_v3, %v8204_v40 }
  0xf0   : > { %v1516_v10 = vadd.f32 %v1484_v62, %v11473_v23  ;;  %v1517_v25 = vadd.f32 %v1485_v44, %v11474_v0  ;;  %v8299_v51 = vmul.f32 0.5, %v1493_v56  ;;  %v8301_v31 = vmul.f32 0.5, %v1494_v50  ;;  %v11501_v44 = vld [vmem:[#allocation72_spill] sm:$0xff] }
  0xf1   : > { %v8303_v53 = vmul.f32 0.5, %v1495_v9  ;;  %v8305_v14 = vmul.f32 0.5, %v1496_v19  ;;  %v8307_v24 = vmul.f32 0.5, %v1497_v38  ;;  %v8309_v2 = vmul.f32 0.5, %v1498_v52 }
  0xf2   : > { %11476 = vst [vmem:[#allocation83_spill] sm:$0xff] %v8299_v51  ;;  %11477 = vst [vmem:[#allocation84_spill] sm:$0xff] %v8301_v31  ;;  %v8311_v59 = vmul.f32 0.5, %v1499_v46  ;;  %v8313_v40 = vmul.f32 0.5, %v1500_v11  ;;  %v8315_v62 = vmul.f32 0.5, %v1501_v34  ;;  %v8317_v63 = vmul.f32 0.5, %v1502_v16 }
  0xf3   : > { %11478 = vst [vmem:[#allocation85_spill] sm:$0xff] %v8303_v53  ;;  %11479 = vst [vmem:[#allocation87_spill] sm:$0xff] %v8305_v14  ;;  %v8319_v29 = vmul.f32 0.5, %v1503_v42  ;;  %v8321_v33 = vmul.f32 0.5, %v1504_v4  ;;  %v8323_v35 = vmul.f32 0.5, %v1505_v49  ;;  %v8325_v8 = vmul.f32 0.5, %v1506_v54 }
  0xf4   : > { %11480 = vst [vmem:[#allocation88_spill] sm:$0xff] %v8307_v24  ;;  %11481 = vst [vmem:[#allocation89_spill] sm:$0xff] %v8309_v2  ;;  %v8327_v36 = vmul.f32 0.5, %v1507_v7  ;;  %v8329_v13 = vmul.f32 0.5, %v1508_v12  ;;  %v8331_v30 = vmul.f32 0.5, %v1509_v58  ;;  %v8333_v1 = vmul.f32 0.5, %v1510_v6 }
  0xf5   : > { %11482 = vst [vmem:[#allocation91_spill] sm:$0xff] %v8311_v59  ;;  %11483 = vst [vmem:[#allocation92_spill] sm:$0xff] %v8313_v40  ;;  %v8335_v32 = vmul.f32 0.5, %v1511_v37  ;;  %v8337_v61 = vmul.f32 0.5, %v1512_v20  ;;  %v8339_v22 = vmul.f32 0.5, %v1513_v48  ;;  %v8341_v21 = vmul.f32 0.5, %v1514_v57 }
  0xf6   : > { %11484 = vst [vmem:[#allocation93_spill] sm:$0xff] %v8315_v62  ;;  %11485 = vst [vmem:[#allocation95_spill] sm:$0xff] %v8317_v63  ;;  %v8343_v43 = vmul.f32 0.5, %v1515_v27  ;;  %v8345_v55 = vmul.f32 0.5, %v1516_v10  ;;  %v8347_v28 = vmul.f32 0.5, %v1517_v25  ;;  %v1491_v15 = vmul.f32 %v11468_v39, %v1455_v17 }
  0xf7   : > { %11486 = vst [vmem:[#allocation96_spill] sm:$0xff] %v8319_v29  ;;  %11487 = vst [vmem:[#allocation97_spill] sm:$0xff] %v8321_v33  ;;  %v8350_v60 = vmul.f32 0.70710677, %v1492_v41  ;;  %v8352_v47 = vmul.f32 0.70710677, %v1493_v56  ;;  %v1518_v23 = vadd.f32 %v1486_v18, %v11501_v44 }
  0xf8   : > { %11488 = vst [vmem:[#allocation99_spill] sm:$0xff] %v8323_v35  ;;  %11489 = vst [vmem:[#allocation100_spill] sm:$0xff] %v8325_v8  ;;  %v8354_v3 = vmul.f32 0.70710677, %v1494_v50  ;;  %v8357_v0 = vmul.f32 0.70710677, %v1495_v9 }
  0xf9   : > { %11490 = vst [vmem:[#allocation101_spill] sm:$0xff] %v8327_v36  ;;  %11491 = vst [vmem:[#allocation103_spill] sm:$0xff] %v8329_v13  ;;  %v8369_v39 = vmul.f32 0.70710677, %v1499_v46  ;;  %v8371_v41 = vmul.f32 0.70710677, %v1500_v11 }
  0xfa   : > { %11492 = vst [vmem:[#allocation104_spill] sm:$0xff] %v8331_v30  ;;  %11493 = vst [vmem:[#allocation105_spill] sm:$0xff] %v8333_v1  ;;  %v11504_v56 = vld [vmem:[#allocation73_spill] sm:$0xff]  ;;  %v11505_v50 = vld [vmem:[#allocation79_spill] sm:$0xff]  ;;  %v8377_v18 = vmul.f32 0.70710677, %v1501_v34 }
  0xfb   : > { %11494 = vst [vmem:[#allocation107_spill] sm:$0xff] %v8335_v32  ;;  %11495 = vst [vmem:[#allocation108_spill] sm:$0xff] %v8337_v61  ;;  %v8375_v17 = vadd.f32 %v11505_v50, %v11504_v56  ;;  %v8379_v9 = vmul.f32 0.70710677, %v1502_v16  ;;  %v11508_v44 = vld [vmem:[#allocation80_spill] sm:$0xff]  ;;  %v11512_v50 = vld [vmem:[#allocation77_spill] sm:$0xff] }
  0xfc   : > { %11496 = vst [vmem:[#allocation109_spill] sm:$0xff] %v8339_v22  ;;  %11497 = vst [vmem:[#allocation110_spill] sm:$0xff] %v8341_v21  ;;  %v8359_v22 = vmul.f32 0.70710677, %v1496_v19  ;;  %v8361_v21 = vmul.f32 0.70710677, %v1497_v38  ;;  %v8404_v61 = vadd.f32 %v1491_v15, %v11512_v50 }
  0xfd   : > { %11498 = vst [vmem:[#allocation102_spill] sm:$0xff] %v8343_v43  ;;  %11499 = vst [vmem:[#allocation106_spill] sm:$0xff] %v8345_v55  ;;  %v11502_v43 = vld [vmem:[#allocation42_spill] sm:$0xff]  ;;  %v8381_v19 = vmul.f32 0.70710677, %v1503_v42  ;;  %v11507_v38 = vld [vmem:[#allocation75_spill] sm:$0xff] }
  0xfe   : > { %11500 = vst [vmem:[#allocation116_spill] sm:$0xff] %v8347_v28  ;;  %v8365_v55 = vadd.f32 %v8258_v45, %v11502_v43  ;;  %v8367_v28 = vmul.f32 0.70710677, %v1498_v52  ;;  %11506 = vst [vmem:[#allocation121_spill] sm:$0xff] %v8375_v17  ;;  %v8385_v45 = vadd.f32 %v11508_v44, %v11507_v38  ;;  %v8387_v52 = vmul.f32 0.70710677, %v1504_v4 }
  0xff   : > { %v8389_v46 = vmul.f32 0.70710677, %v1505_v49  ;;  %v8391_v11 = vmul.f32 0.70710677, %v1506_v54  ;;  %v11510_v43 = vld [vmem:[#allocation76_spill] sm:$0xff]  ;;  %11513 = vst [vmem:[#allocation124_spill] sm:$0xff] %v8404_v61 }
 0x100   : > { %11503 = vst [vmem:[#allocation117_spill] sm:$0xff] %v8365_v55  ;;  %11509 = vst [vmem:[#allocation122_spill] sm:$0xff] %v8385_v45  ;;  %v8395_v56 = vadd.f32 %v8269_v26, %v11510_v43  ;;  %v8397_v34 = vmul.f32 0.70710677, %v1507_v7  ;;  %v8399_v16 = vmul.f32 0.70710677, %v1508_v12 }
 0x101   : > { %v8401_v42 = vmul.f32 0.70710677, %v1509_v58  ;;  %v8406_v38 = vmul.f32 0.70710677, %v1510_v6  ;;  %v8408_v4 = vmul.f32 0.70710677, %v1511_v37 }
 0x102   : > { %11511 = vst [vmem:[#allocation123_spill] sm:$0xff] %v8395_v56  ;;  %v8410_v49 = vmul.f32 0.70710677, %v1512_v20  ;;  %v8412_v54 = vmul.f32 0.70710677, %v1513_v48  ;;  %v8433_v20 = vmul.f32 0.5, %v1518_v23 }
 0x103   : > { %v8414_v44 = vmul.f32 0.70710677, %v1514_v57  ;;  %v8416_v26 = vmul.f32 0.70710677, %v1515_v27  ;;  %v8418_v7 = vmul.f32 0.70710677, %v1516_v10 }
 0x104   : > { %v8420_v12 = vmul.f32 0.70710677, %v1517_v25  ;;  %v8422_v58 = vmul.f32 0.70710677, %v1518_v23  ;;  %v8425_v15 = vmul.f32 0.70710677, %v8365_v55 }
 0x105   : > { %v8428_v6 = vmul.f32 0.70710677, %v8375_v17  ;;  %v8431_v37 = vmul.f32 0.70710677, %v8385_v45  ;;  %11517 = vst [vmem:[#allocation43_spill] sm:$0xff] %v8433_v20  ;;  %vm1588_vm2 = vcmp.lt.f32.partialorder %v8350_v60, 0.0 }
 0x106   : > { %11514 = vst [vmem:[#allocation128_spill] sm:$0xff] %v8425_v15  ;;  %v8436_v48 = vmul.f32 0.70710677, %v8395_v56  ;;  %v8439_v57 = vmul.f32 0.70710677, %v8404_v61  ;;  %vm1589_vm3 = vcmp.lt.f32.partialorder %v8352_v47, 0.0 }
 0x107   : > { %11515 = vst [vmem:[#allocation129_spill] sm:$0xff] %v8428_v6  ;;  %11516 = vst [vmem:[#allocation111_spill] sm:$0xff] %v8431_v37  ;;  %vm1590_vm4 = vcmp.lt.f32.partialorder %v8354_v3, 0.0  ;;  %vm1591_vm5 = vcmp.lt.f32.partialorder %v8357_v0, 0.0  ;;  %vm1592_vm6 = vcmp.lt.f32.partialorder %v8359_v22, 0.0  ;;  %vm1593_vm7 = vcmp.lt.f32.partialorder %v8361_v21, 0.0 }
 0x108   : > { %11518 = vst [vmem:[#allocation112_spill] sm:$0xff] %v8436_v48  ;;  %11519 = vst [vmem:[#allocation113_spill] sm:$0xff] %v8439_v57  ;;  %vm1601_vm15 = vcmp.lt.f32.partialorder %v8389_v46, 0.0  ;;  %vm1602_vm1 = vcmp.lt.f32.partialorder %v8391_v11, 0.0  ;;  %vm1603_vm0 = vcmp.lt.f32.partialorder %v8397_v34, 0.0  ;;  %vm1604_vm8 = vcmp.lt.f32.partialorder %v8399_v16, 0.0 }
 0x109   : > { %vm1605_vm9 = vcmp.lt.f32.partialorder %v8401_v42, 0.0  ;;  %vm1606_vm10 = vcmp.lt.f32.partialorder %v8406_v38, 0.0  ;;  %vm1607_vm11 = vcmp.lt.f32.partialorder %v8408_v4, 0.0  ;;  %vm1608_vm12 = vcmp.lt.f32.partialorder %v8410_v49, 0.0 }
 0x10a   : > { %vm1609_vm13 = vcmp.lt.f32.partialorder %v8412_v54, 0.0  ;;  %vm1610_vm14 = vcmp.lt.f32.partialorder %v8414_v44, 0.0  ;;  %v8465_v27 = vand.u32 2147483647, %v8350_v60  ;;  %v10987_v10 = vmov 1.0  }
 0x10b   : > { %v8470_v25 = vsel %vm1588_vm2, -1.0, %v10987_v10  ;;  %v8475_v23 = vsel %vm1589_vm3, -1.0, %v10987_v10  ;;  %v8480_v43 = vsel %vm1590_vm4, -1.0, %v10987_v10  ;;  %v8483_v50 = vand.u32 2147483647, %v8352_v47 }
 0x10c   : > { %11520 = vst [vmem:[#allocation114_spill] sm:$0xff] %v8470_v25  ;;  %11521 = vst [vmem:[#allocation115_spill] sm:$0xff] %v8475_v23  ;;  %v8488_v61 = vsel %vm1591_vm5, -1.0, %v10987_v10  ;;  %v8493_v60 = vsel %vm1592_vm6, -1.0, %v10987_v10  ;;  %v8498_v56 = vsel %vm1593_vm7, -1.0, %v10987_v10  ;;  %vm11526_vm2 = vcmp.lt.f32.partialorder %v8367_v28, 0.0 }
 0x10d   : > { %11522 = vst [vmem:[#allocation118_spill] sm:$0xff] %v8480_v43  ;;  %11523 = vst [vmem:[#allocation119_spill] sm:$0xff] %v8488_v61  ;;  %v8503_v47 = vsel %vm11526_vm2, -1.0, %v10987_v10  ;;  %vm11528_vm3 = vcmp.lt.f32.partialorder %v8369_v39, 0.0  ;;  %vm11530_vm4 = vcmp.lt.f32.partialorder %v8371_v41, 0.0  ;;  %vm11532_vm5 = vcmp.lt.f32.partialorder %v8377_v18, 0.0 }
 0x10e   : > { %11524 = vst [vmem:[#allocation120_spill] sm:$0xff] %v8493_v60  ;;  %11525 = vst [vmem:[#allocation125_spill] sm:$0xff] %v8498_v56  ;;  %v8508_v45 = vsel %vm11528_vm3, -1.0, %v10987_v10  ;;  %v8513_v20 = vsel %vm11530_vm4, -1.0, %v10987_v10  ;;  %v8518_v17 = vsel %vm11532_vm5, -1.0, %v10987_v10  ;;  %vm11534_vm6 = vcmp.lt.f32.partialorder %v8379_v9, 0.0 }
 0x10f   : > { %11527 = vst [vmem:[#allocation126_spill] sm:$0xff] %v8503_v47  ;;  %11529 = vst [vmem:[#allocation127_spill] sm:$0xff] %v8508_v45  ;;  %v8523_v55 = vsel %vm11534_vm6, -1.0, %v10987_v10  ;;  %vm11536_vm7 = vcmp.lt.f32.partialorder %v8381_v19, 0.0  ;;  %vm11538_vm2 = vcmp.lt.f32.partialorder %v8387_v52, 0.0  ;;  %v8538_v30 = vsel %vm1601_vm15, -1.0, %v10987_v10 }
 0x110   : > { %11531 = vst [vmem:[#allocation132_spill] sm:$0xff] %v8513_v20  ;;  %11533 = vst [vmem:[#allocation133_spill] sm:$0xff] %v8518_v17  ;;  %v8528_v32 = vsel %vm11536_vm7, -1.0, %v10987_v10  ;;  %v8533_v1 = vsel %vm11538_vm2, -1.0, %v10987_v10  ;;  %v8543_v13 = vsel %vm1602_vm1, -1.0, %v10987_v10  ;;  %v8548_v36 = vsel %vm1603_vm0, -1.0, %v10987_v10 }
 0x111   : > { %11535 = vst [vmem:[#allocation134_spill] sm:$0xff] %v8523_v55  ;;  %11537 = vst [vmem:[#allocation136_spill] sm:$0xff] %v8528_v32  ;;  %v8553_v8 = vsel %vm1604_vm8, -1.0, %v10987_v10  ;;  %v8558_v35 = vsel %vm1605_vm9, -1.0, %v10987_v10  ;;  %v8563_v33 = vsel %vm1606_vm10, -1.0, %v10987_v10  ;;  %v8568_v29 = vsel %vm1607_vm11, -1.0, %v10987_v10 }
 0x112   : > { %11539 = vst [vmem:[#allocation137_spill] sm:$0xff] %v8533_v1  ;;  %11540 = vst [vmem:[#allocation138_spill] sm:$0xff] %v8538_v30  ;;  %v8592_v63 = vand.u32 2147483647, %v8359_v22  ;;  %v8613_v22 = vand.u32 2147483647, %v8381_v19 }
 0x113   : > { %11541 = vst [vmem:[#allocation41_spill] sm:$0xff] %v8543_v13  ;;  %11542 = vst [vmem:[#allocation139_spill] sm:$0xff] %v8548_v36  ;;  %v8573_v36 = vsel %vm1608_vm12, -1.0, %v10987_v10  ;;  %v8598_v13 = vand.u32 2147483647, %v8367_v28  ;;  %vm1611_vm0 = vcmp.lt.f32.partialorder %v8416_v26, 0.0 }
 0x114   : > { %11543 = vst [vmem:[#allocation140_spill] sm:$0xff] %v8553_v8  ;;  %11544 = vst [vmem:[#allocation141_spill] sm:$0xff] %v8558_v35  ;;  %v8578_v8 = vsel %vm1609_vm13, -1.0, %v10987_v10  ;;  %v8583_v35 = vsel %vm1610_vm14, -1.0, %v10987_v10  ;;  %v8604_v10 = vand.u32 2147483647, %v8371_v41 }
 0x115   : > { %11545 = vst [vmem:[#allocation142_spill] sm:$0xff] %v8563_v33  ;;  %11546 = vst [vmem:[#allocation143_spill] sm:$0xff] %v8568_v29  ;;  %v8586_v33 = vand.u32 2147483647, %v8354_v3  ;;  %v8589_v29 = vand.u32 2147483647, %v8357_v0 }
 0x116   : > { %11547 = vst [vmem:[#allocation144_spill] sm:$0xff] %v8573_v36  ;;  %11548 = vst [vmem:[#allocation145_spill] sm:$0xff] %v8578_v8  ;;  %v8595_v36 = vand.u32 2147483647, %v8361_v21  ;;  %v8601_v8 = vand.u32 2147483647, %v8369_v39 }
 0x117   : > { %11549 = vst [vmem:[#allocation146_spill] sm:$0xff] %v8583_v35  ;;  %11551 = vst [vmem:[#allocation148_spill] sm:$0xff] %v8598_v13  ;;  %v8607_v3 = vand.u32 2147483647, %v8377_v18  ;;  %v8610_v0 = vand.u32 2147483647, %v8379_v9 }
 0x118   : > { %11550 = vst [vmem:[#allocation147_spill] sm:$0xff] %v8595_v36  ;;  %11552 = vst [vmem:[#allocation149_spill] sm:$0xff] %v8601_v8  ;;  %v8616_v21 = vand.u32 2147483647, %v8387_v52  ;;  %v8619_v28 = vand.u32 2147483647, %v8389_v46 }
 0x119   : > { %11553 = vst [vmem:[#allocation150_spill] sm:$0xff] %v8604_v10  ;;  %11554 = vst [vmem:[#allocation135_spill] sm:$0xff] %v8607_v3  ;;  %v8622_v39 = vand.u32 2147483647, %v8391_v11  ;;  %v8625_v41 = vand.u32 2147483647, %v8397_v34 }
 0x11a   : > { %11555 = vst [vmem:[#allocation47_spill] sm:$0xff] %v8610_v0  ;;  %11556 = vst [vmem:[#allocation40_spill] sm:$0xff] %v8613_v22  ;;  %v8628_v18 = vand.u32 2147483647, %v8399_v16  ;;  %v8631_v9 = vand.u32 2147483647, %v8401_v42 }
 0x11b   : > { %11557 = vst [vmem:[#allocation49_spill] sm:$0xff] %v8616_v21  ;;  %11558 = vst [vmem:[#allocation50_spill] sm:$0xff] %v8619_v28  ;;  %v8634_v19 = vand.u32 2147483647, %v8406_v38  ;;  %v8637_v52 = vand.u32 2147483647, %v8408_v4 }
 0x11c   : > { %11559 = vst [vmem:[#allocation51_spill] sm:$0xff] %v8622_v39  ;;  %11560 = vst [vmem:[#allocation53_spill] sm:$0xff] %v8625_v41  ;;  %v8640_v46 = vand.u32 2147483647, %v8410_v49  ;;  %v8643_v11 = vand.u32 2147483647, %v8412_v54 }
 0x11d   : > { %11561 = vst [vmem:[#allocation54_spill] sm:$0xff] %v8628_v18  ;;  %11562 = vst [vmem:[#allocation44_spill] sm:$0xff] %v8631_v9  ;;  %v8646_v34 = vand.u32 2147483647, %v8414_v44  ;;  %v8650_v16 = vand.u32 2147483647, %v8416_v26 }
 0x11e   : > { %11563 = vst [vmem:[#allocation94_spill] sm:$0xff] %v8634_v19  ;;  %11564 = vst [vmem:[#allocation98_spill] sm:$0xff] %v8637_v52  ;;  %v8653_v42 = vand.u32 2147483647, %v8418_v7  ;;  %v8656_v38 = vand.u32 2147483647, %v8420_v12 }
 0x11f   : > { %11565 = vst [vmem:[#allocation58_spill] sm:$0xff] %v8640_v46  ;;  %11566 = vst [vmem:[#allocation59_spill] sm:$0xff] %v8643_v11  ;;  %vm1612_vm1 = vcmp.lt.f32.partialorder %v8418_v7, 0.0  ;;  %v8660_v4 = vand.u32 2147483647, %v8422_v58  ;;  %vm1613_vm8 = vcmp.lt.f32.partialorder %v8420_v12, 0.0 }
 0x120   : > { %11567 = vst [vmem:[#allocation61_spill] sm:$0xff] %v8646_v34  ;;  %11568 = vst [vmem:[#allocation62_spill] sm:$0xff] %v8650_v16  ;;  %v8663_v49 = vand.u32 2147483647, %v8425_v15  ;;  %v8666_v54 = vand.u32 2147483647, %v8428_v6 }
 0x121   : > { %11569 = vst [vmem:[#allocation63_spill] sm:$0xff] %v8653_v42  ;;  %11570 = vst [vmem:[#allocation65_spill] sm:$0xff] %v8656_v38  ;;  %v8670_v44 = vand.u32 2147483647, %v8431_v37  ;;  %v8673_v35 = vand.u32 2147483647, %v8436_v48 }
 0x122   : > { %11571 = vst [vmem:[#allocation66_spill] sm:$0xff] %v8660_v4  ;;  %11572 = vst [vmem:[#allocation68_spill] sm:$0xff] %v8663_v49  ;;  %v8676_v62 = vand.u32 2147483647, %v8439_v57  ;;  %vm1614_vm9 = vcmp.lt.f32.partialorder %v8422_v58, 0.0  ;;  %v11577_v61 = vmov 1.0  }
 0x123   : > { %11573 = vst [vmem:[#allocation69_spill] sm:$0xff] %v8666_v54  ;;  %11574 = vst [vmem:[#allocation71_spill] sm:$0xff] %v8670_v44  ;;  %v1684_v30 = vmul.f32 0.3275911, %v8465_v27  ;;  %v1685_v15 = vmul.f32 0.3275911, %v8483_v50 }
 0x124   : > { %11575 = vst [vmem:[#allocation45_spill] sm:$0xff] %v8673_v35  ;;  %11576 = vst [vmem:[#allocation130_spill] sm:$0xff] %v8676_v62  ;;  %v1686_v6 = vmul.f32 0.3275911, %v8586_v33  ;;  %v1687_v40 = vmul.f32 0.3275911, %v8589_v29 }
 0x125   : > { %v1688_v1 = vmul.f32 0.3275911, %v8592_v63  ;;  %v1689_v37 = vmul.f32 0.3275911, %v8595_v36  ;;  %v1690_v48 = vmul.f32 0.3275911, %v8598_v13 }
 0x126   : > { %v1691_v59 = vmul.f32 0.3275911, %v8601_v8  ;;  %v1692_v57 = vmul.f32 0.3275911, %v8604_v10  ;;  %v1693_v32 = vmul.f32 0.3275911, %v8607_v3 }
 0x127   : > { %v1694_v2 = vmul.f32 0.3275911, %v8610_v0  ;;  %v1695_v55 = vmul.f32 0.3275911, %v8613_v22  ;;  %v1696_v24 = vmul.f32 0.3275911, %v8616_v21 }
 0x128   : > { %v1697_v17 = vmul.f32 0.3275911, %v8619_v28  ;;  %v1698_v14 = vmul.f32 0.3275911, %v8622_v39  ;;  %v1699_v20 = vmul.f32 0.3275911, %v8625_v41 }
 0x129   : > { %v1700_v53 = vmul.f32 0.3275911, %v8628_v18  ;;  %v1701_v45 = vmul.f32 0.3275911, %v8631_v9  ;;  %v1702_v31 = vmul.f32 0.3275911, %v8634_v19 }
 0x12a   : > { %v1703_v51 = vmul.f32 0.3275911, %v8637_v52  ;;  %v1704_v47 = vmul.f32 0.3275911, %v8640_v46  ;;  %v1705_v5 = vmul.f32 0.3275911, %v8643_v11 }
 0x12b   : > { %v1706_v56 = vmul.f32 0.3275911, %v8646_v34  ;;  %v1707_v60 = vmul.f32 0.3275911, %v8650_v16  ;;  %v8706_v43 = vsel %vm1611_vm0, -1.0, %v11577_v61  ;;  %v1716_v19 = vadd.f32 1.0, %v1684_v30 }
 0x12c   : > { %11578 = vst [vmem:[#allocation131_spill] sm:$0xff] %v8706_v43  ;;  %v1708_v23 = vmul.f32 0.3275911, %v8653_v42  ;;  %v1709_v25 = vmul.f32 0.3275911, %v8656_v38  ;;  %v8713_v46 = vsel %vm1612_vm1, -1.0, %v11577_v61 }
 0x12d   : > { %11579 = vst [vmem:[#allocation48_spill] sm:$0xff] %v8713_v46  ;;  %v1710_v11 = vmul.f32 0.3275911, %v8660_v4  ;;  %v1711_v34 = vmul.f32 0.3275911, %v8663_v49  ;;  %v1717_v16 = vadd.f32 1.0, %v1685_v15  ;;  %6304 = vrcp.f32 %v1716_v19 }
 0x12e   : > { %v8720_v26 = vsel %vm1613_vm8, -1.0, %v11577_v61  ;;  %v1712_v43 = vmul.f32 0.3275911, %v8666_v54  ;;  %v1713_v38 = vmul.f32 0.3275911, %v8670_v44  ;;  %v1718_v30 = vadd.f32 1.0, %v1686_v6 }
 0x12f   : > { %11580 = vst [vmem:[#allocation52_spill] sm:$0xff] %v8720_v26  ;;  %v8727_v7 = vsel %vm1614_vm9, -1.0, %v11577_v61  ;;  %v1714_v46 = vmul.f32 0.3275911, %v8673_v35  ;;  %v1715_v49 = vmul.f32 0.3275911, %v8676_v62  ;;  %6306 = vrcp.f32 %v1717_v16 }
 0x130   : > { %11581 = vst [vmem:[#allocation56_spill] sm:$0xff] %v8727_v7  ;;  %v1719_v15 = vadd.f32 1.0, %v1687_v40  ;;  %v1720_v4 = vadd.f32 1.0, %v1688_v1  ;;  %v1721_v42 = vadd.f32 1.0, %v1689_v37  ;;  %v1722_v12 = vadd.f32 1.0, %v1690_v48 }
 0x131   : > { %v1723_v26 = vadd.f32 1.0, %v1691_v59  ;;  %v1724_v52 = vadd.f32 1.0, %v1692_v57  ;;  %v1725_v54 = vadd.f32 1.0, %v1693_v32  ;;  %v1726_v44 = vadd.f32 1.0, %v1694_v2 }
 0x132   : > { %v1727_v6 = vadd.f32 1.0, %v1695_v55  ;;  %v1728_v9 = vadd.f32 1.0, %v1696_v24  ;;  %6308 = vrcp.f32 %v1718_v30  ;;  %v1729_v58 = vadd.f32 1.0, %v1697_v17 }
 0x133   : > { %v1730_v61 = vadd.f32 1.0, %v1698_v14  ;;  %v1731_v7 = vadd.f32 1.0, %v1699_v20  ;;  %6310 = vrcp.f32 %v1719_v15  ;;  %v1732_v35 = vadd.f32 1.0, %v1700_v53 }
 0x134   : > { %v1733_v18 = vadd.f32 1.0, %v1701_v45  ;;  %v1734_v62 = vadd.f32 1.0, %v1702_v31  ;;  %6312 = vrcp.f32 %v1720_v4  ;;  %v8731_v40 = vadd.f32 1.0, %v1703_v51 }
 0x135   : > { %v8733_v1 = vadd.f32 1.0, %v1704_v47  ;;  %v8735_v59 = vadd.f32 1.0, %v1705_v5  ;;  %6314 = vrcp.f32 %v1721_v42  ;;  %v8737_v32 = vadd.f32 1.0, %v1706_v56 }
 0x136   : > { %v8739_v2 = vadd.f32 1.0, %v1707_v60  ;;  %v8741_v24 = vadd.f32 1.0, %v1708_v23  ;;  %6316 = vrcp.f32 %v1722_v12  ;;  %v8743_v14 = vadd.f32 1.0, %v1709_v25 }
 0x137   : > { %v8745_v53 = vadd.f32 1.0, %v1710_v11  ;;  %v8747_v31 = vadd.f32 1.0, %v1711_v34  ;;  %6318 = vrcp.f32 %v1723_v26  ;;  %v8749_v51 = vadd.f32 1.0, %v1712_v43  ;;  %v8759_v37 = vpop.eup %6304 }
 0x138   : > { %v8751_v55 = vadd.f32 1.0, %v1713_v38  ;;  %v8753_v5 = vadd.f32 1.0, %v1714_v46  ;;  %6320 = vrcp.f32 %v1724_v52  ;;  %v8755_v17 = vadd.f32 1.0, %v1715_v49 }
 0x139   : > { %6322 = vrcp.f32 %v1725_v54  ;;  %v8764_v25 = vpop.eup %6306  ;;  %v11612_v56 = vsub.f32 0.0, %v8483_v50  ;;  %v11617_v60 = vsub.f32 0.0, %v8589_v29  ;;  %vm11672_vm10 = vcmask 64512  }
 0x13a   : > { %6324 = vrcp.f32 %v1726_v44  ;;  %11582 = vst [vmem:[#allocation60_spill] sm:$0xff] %v8764_v25  ;;  %vm11673_vm11 = vmmov %vm11672_vm10  ;;  %vm11674_vm12 = vcmask 58368  }
 0x13b   : > { %6326 = vrcp.f32 %v1727_v6  ;;  %vm11675_vm13 = vmmov %vm11672_vm10 }
 0x13c   : > { %v8769_v47 = vpop.eup %6308  ;;  %6328 = vrcp.f32 %v1728_v9  ;;  %vm11676_vm14 = vmmov %vm11672_vm10 }
 0x13d   : > { %11583 = vst [vmem:[#allocation64_spill] sm:$0xff] %v8769_v47  ;;  %v8774_v11 = vpop.eup %6310  ;;  %6330 = vrcp.f32 %v1729_v58  ;;  %vm11677_vm15 = vmmov %vm11674_vm12 }
 0x13e   : > { %11584 = vst [vmem:[#allocation67_spill] sm:$0xff] %v8774_v11  ;;  %v8779_v38 = vpop.eup %6312  ;;  %6332 = vrcp.f32 %v1730_v61  ;;  %v1812_v61 = vmul.f32 1.0614054, %v8759_v37  ;;  %vm11678_vm3 = vmmov %vm11672_vm10 }
 0x13f   : > { %11585 = vst [vmem:[#allocation70_spill] sm:$0xff] %v8779_v38  ;;  %v8784_v44 = vpop.eup %6314  ;;  %6334 = vrcp.f32 %v1731_v7  ;;  %v1813_v7 = vmul.f32 1.0614054, %v8764_v25  ;;  %vm11679_vm4 = vmmov %vm11678_vm3 }
 0x140   : > { %11587 = vst [vmem:[#allocation74_spill] sm:$0xff] %v8784_v44  ;;  %v8789_v16 = vpop.eup %6316  ;;  %6336 = vrcp.f32 %v1732_v35  ;;  %v1844_v35 = vadd.f32 -1.4531521, %v1812_v61  ;;  %v11610_v61 = vsub.f32 0.0, %v8465_v27  ;;  %vm11680_vm5 = vmmov %vm11674_vm12 }
 0x141   : > { %11591 = vst [vmem:[#allocation78_spill] sm:$0xff] %v8789_v16  ;;  %v8794_v46 = vpop.eup %6318  ;;  %6338 = vrcp.f32 %v1733_v18  ;;  %v1814_v18 = vmul.f32 1.0614054, %v8769_v47  ;;  %vm11681_vm6 = vmmov %vm11678_vm3 }
 0x142   : > { %11594 = vst [vmem:[#allocation82_spill] sm:$0xff] %v8794_v46  ;;  %v8799_v19 = vpop.eup %6320  ;;  %6340 = vrcp.f32 %v1734_v62  ;;  %v1815_v62 = vmul.f32 1.0614054, %v8774_v11  ;;  %v8827_v20 = vmul.f32 %v11610_v61, %v8465_v27  ;;  %v8845_v27 = vmul.f32 %v11617_v60, %v8589_v29  ;;  %vm11682_vm7 = vmmov %vm11678_vm3 }
 0x143   : > { %11597 = vst [vmem:[#allocation46_spill] sm:$0xff] %v8799_v19  ;;  %v8804_v57 = vpop.eup %6322  ;;  %6342 = vrcp.f32 %v8731_v40  ;;  %v1845_v40 = vadd.f32 -1.4531521, %v1813_v7  ;;  %v1846_v48 = vadd.f32 -1.4531521, %v1814_v18  ;;  %vm11683_vm2 = vmmov %vm11680_vm5 }
 0x144   : > { %11601 = vst [vmem:[#allocation55_spill] sm:$0xff] %v8804_v57  ;;  %v8810_v12 = vpop.eup %6324  ;;  %6344 = vrcp.f32 %v8733_v1  ;;  %v1816_v1 = vmul.f32 1.0614054, %v8779_v38  ;;  %11611 = vst [vmem:[#allocation72_spill] sm:$0xff] %v8827_v20 }
 0x145   : > { %11604 = vst [vmem:[#allocation57_spill] sm:$0xff] %v8810_v12  ;;  %v8815_v9 = vpop.eup %6326  ;;  %6346 = vrcp.f32 %v8735_v59  ;;  %v8832_v59 = vmul.f32 %v11612_v56, %v8483_v50  ;;  %11618 = vst [vmem:[#allocation75_spill] sm:$0xff] %v8845_v27  ;;  %v1817_v50 = vmul.f32 1.0614054, %v8784_v44  ;;  %v1847_v56 = vadd.f32 -1.4531521, %v1815_v62 }
 0x146   : > { %11606 = vst [vmem:[#allocation86_spill] sm:$0xff] %v8815_v9  ;;  %v8820_v4 = vpop.eup %6328  ;;  %6348 = vrcp.f32 %v8737_v32  ;;  %v11615_v32 = vsub.f32 0.0, %v8586_v33  ;;  %v8860_v29 = vmul.f32 %v8764_v25, %v1845_v40  ;;  %v1848_v62 = vadd.f32 -1.4531521, %v1816_v1  ;;  %vm11684_vm0 = vmmov %vm11678_vm3 }
 0x147   : > { %11609 = vst [vmem:[#allocation90_spill] sm:$0xff] %v8820_v4  ;;  %11613 = vst [vmem:[#allocation42_spill] sm:$0xff] %v8832_v59  ;;  %v8834_v7 = vpop.eup %6330  ;;  %6350 = vrcp.f32 %v8739_v2  ;;  %v8852_v2 = vmul.f32 %v8759_v37, %v1844_v35  ;;  %v1821_v35 = vmul.f32 1.0614054, %v8804_v57  ;;  %v1823_v43 = vmul.f32 1.0614054, %v8815_v9 }
 0x148   : > { %11614 = vst [vmem:[#allocation73_spill] sm:$0xff] %v8834_v7  ;;  %v8840_v23 = vmul.f32 %v11615_v32, %v8586_v33  ;;  %v8847_v61 = vpop.eup %6332  ;;  %6352 = vrcp.f32 %v8741_v24  ;;  %v1818_v33 = vmul.f32 1.0614054, %v8789_v16  ;;  %v1819_v32 = vmul.f32 1.0614054, %v8794_v46  ;;  %vm11685_vm1 = vmmov %vm11684_vm0 }
 0x149   : > { %11619 = vst [vmem:[#allocation80_spill] sm:$0xff] %v8847_v61  ;;  %v8854_v18 = vpop.eup %6334  ;;  %6354 = vrcp.f32 %v8743_v14  ;;  %v1820_v24 = vmul.f32 1.0614054, %v8799_v19  ;;  %v1822_v14 = vmul.f32 1.0614054, %v8810_v12  ;;  %v8873_v40 = vmul.f32 %v8769_v47, %v1846_v48  ;;  %vm11686_vm8 = vmmov %vm11683_vm2 }
 0x14a   : > { %11616 = vst [vmem:[#allocation79_spill] sm:$0xff] %v8840_v23  ;;  %11620 = vst [vmem:[#allocation76_spill] sm:$0xff] %v8854_v18  ;;  %v8862_v60 = vpop.eup %6336  ;;  %6356 = vrcp.f32 %v8745_v53  ;;  %v1824_v53 = vmul.f32 1.0614054, %v8820_v4  ;;  %v1825_v58 = vmul.f32 1.0614054, %v8834_v7  ;;  %v8884_v34 = vmul.f32 %v8774_v11, %v1847_v56 }
 0x14b   : > { %11621 = vst [vmem:[#allocation77_spill] sm:$0xff] %v8862_v60  ;;  %v8867_v45 = vpop.eup %6338  ;;  %6358 = vrcp.f32 %v8747_v31  ;;  %v1849_v1 = vadd.f32 -1.4531521, %v1817_v50  ;;  %v1850_v31 = vadd.f32 -1.4531521, %v1818_v33  ;;  %vm11687_vm9 = vmmov %vm11684_vm0 }
 0x14c   : > { %11622 = vst [vmem:[#allocation151_spill] sm:$0xff] %v8867_v45  ;;  %v8875_v30 = vpop.eup %6340  ;;  %6360 = vrcp.f32 %v8749_v51  ;;  %v1851_v54 = vadd.f32 -1.4531521, %v1819_v32  ;;  %v1826_v51 = vmul.f32 1.0614054, %v8847_v61 }
 0x14d   : > { %11623 = vst [vmem:[#allocation152_spill] sm:$0xff] %v8875_v30  ;;  %v8880_v52 = vpop.eup %6342  ;;  %6362 = vrcp.f32 %v8751_v55  ;;  %v1852_v42 = vadd.f32 -1.4531521, %v1820_v24  ;;  %v1853_v6 = vadd.f32 -1.4531521, %v1821_v35  ;;  %v1881_v39 = vmul.f32 %v8784_v44, %v1849_v1 }
 0x14e   : > { %11624 = vst [vmem:[#allocation153_spill] sm:$0xff] %v8880_v52  ;;  %v8886_v48 = vpop.eup %6344  ;;  %6364 = vrcp.f32 %v8753_v5  ;;  %v1827_v50 = vmul.f32 1.0614054, %v8854_v18  ;;  %v1854_v55 = vadd.f32 -1.4531521, %v1822_v14  ;;  %v1880_v5 = vmul.f32 %v8779_v38, %v1848_v62 }
 0x14f   : > { %v8890_v15 = vpop.eup %6346  ;;  %6366 = vrcp.f32 %v8755_v17  ;;  %v1855_v33 = vadd.f32 -1.4531521, %v1823_v43  ;;  %v1828_v56 = vmul.f32 1.0614054, %v8862_v60  ;;  %v1856_v26 = vadd.f32 -1.4531521, %v1824_v53 }
 0x150   : > { %v8894_v32 = vpop.eup %6348  ;;  %v1857_v49 = vadd.f32 -1.4531521, %v1825_v58  ;;  %v1829_v24 = vmul.f32 1.0614054, %v8867_v45  ;;  %v1830_v35 = vmul.f32 1.0614054, %v8875_v30  ;;  %v1882_v28 = vmul.f32 %v8789_v16, %v1850_v31 }
 0x151   : > { %11625 = vst [vmem:[#allocation154_spill] sm:$0xff] %v8894_v32  ;;  %v8898_v41 = vpop.eup %6350  ;;  %v1831_v17 = vmul.f32 1.0614054, %v8880_v52  ;;  %v1858_v43 = vadd.f32 -1.4531521, %v1826_v51  ;;  %v1883_v53 = vmul.f32 %v8794_v46, %v1851_v54  ;;  %v8909_v58 = vmul.f32 %v8799_v19, %v1852_v42 }
 0x152   : > { %11626 = vst [vmem:[#allocation155_spill] sm:$0xff] %v8898_v41  ;;  %v8904_v14 = vpop.eup %6352  ;;  %v1832_v21 = vmul.f32 1.0614054, %v8886_v48  ;;  %v1859_v22 = vadd.f32 -1.4531521, %v1827_v50  ;;  %v1885_v0 = vmul.f32 %v8804_v57, %v1853_v6  ;;  %v1886_v3 = vmul.f32 %v8810_v12, %v1854_v55 }
 0x153   : > { %11627 = vst [vmem:[#allocation156_spill] sm:$0xff] %v8904_v14  ;;  %v8911_v62 = vpop.eup %6354  ;;  %v1833_v51 = vmul.f32 1.0614054, %v8890_v15  ;;  %v1860_v10 = vadd.f32 -1.4531521, %v1828_v56  ;;  %v1887_v31 = vmul.f32 %v8815_v9, %v1855_v33  ;;  %v1888_v54 = vmul.f32 %v8820_v4, %v1856_v26 }
 0x154   : > { %11628 = vst [vmem:[#allocation157_spill] sm:$0xff] %v8911_v62  ;;  %v8916_v1 = vpop.eup %6356  ;;  %v1861_v27 = vadd.f32 -1.4531521, %v1829_v24  ;;  %v1862_v23 = vadd.f32 -1.4531521, %v1830_v35  ;;  %v1889_v50 = vmul.f32 %v8834_v7, %v1857_v49  ;;  %v1890_v8 = vmul.f32 %v8847_v61, %v1858_v43 }
 0x155   : > { %11629 = vst [vmem:[#allocation158_spill] sm:$0xff] %v8916_v1  ;;  %v8921_v42 = vpop.eup %6358  ;;  %v1863_v59 = vadd.f32 -1.4531521, %v1831_v17  ;;  %v1834_v6 = vmul.f32 1.0614054, %v8894_v32  ;;  %v1891_v35 = vmul.f32 %v8854_v18, %v1859_v22 }
 0x156   : > { %11630 = vst [vmem:[#allocation159_spill] sm:$0xff] %v8921_v42  ;;  %v8924_v20 = vpop.eup %6360  ;;  %v1835_v55 = vmul.f32 1.0614054, %v8898_v41  ;;  %v8930_v56 = vadd.f32 1.4214138, %v8852_v2  ;;  %v1892_v2 = vmul.f32 %v8862_v60, %v1860_v10  ;;  %v1893_v22 = vmul.f32 %v8867_v45, %v1861_v27 }
 0x157   : > { %11631 = vst [vmem:[#allocation160_spill] sm:$0xff] %v8924_v20  ;;  %v8932_v33 = vpop.eup %6362  ;;  %v1836_v26 = vmul.f32 1.0614054, %v8904_v14  ;;  %v1864_v24 = vadd.f32 -1.4531521, %v1832_v21  ;;  %v1894_v12 = vmul.f32 %v8875_v30, %v1862_v23  ;;  %v1895_v10 = vmul.f32 %v8880_v52, %v1863_v59 }
 0x158   : > { %11632 = vst [vmem:[#allocation161_spill] sm:$0xff] %v8932_v33  ;;  %v8937_v49 = vadd.f32 1.4214138, %v8860_v29  ;;  %v8939_v17 = vpop.eup %6364  ;;  %v1837_v13 = vmul.f32 1.0614054, %v8911_v62 }
 0x159   : > { %11633 = vst [vmem:[#allocation162_spill] sm:$0xff] %v8939_v17  ;;  %v1838_v36 = vmul.f32 1.0614054, %v8916_v1  ;;  %v1865_v43 = vadd.f32 -1.4531521, %v1833_v51  ;;  %v8944_v61 = vpop.eup %6366  ;;  %v1896_v27 = vmul.f32 %v8886_v48, %v1864_v24 }
 0x15a   : > { %11634 = vst [vmem:[#allocation163_spill] sm:$0xff] %v8944_v61  ;;  %v1839_v7 = vmul.f32 1.0614054, %v8921_v42  ;;  %v1840_v21 = vmul.f32 1.0614054, %v8924_v20 }
 0x15b   : > { %v1910_v29 = vadd.f32 1.4214138, %v8873_v40  ;;  %v1841_v18 = vmul.f32 1.0614054, %v8932_v33  ;;  %v1866_v4 = vadd.f32 -1.4531521, %v1834_v6  ;;  %v1897_v6 = vmul.f32 %v8890_v15, %v1865_v43 }
 0x15c   : > { %v1867_v9 = vadd.f32 -1.4531521, %v1835_v55  ;;  %v1842_v51 = vmul.f32 1.0614054, %v8939_v17  ;;  %v1868_v57 = vadd.f32 -1.4531521, %v1836_v26 }
 0x15d   : > { %v1911_v60 = vadd.f32 1.4214138, %v8884_v34  ;;  %v1843_v19 = vmul.f32 1.0614054, %v8944_v61  ;;  %v1869_v46 = vadd.f32 -1.4531521, %v1837_v13  ;;  %v1898_v23 = vmul.f32 %v8894_v32, %v1866_v4 }
 0x15e   : > { %v1870_v16 = vadd.f32 -1.4531521, %v1838_v36  ;;  %v1871_v40 = vadd.f32 -1.4531521, %v1839_v7  ;;  %v1872_v45 = vadd.f32 -1.4531521, %v1840_v21  ;;  %v1899_v26 = vmul.f32 %v8898_v41, %v1867_v9 }
 0x15f   : > { %v1912_v55 = vadd.f32 1.4214138, %v1880_v5  ;;  %v1873_v44 = vadd.f32 -1.4531521, %v1841_v18  ;;  %v1913_v30 = vadd.f32 1.4214138, %v1881_v39  ;;  %v1900_v34 = vmul.f32 %v8904_v14, %v1868_v57 }
 0x160   : > { %v1874_v59 = vadd.f32 -1.4531521, %v1842_v51  ;;  %v1914_v52 = vadd.f32 1.4214138, %v1882_v28  ;;  %v1915_v38 = vadd.f32 1.4214138, %v1883_v53  ;;  %v1901_v36 = vmul.f32 %v8911_v62, %v1869_v46 }
 0x161   : > { %v1875_v13 = vadd.f32 -1.4531521, %v1843_v19  ;;  %v1902_v7 = vmul.f32 %v8916_v1, %v1870_v16  ;;  %v1916_v24 = vadd.f32 1.4214138, %v8909_v58  ;;  %v1903_v5 = vmul.f32 %v8921_v42, %v1871_v40 }
 0x162   : > { %v1904_v18 = vmul.f32 %v8924_v20, %v1872_v45  ;;  %v1917_v4 = vadd.f32 1.4214138, %v1885_v0  ;;  %v1918_v43 = vadd.f32 1.4214138, %v1886_v3  ;;  %v1905_v39 = vmul.f32 %v8932_v33, %v1873_v44 }
 0x163   : > { %v1919_v9 = vadd.f32 1.4214138, %v1887_v31  ;;  %v1920_v21 = vadd.f32 1.4214138, %v1888_v54  ;;  %v1921_v57 = vadd.f32 1.4214138, %v1889_v50  ;;  %v1906_v28 = vmul.f32 %v8939_v17, %v1874_v59 }
 0x164   : > { %v1922_v19 = vadd.f32 1.4214138, %v1890_v8  ;;  %v1923_v53 = vadd.f32 1.4214138, %v1891_v35  ;;  %v1924_v46 = vadd.f32 1.4214138, %v1892_v2  ;;  %v1907_v16 = vmul.f32 %v8944_v61, %v1875_v13 }
 0x165   : > { %v1925_v51 = vadd.f32 1.4214138, %v1893_v22  ;;  %v1926_v58 = vadd.f32 1.4214138, %v1894_v12  ;;  %v1927_v1 = vadd.f32 1.4214138, %v1895_v10  ;;  %v1940_v8 = vmul.f32 %v8759_v37, %v8930_v56 }
 0x166   : > { %v1928_v40 = vadd.f32 1.4214138, %v1896_v27  ;;  %v1929_v42 = vadd.f32 1.4214138, %v1897_v6  ;;  %v1930_v45 = vadd.f32 1.4214138, %v1898_v23  ;;  %v1941_v12 = vmul.f32 %v8764_v25, %v8937_v49 }
 0x167   : > { %v11635_v3 = vsub.f32 0.0, %v8592_v63  ;;  %v1931_v44 = vadd.f32 1.4214138, %v1899_v26  ;;  %v1932_v31 = vadd.f32 1.4214138, %v1900_v34  ;;  %v1942_v6 = vmul.f32 %v8769_v47, %v1910_v29  ;;  %v11637_v23 = vld [vmem:[#allocation70_spill] sm:$0xff] }
 0x168   : > { %v1933_v54 = vadd.f32 1.4214138, %v1901_v36  ;;  %v1934_v50 = vadd.f32 1.4214138, %v1902_v7  ;;  %v1935_v35 = vadd.f32 1.4214138, %v1903_v5  ;;  %v1944_v26 = vmul.f32 %v11637_v23, %v1912_v55 }
 0x169   : > { %v8972_v0 = vmul.f32 %v11635_v3, %v8592_v63  ;;  %v1936_v2 = vadd.f32 1.4214138, %v1904_v18  ;;  %v1937_v22 = vadd.f32 1.4214138, %v1905_v39  ;;  %v1938_v10 = vadd.f32 1.4214138, %v1906_v28 }
 0x16a   : > { %v1939_v27 = vadd.f32 1.4214138, %v1907_v16  ;;  %v1943_v63 = vmul.f32 %v8774_v11, %v1911_v60  ;;  %v11638_v59 = vld [vmem:[#allocation74_spill] sm:$0xff]  ;;  %v11642_v3 = vld [vmem:[#allocation55_spill] sm:$0xff]  ;;  %v11643_v49 = vld [vmem:[#allocation57_spill] sm:$0xff] }
 0x16b   : > { %11636 = vst [vmem:[#allocation164_spill] sm:$0xff] %v8972_v0  ;;  %v1945_v34 = vmul.f32 %v11638_v59, %v1913_v30  ;;  %v11639_v13 = vld [vmem:[#allocation78_spill] sm:$0xff]  ;;  %v1949_v0 = vmul.f32 %v11642_v3, %v1917_v4  ;;  %v1950_v39 = vmul.f32 %v11643_v49, %v1918_v43  ;;  %v11646_v47 = vld [vmem:[#allocation73_spill] sm:$0xff]  ;;  %v11647_v11 = vld [vmem:[#allocation80_spill] sm:$0xff]  ;;  %v1960_v43 = vmul.f32 %v8886_v48, %v1928_v40 }
 0x16c   : > { %v1946_v36 = vmul.f32 %v11639_v13, %v1914_v52  ;;  %v11640_v56 = vld [vmem:[#allocation82_spill] sm:$0xff]  ;;  %v1953_v60 = vmul.f32 %v11646_v47, %v1921_v57  ;;  %v1954_v55 = vmul.f32 %v11647_v11, %v1922_v19  ;;  %v11648_v23 = vld [vmem:[#allocation76_spill] sm:$0xff]  ;;  %v11649_v59 = vld [vmem:[#allocation77_spill] sm:$0xff]  ;;  %v1963_v57 = vmul.f32 %v8898_v41, %v1931_v44 }
 0x16d   : > { %v1947_v7 = vmul.f32 %v11640_v56, %v1915_v38  ;;  %v11641_v5 = vld [vmem:[#allocation46_spill] sm:$0xff]  ;;  %v1955_v30 = vmul.f32 %v11648_v23, %v1923_v53  ;;  %v1956_v52 = vmul.f32 %v11649_v59, %v1924_v46  ;;  %v11650_v13 = vld [vmem:[#allocation151_spill] sm:$0xff]  ;;  %v11651_v56 = vld [vmem:[#allocation152_spill] sm:$0xff]  ;;  %v1964_v19 = vmul.f32 %v8904_v14, %v1932_v31 }
 0x16e   : > { %v1948_v18 = vmul.f32 %v11641_v5, %v1916_v24  ;;  %v11644_v28 = vld [vmem:[#allocation86_spill] sm:$0xff]  ;;  %v1957_v38 = vmul.f32 %v11650_v13, %v1925_v51  ;;  %v1958_v24 = vmul.f32 %v11651_v56, %v1926_v58  ;;  %v11652_v5 = vld [vmem:[#allocation153_spill] sm:$0xff]  ;;  %v1965_v53 = vmul.f32 %v8911_v62, %v1933_v54  ;;  %v11654_v51 = vld [vmem:[#allocation159_spill] sm:$0xff] }
 0x16f   : > { %v1951_v16 = vmul.f32 %v11644_v28, %v1919_v9  ;;  %v11645_v25 = vld [vmem:[#allocation90_spill] sm:$0xff]  ;;  %v1959_v4 = vmul.f32 %v11652_v5, %v1927_v1  ;;  %v1961_v9 = vmul.f32 %v8890_v15, %v1929_v42  ;;  %v1972_v23 = vadd.f32 -0.28449672, %v1940_v8  ;;  %v11655_v14 = vld [vmem:[#allocation147_spill] sm:$0xff] }
 0x170   : > { %v1952_v29 = vmul.f32 %v11645_v25, %v1920_v21  ;;  %v1962_v21 = vmul.f32 %v8894_v32, %v1930_v45  ;;  %v11653_v46 = vld [vmem:[#allocation158_spill] sm:$0xff]  ;;  %v1967_v13 = vmul.f32 %v11654_v51, %v1935_v35  ;;  %v1968_v58 = vmul.f32 %v8924_v20, %v1936_v2 }
 0x171   : > { %v1966_v59 = vmul.f32 %v11653_v46, %v1934_v50  ;;  %v1973_v1 = vadd.f32 -0.28449672, %v1941_v12  ;;  %v1969_v40 = vmul.f32 %v8932_v33, %v1937_v22  ;;  %v1970_v42 = vmul.f32 %v8939_v17, %v1938_v10  ;;  %v11658_v17 = vld [vmem:[#allocation60_spill] sm:$0xff] }
 0x172   : > { %v1971_v45 = vmul.f32 %v8944_v61, %v1939_v27  ;;  %v1974_v32 = vadd.f32 -0.28449672, %v1942_v6  ;;  %v1975_v44 = vadd.f32 -0.28449672, %v1943_v63  ;;  %v1976_v41 = vadd.f32 -0.28449672, %v1944_v26 }
 0x173   : > { %v1977_v31 = vadd.f32 -0.28449672, %v1945_v34  ;;  %v11656_v54 = vsub.f32 0.0, %v11655_v14  ;;  %v1978_v50 = vadd.f32 -0.28449672, %v1946_v36  ;;  %v9014_v2 = vmul.f32 %v8759_v37, %v1972_v23  ;;  %v11659_v34 = vld [vmem:[#allocation64_spill] sm:$0xff] }
 0x174   : > { %v1979_v35 = vadd.f32 -0.28449672, %v1947_v7  ;;  %v1980_v51 = vadd.f32 -0.28449672, %v1948_v18  ;;  %v1981_v12 = vadd.f32 -0.28449672, %v1949_v0  ;;  %v9017_v27 = vmul.f32 %v11658_v17, %v1973_v1 }
 0x175   : > { %v9011_v8 = vmul.f32 %v11656_v54, %v11655_v14  ;;  %v1982_v22 = vadd.f32 -0.28449672, %v1950_v39  ;;  %v1983_v10 = vadd.f32 -0.28449672, %v1951_v16  ;;  %v1984_v6 = vadd.f32 -0.28449672, %v1952_v29 }
 0x176   : > { %v1985_v63 = vadd.f32 -0.28449672, %v1953_v60  ;;  %v1986_v26 = vadd.f32 -0.28449672, %v1954_v55  ;;  %v9020_v61 = vmul.f32 %v11659_v34, %v1974_v32  ;;  %v1987_v14 = vadd.f32 -0.28449672, %v1955_v30 }
 0x177   : > { %11657 = vst [vmem:[#allocation55_spill] sm:$0xff] %v9011_v8  ;;  %v1988_v54 = vadd.f32 -0.28449672, %v1956_v52  ;;  %v1989_v36 = vadd.f32 -0.28449672, %v1957_v38  ;;  %v11660_v7 = vld [vmem:[#allocation67_spill] sm:$0xff] }
 0x178   : > { %v9023_v18 = vmul.f32 %v11660_v7, %v1975_v44  ;;  %v1990_v23 = vadd.f32 -0.28449672, %v1958_v24  ;;  %v1991_v8 = vadd.f32 -0.28449672, %v1959_v4  ;;  %v1992_v0 = vadd.f32 -0.28449672, %v1960_v43 }
 0x179   : > { %v11661_v39 = vld [vmem:[#allocation70_spill] sm:$0xff]  ;;  %v1993_v1 = vadd.f32 -0.28449672, %v1961_v9  ;;  %v1994_v17 = vadd.f32 -0.28449672, %v1962_v21 }
 0x17a   : > { %v9026_v16 = vmul.f32 %v11661_v39, %v1976_v41  ;;  %v1995_v29 = vadd.f32 -0.28449672, %v1963_v57  ;;  %v11662_v60 = vld [vmem:[#allocation74_spill] sm:$0xff]  ;;  %v1996_v32 = vadd.f32 -0.28449672, %v1964_v19 }
 0x17b   : > { %v9029_v55 = vmul.f32 %v11662_v60, %v1977_v31  ;;  %v9031_v34 = vadd.f32 -0.28449672, %v1965_v53  ;;  %v9033_v30 = vadd.f32 -0.28449672, %v1966_v59  ;;  %v11663_v52 = vld [vmem:[#allocation78_spill] sm:$0xff]  ;;  %v9055_v59 = vmul.f32 %v11642_v3, %v1981_v12  ;;  %v11667_v31 = vld [vmem:[#allocation77_spill] sm:$0xff] }
 0x17c   : > { %v9036_v38 = vmul.f32 %v11663_v52, %v1978_v50  ;;  %v9038_v24 = vadd.f32 -0.28449672, %v1967_v13  ;;  %v9040_v4 = vadd.f32 -0.28449672, %v1968_v58  ;;  %v9042_v41 = vadd.f32 -0.28449672, %v1969_v40 }
 0x17d   : > { %v11664_v43 = vld [vmem:[#allocation82_spill] sm:$0xff]  ;;  %v9047_v21 = vadd.f32 -0.28449672, %v1970_v42  ;;  %v9049_v57 = vadd.f32 -0.28449672, %v1971_v45  ;;  %v9058_v13 = vmul.f32 %v11643_v49, %v1982_v22  ;;  %v9061_v58 = vmul.f32 %v11644_v28, %v1983_v10 }
 0x17e   : > { %v9045_v9 = vmul.f32 %v11664_v43, %v1979_v35  ;;  %v11665_v19 = vld [vmem:[#allocation46_spill] sm:$0xff]  ;;  %v9064_v40 = vmul.f32 %v11645_v25, %v1984_v6  ;;  %v9067_v42 = vmul.f32 %v11646_v47, %v1985_v63  ;;  %v9070_v45 = vmul.f32 %v11647_v11, %v1986_v26  ;;  %v11668_v35 = vld [vmem:[#allocation151_spill] sm:$0xff] }
 0x17f   : > { %v9052_v53 = vmul.f32 %v11665_v19, %v1980_v51  ;;  %v11666_v51 = vld [vmem:[#allocation76_spill] sm:$0xff]  ;;  %v9076_v50 = vmul.f32 %v11667_v31, %v1988_v54  ;;  %v9079_v12 = vmul.f32 %v11668_v35, %v1989_v36  ;;  %v9082_v22 = vmul.f32 %v11651_v56, %v1990_v23  ;;  %v11669_v26 = vld [vmem:[#allocation154_spill] sm:$0xff]  ;;  %v11670_v54 = vld [vmem:[#allocation155_spill] sm:$0xff] }
 0x180   : > { %v9073_v44 = vmul.f32 %v11666_v51, %v1987_v14  ;;  %v9085_v10 = vmul.f32 %v11652_v5, %v1991_v8  ;;  %v9088_v6 = vmul.f32 %v8886_v48, %v1992_v0  ;;  %v9091_v63 = vmul.f32 %v8890_v15, %v1993_v1  ;;  %v11671_v36 = vld [vmem:[#allocation156_spill] sm:$0xff]  ;;  %v11725_v0 = vld [vmem:[#allocation159_spill] sm:$0xff] }
 0x181   : > { %v9094_v14 = vmul.f32 %v11669_v26, %v1994_v17  ;;  %v9097_v31 = vmul.f32 %v11670_v54, %v1995_v29  ;;  %v9100_v35 = vmul.f32 %v11671_v36, %v1996_v32  ;;  %v6525_v23 = vmov -inf   ;;  %v11726_v36 = vld [vmem:[#allocation162_spill] sm:$0xff] }
 0x182   : > { %3016 = vst.msk [vmem:[#allocation2 + $0x198] sm:$0xff] %vm11672_vm10, %v6525_v23  ;;  %vm11688_vm10 = vmmov %vm11684_vm0  ;;  %v2029_v17 = vmul.f32 %v8911_v62, %v9031_v34  ;;  %v2030_v8 = vmul.f32 %v11653_v46, %v9033_v30  ;;  %v2031_v1 = vmul.f32 %v11725_v0, %v9038_v24  ;;  %v2032_v29 = vmul.f32 %v8924_v20, %v9040_v4  ;;  %v11727_v34 = vld [vmem:[#allocation163_spill] sm:$0xff] }
 0x183   : > { %3017 = vst.msk [vmem:[#allocation2 + $0x1a0] sm:$0xff] %vm11673_vm11, %v6525_v23  ;;  %vm11689_vm11 = vmmov %vm11683_vm2  ;;  %v2033_v32 = vmul.f32 %v8932_v33, %v9042_v41  ;;  %v2034_v54 = vmul.f32 %v11726_v36, %v9047_v21  ;;  %v2037_v26 = vadd.f32 0.2548296, %v9017_v27  ;;  %v2035_v62 = vmul.f32 %v11727_v34, %v9049_v57  ;;  %v11728_v21 = vld [vmem:[#allocation148_spill] sm:$0xff]  ;;  %v11730_v34 = vld [vmem:[#allocation149_spill] sm:$0xff] }
 0x184   : > { %3018 = vst.msk [vmem:[#allocation2 + $0x1a8] sm:$0x3] %vm11674_vm12, %v6525_v23  ;;  %vm11690_vm12 = vmmov %vm11684_vm0  ;;  %v2038_v30 = vadd.f32 0.2548296, %v9020_v61  ;;  %v2039_v24 = vadd.f32 0.2548296, %v9023_v18 }
 0x185   : > { %2965 = vst.msk [vmem:[#allocation2] sm:$0xff] %vm11675_vm13, %v6525_v23  ;;  %vm11691_vm13 = vmmov %vm11684_vm0  ;;  %v2040_v0 = vadd.f32 0.2548296, %v9026_v16  ;;  %v2041_v4 = vadd.f32 0.2548296, %v9029_v55  ;;  %v11731_v18 = vsub.f32 0.0, %v11730_v34 }
 0x186   : > { %2966 = vst.msk [vmem:[#allocation2 + $0x8] sm:$0xff] %vm11676_vm14, %v6525_v23  ;;  %vm11692_vm14 = vmmov %vm11683_vm2  ;;  %v2042_v41 = vadd.f32 0.2548296, %v9036_v38  ;;  %v2043_v33 = vadd.f32 0.2548296, %v9045_v9 }
 0x187   : > { %2967 = vst.msk [vmem:[#allocation2 + $0x10] sm:$0x3] %vm11677_vm15, %v6525_v23  ;;  %vm11693_vm15 = vmmov %vm11684_vm0  ;;  %v2044_v27 = vadd.f32 0.2548296, %v9052_v53  ;;  %v2045_v57 = vadd.f32 0.2548296, %v9055_v59  ;;  %v9187_v16 = vmul.f32 %v11731_v18, %v11730_v34 }
 0x188   : > { %2968 = vst.msk [vmem:[#allocation2 + $0x18] sm:$0xff] %vm11678_vm3, %v6525_v23  ;;  %vm11694_vm3 = vmmov %vm11684_vm0  ;;  %v2046_v61 = vadd.f32 0.2548296, %v9058_v13  ;;  %v2047_v55 = vadd.f32 0.2548296, %v9061_v58  ;;  %v11733_v18 = vld [vmem:[#allocation64_spill] sm:$0xff] }
 0x189   : > { %2969 = vst.msk [vmem:[#allocation2 + $0x20] sm:$0xff] %vm11679_vm4, %v6525_v23  ;;  %vm11695_vm4 = vmmov %vm11683_vm2  ;;  %v2048_v38 = vadd.f32 0.2548296, %v9064_v40  ;;  %v2049_v9 = vadd.f32 0.2548296, %v9067_v42  ;;  %v9205_v42 = vmul.f32 %v11733_v18, %v2038_v30 }
 0x18a   : > { %2970 = vst.msk [vmem:[#allocation2 + $0x28] sm:$0x3] %vm11680_vm5, %v6525_v23  ;;  %vm11696_vm5 = vmmov %vm11684_vm0  ;;  %v2050_v53 = vadd.f32 0.2548296, %v9070_v45  ;;  %v2051_v59 = vadd.f32 0.2548296, %v9073_v44  ;;  %v9210_v44 = vmul.f32 %v11660_v7, %v2039_v24 }
 0x18b   : > { %2971 = vst.msk [vmem:[#allocation2 + $0x30] sm:$0xff] %vm11681_vm6, %v6525_v23  ;;  %vm11697_vm6 = vmmov %vm11684_vm0  ;;  %v2052_v13 = vadd.f32 0.2548296, %v9076_v50  ;;  %v2053_v34 = vadd.f32 0.2548296, %v9079_v12  ;;  %v11735_v50 = vld [vmem:[#allocation72_spill] sm:$0xff] }
 0x18c   : > { %2972 = vst.msk [vmem:[#allocation2 + $0x38] sm:$0xff] %vm11682_vm7, %v6525_v23  ;;  %vm11698_vm7 = vmmov %vm11683_vm2  ;;  %v2054_v58 = vadd.f32 0.2548296, %v9082_v22  ;;  %v2055_v40 = vadd.f32 0.2548296, %v9085_v10  ;;  %v9216_v22 = vmul.f32 %v11661_v39, %v2040_v0  ;;  %v11736_v10 = vld [vmem:[#allocation42_spill] sm:$0xff] }
 0x18d   : > { %2973 = vst.msk [vmem:[#allocation2 + $0x40] sm:$0x3] %vm11683_vm2, %v6525_v23  ;;  %vm11699_vm2 = vmmov %vm11684_vm0  ;;  %v2057_v45 = vadd.f32 0.2548296, %v9091_v63  ;;  %v2059_v12 = vadd.f32 0.2548296, %v9097_v31  ;;  %v9229_v31 = vmul.f32 %v11663_v52, %v2042_v41  ;;  %v9248_v52 = vmul.f32 %v11643_v49, %v2046_v61 }
 0x18e   : > { %2974 = vst.msk [vmem:[#allocation2 + $0x48] sm:$0xff] %vm11684_vm0, %v6525_v23  ;;  %2990 = vst.msk [vmem:[#allocation2 + $0xc8] sm:$0xff] %vm11684_vm0, %v6525_v23  ;;  %v2060_v30 = vadd.f32 0.2548296, %v9100_v35  ;;  %v2061_v18 = vadd.f32 0.2548296, %v2029_v17 }
 0x18f   : > { %2975 = vst.msk [vmem:[#allocation2 + $0x50] sm:$0xff] %vm11685_vm1, %v6525_v23  ;;  %vm11700_vm1 = vmmov %vm11695_vm4  ;;  %v11737_v63 = vld [vmem:[#allocation79_spill] sm:$0xff]  ;;  %v2062_v24 = vadd.f32 0.2548296, %v2030_v8  ;;  %v9231_v39 = vadd.f32 0.2548296, %v2033_v32  ;;  %v9242_v8 = vmul.f32 %v11665_v19, %v2044_v27  ;;  %v9261_v19 = vmul.f32 %v11647_v11, %v2050_v53 }
 0x190   : > { %2976 = vst.msk [vmem:[#allocation2 + $0x58] sm:$0x3] %vm11686_vm8, %v6525_v23  ;;  %vm11701_vm8 = vmmov %vm11684_vm0  ;;  %v2168_v7 = vmul.f32 1.442695, %v11737_v63  ;;  %v11740_v35 = vld [vmem:[#allocation75_spill] sm:$0xff]  ;;  %v11744_v49 = vld [vmem:[#allocation77_spill] sm:$0xff] }
 0x191   : > { %2977 = vst.msk [vmem:[#allocation2 + $0x60] sm:$0xff] %vm11687_vm9, %v6525_v23  ;;  %vm11702_vm9 = vmmov %vm11684_vm0  ;;  %v2170_v17 = vmul.f32 1.442695, %v11740_v35  ;;  %v9239_v0 = vadd.f32 0.2548296, %v2035_v62  ;;  %v9258_v62 = vmul.f32 %v11646_v47, %v2049_v9  ;;  %v9267_v32 = vmul.f32 %v11744_v49, %v2052_v13  ;;  %v11747_v11 = vld [vmem:[#allocation150_spill] sm:$0xff] }
 0x192   : > { %2978 = vst.msk [vmem:[#allocation2 + $0x68] sm:$0xff] %vm11688_vm10, %v6525_v23  ;;  %vm11703_vm10 = vmmov %vm11700_vm1  ;;  %v9277_v47 = vmul.f32 %v11652_v5, %v2055_v40  ;;  %v11749_v9 = vld [vmem:[#allocation154_spill] sm:$0xff]  ;;  %v11751_v5 = vld [vmem:[#allocation156_spill] sm:$0xff] }
 0x193   : > { %2979 = vst.msk [vmem:[#allocation2 + $0x70] sm:$0x3] %vm11689_vm11, %v6525_v23  ;;  %vm11704_vm11 = vmmov %vm11684_vm0  ;;  %v9295_v13 = vmul.f32 %v11751_v5, %v2060_v30  ;;  %v11755_v40 = vld [vmem:[#allocation135_spill] sm:$0xff]  ;;  %v11761_v30 = vld [vmem:[#allocation49_spill] sm:$0xff] }
 0x194   : > { %2980 = vst.msk [vmem:[#allocation2 + $0x78] sm:$0xff] %vm11690_vm12, %v6525_v23  ;;  %vm11705_vm12 = vmmov %vm11684_vm0  ;;  %v11767_v49 = vld [vmem:[#allocation53_spill] sm:$0xff] }
 0x195   : > { %2981 = vst.msk [vmem:[#allocation2 + $0x80] sm:$0xff] %vm11691_vm13, %v6525_v23  ;;  %vm11706_vm13 = vmmov %vm11700_vm1 }
 0x196   : > { %2982 = vst.msk [vmem:[#allocation2 + $0x88] sm:$0x3] %vm11692_vm14, %v6525_v23  ;;  %vm11707_vm14 = vmmov %vm11684_vm0 }
 0x197   : > { %2983 = vst.msk [vmem:[#allocation2 + $0x90] sm:$0xff] %vm11693_vm15, %v6525_v23  ;;  %vm11708_vm15 = vmmov %vm11684_vm0 }
 0x198   : > { %2984 = vst.msk [vmem:[#allocation2 + $0x98] sm:$0xff] %vm11694_vm3, %v6525_v23  ;;  %vm11709_vm3 = vmmov %vm11700_vm1 }
 0x199   : > { %2985 = vst.msk [vmem:[#allocation2 + $0xa0] sm:$0x3] %vm11695_vm4, %v6525_v23  ;;  %vm11710_vm4 = vmmov %vm11684_vm0 }
 0x19a   : > { %2986 = vst.msk [vmem:[#allocation2 + $0xa8] sm:$0xff] %vm11696_vm5, %v6525_v23  ;;  %vm11711_vm5 = vmmov %vm11684_vm0 }
 0x19b   : > { %2987 = vst.msk [vmem:[#allocation2 + $0xb0] sm:$0xff] %vm11697_vm6, %v6525_v23  ;;  %vm11712_vm6 = vmmov %vm11700_vm1 }
 0x19c   : > { %2988 = vst.msk [vmem:[#allocation2 + $0xb8] sm:$0x3] %vm11698_vm7, %v6525_v23  ;;  %vm11713_vm7 = vmmov %vm11684_vm0 }
 0x19d   : > { %2989 = vst.msk [vmem:[#allocation2 + $0xc0] sm:$0xff] %vm11699_vm2, %v6525_v23  ;;  %vm11714_vm2 = vmmov %vm11684_vm0 }
 0x19e   : > { %2991 = vst.msk [vmem:[#allocation2 + $0xd0] sm:$0x3] %vm11700_vm1, %v6525_v23  ;;  %vm11715_vm0 = vmmov %vm11700_vm1 }
 0x19f   : > { %2992 = vst.msk [vmem:[#allocation2 + $0xd8] sm:$0xff] %vm11701_vm8, %v6525_v23  ;;  %vm11716_vm1 = vmmov %vm11714_vm2 }
 0x1a0   : > { %2993 = vst.msk [vmem:[#allocation2 + $0xe0] sm:$0xff] %vm11702_vm9, %v6525_v23  ;;  %vm11717_vm8 = vmmov %vm11716_vm1 }
 0x1a1   : > { %2994 = vst.msk [vmem:[#allocation2 + $0xe8] sm:$0x3] %vm11703_vm10, %v6525_v23  ;;  %vm11718_vm9 = vmmov %vm11715_vm0 }
 0x1a2   : > { %2995 = vst.msk [vmem:[#allocation2 + $0xf0] sm:$0xff] %vm11704_vm11, %v6525_v23  ;;  %vm11719_vm10 = vmmov %vm11716_vm1 }
 0x1a3   : > { %2996 = vst.msk [vmem:[#allocation2 + $0xf8] sm:$0xff] %vm11705_vm12, %v6525_v23  ;;  %vm11720_vm11 = vmmov %vm11716_vm1 }
 0x1a4   : > { %2997 = vst.msk [vmem:[#allocation2 + $0x100] sm:$0x3] %vm11706_vm13, %v6525_v23  ;;  %vm11721_vm12 = vmmov %vm11715_vm0 }
 0x1a5   : > { %2998 = vst.msk [vmem:[#allocation2 + $0x108] sm:$0xff] %vm11707_vm14, %v6525_v23  ;;  %vm11722_vm13 = vmmov %vm11716_vm1 }
 0x1a6   : > { %2999 = vst.msk [vmem:[#allocation2 + $0x110] sm:$0xff] %vm11708_vm15, %v6525_v23  ;;  %vm11723_vm14 = vmmov %vm11716_vm1 }
 0x1a7   : > { %3000 = vst.msk [vmem:[#allocation2 + $0x118] sm:$0x3] %vm11709_vm3, %v6525_v23  ;;  %vm11724_vm15 = vmmov %vm11715_vm0 }
 0x1a8   : > { %3001 = vst.msk [vmem:[#allocation2 + $0x120] sm:$0xff] %vm11710_vm4, %v6525_v23  ;;  %11734 = vst [vmem:[#allocation57_spill] sm:$0xff] %v9210_v44  ;;  %v9224_v44 = vadd.f32 0.2548296, %v2031_v1  ;;  %v9245_v1 = vmul.f32 %v11642_v3, %v2045_v57  ;;  %v9264_v3 = vmul.f32 %v11666_v51, %v2051_v59  ;;  %v11748_v57 = vsub.f32 0.0, %v11747_v11 }
 0x1a9   : > { %3002 = vst.msk [vmem:[#allocation2 + $0x128] sm:$0xff] %vm11711_vm5, %v6525_v23  ;;  %11739 = vst [vmem:[#allocation90_spill] sm:$0xff] %v9231_v39 }
 0x1aa   : > { %3003 = vst.msk [vmem:[#allocation2 + $0x130] sm:$0x3] %vm11712_vm6, %v6525_v23  ;;  %11742 = vst [vmem:[#allocation80_spill] sm:$0xff] %v9239_v0  ;;  %v2140_v51 = vmul.f32 %v11748_v57, %v11747_v11  ;;  %v11769_v11 = vld [vmem:[#allocation54_spill] sm:$0xff] }
 0x1ab   : > { %3004 = vst.msk [vmem:[#allocation2 + $0x138] sm:$0xff] %vm11713_vm7, %v6525_v23  ;;  %v11770_v57 = vsub.f32 0.0, %v11769_v11  ;;  %vm11815_vm3 = vmmov %vm11716_vm1 }
 0x1ac   : > { %3005 = vst.msk [vmem:[#allocation2 + $0x140] sm:$0xff] %vm11714_vm2, %v6525_v23  ;;  %v2180_v63 = vmul.f32 1.442695, %v2140_v51  ;;  %v11771_v51 = vld [vmem:[#allocation44_spill] sm:$0xff]  ;;  %vm11817_vm4 = vmmov %vm11716_vm1 }
 0x1ad   : > { %3006 = vst.msk [vmem:[#allocation2 + $0x148] sm:$0x3] %vm11715_vm0, %v6525_v23  ;;  %vm11818_vm5 = vmmov %vm11716_vm1 }
 0x1ae   : > { %3007 = vst.msk [vmem:[#allocation2 + $0x150] sm:$0xff] %vm11716_vm1, %v6525_v23  ;;  %vm11821_vm6 = vmmov %vm11716_vm1 }
 0x1af   : > { %3008 = vst.msk [vmem:[#allocation2 + $0x158] sm:$0xff] %vm11717_vm8, %v6525_v23  ;;  %vm11824_vm7 = vmmov %vm11716_vm1 }
 0x1b0   : > { %3009 = vst.msk [vmem:[#allocation2 + $0x160] sm:$0x3] %vm11718_vm9, %v6525_v23  ;;  %vm11827_vm2 = vmmov %vm11716_vm1 }
 0x1b1   : > { %3010 = vst.msk [vmem:[#allocation2 + $0x168] sm:$0xff] %vm11719_vm10, %v6525_v23  ;;  %vm11830_vm0 = vmmov %vm11716_vm1 }
 0x1b2   : > { %3011 = vst.msk [vmem:[#allocation2 + $0x170] sm:$0xff] %vm11720_vm11, %v6525_v23  ;;  %vm11833_vm1 = vmmov %vm11830_vm0 }
 0x1b3   : > { %3012 = vst.msk [vmem:[#allocation2 + $0x178] sm:$0x3] %vm11721_vm12, %v6525_v23  ;;  %vm11836_vm8 = vmmov %vm11830_vm0 }
 0x1b4   : > { %3013 = vst.msk [vmem:[#allocation2 + $0x180] sm:$0xff] %vm11722_vm13, %v6525_v23  ;;  %vm11839_vm9 = vmmov %vm11830_vm0 }
 0x1b5   : > { %3014 = vst.msk [vmem:[#allocation2 + $0x188] sm:$0xff] %vm11723_vm14, %v6525_v23  ;;  %vm11842_vm10 = vmmov %vm11830_vm0 }
 0x1b6   : > { %3015 = vst.msk [vmem:[#allocation2 + $0x190] sm:$0x3] %vm11724_vm15, %v6525_v23  ;;  %v2036_v23 = vadd.f32 0.2548296, %v9014_v2  ;;  %v11729_v2 = vsub.f32 0.0, %v11728_v21  ;;  %vm11845_vm11 = vmmov %vm11830_vm0 }
 0x1b7   : > { %vm11848_vm12 = vmmov %vm11830_vm0 }
 0x1b8   : > { %v2138_v36 = vmul.f32 %v11729_v2, %v11728_v21  ;;  %v9193_v20 = vmul.f32 %v8759_v37, %v2036_v23  ;;  %v11732_v21 = vld [vmem:[#allocation60_spill] sm:$0xff]  ;;  %v2056_v37 = vadd.f32 0.2548296, %v9088_v6  ;;  %v2164_v23 = vmul.f32 1.442695, %v11735_v50  ;;  %vm11851_vm13 = vmmov %vm11830_vm0 }
 0x1b9   : > { %v9199_v2 = vmul.f32 %v11732_v21, %v2037_v26  ;;  %v2058_v26 = vadd.f32 0.2548296, %v9094_v14  ;;  %v2166_v21 = vmul.f32 1.442695, %v11736_v10  ;;  %v9221_v6 = vmul.f32 %v11662_v60, %v2041_v4  ;;  %v11745_v4 = vld [vmem:[#allocation55_spill] sm:$0xff]  ;;  %vm11855_vm15 = vmmov %vm11830_vm0 }
 0x1ba   : > { %v9226_v50 = vadd.f32 0.2548296, %v2032_v29  ;;  %v9234_v14 = vmul.f32 %v11664_v43, %v2043_v33  ;;  %6368 = vpow2.f32 %v2164_v23  ;;  %v9237_v60 = vadd.f32 0.2548296, %v2034_v54  ;;  %v11743_v33 = vld [vmem:[#allocation164_spill] sm:$0xff] }
 0x1bb   : > { %6370 = vpow2.f32 %v2166_v21  ;;  %v2172_v43 = vmul.f32 1.442695, %v11743_v33  ;;  %v9252_v29 = vmul.f32 %v11644_v28, %v2047_v55  ;;  %v9255_v54 = vmul.f32 %v11645_v25, %v2048_v38  ;;  %v11746_v28 = vld [vmem:[#allocation151_spill] sm:$0xff] }
 0x1bc   : > { %11738 = vst [vmem:[#allocation86_spill] sm:$0xff] %v9226_v50  ;;  %11741 = vst [vmem:[#allocation73_spill] sm:$0xff] %v9237_v60  ;;  %6372 = vpow2.f32 %v2168_v7  ;;  %v2174_v41 = vmul.f32 1.442695, %v11745_v4  ;;  %v9271_v27 = vmul.f32 %v11746_v28, %v2053_v34  ;;  %v9274_v25 = vmul.f32 %v11651_v56, %v2054_v58  ;;  %v11750_v56 = vld [vmem:[#allocation155_spill] sm:$0xff]  ;;  %v11752_v34 = vld [vmem:[#allocation157_spill] sm:$0xff] }
 0x1bd   : > { %6374 = vpow2.f32 %v2170_v17  ;;  %v9283_v61 = vmul.f32 %v8886_v48, %v2056_v37  ;;  %v9286_v55 = vmul.f32 %v8890_v15, %v2057_v45  ;;  %v2176_v38 = vmul.f32 1.442695, %v2138_v36  ;;  %v11757_v45 = vld [vmem:[#allocation47_spill] sm:$0xff] }
 0x1be   : > { %6376 = vpow2.f32 %v2172_v43  ;;  %v9289_v53 = vmul.f32 %v11749_v9, %v2058_v26  ;;  %v9292_v59 = vmul.f32 %v11750_v56, %v2059_v12  ;;  %v9298_v58 = vmul.f32 %v11752_v34, %v2061_v18  ;;  %v11759_v12 = vld [vmem:[#allocation40_spill] sm:$0xff]  ;;  %v11765_v33 = vld [vmem:[#allocation51_spill] sm:$0xff]  ;;  %v11773_v34 = vld [vmem:[#allocation94_spill] sm:$0xff] }
 0x1bf   : > { %v9301_v48 = vmul.f32 %v11653_v46, %v2062_v24  ;;  %v11756_v15 = vsub.f32 0.0, %v11755_v40  ;;  %6378 = vpow2.f32 %v2174_v41  ;;  %v2178_v36 = vmul.f32 1.442695, %v9187_v16  ;;  %v11763_v24 = vld [vmem:[#allocation50_spill] sm:$0xff] }
 0x1c0   : > { %11753 = vst [vmem:[#allocation152_spill] sm:$0xff] %v9298_v58  ;;  %v11758_v23 = vsub.f32 0.0, %v11757_v45  ;;  %v11760_v10 = vsub.f32 0.0, %v11759_v12  ;;  %v11762_v18 = vsub.f32 0.0, %v11761_v30  ;;  %v11764_v35 = vsub.f32 0.0, %v11763_v24 }
 0x1c1   : > { %11754 = vst [vmem:[#allocation153_spill] sm:$0xff] %v9301_v48  ;;  %v2141_v37 = vmul.f32 %v11756_v15, %v11755_v40  ;;  %v11766_v16 = vsub.f32 0.0, %v11765_v33  ;;  %v11768_v4 = vsub.f32 0.0, %v11767_v49  ;;  %6380 = vpow2.f32 %v2176_v38 }
 0x1c2   : > { %v2142_v26 = vmul.f32 %v11758_v23, %v11757_v45  ;;  %v2143_v21 = vmul.f32 %v11760_v10, %v11759_v12  ;;  %v2144_v46 = vmul.f32 %v11762_v18, %v11761_v30  ;;  %v2145_v17 = vmul.f32 %v11764_v35, %v11763_v24  ;;  %v11775_v45 = vld [vmem:[#allocation98_spill] sm:$0xff]  ;;  %v11779_v24 = vld [vmem:[#allocation59_spill] sm:$0xff] }
 0x1c3   : > { %v2146_v43 = vmul.f32 %v11766_v16, %v11765_v33  ;;  %v2147_v41 = vmul.f32 %v11768_v4, %v11767_v49  ;;  %v2148_v9 = vmul.f32 %v11770_v57, %v11769_v11  ;;  %v11772_v56 = vsub.f32 0.0, %v11771_v51  ;;  %v11777_v30 = vld [vmem:[#allocation58_spill] sm:$0xff]  ;;  %v11781_v49 = vld [vmem:[#allocation61_spill] sm:$0xff] }
 0x1c4   : > { %v6369_v7 = vpop.eup %6368  ;;  %v11774_v40 = vsub.f32 0.0, %v11773_v34  ;;  %v11776_v23 = vsub.f32 0.0, %v11775_v45  ;;  %v11778_v38 = vsub.f32 0.0, %v11777_v30  ;;  %v11780_v35 = vsub.f32 0.0, %v11779_v24  ;;  %v11783_v57 = vld [vmem:[#allocation62_spill] sm:$0xff] }
 0x1c5   : > { %v6371_v28 = vpop.eup %6370  ;;  %v2149_v5 = vmul.f32 %v11772_v56, %v11771_v51  ;;  %6382 = vpow2.f32 %v2178_v36  ;;  %v2182_v16 = vmul.f32 1.442695, %v2141_v37  ;;  %v11782_v4 = vsub.f32 0.0, %v11781_v49  ;;  %v11789_v37 = vld [vmem:[#allocation66_spill] sm:$0xff] }
 0x1c6   : > { %v2150_v15 = vmul.f32 %v11774_v40, %v11773_v34  ;;  %v2151_v12 = vmul.f32 %v11776_v23, %v11775_v45  ;;  %v6373_v10 = vpop.eup %6372  ;;  %v2152_v18 = vmul.f32 %v11778_v38, %v11777_v30  ;;  %v2153_v33 = vmul.f32 %v11780_v35, %v11779_v24  ;;  %v11785_v45 = vld [vmem:[#allocation63_spill] sm:$0xff]  ;;  %v11787_v38 = vld [vmem:[#allocation65_spill] sm:$0xff] }
 0x1c7   : > { %v2154_v11 = vmul.f32 %v11782_v4, %v11781_v49  ;;  %v11784_v51 = vsub.f32 0.0, %v11783_v57  ;;  %6384 = vpow2.f32 %v2180_v63  ;;  %v2184_v34 = vmul.f32 1.442695, %v2142_v26  ;;  %v6375_v40 = vpop.eup %6374  ;;  %v11791_v4 = vld [vmem:[#allocation68_spill] sm:$0xff] }
 0x1c8   : > { %v11786_v23 = vsub.f32 0.0, %v11785_v45  ;;  %v11788_v24 = vsub.f32 0.0, %v11787_v38  ;;  %v11790_v35 = vsub.f32 0.0, %v11789_v37  ;;  %v2228_v49 = vmul.f32 %v6369_v7, %v9193_v20 }
 0x1c9   : > { %v2155_v56 = vmul.f32 %v11784_v51, %v11783_v57  ;;  %v11792_v57 = vsub.f32 0.0, %v11791_v4  ;;  %v2186_v26 = vmul.f32 1.442695, %v2143_v21  ;;  %v2229_v51 = vmul.f32 %v6371_v28, %v9199_v2  ;;  %v11798_v2 = vld [vmem:[#allocation45_spill] sm:$0xff] }
 0x1ca   : > { %v2156_v30 = vmul.f32 %v11786_v23, %v11785_v45  ;;  %v2157_v36 = vmul.f32 %v11788_v24, %v11787_v38  ;;  %v2158_v0 = vmul.f32 %v11790_v35, %v11789_v37  ;;  %v2230_v60 = vmul.f32 %v6373_v10, %v9205_v42  ;;  %v6377_v45 = vpop.eup %6376  ;;  %v11793_v23 = vld [vmem:[#allocation69_spill] sm:$0xff]  ;;  %v11795_v24 = vld [vmem:[#allocation71_spill] sm:$0xff] }
 0x1cb   : > { %v2159_v63 = vmul.f32 %v11792_v57, %v11791_v4  ;;  %v11794_v39 = vsub.f32 0.0, %v11793_v23  ;;  %v11796_v48 = vsub.f32 0.0, %v11795_v24  ;;  %6386 = vpow2.f32 %v2182_v16  ;;  %v11797_v4 = vld [vmem:[#allocation57_spill] sm:$0xff]  ;;  %v6379_v57 = vpop.eup %6378 }
 0x1cc   : > { %v2188_v20 = vmul.f32 1.442695, %v2144_v46  ;;  %6388 = vpow2.f32 %v2184_v34  ;;  %v2190_v7 = vmul.f32 1.442695, %v2145_v17  ;;  %v2192_v35 = vmul.f32 1.442695, %v2146_v43  ;;  %v6381_v46 = vpop.eup %6380 }
 0x1cd   : > { %v2160_v38 = vmul.f32 %v11794_v39, %v11793_v23  ;;  %v2161_v37 = vmul.f32 %v11796_v48, %v11795_v24  ;;  %v2231_v21 = vmul.f32 %v6375_v40, %v11797_v4  ;;  %v11799_v42 = vsub.f32 0.0, %v11798_v2  ;;  %v11800_v34 = vld [vmem:[#allocation130_spill] sm:$0xff] }
 0x1ce   : > { %v2194_v10 = vmul.f32 1.442695, %v2147_v41  ;;  %v2196_v50 = vmul.f32 1.442695, %v2148_v9  ;;  %v2260_v39 = vsub.f32 1.0, %v2228_v49  ;;  %6390 = vpow2.f32 %v2186_v26 }
 0x1cf   : > { %v9374_v28 = vmul.f32 %v11799_v42, %v11798_v2  ;;  %v2232_v23 = vmul.f32 %v6377_v45, %v9216_v22  ;;  %v2261_v48 = vsub.f32 1.0, %v2229_v51  ;;  %v2262_v16 = vsub.f32 1.0, %v2230_v60  ;;  %v6383_v49 = vpop.eup %6382  ;;  %v11802_v60 = vld [vmem:[#allocation114_spill] sm:$0xff] }
 0x1d0   : > { %v11801_v17 = vsub.f32 0.0, %v11800_v34  ;;  %v2198_v40 = vmul.f32 1.442695, %v2149_v5  ;;  %v2200_v24 = vmul.f32 1.442695, %v2150_v15  ;;  %6392 = vpow2.f32 %v2188_v20  ;;  %v11803_v15 = vld [vmem:[#allocation115_spill] sm:$0xff] }
 0x1d1   : > { %v2202_v4 = vmul.f32 1.442695, %v2151_v12  ;;  %v9380_v58 = vmul.f32 1.442695, %v2152_v18  ;;  %v2233_v41 = vmul.f32 %v6379_v57, %v9221_v6  ;;  %v2263_v9 = vsub.f32 1.0, %v2231_v21  ;;  %v6385_v45 = vpop.eup %6384  ;;  %v11804_v20 = vld [vmem:[#allocation118_spill] sm:$0xff] }
 0x1d2   : > { %v2163_v43 = vmul.f32 %v11801_v17, %v11800_v34  ;;  %6394 = vpow2.f32 %v2190_v7  ;;  %v9383_v26 = vmul.f32 1.442695, %v2153_v33  ;;  %v9385_v22 = vmul.f32 1.442695, %v2154_v11  ;;  %v11805_v21 = vld [vmem:[#allocation119_spill] sm:$0xff] }
 0x1d3   : > { %v2292_v51 = vmul.f32 %v2260_v39, %v11802_v60  ;;  %v2234_v2 = vmul.f32 %v6381_v46, %v9229_v31  ;;  %v2264_v5 = vsub.f32 1.0, %v2232_v23  ;;  %v2293_v12 = vmul.f32 %v2261_v48, %v11803_v15  ;;  %v11811_v15 = vld [vmem:[#allocation84_spill] sm:$0xff] }
 0x1d4   : > { %v2294_v18 = vmul.f32 %v2262_v16, %v11804_v20  ;;  %6396 = vpow2.f32 %v2192_v35  ;;  %v9391_v42 = vmul.f32 1.442695, %v2155_v56  ;;  %v9393_v6 = vmul.f32 1.442695, %v2156_v30  ;;  %v11806_v16 = vld [vmem:[#allocation120_spill] sm:$0xff] }
 0x1d5   : > { %v9395_v7 = vmul.f32 1.442695, %v2157_v36  ;;  %6398 = vpow2.f32 %v2194_v10  ;;  %v2235_v33 = vmul.f32 %v6383_v49, %v9234_v14  ;;  %v2265_v11 = vsub.f32 1.0, %v2233_v41  ;;  %v6387_v39 = vpop.eup %6386  ;;  %v11807_v41 = vld [vmem:[#allocation125_spill] sm:$0xff] }
 0x1d6   : > { %v2295_v57 = vmul.f32 %v2263_v9, %v11805_v21  ;;  %6400 = vpow2.f32 %v2196_v50  ;;  %v9399_v31 = vmul.f32 1.442695, %v2158_v0  ;;  %v2236_v23 = vmul.f32 %v6385_v45, %v9242_v8  ;;  %v6389_v35 = vpop.eup %6388 }
 0x1d7   : > { %v2324_v48 = vadd.f32 1.0, %v2292_v51  ;;  %v2266_v56 = vsub.f32 1.0, %v2234_v2  ;;  %v2296_v30 = vmul.f32 %v2264_v5, %v11806_v16  ;;  %v2325_v46 = vadd.f32 1.0, %v2293_v12  ;;  %v11808_v51 = vld [vmem:[#allocation81_spill] sm:$0xff] }
 0x1d8   : > { %v2326_v36 = vadd.f32 1.0, %v2294_v18  ;;  %6402 = vpow2.f32 %v2198_v40  ;;  %v9403_v10 = vmul.f32 1.442695, %v2159_v63  ;;  %v9405_v14 = vmul.f32 1.442695, %v2160_v38  ;;  %v6391_v17 = vpop.eup %6390  ;;  %v11809_v40 = vld [vmem:[#allocation126_spill] sm:$0xff] }
 0x1d9   : > { %v9407_v34 = vmul.f32 1.442695, %v2161_v37  ;;  %v2237_v50 = vmul.f32 %v6387_v39, %v9245_v1  ;;  %v2267_v0 = vsub.f32 1.0, %v2235_v33  ;;  %v2297_v8 = vmul.f32 %v2265_v11, %v11807_v41  ;;  %v11810_v37 = vld [vmem:[#allocation83_spill] sm:$0xff]  ;;  %v11819_v41 = vld [vmem:[#allocation133_spill] sm:$0xff] }
 0x1da   : > { %v2327_v9 = vadd.f32 1.0, %v2295_v57  ;;  %6404 = vpow2.f32 %v2200_v24  ;;  %v2238_v49 = vmul.f32 %v6389_v35, %v9248_v52  ;;  %v2268_v60 = vsub.f32 1.0, %v2236_v23  ;;  %v6393_v63 = vpop.eup %6392  ;;  %v11812_v33 = vld [vmem:[#allocation127_spill] sm:$0xff]  ;;  %v11813_v57 = vld [vmem:[#allocation85_spill] sm:$0xff] }
 0x1db   : > { %v9413_v45 = vmul.f32 %v2324_v48, %v11808_v51  ;;  %v2298_v38 = vmul.f32 %v2266_v56, %v11809_v40  ;;  %v2328_v2 = vadd.f32 1.0, %v2296_v30  ;;  %v9417_v5 = vmul.f32 %v2325_v46, %v11810_v37  ;;  %v11814_v56 = vld [vmem:[#allocation132_spill] sm:$0xff]  ;;  %v11816_v30 = vld [vmem:[#allocation87_spill] sm:$0xff] }
 0x1dc   : > { %v9420_v1 = vmul.f32 %v2326_v36, %v11811_v15  ;;  %v6395_v12 = vpop.eup %6394  ;;  %6406 = vpow2.f32 %v2202_v4  ;;  %v9423_v24 = vmul.f32 1.442695, %v9374_v28  ;;  %v9425_v52 = vmul.f32 1.442695, %v2163_v43  ;;  %v11823_v15 = vld [vmem:[#allocation89_spill] sm:$0xff] }
 0x1dd   : > { %v2239_v20 = vmul.f32 %v6391_v17, %v9252_v29  ;;  %v2269_v18 = vsub.f32 1.0, %v2237_v50  ;;  %v2299_v11 = vmul.f32 %v2267_v0, %v11812_v33  ;;  %v2329_v21 = vadd.f32 1.0, %v2297_v8 }
 0x1de   : > { %v9430_v39 = vmul.f32 %v2327_v9, %v11813_v57  ;;  %v6397_v23 = vpop.eup %6396  ;;  %v2240_v48 = vmul.f32 %v6393_v63, %v9255_v54  ;;  %v2270_v35 = vsub.f32 1.0, %v2238_v49  ;;  %v2300_v4 = vmul.f32 %v2268_v60, %v11814_v56  ;;  %v11820_v49 = vld [vmem:[#allocation88_spill] sm:$0xff] }
 0x1df   : > { %v2388_v28 = vsel %vm11815_vm3, %v9413_v45, 0.0  ;;  %v6399_v43 = vpop.eup %6398  ;;  %v2330_v16 = vadd.f32 1.0, %v2298_v38  ;;  %v9437_v29 = vmul.f32 %v2328_v2, %v11816_v30  ;;  %v2389_v46 = vsel %vm11817_vm4, %v9417_v5, 0.0  ;;  %v11822_v2 = vld [vmem:[#allocation134_spill] sm:$0xff]  ;;  %v11829_v30 = vld [vmem:[#allocation92_spill] sm:$0xff]  ;;  %vm11861_vm4 = vmmov %vm11830_vm0 }
 0x1e0   : > { %v2391_v36 = vsel %vm11818_vm5, %v9420_v1, 0.0  ;;  %v6401_v17 = vpop.eup %6400  ;;  %6408 = vpow2.f32 %v9380_v58  ;;  %v2241_v54 = vmul.f32 %v6395_v12, %v9258_v62  ;;  %v2271_v50 = vsub.f32 1.0, %v2239_v20 }
 0x1e1   : > { %v2390_v0 = vadd.f32 %v2389_v46, %v2388_v28  ;;  %v2301_v8 = vmul.f32 %v2269_v18, %v11819_v41  ;;  %v2331_v9 = vadd.f32 1.0, %v2299_v11  ;;  %v9447_v60 = vmul.f32 %v2329_v21, %v11820_v49  ;;  %v11825_v21 = vld [vmem:[#allocation136_spill] sm:$0xff] }
 0x1e2   : > { %v2393_v51 = vsel %vm11821_vm6, %v9430_v39, 0.0  ;;  %v6403_v63 = vpop.eup %6402  ;;  %6410 = vpow2.f32 %v9383_v26  ;;  %v2242_v40 = vmul.f32 %v6397_v23, %v9261_v19  ;;  %v2272_v38 = vsub.f32 1.0, %v2240_v48  ;;  %v11826_v23 = vld [vmem:[#allocation91_spill] sm:$0xff]  ;;  %vm11868_vm6 = vmmov %vm11830_vm0 }
 0x1e3   : > { %v2392_v58 = vadd.f32 %v2391_v36, %v2390_v0  ;;  %v2302_v62 = vmul.f32 %v2270_v35, %v11822_v2  ;;  %v2332_v37 = vadd.f32 1.0, %v2300_v4  ;;  %v9455_v12 = vmul.f32 %v2330_v16, %v11823_v15  ;;  %v11828_v16 = vld [vmem:[#allocation137_spill] sm:$0xff] }
 0x1e4   : > { %v2395_v20 = vsel %vm11824_vm7, %v9437_v29, 0.0  ;;  %v6405_v18 = vpop.eup %6404  ;;  %6412 = vpow2.f32 %v9385_v22  ;;  %v2243_v33 = vmul.f32 %v6399_v43, %v9264_v3  ;;  %v2273_v11 = vsub.f32 1.0, %v2241_v54 }
 0x1e5   : > { %v2394_v26 = vadd.f32 %v2393_v51, %v2392_v58  ;;  %v2303_v19 = vmul.f32 %v2271_v50, %v11825_v21  ;;  %v2333_v57 = vadd.f32 1.0, %v2301_v8  ;;  %v9463_v48 = vmul.f32 %v2331_v9, %v11826_v23  ;;  %v11835_v58 = vld [vmem:[#allocation95_spill] sm:$0xff] }
 0x1e6   : > { %v2397_v35 = vsel %vm11827_vm2, %v9447_v60, 0.0  ;;  %v6407_v56 = vpop.eup %6406  ;;  %6414 = vpow2.f32 %v9391_v42  ;;  %v2244_v4 = vmul.f32 %v6401_v17, %v9267_v32  ;;  %v2274_v28 = vsub.f32 1.0, %v2242_v40  ;;  %v11831_v42 = vld [vmem:[#allocation138_spill] sm:$0xff]  ;;  %v11832_v17 = vld [vmem:[#allocation93_spill] sm:$0xff]  ;;  %vm11874_vm2 = vmmov %vm11830_vm0 }
 0x1e7   : > { %v2396_v22 = vadd.f32 %v2395_v20, %v2394_v26  ;;  %v2304_v3 = vmul.f32 %v2272_v38, %v11828_v16  ;;  %v2334_v43 = vadd.f32 1.0, %v2302_v62  ;;  %v9471_v46 = vmul.f32 %v2332_v37, %v11829_v30  ;;  %v11834_v38 = vld [vmem:[#allocation41_spill] sm:$0xff] }
 0x1e8   : > { %v2399_v36 = vsel %vm11830_vm0, %v9455_v12, 0.0  ;;  %6416 = vpow2.f32 %v9393_v6  ;;  %v2245_v54 = vmul.f32 %v6403_v63, %v9271_v27  ;;  %v2275_v50 = vsub.f32 1.0, %v2243_v33  ;;  %v11837_v33 = vld [vmem:[#allocation139_spill] sm:$0xff]  ;;  %v11843_v30 = vld [vmem:[#allocation141_spill] sm:$0xff] }
 0x1e9   : > { %v2398_v0 = vadd.f32 %v2397_v35, %v2396_v22  ;;  %v2305_v41 = vmul.f32 %v2273_v11, %v11831_v42  ;;  %v2335_v32 = vadd.f32 1.0, %v2303_v19  ;;  %v9479_v8 = vmul.f32 %v2333_v57, %v11832_v17  ;;  %v11838_v11 = vld [vmem:[#allocation96_spill] sm:$0xff]  ;;  %v11846_v17 = vld [vmem:[#allocation142_spill] sm:$0xff] }
 0x1ea   : > { %v2401_v9 = vsel %vm11833_vm1, %v9463_v48, 0.0  ;;  %v6409_v49 = vpop.eup %6408  ;;  %6418 = vpow2.f32 %v9395_v7  ;;  %v2246_v51 = vmul.f32 %v6405_v18, %v9274_v25  ;;  %v2276_v40 = vsub.f32 1.0, %v2244_v4  ;;  %v11840_v35 = vld [vmem:[#allocation140_spill] sm:$0xff]  ;;  %v11841_v4 = vld [vmem:[#allocation97_spill] sm:$0xff]  ;;  %vm11883_vm1 = vmmov %vm11830_vm0 }
 0x1eb   : > { %v2400_v6 = vadd.f32 %v2399_v36, %v2398_v0  ;;  %v2306_v27 = vmul.f32 %v2274_v28, %v11834_v38  ;;  %v2336_v63 = vadd.f32 1.0, %v2304_v3  ;;  %v9487_v2 = vmul.f32 %v2334_v43, %v11835_v58 }
 0x1ec   : > { %v2403_v62 = vsel %vm11836_vm8, %v9471_v46, 0.0  ;;  %v6411_v37 = vpop.eup %6410  ;;  %6420 = vpow2.f32 %v9399_v31  ;;  %v2247_v15 = vmul.f32 %v6407_v56, %v9277_v47  ;;  %v2277_v20 = vsub.f32 1.0, %v2245_v54  ;;  %v11844_v54 = vld [vmem:[#allocation99_spill] sm:$0xff]  ;;  %vm11887_vm8 = vmmov %vm11830_vm0 }
 0x1ed   : > { %v2402_v7 = vadd.f32 %v2401_v9, %v2400_v6  ;;  %v2307_v25 = vmul.f32 %v2275_v50, %v11837_v33  ;;  %v2337_v18 = vadd.f32 1.0, %v2305_v41  ;;  %v9495_v26 = vmul.f32 %v2335_v32, %v11838_v11 }
 0x1ee   : > { %v2405_v21 = vsel %vm11839_vm9, %v9479_v8, 0.0  ;;  %v6413_v19 = vpop.eup %6412  ;;  %6422 = vpow2.f32 %v9403_v10  ;;  %v2248_v57 = vmul.f32 %v6409_v49, %v9283_v61  ;;  %v2278_v23 = vsub.f32 1.0, %v2246_v51  ;;  %v11847_v49 = vld [vmem:[#allocation100_spill] sm:$0xff]  ;;  %vm11889_vm9 = vmmov %vm11830_vm0 }
 0x1ef   : > { %v2404_v31 = vadd.f32 %v2403_v62, %v2402_v7  ;;  %v2308_v47 = vmul.f32 %v2276_v40, %v11840_v35  ;;  %v2338_v56 = vadd.f32 1.0, %v2306_v27  ;;  %v9503_v28 = vmul.f32 %v2336_v63, %v11841_v4  ;;  %v11849_v63 = vld [vmem:[#allocation143_spill] sm:$0xff]  ;;  %v11850_v62 = vld [vmem:[#allocation101_spill] sm:$0xff] }
 0x1f0   : > { %v2407_v22 = vsel %vm11842_vm10, %v9487_v2, 0.0  ;;  %v6415_v16 = vpop.eup %6414  ;;  %6424 = vpow2.f32 %v9405_v14  ;;  %v2249_v3 = vmul.f32 %v6411_v37, %v9286_v55  ;;  %v2279_v43 = vsub.f32 1.0, %v2247_v15  ;;  %v11858_v4 = vld [vmem:[#allocation129_spill] sm:$0xff] }
 0x1f1   : > { %v2406_v10 = vadd.f32 %v2405_v21, %v2404_v31  ;;  %v2309_v61 = vmul.f32 %v2277_v20, %v11843_v30  ;;  %v2339_v36 = vadd.f32 1.0, %v2307_v25  ;;  %v9511_v50 = vmul.f32 %v2337_v18, %v11844_v54  ;;  %v11852_v25 = vld [vmem:[#allocation128_spill] sm:$0xff]  ;;  %v11854_v21 = vld [vmem:[#allocation103_spill] sm:$0xff] }
 0x1f2   : > { %v2409_v0 = vsel %vm11845_vm11, %v9495_v26, 0.0  ;;  %v6417_v42 = vpop.eup %6416  ;;  %6426 = vpow2.f32 %v9407_v34  ;;  %v2250_v41 = vmul.f32 %v6413_v19, %v9289_v53  ;;  %v2280_v32 = vsub.f32 1.0, %v2248_v57  ;;  %v11856_v31 = vld [vmem:[#allocation159_spill] sm:$0xff]  ;;  %v11863_v54 = vld [vmem:[#allocation160_spill] sm:$0xff]  ;;  %vm11892_vm11 = vmmov %vm11830_vm0 }
 0x1f3   : > { %v2408_v14 = vadd.f32 %v2407_v22, %v2406_v10  ;;  %v2310_v55 = vmul.f32 %v2278_v23, %v11846_v17  ;;  %v2340_v9 = vadd.f32 1.0, %v2308_v47  ;;  %v9519_v51 = vmul.f32 %v2338_v56, %v11847_v49  ;;  %v11859_v22 = vld [vmem:[#allocation145_spill] sm:$0xff]  ;;  %v11866_v17 = vld [vmem:[#allocation146_spill] sm:$0xff] }
 0x1f4   : > { %v2411_v40 = vsel %vm11848_vm12, %v9503_v28, 0.0  ;;  %v6419_v6 = vpop.eup %6418  ;;  %6428 = vpow2.f32 %v9423_v24  ;;  %v2251_v38 = vmul.f32 %v6415_v16, %v9292_v59  ;;  %v2281_v27 = vsub.f32 1.0, %v2249_v3  ;;  %v11853_v59 = vld [vmem:[#allocation144_spill] sm:$0xff]  ;;  %v11867_v49 = vld [vmem:[#allocation105_spill] sm:$0xff]  ;;  %vm11895_vm12 = vmmov %vm11830_vm0 }
 0x1f5   : > { %v2410_v34 = vadd.f32 %v2409_v0, %v2408_v14  ;;  %v2311_v53 = vmul.f32 %v2279_v43, %v11849_v63  ;;  %v2341_v58 = vadd.f32 1.0, %v2309_v61  ;;  %v9527_v37 = vmul.f32 %v2339_v36, %v11850_v62  ;;  %v11860_v43 = vld [vmem:[#allocation104_spill] sm:$0xff]  ;;  %v11862_v36 = vld [vmem:[#allocation86_spill] sm:$0xff]  ;;  %v11865_v14 = vld [vmem:[#allocation111_spill] sm:$0xff] }
 0x1f6   : > { %v2413_v15 = vsel %vm11851_vm13, %v9511_v50, 0.0  ;;  %v6421_v20 = vpop.eup %6420  ;;  %6430 = vpow2.f32 %v9425_v52  ;;  %v2252_v7 = vmul.f32 %v6417_v42, %v9295_v13  ;;  %v2282_v33 = vsub.f32 1.0, %v2250_v41  ;;  %v11857_v52 = vld [vmem:[#allocation152_spill] sm:$0xff]  ;;  %vm11898_vm13 = vmmov %vm11830_vm0 }
 0x1f7   : > { %v2412_v24 = vadd.f32 %v2411_v40, %v2410_v34  ;;  %vm1615_vm14 = vcmp.lt.f32.partialorder %v11852_v25, 0.0  ;;  %v2312_v18 = vmul.f32 %v2280_v32, %v11853_v59  ;;  %v2342_v11 = vadd.f32 1.0, %v2310_v55  ;;  %v11870_v34 = vld [vmem:[#allocation161_spill] sm:$0xff] }
 0x1f8   : > { %v9536_v19 = vmul.f32 %v2340_v9, %v11854_v21  ;;  %v2415_v57 = vsel %vm11855_vm15, %v9519_v51, 0.0  ;;  %v6423_v23 = vpop.eup %6422  ;;  %v2095_v35 = vmul.f32 %v11856_v31, %v9224_v44  ;;  %v2253_v47 = vmul.f32 %v6419_v6, %v11857_v52  ;;  %v11864_v44 = vld [vmem:[#allocation153_spill] sm:$0xff]  ;;  %vm11902_vm15 = vmmov %vm11830_vm0 }
 0x1f9   : > { %v2283_v13 = vsub.f32 1.0, %v2251_v38  ;;  %v2414_v56 = vadd.f32 %v2413_v15, %v2412_v24  ;;  %vm1616_vm3 = vcmp.lt.f32.partialorder %v11858_v4, 0.0  ;;  %v2313_v16 = vmul.f32 %v2281_v27, %v11859_v22  ;;  %v11869_v27 = vld [vmem:[#allocation90_spill] sm:$0xff]  ;;  %v11871_v15 = vld [vmem:[#allocation112_spill] sm:$0xff]  ;;  %v11875_v21 = vld [vmem:[#allocation73_spill] sm:$0xff] }
 0x1fa   : > { %v2343_v3 = vadd.f32 1.0, %v2311_v53  ;;  %v9546_v10 = vmul.f32 %v2341_v58, %v11860_v43  ;;  %v2417_v30 = vsel %vm11861_vm4, %v9527_v37, 0.0  ;;  %v6425_v61 = vpop.eup %6424  ;;  %v2096_v0 = vmul.f32 %v11863_v54, %v11862_v36  ;;  %v11878_v43 = vld [vmem:[#allocation108_spill] sm:$0xff]  ;;  %v11880_v36 = vld [vmem:[#allocation163_spill] sm:$0xff]  ;;  %vm11905_vm4 = vmmov %vm11830_vm0 }
 0x1fb   : > { %v2254_v42 = vmul.f32 %v6421_v20, %v11864_v44  ;;  %v2284_v41 = vsub.f32 1.0, %v2252_v7  ;;  %v2416_v32 = vadd.f32 %v2415_v57, %v2414_v56  ;;  %vm1617_vm5 = vcmp.lt.f32.partialorder %v11865_v14, 0.0  ;;  %v11872_v20 = vld [vmem:[#allocation131_spill] sm:$0xff]  ;;  %v11876_v57 = vld [vmem:[#allocation162_spill] sm:$0xff] }
 0x1fc   : > { %v2314_v55 = vmul.f32 %v2282_v33, %v11866_v17  ;;  %v2344_v9 = vadd.f32 1.0, %v2312_v18  ;;  %v9556_v40 = vmul.f32 %v2342_v11, %v11867_v49  ;;  %v2419_v6 = vsel %vm11868_vm6, %v9536_v19, 0.0  ;;  %v6427_v38 = vpop.eup %6426  ;;  %v11873_v33 = vld [vmem:[#allocation107_spill] sm:$0xff]  ;;  %v11881_v49 = vld [vmem:[#allocation52_spill] sm:$0xff]  ;;  %vm11907_vm6 = vmmov %vm11830_vm0 }
 0x1fd   : > { %v2097_v63 = vmul.f32 %v11870_v34, %v11869_v27  ;;  %v2255_v53 = vmul.f32 %v6423_v23, %v2095_v35  ;;  %v2285_v58 = vsub.f32 1.0, %v2253_v47  ;;  %v2418_v62 = vadd.f32 %v2417_v30, %v2416_v32  ;;  %v11877_v35 = vld [vmem:[#allocation48_spill] sm:$0xff] }
 0x1fe   : > { %vm1618_vm7 = vcmp.lt.f32.partialorder %v11871_v15, 0.0  ;;  %v2315_v7 = vmul.f32 %v2283_v13, %v11872_v20  ;;  %v2345_v24 = vadd.f32 1.0, %v2313_v16  ;;  %v9565_v59 = vmul.f32 %v2343_v3, %v11873_v33  ;;  %v6429_v11 = vpop.eup %6428  ;;  %v11879_v3 = vld [vmem:[#allocation80_spill] sm:$0xff] }
 0x1ff   : > { %v2421_v18 = vsel %vm11874_vm2, %v9546_v10, 0.0  ;;  %v2098_v31 = vmul.f32 %v11876_v57, %v11875_v21  ;;  %v2256_v52 = vmul.f32 %v6425_v61, %v2096_v0  ;;  %v2286_v56 = vsub.f32 1.0, %v2254_v42  ;;  %v11882_v42 = vld [vmem:[#allocation109_spill] sm:$0xff]  ;;  %v11885_v20 = vld [vmem:[#allocation56_spill] sm:$0xff]  ;;  %v11888_v57 = vld [vmem:[#allocation102_spill] sm:$0xff] }
 0x200   : > { %v2420_v23 = vadd.f32 %v2419_v6, %v2418_v62  ;;  %v2316_v47 = vmul.f32 %v2284_v41, %v11877_v35  ;;  %v2346_v22 = vadd.f32 1.0, %v2314_v55  ;;  %v9573_v30 = vmul.f32 %v2344_v9, %v11878_v43  ;;  %v6431_v16 = vpop.eup %6430  ;;  %v11891_v43 = vld [vmem:[#allocation106_spill] sm:$0xff] }
 0x201   : > { %v2423_v13 = vsel %vm11830_vm0, %v9556_v40, 0.0  ;;  %v2099_v54 = vmul.f32 %v11880_v36, %v11879_v3  ;;  %v2257_v44 = vmul.f32 %v6427_v38, %v2097_v63  ;;  %v2287_v32 = vsub.f32 1.0, %v2255_v53  ;;  %v11886_v53 = vld [vmem:[#allocation110_spill] sm:$0xff]  ;;  %v11893_v3 = vld [vmem:[#allocation117_spill] sm:$0xff] }
 0x202   : > { %v2422_v17 = vadd.f32 %v2421_v18, %v2420_v23  ;;  %v2317_v61 = vmul.f32 %v2285_v58, %v11881_v49  ;;  %v2347_v0 = vadd.f32 1.0, %v2315_v7  ;;  %v9581_v6 = vmul.f32 %v2345_v24, %v11882_v42  ;;  %v11894_v49 = vld [vmem:[#allocation116_spill] sm:$0xff]  ;;  %v11896_v42 = vld [vmem:[#allocation121_spill] sm:$0xff] }
 0x203   : > { %v2425_v41 = vsel %vm11883_vm1, %v9565_v59, 0.0  ;;  %v11884_v55 = vmov 1.0   ;;  %v2258_v27 = vmul.f32 %v6429_v11, %v2098_v31  ;;  %v2288_v34 = vsub.f32 1.0, %v2256_v52  ;;  %vm11911_vm1 = vmmov %vm11830_vm0 }
 0x204   : > { %v1647_v9 = vsel %vm1615_vm14, -1.0, %v11884_v55  ;;  %v2424_v62 = vadd.f32 %v2423_v13, %v2422_v17  ;;  %v2318_v38 = vmul.f32 %v2286_v56, %v11885_v20  ;;  %v2348_v63 = vadd.f32 1.0, %v2316_v47  ;;  %v11890_v56 = vld [vmem:[#allocation113_spill] sm:$0xff]  ;;  %vm11900_vm14 = vmmov %vm11830_vm0 }
 0x205   : > { %v9590_v33 = vmul.f32 %v2346_v22, %v11886_v53  ;;  %v2427_v58 = vsel %vm11887_vm8, %v9573_v30, 0.0  ;;  %v1648_v7 = vsel %vm1616_vm3, -1.0, %v11884_v55  ;;  %v2259_v24 = vmul.f32 %v6431_v16, %v2099_v54  ;;  %vm11904_vm3 = vmmov %vm11830_vm0 }
 0x206   : > { %v2289_v18 = vsub.f32 1.0, %v2257_v44  ;;  %v2426_v25 = vadd.f32 %v2425_v41, %v2424_v62  ;;  %v2319_v21 = vmul.f32 %v2287_v32, %v1647_v9  ;;  %v2349_v11 = vadd.f32 1.0, %v2317_v61  ;;  %v11897_v62 = vld [vmem:[#allocation43_spill] sm:$0xff]  ;;  %vm11912_vm8 = vmmov %vm11830_vm0 }
 0x207   : > { %v9598_v31 = vmul.f32 %v2347_v0, %v11888_v57  ;;  %v2429_v52 = vsel %vm11889_vm9, %v9581_v6, 0.0  ;;  %vm1619_vm10 = vcmp.lt.f32.partialorder %v11890_v56, 0.0  ;;  %v1649_v23 = vsel %vm1617_vm5, -1.0, %v11884_v55  ;;  %vm11906_vm5 = vmmov %vm11830_vm0 }
 0x208   : > { %v2290_v35 = vsub.f32 1.0, %v2258_v27  ;;  %v2428_v4 = vadd.f32 %v2427_v58, %v2426_v25  ;;  %v2320_v47 = vmul.f32 %v2288_v34, %v1648_v7  ;;  %v2350_v22 = vadd.f32 1.0, %v2318_v38  ;;  %vm11913_vm9 = vmmov %vm11830_vm0 }
 0x209   : > { %v9607_v13 = vmul.f32 %v2348_v63, %v11891_v43  ;;  %v2431_v16 = vsel %vm11892_vm11, %v9590_v33, 0.0  ;;  %v1551_v36 = vmul.f32 0.5, %v11893_v3  ;;  %v1650_v54 = vsel %vm1618_vm7, -1.0, %v11884_v55  ;;  %v11899_v63 = vld [vmem:[#allocation122_spill] sm:$0xff]  ;;  %vm11908_vm7 = vmmov %vm11830_vm0 }
 0x20a   : > { %v2291_v44 = vsub.f32 1.0, %v2259_v24  ;;  %v2430_v32 = vadd.f32 %v2429_v52, %v2428_v4  ;;  %v2321_v14 = vmul.f32 %v2289_v18, %v1649_v23  ;;  %v2351_v17 = vadd.f32 1.0, %v2319_v21  ;;  %v11903_v4 = vld [vmem:[#allocation124_spill] sm:$0xff]  ;;  %vm11915_vm11 = vmmov %vm11830_vm0 }
 0x20b   : > { %v9616_v61 = vmul.f32 %v2349_v11, %v11894_v49  ;;  %v2433_v0 = vsel %vm11895_vm12, %v9598_v31, 0.0  ;;  %v1552_v41 = vmul.f32 0.5, %v11896_v42  ;;  %v1651_v9 = vsel %vm1619_vm10, -1.0, %v11884_v55  ;;  %v11901_v11 = vld [vmem:[#allocation123_spill] sm:$0xff]  ;;  %vm11914_vm10 = vmmov %vm11830_vm0 }
 0x20c   : > { %v2432_v27 = vadd.f32 %v2431_v16, %v2430_v32  ;;  %v2322_v34 = vmul.f32 %v2290_v35, %v1650_v54  ;;  %v2352_v15 = vadd.f32 1.0, %v2320_v47  ;;  %v9625_v20 = vmul.f32 %v2350_v22, %v11897_v62  ;;  %vm11916_vm12 = vmmov %vm11830_vm0 }
 0x20d   : > { %v2435_v38 = vsel %vm11898_vm13, %v9607_v13, 0.0  ;;  %v1553_v53 = vmul.f32 0.5, %v11899_v63  ;;  %v2323_v7 = vmul.f32 %v2291_v44, %v1651_v9  ;;  %v2353_v24 = vadd.f32 1.0, %v2321_v14  ;;  %vm11917_vm13 = vmmov %vm11830_vm0 }
 0x20e   : > { %v2434_v58 = vadd.f32 %v2433_v0, %v2432_v27  ;;  %v9630_v18 = vmul.f32 %v2351_v17, %v1551_v36  ;;  %v2437_v25 = vsel %vm11900_vm14, %v9616_v61, 0.0  ;;  %v1554_v57 = vmul.f32 0.5, %v11901_v11  ;;  %vm11918_vm14 = vmmov %vm11830_vm0 }
 0x20f   : > { %v2354_v52 = vadd.f32 1.0, %v2322_v34  ;;  %v9635_v56 = vmul.f32 %v2352_v15, %v1552_v41  ;;  %v2439_v23 = vsel %vm11902_vm15, %v9625_v20, 0.0  ;;  %v1555_v47 = vmul.f32 0.5, %v11903_v4  ;;  %vm11919_vm15 = vmmov %vm11830_vm0 }
 0x210   : > { %v2436_v21 = vadd.f32 %v2435_v38, %v2434_v58  ;;  %v2355_v22 = vadd.f32 1.0, %v2323_v7  ;;  %v9640_v43 = vmul.f32 %v2353_v24, %v1553_v53  ;;  %v2441_v16 = vsel %vm11904_vm3, %v9630_v18, 0.0  ;;  %vm11920_vm3 = vmmov %vm11830_vm0 }
 0x211   : > { %v9644_v36 = vmul.f32 %v2354_v52, %v1554_v57  ;;  %v2443_v54 = vsel %vm11905_vm4, %v9635_v56, 0.0  ;;  %v6526_v58 = vmov 3   ;;  %v6527_v7 = vmov 0   ;;  %v531_v52 = vld [vmem:[%s10835_s4] sm:$0xff]  ;;  %vm11921_vm4 = vmmov %vm11830_vm0 }
 0x212   : > { %v2438_v35 = vadd.f32 %v2437_v25, %v2436_v21  ;;  %v9648_v32 = vmul.f32 %v2355_v22, %v1555_v47  ;;  %v2445_v14 = vsel %vm11906_vm5, %v9640_v43, 0.0  ;;  %v6528_v24 = vmov 4   ;;  %vm11922_vm5 = vmmov %vm11830_vm0 }
 0x213   : > { %v2447_v49 = vsel %vm11907_vm6, %v9644_v36, 0.0  ;;  %v6529_v25 = vmov 5   ;;  %v6530_v21 = vmov 6   ;;  %v6531_v11 = vmov 7   ;;  %vm11923_vm6 = vmmov %vm11830_vm0 }
 0x214   : > { %v2440_v3 = vadd.f32 %v2439_v23, %v2438_v35  ;;  %v2449_v42 = vsel %vm11908_vm7, %v9648_v32, 0.0  ;;  %v11909_v57 = vmov 1   ;;  %vm11924_vm7 = vmmov %vm11830_vm0 }
 0x216   : > { %v2442_v44 = vadd.f32 %v2441_v16, %v2440_v3 }
 0x218   : > { %v2444_v17 = vadd.f32 %v2443_v54, %v2442_v44 }
 0x21a   : > { %v2446_v0 = vadd.f32 %v2445_v14, %v2444_v17 }
 0x21c   : > { %v2448_v41 = vadd.f32 %v2447_v49, %v2446_v0 }
 0x21e   : > { %v2450_v9 = vadd.f32 %v2449_v42, %v2448_v41 }
 0x220   : > { %v2451_v27 = vrot.slane %v2450_v9, 4 }
 0x222   : > { %v2452_v34 = vadd.f32 %v2451_v27, %v2450_v9 }
 0x224   : > { %v2453_v15 = vrot.slane %v2452_v34, 2 }
 0x226   : > { %v2454_v62 = vadd.f32 %v2453_v15, %v2452_v34 }
 0x228   : > { %v2455_v38 = vrot.slane %v2454_v62, 1 }
 0x22a   : > { %v2456_v63 = vadd.f32 %v2455_v38, %v2454_v62 }
 0x22c   : > { %v2458_v53 = vmul.f32 0.00390625, %v2456_v63 }
 0x22e   : > { %2475 = vperm.xlu1 %6295, %v2458_v53   ;;  %2466 = vperm.xlu0 %6293, %v2458_v53  }
 0x232   : > { %6296 = vset.pattern.permute.xlu1 %v6526_v58  ;;  %6294 = vset.pattern.permute.xlu0 %v6527_v7 }
 0x233   : > { %2484 = vperm.xlu1 %6296, %v2458_v53   ;;  %2461 = vperm.xlu0 %6294, %v2458_v53  }
 0x237   : > { %6297 = vset.pattern.permute.xlu1 %v6528_v24  ;;  %6298 = vset.pattern.permute.xlu0 %v6529_v25 }
 0x238   : > { %2493 = vperm.xlu1 %6297, %v2458_v53   ;;  %2502 = vperm.xlu0 %6298, %v2458_v53  }
 0x23c   : > { %6299 = vset.pattern.permute.xlu1 %v6530_v21  ;;  %6301 = vset.pattern.permute.xlu0 %v6527_v7 }
 0x23d   : > { %2511 = vperm.xlu1 %6299, %v2458_v53  }
 0x241   : > { %6300 = vset.pattern.permute.xlu1 %v6531_v11 }
 0x242   : > { %2520 = vperm.xlu1 %6300, %v2458_v53  }
 0x246   : > { %6302 = vset.pattern.permute.xlu1 %v11909_v57 }
 0x2ad   : > { %v2476_v23 = vpop.permute.xlu1 %2475  ;;  %v2467_v35 = vpop.permute.xlu0 %2466 }
 0x2ae   : > { %v2469_v4 = vmul.f32 %v2467_v35, %v531_v52  ;;  %v2478_v47 = vmul.f32 %v2476_v23, %v531_v52 }
 0x2b0   : > { %v2471_v22 = vrot.slane %v2469_v4, 1  ;;  %v2480_v14 = vrot.slane %v2478_v47, 2 }
 0x2b2   : > { %v2485_v16 = vpop.permute.xlu1 %2484  ;;  %v2462_v3 = vpop.permute.xlu0 %2461 }
 0x2b3   : > { %v2487_v54 = vmul.f32 %v2485_v16, %v531_v52  ;;  %v2464_v44 = vmul.f32 %v2462_v3, %v531_v52 }
 0x2b5   : > { %v2473_v17 = vadd.f32 %v2471_v22, %v2464_v44  ;;  %v2489_v49 = vrot.slane %v2487_v54, 3 }
 0x2b7   : > { %v2482_v0 = vadd.f32 %v2480_v14, %v2473_v17  ;;  %v2494_v42 = vpop.permute.xlu1 %2493  ;;  %v2503_v41 = vpop.permute.xlu0 %2502 }
 0x2b8   : > { %v2496_v9 = vmul.f32 %v2494_v42, %v531_v52  ;;  %v2505_v27 = vmul.f32 %v2503_v41, %v531_v52 }
 0x2b9   : > { %v2491_v34 = vadd.f32 %v2489_v49, %v2482_v0 }
 0x2ba   : > { %v2498_v15 = vrot.slane %v2496_v9, 4  ;;  %v2507_v38 = vrot.slane %v2505_v27, 5 }
 0x2bc   : > { %v2500_v62 = vadd.f32 %v2498_v15, %v2491_v34  ;;  %v2512_v63 = vpop.permute.xlu1 %2511 }
 0x2bd   : > { %v2514_v53 = vmul.f32 %v2512_v63, %v531_v52 }
 0x2be   : > { %v2509_v58 = vadd.f32 %v2507_v38, %v2500_v62 }
 0x2bf   : > { %v2516_v24 = vrot.slane %v2514_v53, 6 }
 0x2c1   : > { %v2521_v25 = vpop.permute.xlu1 %2520  ;;  %v2518_v11 = vadd.f32 %v2516_v24, %v2509_v58 }
 0x2c2   : > { %v2523_v21 = vmul.f32 %v2521_v25, %v531_v52  ;;  %v533_v25 = vld [vmem:[%s10837_s6] sm:$0xff] }
 0x2c3   : > { %5989 = vmatprep.subr.mxu0 %v533_v25  ;;  %6234 = vmatprep.subr.mxu1 %v533_v25 }
 0x2c4   : > { %v2525_v57 = vrot.slane %v2523_v21, 7  ;;  %5990 = vmatpush3.msra.mxu0 %v533_v25  ;;  %6235 = vmatpush3.msra.mxu1 %v533_v25  ;;  %v532_v21 = vld [vmem:[%s10836_s5] sm:$0x3] }
 0x2c6   : > { %v2527_v23 = vadd.f32 %v2525_v57, %v2518_v11  ;;  %v2566_v11 = vrot.slane %v532_v21, 1 }
 0x2c8   : > { %v2529_v35 = vmul.f32 0.70710677, %v2527_v23  ;;  %v2528_v53 = vmul.f32 0.5, %v2527_v23 }
 0x2ca   : > { %v2532_v4 = vand.u32 2147483647, %v2529_v35  ;;  %vm2530_vm2 = vcmp.lt.f32.partialorder %v2529_v35, 0.0 }
 0x2cb   : > { %v2531_v38 = vsel %vm2530_vm2, -1.0, %v11884_v55  ;;  %vm11925_vm2 = vmmov %vm11830_vm0 }
 0x2cc   : > { %v2533_v47 = vmul.f32 0.3275911, %v2532_v4  ;;  %v2546_v16 = vsub.f32 0.0, %v2532_v4 }
 0x2ce   : > { %v2534_v22 = vadd.f32 1.0, %v2533_v47  ;;  %v2547_v54 = vmul.f32 %v2546_v16, %v2532_v4 }
 0x2d0   : > { %6432 = vrcp.f32 %v2534_v22  ;;  %v2548_v17 = vmul.f32 1.442695, %v2547_v54 }
 0x2d2   : > { %6434 = vpow2.f32 %v2548_v17 }
 0x2da   : > { %v6433_v3 = vpop.eup %6432 }
 0x2db   : > { %v2537_v44 = vmul.f32 1.0614054, %v6433_v3 }
 0x2dc   : > { %v6435_v34 = vpop.eup %6434 }
 0x2dd   : > { %v2538_v14 = vadd.f32 -1.4531521, %v2537_v44  ;;  %v11910_v44 = vld [vmem:[#allocation37_spill] sm:$0xff] }
 0x2df   : > { %v2539_v49 = vmul.f32 %v6433_v3, %v2538_v14 }
 0x2e1   : > { %v2540_v0 = vadd.f32 1.4214138, %v2539_v49 }
 0x2e3   : > { %v2541_v42 = vmul.f32 %v6433_v3, %v2540_v0 }
 0x2e5   : > { %v2542_v41 = vadd.f32 -0.28449672, %v2541_v42 }
 0x2e7   : > { %v2543_v52 = vmul.f32 %v6433_v3, %v2542_v41 }
 0x2e9   : > { %v2544_v9 = vadd.f32 0.2548296, %v2543_v52 }
 0x2eb   : > { %v2545_v27 = vmul.f32 %v6433_v3, %v2544_v9 }
 0x2ed   : > { %v2550_v15 = vmul.f32 %v6435_v34, %v2545_v27  ;;  %v11942_v27 = vld [vmem:[#allocation18_spill] sm:$0xff] }
 0x2ef   : > { %v2551_v62 = vsub.f32 1.0, %v2550_v15 }
 0x2f1   : > { %v2552_v63 = vmul.f32 %v2551_v62, %v2531_v38  ;;  %v11943_v62 = vld [vmem:[#allocation5_spill] sm:$0xff] }
 0x2f3   : > { %v2553_v58 = vadd.f32 1.0, %v2552_v63  ;;  %v11944_v63 = vld [vmem:[#allocation17_spill] sm:$0xff] }
 0x2f5   : > { %v2554_v24 = vmul.f32 %v2553_v58, %v2528_v53 }
 0x2f7   : > { %2562 = vperm.xlu1 %6302, %v2554_v24   ;;  %2557 = vperm.xlu0 %6301, %v2554_v24   ;;  %v11948_v24 = vld [vmem:[#allocation8_spill] sm:$0xff] }
 0x2fb   : > { %6303 = vset.pattern.permute.xlu1 %v6527_v7 }
 0x376   : > { %v2563_v57 = vpop.permute.xlu1 %2562  ;;  %v2558_v23 = vpop.permute.xlu0 %2557 }
 0x377   : > { %v2568_v35 = vmul.f32 %v2566_v11, %v2563_v57  ;;  %v2560_v4 = vmul.f32 %v2558_v23, %v532_v21  ;;  %v11949_v21 = vld [vmem:[#allocation20_spill] sm:$0xff] }
 0x379   : > { %v2569_v47 = vadd.f32 %v2568_v35, %v2560_v4  ;;  %v11950_v35 = vld [vmem:[#allocation7_spill] sm:$0xff] }
 0x37b   : > { %v2570_v22 = vsub.f32 0.0, %v2569_v47  ;;  %v11951_v47 = vld [vmem:[#allocation19_spill] sm:$0xff] }
 0x37d   : > { %v2571_v7 = vmul.f32 1.442695, %v2570_v22 }
 0x37f   : > { %6436 = vpow2.f32 %v2571_v7 }
 0x389   : > { %v6437_v16 = vpop.eup %6436 }
 0x38a   : > { %v2573_v3 = vadd.f32 1.0, %v6437_v16 }
 0x38c   : > { %6438 = vrcp.f32 %v2573_v3  ;;  %v11956_v3 = vld [vmem:[#allocation10_spill] sm:$0xff] }
 0x396   : > { %v6439_v54 = vpop.eup %6438 }
 0x397   : > { %v9671_v14 = vrot.slane %v6439_v54, %v11910_v44 }
 0x399   : > { %v2580_v17 = vmul.f32 %v9671_v14, %v9413_v45  ;;  %v2592_v49 = vmul.f32 %v9671_v14, %v9503_v28  ;;  %v2581_v0 = vmul.f32 %v9671_v14, %v9417_v5  ;;  %v2593_v42 = vmul.f32 %v9671_v14, %v9511_v50 }
 0x39a   : > { %v2582_v41 = vmul.f32 %v9671_v14, %v9420_v1  ;;  %v2594_v52 = vmul.f32 %v9671_v14, %v9519_v51  ;;  %v2583_v45 = vmul.f32 %v9671_v14, %v9430_v39  ;;  %v2595_v5 = vmul.f32 %v9671_v14, %v9527_v37 }
 0x39b   : > { %5991 = vmatprep.mubr.msk.f32.mxu0 %vm11830_vm0, %v2580_v17  ;;  %6009 = vmatprep.mubr.msk.f32.mxu1 %vm11911_vm1, %v2592_v49  ;;  %v2584_v1 = vmul.f32 %v9671_v14, %v9437_v29  ;;  %v2596_v28 = vmul.f32 %v9671_v14, %v9536_v19  ;;  %v2585_v39 = vmul.f32 %v9671_v14, %v9447_v60  ;;  %vm11926_vm1 = vmmov %vm11830_vm0 }
 0x39c   : > { %5992 = vmatmul.mubr.msk.f32.vlgmr.msra.gmra.mrb[0].mxu0 %vm11912_vm8, %v2581_v0  ;;  %6010 = vmatmul.mubr.msk.f32.vlgmr.msra.gmra.mrb[0].mxu1 %vm11913_vm9, %v2593_v42  ;;  %v2597_v50 = vmul.f32 %v9671_v14, %v9546_v10  ;;  %v2586_v29 = vmul.f32 %v9671_v14, %v9455_v12  ;;  %v2598_v51 = vmul.f32 %v9671_v14, %v9556_v40  ;;  %vm11927_vm8 = vmmov %vm11830_vm0  ;;  %v11958_v42 = vld [vmem:[#allocation9_spill] sm:$0xff] }
 0x39d   : > { %5994 = vmatprep.mubr.msk.f32.mxu0 %vm11914_vm10, %v2582_v41  ;;  %6012 = vmatprep.mubr.msk.f32.mxu1 %vm11915_vm11, %v2594_v52  ;;  %v2587_v60 = vmul.f32 %v9671_v14, %v9463_v48  ;;  %v2599_v37 = vmul.f32 %v9671_v14, %v9565_v59  ;;  %v2588_v12 = vmul.f32 %v9671_v14, %v9471_v46  ;;  %vm11928_vm9 = vmmov %vm11830_vm0  ;;  %v11959_v52 = vld [vmem:[#allocation21_spill] sm:$0xff] }
 0x39e   : > { %v2600_v19 = vmul.f32 %v9671_v14, %v9573_v30  ;;  %v2589_v48 = vmul.f32 %v9671_v14, %v9479_v8  ;;  %v2601_v10 = vmul.f32 %v9671_v14, %v9581_v6  ;;  %v2590_v46 = vmul.f32 %v9671_v14, %v9487_v2  ;;  %vm11929_vm10 = vmmov %vm11830_vm0 }
 0x39f   : > { %v2602_v40 = vmul.f32 %v9671_v14, %v9590_v33  ;;  %vm11930_vm11 = vmmov %vm11830_vm0  ;;  %v2591_v8 = vmul.f32 %v9671_v14, %v9495_v26  ;;  %v2603_v59 = vmul.f32 %v9671_v14, %v9598_v31  ;;  %v2604_v2 = vmul.f32 %v9671_v14, %v9607_v13 }
 0x3a0   : > { %5995 = vmatmul.mubr.msk.f32.gmra.mrb[2].mxu0 %vm11916_vm12, %v2583_v45  ;;  %6013 = vmatmul.mubr.msk.f32.gmra.mrb[2].mxu1 %vm11917_vm13, %v2595_v5  ;;  %vm11931_vm12 = vmmov %vm11830_vm0  ;;  %v2605_v30 = vmul.f32 %v9671_v14, %v9616_v61  ;;  %v2606_v6 = vmul.f32 %v9671_v14, %v9625_v20  ;;  %v2607_v26 = vmul.f32 %v9671_v14, %v9630_v18  ;;  %v3341_v20 = vld [vmem:[%s10832_s1] sm:$0xff] }
 0x3a1   : > { %5997 = vmatprep.mubr.msk.f32.mxu0 %vm11918_vm14, %v2584_v1  ;;  %6015 = vmatprep.mubr.msk.f32.mxu1 %vm11919_vm15, %v2596_v28  ;;  %vm11932_vm13 = vmmov %vm11830_vm0  ;;  %v2608_v33 = vmul.f32 %v9671_v14, %v9635_v56  ;;  %v2609_v31 = vmul.f32 %v9671_v14, %v9640_v43  ;;  %v2610_v13 = vmul.f32 %v9671_v14, %v9644_v36  ;;  %v11941_v43 = vld [vmem:[#allocation6_spill] sm:$0xff]  ;;  %v3051_v5 = vld [vmem:[#allocation2] sm:$0xff] }
 0x3a2   : > { %vm11933_vm14 = vmmov %vm11830_vm0  ;;  %v2611_v61 = vmul.f32 %v9671_v14, %v9648_v32  ;;  %v11957_v14 = vld [vmem:[#allocation22_spill] sm:$0xff]  ;;  %v3053_v1 = vld [vmem:[#allocation2 + $0x10] sm:$0x3] }
 0x3a3   : > { %vm11934_vm15 = vmmov %vm11830_vm0 }
 0x3a4   : > { %5998 = vmatmul.mubr.msk.f32.gmra.mrb[4].mxu0 %vm11920_vm3, %v2585_v39  ;;  %6016 = vmatmul.mubr.msk.f32.gmra.mrb[4].mxu1 %vm11921_vm4, %v2597_v50  ;;  %vm11935_vm3 = vmmov %vm11830_vm0  ;;  %v3052_v39 = vld [vmem:[#allocation2 + $0x8] sm:$0xff] }
 0x3a5   : > { %6000 = vmatprep.mubr.msk.f32.mxu0 %vm11922_vm5, %v2586_v29  ;;  %6018 = vmatprep.mubr.msk.f32.mxu1 %vm11923_vm6, %v2598_v51  ;;  %vm11936_vm4 = vmmov %vm11830_vm0 }
 0x3a6   : > { %vm11937_vm5 = vmmov %vm11830_vm0 }
 0x3a7   : > { %vm11938_vm6 = vmmov %vm11830_vm0 }
 0x3a8   : > { %6001 = vmatmul.mubr.msk.f32.gmra.mrb[6].mxu0 %vm11924_vm7, %v2587_v60  ;;  %6019 = vmatmul.mubr.msk.f32.gmra.mrb[6].mxu1 %vm11925_vm2, %v2599_v37  ;;  %vm11939_vm7 = vmmov %vm11830_vm0  ;;  %v11964_v37 = vld [vmem:[#allocation12_spill] sm:$0xff] }
 0x3a9   : > { %6003 = vmatprep.mubr.msk.f32.mxu0 %vm11830_vm0, %v2588_v12  ;;  %6021 = vmatprep.mubr.msk.f32.mxu1 %vm11926_vm1, %v2600_v19  ;;  %vm11940_vm2 = vmmov %vm11830_vm0  ;;  %v11965_v19 = vld [vmem:[#allocation24_spill] sm:$0xff] }
 0x3aa   : > { %vm11945_vm1 = vmmov %vm11830_vm0 }
 0x3ac   : > { %6004 = vmatmul.mubr.msk.f32.gmra.mrb[8].mxu0 %vm11927_vm8, %v2589_v48  ;;  %6022 = vmatmul.mubr.msk.f32.gmra.mrb[8].mxu1 %vm11928_vm9, %v2601_v10  ;;  %vm11946_vm8 = vmmov %vm11830_vm0 }
 0x3ad   : > { %6006 = vmatprep.mubr.msk.f32.mxu0 %vm11929_vm10, %v2590_v46  ;;  %6024 = vmatprep.mubr.msk.f32.mxu1 %vm11930_vm11, %v2602_v40  ;;  %vm11947_vm9 = vmmov %vm11830_vm0 }
 0x3ae   : > { %vm11952_vm10 = vmmov %vm11830_vm0 }
 0x3af   : > { %vm11953_vm11 = vmmov %vm11830_vm0 }
 0x3b0   : > { %6007 = vmatmul.mubr.msk.f32.gmra.mrb[10].mxu0 %vm11931_vm12, %v2591_v8  ;;  %6025 = vmatmul.mubr.msk.f32.gmra.mrb[10].mxu1 %vm11932_vm13, %v2603_v59  ;;  %vm11954_vm12 = vmmov %vm11830_vm0  ;;  %v11966_v8 = vld [vmem:[#allocation11_spill] sm:$0xff] }
 0x3b1   : > { %6027 = vmatprep.mubr.msk.f32.mxu1 %vm11933_vm14, %v2604_v2  ;;  %vm11955_vm13 = vmmov %vm11830_vm0  ;;  %v11967_v2 = vld [vmem:[#allocation23_spill] sm:$0xff] }
 0x3b2   : > { %vm11960_vm14 = vmmov %vm11830_vm0 }
 0x3b4   : > { %6028 = vmatmul.mubr.msk.f32.gmra.mrb[12].mxu1 %vm11934_vm15, %v2605_v30  ;;  %vm11961_vm15 = vmmov %vm11830_vm0 }
 0x3b5   : > { %6030 = vmatprep.mubr.msk.f32.mxu1 %vm11935_vm3, %v2606_v6  ;;  %vm11962_vm3 = vmmov %vm11830_vm0 }
 0x3b8   : > { %6031 = vmatmul.mubr.msk.f32.gmra.mrb[14].mxu1 %vm11936_vm4, %v2607_v26  ;;  %vm11963_vm4 = vmmov %vm11830_vm0 }
 0x3b9   : > { %6033 = vmatprep.mubr.msk.f32.mxu1 %vm11937_vm5, %v2608_v33  ;;  %vm11968_vm5 = vmmov %vm11830_vm0 }
 0x3bc   : > { %6034 = vmatmul.mubr.msk.f32.gmra.mrb[16].mxu1 %vm11938_vm6, %v2609_v31  ;;  %vm11969_vm6 = vmmov %vm11830_vm0 }
 0x3bd   : > { %6036 = vmatprep.mubr.msk.f32.mxu1 %vm11939_vm7, %v2610_v13  ;;  %vm11970_vm7 = vmmov %vm11830_vm0 }
 0x3c0   : > { %6037 = vmatmul.mubr.msk.f32.gmra.mrb[18].mxu1 %vm11940_vm2, %v2611_v61  ;;  %vm11971_vm2 = vmmov %vm11830_vm0 }
 0x3c1   : > { %6071 = vmatprep.mubr.f32.mxu1 %v3341_v20 }
 0x46f   : > { %v5993_v18 = vpop.f32.mrb[0].mxu0  ;;  %v6011_v56 = vpop.f32.mrb[0].mxu1 }
 0x470   : > { %v2934_v9 = vadd.f32 %v5993_v18, %v11941_v43  ;;  %v2946_v36 = vadd.f32 %v6011_v56, %v11942_v27  ;;  %v2774_v34 = vpop.f32.mrb[1].mxu0  ;;  %v2834_v15 = vpop.f32.mrb[1].mxu1  ;;  %v11972_v27 = vld [vmem:[#allocation14_spill] sm:$0xff] }
 0x471   : > { %v2933_v38 = vadd.f32 %v2774_v34, %v11943_v62  ;;  %v2945_v53 = vadd.f32 %v2834_v15, %v11944_v63  ;;  %v11973_v34 = vld [vmem:[#allocation26_spill] sm:$0xff] }
 0x472   : > { %3020 = vst.msk [vmem:[#allocation2 + $0x21] sm:$0xff] %vm11830_vm0, %v2934_v9  ;;  %vm3195_vm0 = vcmask 1046528  }
 0x473   : > { %3032 = vst.msk [vmem:[#allocation2 + $0xb1] sm:$0xff] %vm11945_vm1, %v2946_v36  ;;  %v5996_v32 = vpop.f32.mrb[2].mxu0  ;;  %v6014_v58 = vpop.f32.mrb[2].mxu1  ;;  %vm3268_vm1 = vcmask 1045504  }
 0x474   : > { %3019 = vst.msk [vmem:[#allocation2 + $0x19] sm:$0xff] %vm11946_vm8, %v2933_v38  ;;  %v2936_v25 = vadd.f32 %v5996_v32, %v11948_v24  ;;  %v2948_v11 = vadd.f32 %v6014_v58, %v11949_v21  ;;  %v2784_v57 = vpop.f32.mrb[3].mxu0  ;;  %v2844_v23 = vpop.f32.mrb[3].mxu1  ;;  %v11974_v58 = vld [vmem:[#allocation13_spill] sm:$0xff]  ;;  %vm11976_vm8 = vmmov %vm11971_vm2 }
 0x475   : > { %3031 = vst.msk [vmem:[#allocation2 + $0xa9] sm:$0xff] %vm11947_vm9, %v2945_v53  ;;  %v2935_v4 = vadd.f32 %v2784_v57, %v11950_v35  ;;  %v2947_v22 = vadd.f32 %v2844_v23, %v11951_v47  ;;  %vm11977_vm9 = vmmov %vm11971_vm2 }
 0x476   : > { %3022 = vst.msk [vmem:[#allocation2 + $0x39] sm:$0xff] %vm11952_vm10, %v2936_v25  ;;  %v11975_v25 = vld [vmem:[#allocation25_spill] sm:$0xff]  ;;  %vm11978_vm10 = vmmov %vm11971_vm2 }
 0x477   : > { %3034 = vst.msk [vmem:[#allocation2 + $0xc9] sm:$0xff] %vm11953_vm11, %v2948_v11  ;;  %v5999_v7 = vpop.f32.mrb[4].mxu0  ;;  %v6017_v16 = vpop.f32.mrb[4].mxu1  ;;  %vm11979_vm11 = vmmov %vm11971_vm2 }
 0x478   : > { %3021 = vst.msk [vmem:[#allocation2 + $0x31] sm:$0xff] %vm11954_vm12, %v2935_v4  ;;  %v2938_v54 = vadd.f32 %v5999_v7, %v11956_v3  ;;  %v2950_v17 = vadd.f32 %v6017_v16, %v11957_v14  ;;  %v2794_v49 = vpop.f32.mrb[5].mxu0  ;;  %v2854_v0 = vpop.f32.mrb[5].mxu1  ;;  %vm11984_vm12 = vmmov %vm11971_vm2 }
 0x479   : > { %3033 = vst.msk [vmem:[#allocation2 + $0xc1] sm:$0xff] %vm11955_vm13, %v2947_v22  ;;  %v2937_v41 = vadd.f32 %v2794_v49, %v11958_v42  ;;  %v2949_v45 = vadd.f32 %v2854_v0, %v11959_v52  ;;  %v3077_v28 = vld [vmem:[#allocation2 + $0x28] sm:$0x3]  ;;  %vm11985_vm13 = vmmov %vm11971_vm2 }
 0x47a   : > { %3024 = vst.msk [vmem:[#allocation2 + $0x51] sm:$0xff] %vm11960_vm14, %v2938_v54  ;;  %v3125_v40 = vmax.f32 %v3053_v1, %v3077_v28  ;;  %v11980_v52 = vld [vmem:[#allocation16_spill] sm:$0xff]  ;;  %vm11986_vm14 = vmmov %vm11971_vm2 }
 0x47b   : > { %3036 = vst.msk [vmem:[#allocation2 + $0xe1] sm:$0xff] %vm11961_vm15, %v2950_v17  ;;  %v3075_v50 = vld [vmem:[#allocation2 + $0x18] sm:$0xff]  ;;  %v3076_v29 = vld [vmem:[#allocation2 + $0x20] sm:$0xff]  ;;  %v6002_v51 = vpop.f32.mrb[6].mxu0  ;;  %v6020_v60 = vpop.f32.mrb[6].mxu1  ;;  %vm11987_vm15 = vmmov %vm11971_vm2 }
 0x47c   : > { %3023 = vst.msk [vmem:[#allocation2 + $0x49] sm:$0xff] %vm11962_vm3, %v2937_v41  ;;  %v2940_v12 = vadd.f32 %v6002_v51, %v11964_v37  ;;  %v2952_v48 = vadd.f32 %v6020_v60, %v11965_v19  ;;  %v2804_v10 = vpop.f32.mrb[7].mxu0  ;;  %v2864_v46 = vpop.f32.mrb[7].mxu1  ;;  %v3123_v26 = vmax.f32 %v3051_v5, %v3075_v50  ;;  %v3124_v33 = vmax.f32 %v3052_v39, %v3076_v29  ;;  %v11981_v5 = vld [vmem:[#allocation28_spill] sm:$0xff]  ;;  %v11982_v60 = vld [vmem:[#allocation15_spill] sm:$0xff]  ;;  %vm11990_vm3 = vmmov %vm11971_vm2 }
 0x47d   : > { %3035 = vst.msk [vmem:[#allocation2 + $0xd9] sm:$0xff] %vm11963_vm4, %v2949_v45  ;;  %v2939_v59 = vadd.f32 %v2804_v10, %v11966_v8  ;;  %v2951_v30 = vadd.f32 %v2864_v46, %v11967_v2  ;;  %v3101_v6 = vld [vmem:[#allocation2 + $0x40] sm:$0x3]  ;;  %vm11991_vm4 = vmmov %vm11971_vm2 }
 0x47e   : > { %3026 = vst.msk [vmem:[#allocation2 + $0x69] sm:$0xff] %vm11968_vm5, %v2940_v12  ;;  %v3149_v61 = vmax.f32 %v3125_v40, %v3101_v6  ;;  %v3056_v9 = vld [vmem:[#allocation2 + $0x40] sm:$0x3]  ;;  %v3065_v32 = vld [vmem:[#allocation2 + $0xd0] sm:$0x3]  ;;  %vm11994_vm5 = vmmov %vm11971_vm2 }
 0x47f   : > { %3038 = vst.msk [vmem:[#allocation2 + $0xf9] sm:$0xff] %vm11969_vm6, %v2952_v48  ;;  %v9802_v31 = vld [vmem:[#allocation2 + $0x30] sm:$0xff]  ;;  %v9804_v13 = vld [vmem:[#allocation2 + $0x38] sm:$0xff]  ;;  %v6005_v20 = vpop.f32.mrb[8].mxu0  ;;  %v6023_v18 = vpop.f32.mrb[8].mxu1  ;;  %v11983_v12 = vld [vmem:[#allocation27_spill] sm:$0xff] }
 0x480   : > { %3025 = vst.msk [vmem:[#allocation2 + $0x61] sm:$0xff] %vm11970_vm7, %v2939_v59  ;;  %v3147_v56 = vmax.f32 %v3123_v26, %v9802_v31  ;;  %v3148_v43 = vmax.f32 %v3124_v33, %v9804_v13  ;;  %v2942_v36 = vadd.f32 %v6005_v20, %v11972_v27  ;;  %v2954_v15 = vadd.f32 %v6023_v18, %v11973_v34  ;;  %v2814_v62 = vpop.f32.mrb[9].mxu0  ;;  %v2874_v38 = vpop.f32.mrb[9].mxu1  ;;  %v9828_v40 = vld [vmem:[#allocation2 + $0xc0] sm:$0xff]  ;;  %v9836_v33 = vld [vmem:[#allocation2 + $0xc8] sm:$0xff]  ;;  %v11988_v27 = vld [vmem:[#allocation30_spill] sm:$0xff] }
 0x481   : > { %3037 = vst.msk [vmem:[#allocation2 + $0xf1] sm:$0xff] %vm11971_vm2, %v2951_v30  ;;  %v3199_v63 = vrot.slane %v3149_v61, 1  ;;  %v3272_v53 = vrot.slane %v3149_v61, 2  ;;  %v2941_v24 = vadd.f32 %v2814_v62, %v11974_v58  ;;  %v2953_v21 = vadd.f32 %v2874_v38, %v11975_v25  ;;  %v3080_v23 = vld [vmem:[#allocation2 + $0x58] sm:$0x3]  ;;  %vm11995_vm6 = vmmov %vm11971_vm2 }
 0x482   : > { %v3196_v11 = vrot.slane %v3147_v56, 1  ;;  %v3197_v57 = vrot.slane %v3148_v43, 1  ;;  %v3089_v35 = vld [vmem:[#allocation2 + $0xe8] sm:$0x3]  ;;  %3028 = vst.msk [vmem:[#allocation2 + $0x81] sm:$0xff] %vm11976_vm8, %v2942_v36  ;;  %v3269_v4 = vrot.slane %v3147_v56, 2  ;;  %v3128_v16 = vmax.f32 %v3056_v9, %v3080_v23  ;;  %vm11998_vm7 = vmmov %vm11971_vm2 }
 0x483   : > { %3040 = vst.msk [vmem:[#allocation2 + $0x111] sm:$0xff] %vm11977_vm9, %v2954_v15  ;;  %v3270_v47 = vrot.slane %v3148_v43, 2  ;;  %v3078_v22 = vld [vmem:[#allocation2 + $0x48] sm:$0xff]  ;;  %v3079_v7 = vld [vmem:[#allocation2 + $0x50] sm:$0xff]  ;;  %v3137_v3 = vmax.f32 %v3065_v32, %v3089_v35  ;;  %v6008_v54 = vpop.f32.mrb[10].mxu0  ;;  %v6026_v14 = vpop.f32.mrb[10].mxu1  ;;  %vm12001_vm8 = vmmov %vm11971_vm2 }
 0x484   : > { %3027 = vst.msk [vmem:[#allocation2 + $0x79] sm:$0xff] %vm11978_vm10, %v2941_v24  ;;  %v3198_v17 = vsel %vm3195_vm0, %v3196_v11, %v3197_v57  ;;  %v3200_v49 = vsel %vm3195_vm0, %v3197_v57, %v3199_v63  ;;  %v3126_v0 = vmax.f32 %v9802_v31, %v3078_v22  ;;  %v3127_v42 = vmax.f32 %v9804_v13, %v3079_v7  ;;  %v3087_v41 = vld [vmem:[#allocation2 + $0xd8] sm:$0xff]  ;;  %v2824_v28 = vpop.f32.mrb[11].mxu0  ;;  %v2884_v39 = vpop.f32.mrb[11].mxu1  ;;  %v3088_v51 = vld [vmem:[#allocation2 + $0xe0] sm:$0xff]  ;;  %vm12002_vm9 = vmmov %vm11971_vm2 }
 0x485   : > { %3039 = vst.msk [vmem:[#allocation2 + $0x109] sm:$0xff] %vm11979_vm11, %v2953_v21  ;;  %v2944_v45 = vadd.f32 %v6008_v54, %v11980_v52  ;;  %v2956_v1 = vadd.f32 %v6026_v14, %v11981_v5  ;;  %v3252_v50 = vmax.f32 %v3147_v56, %v3198_v17  ;;  %v3253_v29 = vmax.f32 %v3148_v43, %v3200_v49  ;;  %v3104_v46 = vld [vmem:[#allocation2 + $0x70] sm:$0x3]  ;;  %v11992_v14 = vld [vmem:[#allocation32_spill] sm:$0xff]  ;;  %v11993_v5 = vld [vmem:[#allocation31_spill] sm:$0xff] }
 0x486   : > { %v2943_v37 = vadd.f32 %v2824_v28, %v11982_v60  ;;  %v2955_v19 = vadd.f32 %v2884_v39, %v11983_v12  ;;  %v3271_v48 = vsel %vm3268_vm1, %v3269_v4, %v3270_v47  ;;  %v3273_v10 = vsel %vm3268_vm1, %v3270_v47, %v3272_v53  ;;  %v3113_v8 = vld [vmem:[#allocation2 + $0x100] sm:$0x3]  ;;  %v3059_v63 = vld [vmem:[#allocation2 + $0x70] sm:$0x3]  ;;  %v3084_v52 = vld [vmem:[#allocation2 + $0xa8] sm:$0xff] }
 0x487   : > { %3030 = vst.msk [vmem:[#allocation2 + $0x99] sm:$0xff] %vm11984_vm12, %v2944_v45  ;;  %v3325_v59 = vmax.f32 %v3252_v50, %v3271_v48  ;;  %v3326_v2 = vmax.f32 %v3253_v29, %v3273_v10  ;;  %v9832_v30 = vld [vmem:[#allocation2 + $0x60] sm:$0xff]  ;;  %v9834_v6 = vld [vmem:[#allocation2 + $0x68] sm:$0xff]  ;;  %v3152_v26 = vmax.f32 %v3128_v16, %v3104_v46  ;;  %v3135_v31 = vmax.f32 %v9828_v40, %v3087_v41  ;;  %v6029_v13 = vpop.f32.mrb[12].mxu1  ;;  %v11989_v53 = vld [vmem:[#allocation29_spill] sm:$0xff] }
 0x488   : > { %3042 = vst.msk [vmem:[#allocation2 + $0x129] sm:$0xff] %vm11985_vm13, %v2956_v1  ;;  %v3150_v61 = vmax.f32 %v3126_v0, %v9832_v30  ;;  %v3151_v20 = vmax.f32 %v3127_v42, %v9834_v6  ;;  %v9843_v18 = vld [vmem:[#allocation2 + $0xf0] sm:$0xff]  ;;  %v9845_v56 = vld [vmem:[#allocation2 + $0xf8] sm:$0xff]  ;;  %v3136_v43 = vmax.f32 %v9836_v33, %v3088_v51  ;;  %v9848_v9 = vmax.f32 %v3137_v3, %v3113_v8  ;;  %v2894_v34 = vpop.f32.mrb[13].mxu1  ;;  %vm12003_vm10 = vmmov %vm11971_vm2 }
 0x489   : > { %3029 = vst.msk [vmem:[#allocation2 + $0x91] sm:$0xff] %vm11986_vm14, %v2943_v37  ;;  %v2958_v36 = vadd.f32 %v6029_v13, %v11988_v27  ;;  %v6194_v15 = vpack.c.bf16 %v3326_v2, %v3325_v59  ;;  %v3204_v62 = vrot.slane %v3152_v26, 1  ;;  %v3277_v38 = vrot.slane %v3152_v26, 2  ;;  %v3083_v21 = vld [vmem:[#allocation2 + $0x88] sm:$0x3]  ;;  %v3085_v10 = vld [vmem:[#allocation2 + $0xb0] sm:$0xff]  ;;  %vm12004_vm11 = vmmov %vm11971_vm2 }
 0x48a   : > { %3041 = vst.msk [vmem:[#allocation2 + $0x121] sm:$0xff] %vm11987_vm15, %v2955_v19  ;;  %v2957_v32 = vadd.f32 %v2894_v34, %v11989_v53  ;;  %v3201_v58 = vrot.slane %v3150_v61, 1  ;;  %v3202_v24 = vrot.slane %v3151_v20, 1  ;;  %v3274_v25 = vrot.slane %v3150_v61, 2  ;;  %v3086_v45 = vld [vmem:[#allocation2 + $0xb8] sm:$0x3]  ;;  %vm12005_vm12 = vmmov %vm11971_vm2 }
 0x48b   : > { %3044 = vst.msk [vmem:[#allocation2 + $0x141] sm:$0xff] %vm11990_vm3, %v2958_v36  ;;  %6195 = vmatprep.subr.bf16.mxu1 %v6194_v15  ;;  %v3275_v11 = vrot.slane %v3151_v20, 2  ;;  %v3081_v57 = vld [vmem:[#allocation2 + $0x78] sm:$0xff]  ;;  %v3082_v23 = vld [vmem:[#allocation2 + $0x80] sm:$0xff]  ;;  %v3131_v35 = vmax.f32 %v3059_v63, %v3083_v21  ;;  %v9854_v4 = vmax.f32 %v3135_v31, %v9843_v18  ;;  %v9857_v47 = vmax.f32 %v3136_v43, %v9845_v56  ;;  %v6032_v22 = vpop.f32.mrb[14].mxu1  ;;  %v11997_v27 = vld [vmem:[#allocation33_spill] sm:$0xff] }
 0x48c   : > { %3043 = vst.msk [vmem:[#allocation2 + $0x139] sm:$0xff] %vm11991_vm4, %v2957_v32  ;;  %6197 = vmatpush3.bf16.msra.mxu1 %v6194_v15  ;;  %v3203_v7 = vsel %vm3195_vm0, %v3201_v58, %v3202_v24  ;;  %v3205_v16 = vsel %vm3195_vm0, %v3202_v24, %v3204_v62  ;;  %v3129_v3 = vmax.f32 %v9832_v30, %v3081_v57  ;;  %v2904_v49 = vpop.f32.mrb[15].mxu1  ;;  %v11996_v26 = vld [vmem:[#allocation34_spill] sm:$0xff]  ;;  %v3219_v57 = vrot.slane %v9848_v9, 1  ;;  %vm12006_vm13 = vmmov %vm11971_vm2 }
 0x48d   : > { %v3130_v54 = vmax.f32 %v9834_v6, %v3082_v23  ;;  %v2960_v17 = vadd.f32 %v6032_v22, %v11992_v14  ;;  %v3254_v0 = vmax.f32 %v3150_v61, %v3203_v7  ;;  %v3255_v42 = vmax.f32 %v3151_v20, %v3205_v16  ;;  %v11999_v23 = vld [vmem:[#allocation36_spill] sm:$0xff]  ;;  %v12000_v16 = vld [vmem:[#allocation35_spill] sm:$0xff]  ;;  %vm12007_vm14 = vmmov %vm11971_vm2 }
 0x48e   : > { %v3276_v41 = vsel %vm3268_vm1, %v3274_v25, %v3275_v11  ;;  %v2959_v1 = vadd.f32 %v2904_v49, %v11993_v5  ;;  %v3278_v28 = vsel %vm3268_vm1, %v3275_v11, %v3277_v38  ;;  %v3107_v39 = vld [vmem:[#allocation2 + $0xa0] sm:$0x3]  ;;  %v3216_v29 = vrot.slane %v9854_v4, 1  ;;  %v3110_v38 = vld [vmem:[#allocation2 + $0xd0] sm:$0x3]  ;;  %vm12008_vm15 = vmmov %vm11971_vm2 }
 0x48f   : > { %v3062_v50 = vld [vmem:[#allocation2 + $0xa0] sm:$0x3]  ;;  %v3217_v51 = vrot.slane %v9857_v47, 1  ;;  %3046 = vst.msk [vmem:[#allocation2 + $0x159] sm:$0xff] %vm11994_vm5, %v2960_v17  ;;  %v3327_v60 = vmax.f32 %v3254_v0, %v3276_v41  ;;  %v3328_v37 = vmax.f32 %v3255_v42, %v3278_v28  ;;  %v3155_v48 = vmax.f32 %v3131_v35, %v3107_v39  ;;  %v6035_v8 = vpop.f32.mrb[16].mxu1  ;;  %vm12009_vm3 = vmmov %vm11971_vm2 }
 0x490   : > { %v3105_v12 = vld [vmem:[#allocation2 + $0x90] sm:$0xff]  ;;  %v3106_v19 = vld [vmem:[#allocation2 + $0x98] sm:$0xff]  ;;  %v3134_v46 = vmax.f32 %v3062_v50, %v3086_v45  ;;  %3045 = vst.msk [vmem:[#allocation2 + $0x151] sm:$0xff] %vm11995_vm6, %v2959_v1  ;;  %v2962_v31 = vadd.f32 %v6035_v8, %v11996_v26  ;;  %v2914_v13 = vpop.f32.mrb[17].mxu1  ;;  %v3068_v8 = vld [vmem:[#allocation2 + $0x100] sm:$0x3] }
 0x491   : > { %v3153_v59 = vmax.f32 %v3129_v3, %v3105_v12  ;;  %v3154_v2 = vmax.f32 %v3130_v54, %v3106_v19  ;;  %v3132_v30 = vmax.f32 %v3105_v12, %v3084_v52  ;;  %v3133_v6 = vmax.f32 %v3106_v19, %v3085_v10  ;;  %v3092_v12 = vld [vmem:[#allocation2 + $0x118] sm:$0x3]  ;;  %vm12010_vm4 = vmmov %vm11971_vm2 }
 0x492   : > { %v6198_v61 = vpack.c.bf16 %v3328_v37, %v3327_v60  ;;  %v3209_v20 = vrot.slane %v3155_v48, 1  ;;  %v3282_v43 = vrot.slane %v3155_v48, 2  ;;  %v2961_v36 = vadd.f32 %v2914_v13, %v11997_v27  ;;  %3048 = vst.msk [vmem:[#allocation2 + $0x171] sm:$0xff] %vm11998_vm7, %v2962_v31  ;;  %v3090_v60 = vld [vmem:[#allocation2 + $0x108] sm:$0xff]  ;;  %v3091_v37 = vld [vmem:[#allocation2 + $0x110] sm:$0xff]  ;;  %v3114_v31 = vld [vmem:[#allocation2 + $0x120] sm:$0xff] }
 0x493   : > { %v3206_v34 = vrot.slane %v3153_v59, 1  ;;  %v3207_v15 = vrot.slane %v3154_v2, 1  ;;  %v3279_v62 = vrot.slane %v3153_v59, 2  ;;  %v3280_v63 = vrot.slane %v3154_v2, 2  ;;  %v6038_v24 = vpop.f32.mrb[18].mxu1  ;;  %v3115_v13 = vld [vmem:[#allocation2 + $0x128] sm:$0xff] }
 0x494   : > { %6199 = vmatprep.subr.bf16.mxu1 %v6198_v61  ;;  %v3156_v53 = vmax.f32 %v3132_v30, %v9828_v40  ;;  %v3157_v32 = vmax.f32 %v3133_v6, %v9836_v33  ;;  %v3158_v58 = vmax.f32 %v3134_v46, %v3110_v38  ;;  %3047 = vst.msk [vmem:[#allocation2 + $0x169] sm:$0xff] %vm11971_vm2, %v2961_v36  ;;  %v2924_v22 = vpop.f32.mrb[19].mxu1  ;;  %v3289_v30 = vrot.slane %v9854_v4, 2 }
 0x495   : > { %6201 = vmatpush3.bf16.msra.mxu1 %v6198_v61  ;;  %v3208_v25 = vsel %vm3195_vm0, %v3206_v34, %v3207_v15  ;;  %v3210_v21 = vsel %vm3195_vm0, %v3207_v15, %v3209_v20  ;;  %v3218_v11 = vsel %vm3195_vm0, %v3216_v29, %v3217_v51  ;;  %v2964_v35 = vadd.f32 %v6038_v24, %v11999_v23  ;;  %v3116_v20 = vld [vmem:[#allocation2 + $0x130] sm:$0x3]  ;;  %v3095_v34 = vld [vmem:[#allocation2 + $0x148] sm:$0x3] }
 0x496   : > { %v3256_v7 = vmax.f32 %v3153_v59, %v3208_v25  ;;  %v3257_v40 = vmax.f32 %v3154_v2, %v3210_v21  ;;  %v3281_v33 = vsel %vm3268_vm1, %v3279_v62, %v3280_v63  ;;  %v2963_v3 = vadd.f32 %v2924_v22, %v12000_v16  ;;  %v3093_v59 = vld [vmem:[#allocation2 + $0x138] sm:$0xff]  ;;  %v3094_v2 = vld [vmem:[#allocation2 + $0x140] sm:$0xff]  ;;  %v3071_v24 = vld [vmem:[#allocation2 + $0x130] sm:$0x3] }
 0x497   : > { %v3283_v54 = vsel %vm3268_vm1, %v3280_v63, %v3282_v43  ;;  %v3211_v14 = vrot.slane %v3156_v53, 1  ;;  %v3212_v17 = vrot.slane %v3157_v32, 1  ;;  %3050 = vst.msk [vmem:[#allocation2 + $0x189] sm:$0xff] %vm12001_vm8, %v2964_v35  ;;  %v3214_v42 = vrot.slane %v3158_v58, 1  ;;  %v3117_v15 = vld [vmem:[#allocation2 + $0x150] sm:$0xff]  ;;  %v3118_v38 = vld [vmem:[#allocation2 + $0x158] sm:$0xff] }
 0x498   : > { %v3329_v49 = vmax.f32 %v3256_v7, %v3281_v33  ;;  %v3330_v0 = vmax.f32 %v3257_v40, %v3283_v54  ;;  %v3284_v41 = vrot.slane %v3156_v53, 2  ;;  %3049 = vst.msk [vmem:[#allocation2 + $0x181] sm:$0xff] %vm12002_vm9, %v2963_v3  ;;  %v3285_v45 = vrot.slane %v3157_v32, 2 }
 0x499   : > { %v3213_v52 = vsel %vm3195_vm0, %v3211_v14, %v3212_v17  ;;  %v3287_v5 = vrot.slane %v3158_v58, 2  ;;  %v3220_v1 = vsel %vm3195_vm0, %v3217_v51, %v3219_v57  ;;  %v3215_v39 = vsel %vm3195_vm0, %v3212_v17, %v3214_v42 }
 0x49a   : > { %v6202_v28 = vpack.c.bf16 %v3330_v0, %v3329_v49  ;;  %v3258_v50 = vmax.f32 %v3156_v53, %v3213_v52  ;;  %v3260_v29 = vmax.f32 %v9854_v4, %v3218_v11  ;;  %v3259_v19 = vmax.f32 %v3157_v32, %v3215_v39 }
 0x49b   : > { %v3286_v48 = vsel %vm3268_vm1, %v3284_v41, %v3285_v45  ;;  %v3288_v10 = vsel %vm3268_vm1, %v3285_v45, %v3287_v5  ;;  %v3261_v46 = vmax.f32 %v9857_v47, %v3220_v1  ;;  %v3290_v6 = vrot.slane %v9857_v47, 2  ;;  %v3096_v49 = vld [vmem:[#allocation2 + $0x168] sm:$0xff]  ;;  %v3097_v45 = vld [vmem:[#allocation2 + $0x170] sm:$0xff] }
 0x49c   : > { %6203 = vmatprep.subr.bf16.mxu1 %v6202_v28  ;;  %v3331_v51 = vmax.f32 %v3258_v50, %v3286_v48  ;;  %v3292_v26 = vrot.slane %v9848_v9, 2  ;;  %v3332_v61 = vmax.f32 %v3259_v19, %v3288_v10  ;;  %v3138_v43 = vmax.f32 %v9843_v18, %v3090_v60  ;;  %v3119_v18 = vld [vmem:[#allocation2 + $0x160] sm:$0x3]  ;;  %v3098_v50 = vld [vmem:[#allocation2 + $0x178] sm:$0x3] }
 0x49d   : > { %6205 = vmatpush3.bf16.msra.mxu1 %v6202_v28  ;;  %v3139_v27 = vmax.f32 %v9845_v56, %v3091_v37  ;;  %v3140_v36 = vmax.f32 %v3068_v8, %v3092_v12  ;;  %v3291_v62 = vsel %vm3268_vm1, %v3289_v30, %v3290_v6  ;;  %v3141_v47 = vmax.f32 %v3114_v31, %v3093_v59  ;;  %v3074_v59 = vld [vmem:[#allocation2 + $0x160] sm:$0x3] }
 0x49e   : > { %v3293_v4 = vsel %vm3268_vm1, %v3290_v6, %v3292_v26  ;;  %v3142_v63 = vmax.f32 %v3115_v13, %v3094_v2  ;;  %v6206_v9 = vpack.c.bf16 %v3332_v61, %v3331_v51  ;;  %v3333_v53 = vmax.f32 %v3260_v29, %v3291_v62  ;;  %v3122_v2 = vld [vmem:[#allocation2 + $0x190] sm:$0x3] }
 0x49f   : > { %v3334_v32 = vmax.f32 %v3261_v46, %v3293_v4  ;;  %v3162_v58 = vmax.f32 %v3138_v43, %v3114_v31  ;;  %v3163_v25 = vmax.f32 %v3139_v27, %v3115_v13  ;;  %v3164_v21 = vmax.f32 %v3140_v36, %v3116_v20  ;;  %v3120_v12 = vld [vmem:[#allocation2 + $0x180] sm:$0xff]  ;;  %v3121_v19 = vld [vmem:[#allocation2 + $0x188] sm:$0xff] }
 0x4a0   : > { %v3143_v11 = vmax.f32 %v3071_v24, %v3095_v34  ;;  %v3165_v56 = vmax.f32 %v3141_v47, %v3117_v15  ;;  %6207 = vmatprep.subr.bf16.mxu1 %v6206_v9  ;;  %v3166_v22 = vmax.f32 %v3142_v63, %v3118_v38  ;;  %v3144_v48 = vmax.f32 %v3117_v15, %v3096_v49 }
 0x4a1   : > { %v6210_v57 = vpack.c.bf16 %v3334_v32, %v3333_v53  ;;  %v3221_v23 = vrot.slane %v3162_v58, 1  ;;  %v3294_v35 = vrot.slane %v3162_v58, 2  ;;  %6209 = vmatpush3.bf16.msra.mxu1 %v6206_v9  ;;  %v3222_v7 = vrot.slane %v3163_v25, 1 }
 0x4a2   : > { %v3224_v40 = vrot.slane %v3164_v21, 1  ;;  %v3295_v33 = vrot.slane %v3163_v25, 2  ;;  %v3297_v16 = vrot.slane %v3164_v21, 2  ;;  %v3167_v3 = vmax.f32 %v3143_v11, %v3119_v18 }
 0x4a3   : > { %6211 = vmatprep.subr.bf16.mxu1 %v6210_v57  ;;  %v3226_v54 = vrot.slane %v3165_v56, 1  ;;  %v3227_v14 = vrot.slane %v3166_v22, 1  ;;  %v3299_v17 = vrot.slane %v3165_v56, 2  ;;  %v3223_v0 = vsel %vm3195_vm0, %v3221_v23, %v3222_v7  ;;  %v3343_v23 = vld [vmem:[%s10832_s1 + $0x10] sm:$0xff] }
 0x4a4   : > { %v3225_v42 = vsel %vm3195_vm0, %v3222_v7, %v3224_v40  ;;  %v3296_v41 = vsel %vm3268_vm1, %v3294_v35, %v3295_v33  ;;  %v3298_v52 = vsel %vm3268_vm1, %v3295_v33, %v3297_v16  ;;  %v3262_v5 = vmax.f32 %v3162_v58, %v3223_v0  ;;  %v3344_v35 = vld [vmem:[%s10832_s1 + $0x18] sm:$0xff]  ;;  %v3346_v7 = vld [vmem:[%s10832_s1 + $0x28] sm:$0xff]  ;;  %v3347_v40 = vld [vmem:[%s10832_s1 + $0x30] sm:$0xff] }
 0x4a5   : > { %v3263_v1 = vmax.f32 %v3163_v25, %v3225_v42  ;;  %v3228_v28 = vsel %vm3195_vm0, %v3226_v54, %v3227_v14  ;;  %v3229_v39 = vrot.slane %v3167_v3, 1  ;;  %6213 = vmatpush3.bf16.msra.mxu1 %v6210_v57  ;;  %v3300_v60 = vrot.slane %v3166_v22, 2  ;;  %v3342_v57 = vld [vmem:[%s10832_s1 + $0x8] sm:$0xff]  ;;  %v3348_v33 = vld [vmem:[%s10832_s1 + $0x38] sm:$0xff]  ;;  %v3594_v16 = vld [vmem:[%s10841_s10] sm:$0xf] }
 0x4a6   : > { %v3264_v29 = vmax.f32 %v3165_v56, %v3228_v28  ;;  %v3302_v37 = vrot.slane %v3167_v3, 2  ;;  %v3335_v10 = vmax.f32 %v3262_v5, %v3296_v41  ;;  %v3145_v51 = vmax.f32 %v3118_v38, %v3097_v45  ;;  %v3454_v56 = vld [vmem:[%s10838_s7] sm:$0xff] }
 0x4a7   : > { %v3336_v46 = vmax.f32 %v3263_v1, %v3298_v52  ;;  %v3230_v8 = vsel %vm3195_vm0, %v3227_v14, %v3229_v39  ;;  %v3301_v6 = vsel %vm3268_vm1, %v3299_v17, %v3300_v60  ;;  %v3146_v31 = vmax.f32 %v3074_v59, %v3098_v50  ;;  %v3591_v28 = vld [vmem:[%s10840_s9] sm:$0x7]  ;;  %v12012_v50 = vld [vmem:[#allocation38_spill] sm:$0xff] }
 0x4a8   : > { %v3265_v30 = vmax.f32 %v3166_v22, %v3230_v8  ;;  %v3303_v26 = vsel %vm3268_vm1, %v3300_v60, %v3302_v37  ;;  %v3337_v61 = vmax.f32 %v3264_v29, %v3301_v6  ;;  %v3168_v20 = vmax.f32 %v3144_v48, %v3120_v12  ;;  %v3345_v22 = vld [vmem:[%s10832_s1 + $0x20] sm:$0xff] }
 0x4a9   : > { %v6214_v13 = vpack.c.bf16 %v3336_v46, %v3335_v10  ;;  %v3169_v43 = vmax.f32 %v3145_v51, %v3121_v19  ;;  %v3170_v36 = vmax.f32 %v3146_v31, %v3122_v2  ;;  %v4122_v3 = vrot.slane %v3594_v16, 1  ;;  %v12013_v60 = vld [vmem:[#allocation39_spill] sm:$0xff] }
 0x4aa   : > { %v3338_v27 = vmax.f32 %v3265_v30, %v3303_v26  ;;  %v3231_v34 = vrot.slane %v3168_v20, 1  ;;  %v3304_v62 = vrot.slane %v3168_v20, 2  ;;  %v4132_v54 = vrot.slane %v3594_v16, 2  ;;  %v5794_v26 = vld [vmem:[%s10839_s8] ss:$0 sm:$0xff] }
 0x4ab   : > { %6215 = vmatprep.subr.bf16.mxu1 %v6214_v13  ;;  %v3232_v15 = vrot.slane %v3169_v43, 1  ;;  %v3305_v4 = vrot.slane %v3169_v43, 2  ;;  %v3234_v38 = vrot.slane %v3170_v36, 1  ;;  %v3307_v63 = vrot.slane %v3170_v36, 2  ;;  %4123 = vrot.lane.b32.xlu1 %v4122_v3, %s6532_s29  ;;  %s5611_s29 = sld [smem:[#allocation4]] }
 0x4ac   : > { %6217 = vmatpush3.bf16.msra.mxu1 %v6214_v13  ;;  %v6218_v47 = vpack.c.bf16 %v3338_v27, %v3337_v61  ;;  %v4142_v14 = vrot.slane %v3594_v16, 3  ;;  %4133 = vrot.lane.b32.xlu0 %v4132_v54, %s6533_s30  ;;  %vm3597_vm5 = vcmask 31744   ;;  %vm3599_vm6 = vcmask 25600   ;;  %s5862_s30 = sshll.u32 %s12029_s21, 4 }
 0x4ad   : > { %v3233_v9 = vsel %vm3195_vm0, %v3231_v34, %v3232_v15  ;;  %v3235_v53 = vsel %vm3195_vm0, %v3232_v15, %v3234_v38  ;;  %v3306_v24 = vsel %vm3268_vm1, %v3304_v62, %v3305_v4  ;;  %v3308_v25 = vsel %vm3268_vm1, %v3305_v4, %v3307_v63  ;;  %v3592_v34 = vld [vmem:[%s10840_s9 + $0x4] sm:$0x7]  ;;  %v3593_v4 = vld [vmem:[%s10840_s9 + $0x8] sm:$0x7]  ;;  %s495_s18 = scalar_lea.vmem %s10846_s15, %s5862_s30 }
 0x4ae   : > { %6219 = vmatprep.subr.bf16.mxu1 %v6218_v47  ;;  %v3266_v32 = vmax.f32 %v3168_v20, %v3233_v9  ;;  %v3267_v58 = vmax.f32 %v3169_v43, %v3235_v53  ;;  %v12011_v1 = vmov 0.0   ;;  %v9993_v39 = vrot.slane %v3591_v28, %v11910_v44 }
 0x4af   : > { %4143 = vrot.lane.b32.xlu1 %v4142_v14, %s6534_s16  ;;  %3603 = vst.msk [vmem:[#allocation3 + $0x20] sm:$0xff] %vm3597_vm5, %v12011_v1  ;;  %3598 = vst.msk [vmem:[#allocation3] sm:$0xff] %vm3597_vm5, %v12011_v1  ;;  %v9996_v29 = vrot.slane %v3591_v28, %v12012_v50  ;;  %v9999_v37 = vrot.slane %v3591_v28, %v12013_v60  ;;  %v10086_v54 = vrot.slane %v3592_v34, %v12013_v60 }
 0x4b0   : > { %6221 = vmatpush3.bf16.msra.mxu1 %v6218_v47  ;;  %v3339_v21 = vmax.f32 %v3266_v32, %v3306_v24  ;;  %v3340_v18 = vmax.f32 %v3267_v58, %v3308_v25  ;;  %3604 = vst.msk [vmem:[#allocation3 + $0x28] sm:$0x3] %vm3599_vm6, %v12011_v1  ;;  %3600 = vst.msk [vmem:[#allocation3 + $0x8] sm:$0x3] %vm3599_vm6, %v12011_v1  ;;  %v10040_v47 = vrot.slane %v3592_v34, %v11910_v44 }
 0x4b1   : > { %3601 = vst.msk [vmem:[#allocation3 + $0x10] sm:$0xff] %vm3597_vm5, %v12011_v1  ;;  %3605 = vst.msk [vmem:[#allocation3 + $0x30] sm:$0xff] %vm3597_vm5, %v12011_v1 }
 0x4b2   : > { %v6222_v11 = vpack.c.bf16 %v3340_v18, %v3339_v21  ;;  %3602 = vst.msk [vmem:[#allocation3 + $0x18] sm:$0x3] %vm3599_vm6, %v12011_v1  ;;  %3606 = vst.msk [vmem:[#allocation3 + $0x38] sm:$0x3] %vm3599_vm6, %v12011_v1  ;;  %v10059_v18 = vrot.slane %v3592_v34, %v12012_v50 }
 0x4b3   : > { %3607 = vst.msk [vmem:[#allocation3 + $0x40] sm:$0xff] %vm3597_vm5, %v12011_v1  ;;  %3609 = vst.msk [vmem:[#allocation3 + $0x50] sm:$0xff] %vm3597_vm5, %v12011_v1 }
 0x4b4   : > { %6223 = vmatprep.subr.bf16.mxu1 %v6222_v11  ;;  %3608 = vst.msk [vmem:[#allocation3 + $0x48] sm:$0x3] %vm3599_vm6, %v12011_v1  ;;  %3610 = vst.msk [vmem:[#allocation3 + $0x58] sm:$0x3] %vm3599_vm6, %v12011_v1 }
 0x4b5   : > { %6225 = vmatpush3.bf16.msra.mxu1 %v6222_v11  ;;  %3611 = vst.msk [vmem:[#allocation3 + $0x60] sm:$0xff] %vm3597_vm5, %v12011_v1  ;;  %3613 = vst.msk [vmem:[#allocation3 + $0x70] sm:$0xff] %vm3597_vm5, %v12011_v1  ;;  %v10062_v11 = vrot.slane %v3593_v4, %v11910_v44 }
 0x4b6   : > { %6083 = vmatprep.subr.mxu1 %v3454_v56  ;;  %3612 = vst.msk [vmem:[#allocation3 + $0x68] sm:$0x3] %vm3599_vm6, %v12011_v1  ;;  %3614 = vst.msk [vmem:[#allocation3 + $0x78] sm:$0x3] %vm3599_vm6, %v12011_v1  ;;  %v3628_v12 = vld [vmem:[#allocation3] sm:$0xff] }
 0x4b7   : > { %3615 = vst.msk [vmem:[#allocation3 + $0x80] sm:$0xff] %vm3597_vm5, %v12011_v1  ;;  %3617 = vst.msk [vmem:[#allocation3 + $0x90] sm:$0xff] %vm3597_vm5, %v12011_v1  ;;  %v3656_v19 = vld [vmem:[#allocation3 + $0x1] sm:$0xff]  ;;  %v3640_v48 = vmul.f32 %v9993_v39, %v3628_v12 }
 0x4b8   : > { %6072 = vmatmul.mubr.f32.vlgmr.msra.gmra.mrb[20].mxu1 %v3342_v57  ;;  %3616 = vst.msk [vmem:[#allocation3 + $0x88] sm:$0x3] %vm3599_vm6, %v12011_v1  ;;  %3618 = vst.msk [vmem:[#allocation3 + $0x98] sm:$0x3] %vm3599_vm6, %v12011_v1  ;;  %v3668_v10 = vmul.f32 %v9996_v29, %v3656_v19  ;;  %v3684_v46 = vld [vmem:[#allocation3 + $0x2] sm:$0xff]  ;;  %v10068_v57 = vrot.slane %v3593_v4, %v12013_v60 }
 0x4b9   : > { %6074 = vmatprep.mubr.f32.mxu1 %v3343_v23  ;;  %6084 = vmatpush3.msra.mxu1 %v3454_v56  ;;  %v3696_v8 = vmul.f32 %v9999_v37, %v3684_v46  ;;  %4560 = vst.msk [vmem:[#allocation3] sm:$0xff] %vm3597_vm5, %v12011_v1  ;;  %v10065_v56 = vrot.slane %v3593_v4, %v12012_v50 }
 0x4ba   : > { %4561 = vst.msk [vmem:[#allocation3 + $0x8] sm:$0x3] %vm3599_vm6, %v12011_v1  ;;  %v3676_v59 = vadd.f32 %v3668_v10, %v3640_v48 }
 0x4bc   : > { %6075 = vmatmul.mubr.f32.gmra.mrb[22].mxu1 %v3344_v35  ;;  %v10008_v2 = vadd.f32 %v3696_v8, %v3676_v59 }
 0x4bd   : > { %6077 = vmatprep.mubr.f32.mxu1 %v3345_v22 }
 0x4be   : > { %v3804_v51 = vld [vmem:[#allocation3 + $0x90] sm:$0xff] }
 0x4bf   : > { %v3832_v30 = vld [vmem:[#allocation3 + $0x91] sm:$0xff]  ;;  %v10089_v14 = vmul.f32 %v10062_v11, %v3804_v51 }
 0x4c0   : > { %6078 = vmatmul.mubr.f32.gmra.mrb[24].mxu1 %v3346_v7  ;;  %v3860_v6 = vld [vmem:[#allocation3 + $0x92] sm:$0xff] }
 0x4c1   : > { %6080 = vmatprep.mubr.f32.mxu1 %v3347_v40  ;;  %4578 = vst.msk [vmem:[#allocation3 + $0x90] sm:$0xff] %vm3597_vm5, %v12011_v1 }
 0x4c2   : > { %4579 = vst.msk [vmem:[#allocation3 + $0x98] sm:$0x3] %vm3599_vm6, %v12011_v1 }
 0x4c4   : > { %6081 = vmatmul.mubr.f32.gmra.mrb[26].mxu1 %v3348_v33 }
 0x58b   : > { %v6073_v17 = vpop.f32.mrb[20].mxu1 }
 0x58c   : > { %v3415_v49 = vpop.f32.mrb[21].mxu1 }
 0x58d   : > { %6085 = vmatprep.mubr.msk.f32.mxu1 %vm12003_vm10, %v3415_v49 }
 0x58e   : > { %6086 = vmatmul.mubr.msk.f32.vlgmr.msra.gmra.mrb[28].mxu1 %vm12004_vm11, %v6073_v17 }
 0x58f   : > { %v6076_v0 = vpop.f32.mrb[22].mxu1 }
 0x590   : > { %v3425_v42 = vpop.f32.mrb[23].mxu1 }
 0x591   : > { %6088 = vmatprep.mubr.msk.f32.mxu1 %vm12005_vm12, %v3425_v42 }
 0x592   : > { %6089 = vmatmul.mubr.msk.f32.gmra.mrb[30].mxu1 %vm12006_vm13, %v6076_v0 }
 0x593   : > { %v6079_v41 = vpop.f32.mrb[24].mxu1 }
 0x594   : > { %v3435_v52 = vpop.f32.mrb[25].mxu1 }
 0x595   : > { %6091 = vmatprep.mubr.msk.f32.mxu1 %vm12007_vm14, %v3435_v52  ;;  %v10100_v52 = vmul.f32 %v10065_v56, %v3832_v30 }
 0x596   : > { %6092 = vmatmul.mubr.msk.f32.gmra.mrb[32].mxu1 %vm12008_vm15, %v6079_v41  ;;  %vm4227_vm15 = vcmask 1043456  }
 0x597   : > { %v6082_v45 = vpop.f32.mrb[26].mxu1 }
 0x598   : > { %v3445_v5 = vpop.f32.mrb[27].mxu1 }
 0x599   : > { %6094 = vmatprep.mubr.msk.f32.mxu1 %vm12009_vm3, %v3445_v5 }
 0x59a   : > { %6095 = vmatmul.mubr.msk.f32.gmra.mrb[34].mxu1 %vm12010_vm4, %v6082_v45  ;;  %v10103_v45 = vmul.f32 %v10068_v57, %v3860_v6 }
 0x661   : > { %v6087_v31 = vpop.f32.mrb[28].mxu1 }
 0x662   : > { %v10017_v13 = vadd.f32 %v6087_v31, %v5794_v26  ;;  %v3552_v61 = vpop.f32.mrb[29].mxu1 }
 0x663   : > { %v10019_v20 = vadd.f32 %v5794_v26, %v3552_v61 }
 0x664   : > { %3621 = vst.msk [vmem:[#allocation3 + $0x21] sm:$0xff] %vm3597_vm5, %v10017_v13 }
 0x665   : > { %12014 = vst [vmem:[#allocation158_spill] sm:$0xff] %v10019_v20  ;;  %3620 = vst.msk [vmem:[#allocation3 + $0x11] sm:$0xff] %vm3597_vm5, %v10019_v20  ;;  %v6090_v43 = vpop.f32.mrb[30].mxu1 }
 0x666   : > { %v10025_v27 = vadd.f32 %v6090_v43, %v5794_v26  ;;  %v3562_v36 = vpop.f32.mrb[31].mxu1 }
 0x667   : > { %v10030_v15 = vadd.f32 %v5794_v26, %v3562_v36 }
 0x668   : > { %12015 = vst [vmem:[#allocation147_spill] sm:$0xff] %v10025_v27  ;;  %3623 = vst.msk [vmem:[#allocation3 + $0x41] sm:$0xff] %vm3597_vm5, %v10025_v27 }
 0x669   : > { %12016 = vst [vmem:[#allocation67_spill] sm:$0xff] %v10030_v15  ;;  %3622 = vst.msk [vmem:[#allocation3 + $0x31] sm:$0xff] %vm3597_vm5, %v10030_v15  ;;  %v6093_v62 = vpop.f32.mrb[32].mxu1 }
 0x66a   : > { %v10042_v38 = vadd.f32 %v6093_v62, %v5794_v26  ;;  %v3572_v63 = vpop.f32.mrb[33].mxu1 }
 0x66b   : > { %v10044_v9 = vld [vmem:[#allocation3 + $0x20] sm:$0xff]  ;;  %v10050_v58 = vadd.f32 %v5794_v26, %v3572_v63 }
 0x66c   : > { %12017 = vst [vmem:[#allocation70_spill] sm:$0xff] %v10042_v38  ;;  %v10046_v53 = vld [vmem:[#allocation3 + $0x21] sm:$0xff]  ;;  %v3629_v24 = vld [vmem:[#allocation3 + $0x10] sm:$0xff]  ;;  %3625 = vst.msk [vmem:[#allocation3 + $0x61] sm:$0xff] %vm3597_vm5, %v10042_v38  ;;  %v3642_v23 = vmul.f32 %v9993_v39, %v10044_v9  ;;  %v3725_v28 = vmul.f32 %v10040_v47, %v10044_v9 }
 0x66d   : > { %v10048_v32 = vld [vmem:[#allocation3 + $0x22] sm:$0xff]  ;;  %12018 = vst [vmem:[#allocation74_spill] sm:$0xff] %v10050_v58  ;;  %v3657_v25 = vld [vmem:[#allocation3 + $0x11] sm:$0xff]  ;;  %v3670_v35 = vmul.f32 %v9996_v29, %v10046_v53  ;;  %v3641_v22 = vmul.f32 %v9993_v39, %v3629_v24  ;;  %3624 = vst.msk [vmem:[#allocation3 + $0x51] sm:$0xff] %vm3597_vm5, %v10050_v58  ;;  %v6096_v40 = vpop.f32.mrb[34].mxu1  ;;  %v3724_v33 = vmul.f32 %v10040_v47, %v3629_v24 }
 0x66e   : > { %4565 = vst.msk [vmem:[#allocation3 + $0x28] sm:$0x3] %vm3599_vm6, %v12011_v1  ;;  %v3685_v21 = vld [vmem:[#allocation3 + $0x12] sm:$0xff]  ;;  %v3669_v7 = vmul.f32 %v9996_v29, %v3657_v25  ;;  %v10083_v16 = vadd.f32 %v6096_v40, %v5794_v26  ;;  %v3582_v3 = vpop.f32.mrb[35].mxu1  ;;  %v3698_v5 = vmul.f32 %v9999_v37, %v10048_v32  ;;  %v3752_v6 = vmul.f32 %v10059_v18, %v3657_v25 }
 0x66f   : > { %4564 = vst.msk [vmem:[#allocation3 + $0x20] sm:$0xff] %vm3597_vm5, %v12011_v1  ;;  %4562 = vst.msk [vmem:[#allocation3 + $0x10] sm:$0xff] %vm3597_vm5, %v12011_v1  ;;  %v10091_v49 = vld [vmem:[#allocation3 + $0x40] sm:$0xff]  ;;  %v10097_v41 = vadd.f32 %v5794_v26, %v3582_v3  ;;  %v3678_v10 = vadd.f32 %v3670_v35, %v3642_v23  ;;  %v3697_v46 = vmul.f32 %v9999_v37, %v3685_v21 }
 0x670   : > { %4563 = vst.msk [vmem:[#allocation3 + $0x18] sm:$0x3] %vm3599_vm6, %v12011_v1  ;;  %12019 = vst [vmem:[#allocation78_spill] sm:$0xff] %v10083_v16  ;;  %v3677_v17 = vadd.f32 %v3669_v7, %v3641_v22  ;;  %v10093_v0 = vld [vmem:[#allocation3 + $0x41] sm:$0xff]  ;;  %v3644_v50 = vmul.f32 %v9993_v39, %v10091_v49  ;;  %v10111_v60 = vld [vmem:[#allocation3 + $0x30] sm:$0xff]  ;;  %v3732_v51 = vadd.f32 %v3724_v33, %v10008_v2 }
 0x671   : > { %v10095_v42 = vld [vmem:[#allocation3 + $0x42] sm:$0xff]  ;;  %12020 = vst [vmem:[#allocation82_spill] sm:$0xff] %v10097_v41  ;;  %v10113_v12 = vld [vmem:[#allocation3 + $0x31] sm:$0xff]  ;;  %3627 = vst.msk [vmem:[#allocation3 + $0x81] sm:$0xff] %vm3597_vm5, %v10083_v16  ;;  %v3672_v48 = vmul.f32 %v9996_v29, %v10093_v0  ;;  %v3643_v8 = vmul.f32 %v9993_v39, %v10111_v60  ;;  %v10140_v26 = vmul.f32 %v10059_v18, %v10046_v53 }
 0x672   : > { %v10115_v19 = vld [vmem:[#allocation3 + $0x32] sm:$0xff]  ;;  %4568 = vst.msk [vmem:[#allocation3 + $0x40] sm:$0xff] %vm3597_vm5, %v12011_v1  ;;  %v3671_v59 = vmul.f32 %v9996_v29, %v10113_v12  ;;  %3626 = vst.msk [vmem:[#allocation3 + $0x71] sm:$0xff] %vm3597_vm5, %v10097_v41  ;;  %v3705_v31 = vadd.f32 %v3697_v46, %v3677_v17  ;;  %v3700_v62 = vmul.f32 %v9999_v37, %v10095_v42 }
 0x673   : > { %4569 = vst.msk [vmem:[#allocation3 + $0x48] sm:$0x3] %vm3599_vm6, %v12011_v1  ;;  %4567 = vst.msk [vmem:[#allocation3 + $0x38] sm:$0x3] %vm3599_vm6, %v12011_v1  ;;  %v3680_v30 = vadd.f32 %v3672_v48, %v3644_v50  ;;  %v10142_v43 = vld [vmem:[#allocation3 + $0x60] sm:$0xff]  ;;  %v10151_v2 = vmul.f32 %v10086_v54, %v3685_v21  ;;  %v3726_v4 = vmul.f32 %v10040_v47, %v10111_v60 }
 0x674   : > { %4566 = vst.msk [vmem:[#allocation3 + $0x30] sm:$0xff] %vm3597_vm5, %v12011_v1  ;;  %v3679_v61 = vadd.f32 %v3671_v59, %v3643_v8  ;;  %v10144_v36 = vld [vmem:[#allocation3 + $0x61] sm:$0xff]  ;;  %v10155_v63 = vld [vmem:[#allocation3 + $0x50] sm:$0xff]  ;;  %v3646_v23 = vmul.f32 %v9993_v39, %v10142_v43  ;;  %v3699_v22 = vmul.f32 %v9999_v37, %v10115_v19  ;;  %v3706_v33 = vadd.f32 %v3698_v5, %v3678_v10 }
 0x675   : > { %v10146_v34 = vld [vmem:[#allocation3 + $0x62] sm:$0xff]  ;;  %v10157_v24 = vld [vmem:[#allocation3 + $0x51] sm:$0xff]  ;;  %v3674_v35 = vmul.f32 %v9996_v29, %v10144_v36  ;;  %v3645_v21 = vmul.f32 %v9993_v39, %v10155_v63  ;;  %v3708_v50 = vadd.f32 %v3700_v62, %v3680_v30  ;;  %v3728_v48 = vmul.f32 %v10040_v47, %v10155_v63 }
 0x676   : > { %v10159_v25 = vld [vmem:[#allocation3 + $0x52] sm:$0xff]  ;;  %4572 = vst.msk [vmem:[#allocation3 + $0x60] sm:$0xff] %vm3597_vm5, %v12011_v1  ;;  %v3673_v7 = vmul.f32 %v9996_v29, %v10157_v24  ;;  %v3702_v40 = vmul.f32 %v9999_v37, %v10146_v34  ;;  %v3707_v17 = vadd.f32 %v3699_v22, %v3679_v61  ;;  %v3727_v46 = vmul.f32 %v10040_v47, %v10091_v49 }
 0x677   : > { %4573 = vst.msk [vmem:[#allocation3 + $0x68] sm:$0x3] %vm3599_vm6, %v12011_v1  ;;  %4571 = vst.msk [vmem:[#allocation3 + $0x58] sm:$0x3] %vm3599_vm6, %v12011_v1  ;;  %v3682_v3 = vadd.f32 %v3674_v35, %v3646_v23  ;;  %v3701_v10 = vmul.f32 %v9999_v37, %v10159_v25  ;;  %v3754_v23 = vmul.f32 %v10059_v18, %v10113_v12 }
 0x678   : > { %4570 = vst.msk [vmem:[#allocation3 + $0x50] sm:$0xff] %vm3597_vm5, %v12011_v1  ;;  %v10185_v8 = vld [vmem:[#allocation3 + $0x81] sm:$0xff]  ;;  %v3681_v5 = vadd.f32 %v3673_v7, %v3645_v21  ;;  %v3729_v22 = vmul.f32 %v10040_v47, %v10142_v43  ;;  %v3733_v21 = vadd.f32 %v3725_v28, %v3705_v31  ;;  %v3755_v7 = vmul.f32 %v10059_v18, %v10093_v0 }
 0x679   : > { %v10187_v59 = vld [vmem:[#allocation3 + $0x82] sm:$0xff]  ;;  %v10195_v30 = vld [vmem:[#allocation3 + $0x71] sm:$0xff]  ;;  %v3710_v35 = vadd.f32 %v3702_v40, %v3682_v3  ;;  %v3734_v15 = vadd.f32 %v3726_v4, %v3706_v33  ;;  %v3735_v31 = vadd.f32 %v3727_v46, %v3707_v17  ;;  %v3736_v40 = vadd.f32 %v3728_v48, %v3708_v50 }
 0x67a   : > { %v3719_v41 = vld [vmem:[#allocation3 + $0x80] sm:$0xff]  ;;  %4577 = vst.msk [vmem:[#allocation3 + $0x88] sm:$0x3] %vm3599_vm6, %v12011_v1  ;;  %v3635_v61 = vld [vmem:[#allocation3 + $0x70] sm:$0xff]  ;;  %v3675_v58 = vmul.f32 %v9996_v29, %v10195_v30  ;;  %v3709_v38 = vadd.f32 %v3701_v10, %v3681_v5  ;;  %v3760_v3 = vadd.f32 %v3752_v6, %v3732_v51  ;;  %v3756_v29 = vmul.f32 %v10059_v18, %v10157_v24 }
 0x67b   : > { %v10197_v62 = vld [vmem:[#allocation3 + $0x72] sm:$0xff]  ;;  %4576 = vst.msk [vmem:[#allocation3 + $0x80] sm:$0xff] %vm3597_vm5, %v12011_v1  ;;  %v3647_v16 = vmul.f32 %v9993_v39, %v3635_v61  ;;  %v3730_v28 = vmul.f32 %v10040_v47, %v3635_v61  ;;  %v3731_v4 = vmul.f32 %v10040_v47, %v3719_v41  ;;  %v3757_v5 = vmul.f32 %v10059_v18, %v10144_v36 }
 0x67c   : > { %4575 = vst.msk [vmem:[#allocation3 + $0x78] sm:$0x3] %vm3599_vm6, %v12011_v1  ;;  %v3703_v39 = vmul.f32 %v9999_v37, %v10197_v62  ;;  %v3737_v20 = vadd.f32 %v3729_v22, %v3709_v38  ;;  %v3762_v37 = vadd.f32 %v3754_v23, %v3734_v15  ;;  %v3763_v38 = vadd.f32 %v3755_v7, %v3735_v31 }
 0x67d   : > { %4574 = vst.msk [vmem:[#allocation3 + $0x70] sm:$0xff] %vm3597_vm5, %v12011_v1  ;;  %v3683_v27 = vadd.f32 %v3675_v58, %v3647_v16  ;;  %v3738_v33 = vadd.f32 %v3730_v28, %v3710_v35  ;;  %v3758_v1 = vmul.f32 %v10059_v18, %v10195_v30  ;;  %v3759_v58 = vmul.f32 %v10059_v18, %v10185_v8 }
 0x67e   : > { %v3761_v16 = vadd.f32 %v10140_v26, %v3733_v21  ;;  %v3764_v51 = vadd.f32 %v3756_v29, %v3736_v40  ;;  %v3765_v6 = vadd.f32 %v3757_v5, %v3737_v20  ;;  %v3781_v47 = vmul.f32 %v10086_v54, %v10048_v32 }
 0x67f   : > { %v3711_v17 = vadd.f32 %v3703_v39, %v3683_v27  ;;  %v3766_v50 = vadd.f32 %v3758_v1, %v3738_v33  ;;  %v3782_v46 = vmul.f32 %v10086_v54, %v10115_v19  ;;  %v3783_v27 = vmul.f32 %v10086_v54, %v10095_v42 }
 0x680   : > { %v3784_v18 = vmul.f32 %v10086_v54, %v10159_v25  ;;  %v3785_v15 = vmul.f32 %v10086_v54, %v10146_v34  ;;  %v3786_v20 = vmul.f32 %v10086_v54, %v10197_v62  ;;  %v3787_v26 = vmul.f32 %v10086_v54, %v10187_v59 }
 0x681   : > { %v3739_v48 = vadd.f32 %v3731_v4, %v3711_v17  ;;  %v3788_v23 = vadd.f32 %v10151_v2, %v3760_v3  ;;  %v3789_v35 = vadd.f32 %v3781_v47, %v3761_v16  ;;  %v3790_v22 = vadd.f32 %v3782_v46, %v3762_v37 }
 0x682   : > { %v3791_v21 = vadd.f32 %v3783_v27, %v3763_v38  ;;  %v3792_v7 = vadd.f32 %v3784_v18, %v3764_v51  ;;  %v3793_v28 = vadd.f32 %v3785_v15, %v3765_v6  ;;  %v3794_v31 = vadd.f32 %v3786_v20, %v3766_v50 }
 0x683   : > { %v3767_v10 = vadd.f32 %v3759_v58, %v3739_v48  ;;  %v3809_v39 = vmul.f32 %v10062_v11, %v10044_v9  ;;  %v3810_v29 = vmul.f32 %v10062_v11, %v10111_v60  ;;  %v3811_v4 = vmul.f32 %v10062_v11, %v10091_v49 }
 0x684   : > { %v3812_v54 = vmul.f32 %v10062_v11, %v10155_v63  ;;  %v3813_v2 = vmul.f32 %v10062_v11, %v10142_v43  ;;  %v3814_v3 = vmul.f32 %v10062_v11, %v3635_v61  ;;  %v3815_v33 = vmul.f32 %v10062_v11, %v3719_v41 }
 0x685   : > { %v3795_v40 = vadd.f32 %v3787_v26, %v3767_v10  ;;  %v3817_v5 = vadd.f32 %v3809_v39, %v3788_v23  ;;  %v3818_v1 = vadd.f32 %v3810_v29, %v3789_v35  ;;  %v3819_v17 = vadd.f32 %v3811_v4, %v3790_v22 }
 0x686   : > { %v3820_v58 = vadd.f32 %v3812_v54, %v3791_v21  ;;  %v3821_v60 = vadd.f32 %v3813_v2, %v3792_v7  ;;  %v3822_v16 = vadd.f32 %v3814_v3, %v3793_v28  ;;  %v3823_v37 = vadd.f32 %v3815_v33, %v3794_v31 }
 0x687   : > { %v3824_v9 = vadd.f32 %v10089_v14, %v3795_v40  ;;  %v3837_v49 = vmul.f32 %v10065_v56, %v10046_v53  ;;  %v3838_v63 = vmul.f32 %v10065_v56, %v10113_v12  ;;  %v3839_v43 = vmul.f32 %v10065_v56, %v10093_v0 }
 0x688   : > { %v3840_v41 = vmul.f32 %v10065_v56, %v10157_v24  ;;  %v3841_v14 = vmul.f32 %v10065_v56, %v10144_v36  ;;  %v3842_v61 = vmul.f32 %v10065_v56, %v10195_v30  ;;  %v3843_v53 = vmul.f32 %v10065_v56, %v10185_v8 }
 0x689   : > { %v3852_v11 = vadd.f32 %v10100_v52, %v3824_v9  ;;  %v3845_v38 = vadd.f32 %v3837_v49, %v3817_v5  ;;  %v3846_v51 = vadd.f32 %v3838_v63, %v3818_v1  ;;  %v3847_v12 = vadd.f32 %v3839_v43, %v3819_v17 }
 0x68a   : > { %v3848_v6 = vadd.f32 %v3840_v41, %v3820_v58  ;;  %v3849_v50 = vadd.f32 %v3841_v14, %v3821_v60  ;;  %v3850_v0 = vadd.f32 %v3842_v61, %v3822_v16  ;;  %v3851_v48 = vadd.f32 %v3843_v53, %v3823_v37 }
 0x68b   : > { %v10269_v52 = vadd.f32 %v10103_v45, %v3852_v11  ;;  %v3865_v24 = vmul.f32 %v10068_v57, %v10048_v32  ;;  %v3866_v36 = vmul.f32 %v10068_v57, %v10115_v19  ;;  %v3867_v30 = vmul.f32 %v10068_v57, %v10095_v42 }
 0x68c   : > { %v3868_v56 = vmul.f32 %v10068_v57, %v10159_v25  ;;  %v3869_v8 = vmul.f32 %v10068_v57, %v10146_v34  ;;  %v3870_v45 = vmul.f32 %v10068_v57, %v10197_v62  ;;  %v3871_v47 = vmul.f32 %v10068_v57, %v10187_v59 }
 0x68d   : > { %v3873_v46 = vadd.f32 %v3865_v24, %v3845_v38  ;;  %v3874_v32 = vadd.f32 %v3866_v36, %v3846_v51  ;;  %v3875_v27 = vadd.f32 %v3867_v30, %v3847_v12  ;;  %v10307_v35 = vmul.f32 0.70710677, %v10269_v52 }
 0x68e   : > { %v3876_v18 = vadd.f32 %v3868_v56, %v3848_v6  ;;  %v3877_v19 = vadd.f32 %v3869_v8, %v3849_v50  ;;  %v3878_v15 = vadd.f32 %v3870_v45, %v3850_v0  ;;  %v10285_v20 = vadd.f32 %v3871_v47, %v3851_v48 }
 0x68f   : > { %v10287_v42 = vmul.f32 0.70710677, %v3873_v46  ;;  %v10289_v25 = vmul.f32 0.70710677, %v3874_v32  ;;  %v10291_v26 = vmul.f32 0.70710677, %v3875_v27 }
 0x690   : > { %v10293_v34 = vmul.f32 0.70710677, %v3876_v18  ;;  %v10295_v62 = vmul.f32 0.70710677, %v3877_v19  ;;  %v10297_v10 = vmul.f32 0.70710677, %v3878_v15 }
 0x691   : > { %v10299_v57 = vmul.f32 0.5, %v3873_v46  ;;  %v10301_v59 = vmul.f32 0.5, %v3874_v32  ;;  %v10304_v23 = vmul.f32 0.70710677, %v10285_v20  ;;  %v10309_v22 = vmul.f32 0.5, %v3875_v27 }
 0x692   : > { %v10311_v21 = vmul.f32 0.5, %v3876_v18  ;;  %v10313_v7 = vmul.f32 0.5, %v3877_v19  ;;  %v10315_v28 = vmul.f32 0.5, %v3878_v15  ;;  %v3913_v31 = vand.u32 2147483647, %v10287_v42 }
 0x693   : > { %v3914_v40 = vand.u32 2147483647, %v10289_v25  ;;  %v3915_v39 = vand.u32 2147483647, %v10291_v26  ;;  %v3916_v29 = vand.u32 2147483647, %v10293_v34 }
 0x694   : > { %v3917_v4 = vand.u32 2147483647, %v10295_v62  ;;  %v3918_v54 = vand.u32 2147483647, %v10297_v10  ;;  %v3919_v2 = vand.u32 2147483647, %v10304_v23 }
 0x695   : > { %v3920_v3 = vand.u32 2147483647, %v10307_v35  ;;  %v3921_v33 = vmul.f32 0.3275911, %v3913_v31  ;;  %v3922_v5 = vmul.f32 0.3275911, %v3914_v40 }
 0x696   : > { %v3923_v1 = vmul.f32 0.3275911, %v3915_v39  ;;  %v3924_v17 = vmul.f32 0.3275911, %v3916_v29  ;;  %v3925_v9 = vmul.f32 0.3275911, %v3917_v4 }
 0x697   : > { %v3926_v58 = vmul.f32 0.3275911, %v3918_v54  ;;  %v3927_v60 = vmul.f32 0.3275911, %v3919_v2  ;;  %vm3897_vm7 = vcmp.lt.f32.partialorder %v10287_v42, 0.0  ;;  %v3929_v37 = vadd.f32 1.0, %v3921_v33 }
 0x698   : > { %v3928_v16 = vmul.f32 0.3275911, %v3920_v3  ;;  %v3930_v49 = vadd.f32 1.0, %v3922_v5  ;;  %v3931_v63 = vadd.f32 1.0, %v3923_v1  ;;  %vm3898_vm2 = vcmp.lt.f32.partialorder %v10289_v25, 0.0 }
 0x699   : > { %v3932_v43 = vadd.f32 1.0, %v3924_v17  ;;  %v3933_v11 = vadd.f32 1.0, %v3925_v9  ;;  %v3934_v41 = vadd.f32 1.0, %v3926_v58  ;;  %v3935_v14 = vadd.f32 1.0, %v3927_v60 }
 0x69a   : > { %6440 = vrcp.f32 %v3929_v37  ;;  %v4025_v61 = vsub.f32 0.0, %v3913_v31  ;;  %v4026_v53 = vsub.f32 0.0, %v3914_v40  ;;  %v4027_v38 = vsub.f32 0.0, %v3915_v39 }
 0x69b   : > { %6442 = vrcp.f32 %v3930_v49  ;;  %v4028_v51 = vsub.f32 0.0, %v3916_v29  ;;  %v4029_v12 = vsub.f32 0.0, %v3917_v4  ;;  %v3936_v6 = vadd.f32 1.0, %v3928_v16 }
 0x69c   : > { %6444 = vrcp.f32 %v3931_v63  ;;  %v4030_v50 = vsub.f32 0.0, %v3918_v54  ;;  %v4031_v0 = vsub.f32 0.0, %v3919_v2  ;;  %v4033_v48 = vmul.f32 %v4025_v61, %v3913_v31 }
 0x69d   : > { %6446 = vrcp.f32 %v3932_v43  ;;  %v4034_v24 = vmul.f32 %v4026_v53, %v3914_v40  ;;  %v4035_v36 = vmul.f32 %v4027_v38, %v3915_v39  ;;  %vm3899_vm8 = vcmp.lt.f32.partialorder %v10291_v26, 0.0 }
 0x69e   : > { %6448 = vrcp.f32 %v3933_v11  ;;  %v4032_v30 = vsub.f32 0.0, %v3920_v3  ;;  %v4036_v56 = vmul.f32 %v4028_v51, %v3916_v29  ;;  %vm3900_vm9 = vcmp.lt.f32.partialorder %v10293_v34, 0.0 }
 0x69f   : > { %6450 = vrcp.f32 %v3934_v41  ;;  %v4037_v8 = vmul.f32 %v4029_v12, %v3917_v4  ;;  %v4041_v45 = vmul.f32 1.442695, %v4033_v48  ;;  %vm3901_vm10 = vcmp.lt.f32.partialorder %v10295_v62, 0.0 }
 0x6a0   : > { %6452 = vrcp.f32 %v3935_v14  ;;  %v4038_v47 = vmul.f32 %v4030_v50, %v3918_v54  ;;  %v4043_v46 = vmul.f32 1.442695, %v4034_v24  ;;  %vm3902_vm11 = vcmp.lt.f32.partialorder %v10297_v10, 0.0 }
 0x6a1   : > { %6454 = vrcp.f32 %v3936_v6  ;;  %v4039_v32 = vmul.f32 %v4031_v0, %v3919_v2  ;;  %v4045_v27 = vmul.f32 1.442695, %v4035_v36  ;;  %vm3903_vm12 = vcmp.lt.f32.partialorder %v10304_v23, 0.0 }
 0x6a2   : > { %vm3904_vm13 = vcmp.lt.f32.partialorder %v10307_v35, 0.0  ;;  %v4040_v18 = vmul.f32 %v4032_v30, %v3920_v3  ;;  %v4047_v19 = vmul.f32 1.442695, %v4036_v56  ;;  %v10336_v15 = vsel %vm3897_vm7, -1.0, %v11884_v55 }
 0x6a3   : > { %v10341_v31 = vsel %vm3898_vm2, -1.0, %v11884_v55  ;;  %6456 = vpow2.f32 %v4041_v45  ;;  %v4049_v40 = vmul.f32 1.442695, %v4037_v8  ;;  %v10348_v29 = vsel %vm3899_vm8, -1.0, %v11884_v55 }
 0x6a4   : > { %v10343_v39 = vpop.eup %6440  ;;  %v10353_v42 = vsel %vm3900_vm9, -1.0, %v11884_v55  ;;  %6458 = vpow2.f32 %v4043_v46  ;;  %v4051_v4 = vmul.f32 1.442695, %v4038_v47  ;;  %v10360_v25 = vsel %vm3901_vm10, -1.0, %v11884_v55 }
 0x6a5   : > { %v10355_v54 = vpop.eup %6442  ;;  %v3953_v2 = vmul.f32 1.0614054, %v10343_v39  ;;  %6460 = vpow2.f32 %v4045_v27  ;;  %v4053_v26 = vmul.f32 1.442695, %v4039_v32  ;;  %v10368_v34 = vsel %vm3902_vm11, -1.0, %v11884_v55 }
 0x6a6   : > { %v10363_v3 = vpop.eup %6444  ;;  %v3954_v33 = vmul.f32 1.0614054, %v10355_v54  ;;  %6462 = vpow2.f32 %v4047_v19  ;;  %v4055_v5 = vmul.f32 1.442695, %v4040_v18  ;;  %v10376_v62 = vsel %vm3903_vm12, -1.0, %v11884_v55 }
 0x6a7   : > { %v10371_v1 = vpop.eup %6446  ;;  %v3955_v17 = vmul.f32 1.0614054, %v10363_v3  ;;  %v3961_v9 = vadd.f32 -1.4531521, %v3953_v2  ;;  %6464 = vpow2.f32 %v4049_v40  ;;  %v10384_v10 = vsel %vm3904_vm13, -1.0, %v11884_v55 }
 0x6a8   : > { %v10379_v58 = vpop.eup %6448  ;;  %v3956_v60 = vmul.f32 1.0614054, %v10371_v1  ;;  %v3962_v16 = vadd.f32 -1.4531521, %v3954_v33  ;;  %6466 = vpow2.f32 %v4051_v4 }
 0x6a9   : > { %v10387_v37 = vpop.eup %6450  ;;  %v3957_v23 = vmul.f32 1.0614054, %v10379_v58  ;;  %v3963_v49 = vadd.f32 -1.4531521, %v3955_v17  ;;  %v3969_v63 = vmul.f32 %v10343_v39, %v3961_v9  ;;  %6468 = vpow2.f32 %v4053_v26 }
 0x6aa   : > { %v10391_v43 = vpop.eup %6452  ;;  %v3958_v11 = vmul.f32 1.0614054, %v10387_v37  ;;  %v3964_v41 = vadd.f32 -1.4531521, %v3956_v60  ;;  %v3970_v35 = vmul.f32 %v10355_v54, %v3962_v16  ;;  %6470 = vpow2.f32 %v4055_v5 }
 0x6ab   : > { %v10395_v14 = vpop.eup %6454  ;;  %v3959_v61 = vmul.f32 1.0614054, %v10391_v43  ;;  %v3965_v53 = vadd.f32 -1.4531521, %v3957_v23  ;;  %v3971_v38 = vmul.f32 %v10363_v3, %v3963_v49  ;;  %v3977_v51 = vadd.f32 1.4214138, %v3969_v63 }
 0x6ac   : > { %v3960_v12 = vmul.f32 1.0614054, %v10395_v14  ;;  %v3966_v6 = vadd.f32 -1.4531521, %v3958_v11  ;;  %v3972_v50 = vmul.f32 %v10371_v1, %v3964_v41  ;;  %v3978_v0 = vadd.f32 1.4214138, %v3970_v35 }
 0x6ad   : > { %v6457_v48 = vpop.eup %6456  ;;  %v3967_v24 = vadd.f32 -1.4531521, %v3959_v61  ;;  %v3973_v36 = vmul.f32 %v10379_v58, %v3965_v53  ;;  %v3979_v30 = vadd.f32 1.4214138, %v3971_v38  ;;  %v3985_v56 = vmul.f32 %v10343_v39, %v3977_v51 }
 0x6ae   : > { %v6459_v8 = vpop.eup %6458  ;;  %v3968_v45 = vadd.f32 -1.4531521, %v3960_v12  ;;  %v3974_v47 = vmul.f32 %v10387_v37, %v3966_v6  ;;  %v3980_v46 = vadd.f32 1.4214138, %v3972_v50  ;;  %v3986_v32 = vmul.f32 %v10355_v54, %v3978_v0 }
 0x6af   : > { %v6461_v27 = vpop.eup %6460  ;;  %v3975_v18 = vmul.f32 %v10391_v43, %v3967_v24  ;;  %v3981_v19 = vadd.f32 1.4214138, %v3973_v36  ;;  %v3987_v40 = vmul.f32 %v10363_v3, %v3979_v30  ;;  %v3993_v4 = vadd.f32 -0.28449672, %v3985_v56 }
 0x6b0   : > { %v6463_v2 = vpop.eup %6462  ;;  %v3976_v26 = vmul.f32 %v10395_v14, %v3968_v45  ;;  %v3982_v33 = vadd.f32 1.4214138, %v3974_v47  ;;  %v3988_v5 = vmul.f32 %v10371_v1, %v3980_v46  ;;  %v3994_v17 = vadd.f32 -0.28449672, %v3986_v32 }
 0x6b1   : > { %v6465_v9 = vpop.eup %6464  ;;  %v3983_v60 = vadd.f32 1.4214138, %v3975_v18  ;;  %v3989_v16 = vmul.f32 %v10379_v58, %v3981_v19  ;;  %v3995_v23 = vadd.f32 -0.28449672, %v3987_v40  ;;  %v4001_v49 = vmul.f32 %v10343_v39, %v3993_v4 }
 0x6b2   : > { %v6467_v63 = vpop.eup %6466  ;;  %v3984_v11 = vadd.f32 1.4214138, %v3976_v26  ;;  %v3990_v41 = vmul.f32 %v10387_v37, %v3982_v33  ;;  %v3996_v35 = vadd.f32 -0.28449672, %v3988_v5  ;;  %v4002_v61 = vmul.f32 %v10355_v54, %v3994_v17 }
 0x6b3   : > { %v6469_v53 = vpop.eup %6468  ;;  %v3991_v38 = vmul.f32 %v10391_v43, %v3983_v60  ;;  %v3997_v51 = vadd.f32 -0.28449672, %v3989_v16  ;;  %v4003_v12 = vmul.f32 %v10363_v3, %v3995_v23  ;;  %v4009_v6 = vadd.f32 0.2548296, %v4001_v49 }
 0x6b4   : > { %v6471_v50 = vpop.eup %6470  ;;  %v3992_v0 = vmul.f32 %v10395_v14, %v3984_v11  ;;  %v3998_v24 = vadd.f32 -0.28449672, %v3990_v41  ;;  %v4004_v36 = vmul.f32 %v10371_v1, %v3996_v35  ;;  %v4010_v30 = vadd.f32 0.2548296, %v4002_v61 }
 0x6b5   : > { %v3999_v56 = vadd.f32 -0.28449672, %v3991_v38  ;;  %v4005_v45 = vmul.f32 %v10379_v58, %v3997_v51  ;;  %v4011_v47 = vadd.f32 0.2548296, %v4003_v12  ;;  %v4017_v46 = vmul.f32 %v10343_v39, %v4009_v6 }
 0x6b6   : > { %v4000_v32 = vadd.f32 -0.28449672, %v3992_v0  ;;  %v4006_v18 = vmul.f32 %v10387_v37, %v3998_v24  ;;  %v4012_v19 = vadd.f32 0.2548296, %v4004_v36  ;;  %v4018_v40 = vmul.f32 %v10355_v54, %v4010_v30 }
 0x6b7   : > { %v4007_v4 = vmul.f32 %v10391_v43, %v3999_v56  ;;  %v4013_v26 = vadd.f32 0.2548296, %v4005_v45  ;;  %v4019_v33 = vmul.f32 %v10363_v3, %v4011_v47  ;;  %v4057_v5 = vmul.f32 %v6457_v48, %v4017_v46 }
 0x6b8   : > { %v4008_v17 = vmul.f32 %v10395_v14, %v4000_v32  ;;  %v4014_v60 = vadd.f32 0.2548296, %v4006_v18  ;;  %v4020_v16 = vmul.f32 %v10371_v1, %v4012_v19  ;;  %v4058_v23 = vmul.f32 %v6459_v8, %v4018_v40 }
 0x6b9   : > { %v4015_v49 = vadd.f32 0.2548296, %v4007_v4  ;;  %v4021_v39 = vmul.f32 %v10379_v58, %v4013_v26  ;;  %v4059_v11 = vmul.f32 %v6461_v27, %v4019_v33  ;;  %v4065_v41 = vsub.f32 1.0, %v4057_v5 }
 0x6ba   : > { %v4016_v35 = vadd.f32 0.2548296, %v4008_v17  ;;  %v4022_v54 = vmul.f32 %v10387_v37, %v4014_v60  ;;  %v4060_v61 = vmul.f32 %v6463_v2, %v4020_v16  ;;  %v4066_v38 = vsub.f32 1.0, %v4058_v23 }
 0x6bb   : > { %v4023_v51 = vmul.f32 %v10391_v43, %v4015_v49  ;;  %v4061_v3 = vmul.f32 %v6465_v9, %v4021_v39  ;;  %v4067_v48 = vsub.f32 1.0, %v4059_v11  ;;  %v4073_v12 = vmul.f32 %v4065_v41, %v10336_v15 }
 0x6bc   : > { %v4024_v6 = vmul.f32 %v10395_v14, %v4016_v35  ;;  %v4062_v1 = vmul.f32 %v6467_v63, %v4022_v54  ;;  %v4068_v8 = vsub.f32 1.0, %v4060_v61  ;;  %v4074_v0 = vmul.f32 %v4066_v38, %v10341_v31  ;;  %v4124_v54 = vpop.permute.xlu1 %4123  ;;  %v4134_v38 = vpop.permute.xlu0 %4133 }
 0x6bd   : > { %v4063_v58 = vmul.f32 %v6469_v53, %v4023_v51  ;;  %v4069_v27 = vsub.f32 1.0, %v4061_v3  ;;  %v4075_v24 = vmul.f32 %v4067_v48, %v10348_v29  ;;  %v4081_v36 = vadd.f32 1.0, %v4073_v12 }
 0x6be   : > { %v4064_v37 = vmul.f32 %v6471_v50, %v4024_v6  ;;  %v4070_v2 = vsub.f32 1.0, %v4062_v1  ;;  %v4076_v30 = vmul.f32 %v4068_v8, %v10353_v42  ;;  %v4082_v43 = vadd.f32 1.0, %v4074_v0  ;;  %v6512_v1 = vld [vmem:[%s10841_s10] sm:$0xf] }
 0x6bf   : > { %v4071_v9 = vsub.f32 1.0, %v4063_v58  ;;  %v4077_v56 = vmul.f32 %v4069_v27, %v10360_v25  ;;  %v4083_v15 = vadd.f32 1.0, %v4075_v24  ;;  %v10435_v14 = vmul.f32 %v4081_v36, %v10299_v57 }
 0x6c0   : > { %v4072_v63 = vsub.f32 1.0, %v4064_v37  ;;  %v4078_v31 = vmul.f32 %v4070_v2, %v10368_v34  ;;  %v4084_v53 = vadd.f32 1.0, %v4076_v30  ;;  %v10439_v45 = vmul.f32 %v4082_v43, %v10301_v59  ;;  %v4144_v12 = vpop.permute.xlu1 %4143 }
 0x6c1   : > { %v4079_v29 = vmul.f32 %v4071_v9, %v10376_v62  ;;  %v4085_v50 = vadd.f32 1.0, %v4077_v56  ;;  %v10443_v42 = vmul.f32 %v4083_v15, %v10309_v22  ;;  %v4097_v25 = vsel %vm3597_vm5, %v10435_v14, 0.0 }
 0x6c2   : > { %v4080_v47 = vmul.f32 %v4072_v63, %v10384_v10  ;;  %v4086_v57 = vadd.f32 1.0, %v4078_v31  ;;  %v10449_v46 = vmul.f32 %v4084_v53, %v10311_v21  ;;  %v4098_v34 = vsel %vm3597_vm5, %v10439_v45, 0.0 }
 0x6c3   : > { %v4087_v59 = vadd.f32 1.0, %v4079_v29  ;;  %v10454_v32 = vmul.f32 %v4085_v50, %v10313_v7  ;;  %v4099_v62 = vadd.f32 %v4098_v34, %v4097_v25  ;;  %v4100_v19 = vsel %vm3597_vm5, %v10443_v42, 0.0 }
 0x6c4   : > { %v4088_v18 = vadd.f32 1.0, %v4080_v47  ;;  %v10457_v22 = vmul.f32 %v4086_v57, %v10315_v28  ;;  %v4102_v10 = vsel %vm3597_vm5, %v10449_v46, 0.0  ;;  %v3887_v40 = vmul.f32 0.5, %v10285_v20 }
 0x6c5   : > { %v4101_v21 = vadd.f32 %v4100_v19, %v4099_v62  ;;  %v3888_v4 = vmul.f32 0.5, %v10269_v52  ;;  %v4104_v28 = vsel %vm3597_vm5, %v10454_v32, 0.0 }
 0x6c6   : > { %v10465_v33 = vmul.f32 %v4087_v59, %v3887_v40  ;;  %v4106_v5 = vsel %vm3597_vm5, %v10457_v22, 0.0 }
 0x6c7   : > { %v4103_v26 = vadd.f32 %v4102_v10, %v4101_v21  ;;  %v10467_v7 = vmul.f32 %v4088_v18, %v3888_v4 }
 0x6c8   : > { %v4108_v16 = vsel %vm3597_vm5, %v10465_v33, 0.0 }
 0x6c9   : > { %v4105_v17 = vadd.f32 %v4104_v28, %v4103_v26  ;;  %v4110_v20 = vsel %vm3597_vm5, %v10467_v7, 0.0 }
 0x6cb   : > { %v4107_v60 = vadd.f32 %v4106_v5, %v4105_v17  ;;  %v3596_v5 = vld [vmem:[%s10843_s12] sm:$0xf] }
 0x6cc   : > { %6097 = vmatprep.subr.msk.mxu1 %vm4227_vm15, %v3596_v5  ;;  %v3595_v17 = vld [vmem:[%s10842_s11] sm:$0x1] }
 0x6cd   : > { %v4109_v52 = vadd.f32 %v4108_v16, %v4107_v60  ;;  %6098 = vmatpush3.msk.msra.mxu1 %vm4227_vm15, %v3596_v5 }
 0x6cf   : > { %v4111_v23 = vadd.f32 %v4110_v20, %v4109_v52 }
 0x6d1   : > { %v4112_v49 = vrot.slane %v4111_v23, 4 }
 0x6d3   : > { %v4113_v39 = vadd.f32 %v4112_v49, %v4111_v23 }
 0x6d5   : > { %v4114_v11 = vrot.slane %v4113_v39, 2 }
 0x6d7   : > { %v4115_v41 = vadd.f32 %v4114_v11, %v4113_v39 }
 0x6d9   : > { %v4116_v35 = vrot.slane %v4115_v41, 1 }
 0x6db   : > { %v4117_v61 = vadd.f32 %v4116_v35, %v4115_v41 }
 0x6dd   : > { %v4119_v51 = vmul.f32 0.015625, %v4117_v61 }
 0x6df   : > { %v4126_v3 = vmul.f32 %v4124_v54, %v4119_v51  ;;  %v4136_v48 = vmul.f32 %v4134_v38, %v4119_v51  ;;  %v4146_v6 = vmul.f32 %v4144_v12, %v4119_v51  ;;  %v4120_v8 = vmul.f32 %v6512_v1, %v4119_v51 }
 0x6e1   : > { %4128 = vrot.lane.b32.xlu0 %v4126_v3, %s6535_s26  ;;  %4138 = vrot.lane.b32.xlu1 %v4136_v48, %s6536_s27 }
 0x6e5   : > { %4148 = vrot.lane.b32.xlu0 %v4146_v6, %s6537_s28  ;;  %v12021_v6 = vld [vmem:[#allocation158_spill] sm:$0xff] }
 0x753   : > { %v4129_v0 = vpop.permute.xlu0 %4128  ;;  %v4139_v27 = vpop.permute.xlu1 %4138 }
 0x754   : > { %v4131_v58 = vadd.f32 %v4129_v0, %v4120_v8 }
 0x756   : > { %v4141_v24 = vadd.f32 %v4139_v27, %v4131_v58 }
 0x757   : > { %v4149_v36 = vpop.permute.xlu0 %4148 }
 0x758   : > { %v4151_v37 = vadd.f32 %v4149_v36, %v4141_v24  ;;  %v12022_v24 = vld [vmem:[#allocation147_spill] sm:$0xff] }
 0x75a   : > { %v4153_v2 = vmul.f32 0.70710677, %v4151_v37  ;;  %v4152_v4 = vmul.f32 0.5, %v4151_v37 }
 0x75c   : > { %v4156_v30 = vand.u32 2147483647, %v4153_v2  ;;  %vm4154_vm14 = vcmp.lt.f32.partialorder %v4153_v2, 0.0 }
 0x75d   : > { %v4155_v21 = vsel %vm4154_vm14, -1.0, %v11884_v55 }
 0x75e   : > { %v4157_v43 = vmul.f32 0.3275911, %v4156_v30  ;;  %v4170_v56 = vsub.f32 0.0, %v4156_v30 }
 0x760   : > { %v4158_v9 = vadd.f32 1.0, %v4157_v43  ;;  %v4171_v63 = vmul.f32 %v4170_v56, %v4156_v30  ;;  %v12023_v30 = vld [vmem:[#allocation67_spill] sm:$0xff] }
 0x762   : > { %6472 = vrcp.f32 %v4158_v9  ;;  %v4172_v29 = vmul.f32 1.442695, %v4171_v63 }
 0x764   : > { %6474 = vpow2.f32 %v4172_v29 }
 0x76c   : > { %v6473_v15 = vpop.eup %6472 }
 0x76d   : > { %v4161_v31 = vmul.f32 1.0614054, %v6473_v15 }
 0x76e   : > { %v6475_v18 = vpop.eup %6474 }
 0x76f   : > { %v4162_v53 = vadd.f32 -1.4531521, %v4161_v31 }
 0x771   : > { %v4163_v50 = vmul.f32 %v6473_v15, %v4162_v53 }
 0x773   : > { %v4164_v25 = vadd.f32 1.4214138, %v4163_v50 }
 0x775   : > { %v4165_v47 = vmul.f32 %v6473_v15, %v4164_v25 }
 0x777   : > { %v4166_v57 = vadd.f32 -0.28449672, %v4165_v47 }
 0x779   : > { %v4167_v34 = vmul.f32 %v6473_v15, %v4166_v57 }
 0x77b   : > { %v4168_v59 = vadd.f32 0.2548296, %v4167_v34 }
 0x77d   : > { %v4169_v62 = vmul.f32 %v6473_v15, %v4168_v59  ;;  %v12024_v59 = vld [vmem:[#allocation70_spill] sm:$0xff] }
 0x77f   : > { %v4174_v19 = vmul.f32 %v6475_v18, %v4169_v62 }
 0x781   : > { %v4175_v10 = vsub.f32 1.0, %v4174_v19 }
 0x783   : > { %v4176_v40 = vmul.f32 %v4175_v10, %v4155_v21  ;;  %v12025_v10 = vld [vmem:[#allocation74_spill] sm:$0xff] }
 0x785   : > { %v4177_v26 = vadd.f32 1.0, %v4176_v40 }
 0x787   : > { %v4178_v28 = vmul.f32 %v4177_v26, %v4152_v4 }
 0x789   : > { %4181 = vperm.xlu1 %6303, %v4178_v28  }
 0x808   : > { %v4182_v60 = vpop.permute.xlu1 %4181 }
 0x809   : > { %v4184_v16 = vmul.f32 %v4182_v60, %v3595_v17 }
 0x80b   : > { %v4185_v20 = vsub.f32 0.0, %v4184_v16 }
 0x80d   : > { %v4186_v52 = vmul.f32 1.442695, %v4185_v20 }
 0x80f   : > { %6476 = vpow2.f32 %v4186_v52 }
 0x819   : > { %v6477_v23 = vpop.eup %6476 }
 0x81a   : > { %v4188_v49 = vadd.f32 1.0, %v6477_v23 }
 0x81c   : > { %6478 = vrcp.f32 %v4188_v49 }
 0x826   : > { %v6479_v39 = vpop.eup %6478 }
 0x827   : > { %v4194_v11 = vrot.slane %v6479_v39, %v11910_v44 }
 0x829   : > { %v4195_v41 = vmul.f32 %v4194_v11, %v10435_v14  ;;  %v4196_v35 = vmul.f32 %v4194_v11, %v10439_v45  ;;  %v4197_v54 = vmul.f32 %v4194_v11, %v10443_v42  ;;  %v4198_v61 = vmul.f32 %v4194_v11, %v10449_v46  ;;  %v10506_v42 = vld [vmem:[#allocation3] sm:$0xff]  ;;  %v10508_v46 = vld [vmem:[#allocation3 + $0x8] sm:$0x3] }
 0x82a   : > { %v4199_v38 = vmul.f32 %v4194_v11, %v10454_v32  ;;  %v4200_v44 = vmul.f32 %v4194_v11, %v10457_v22  ;;  %v4201_v14 = vmul.f32 %v4194_v11, %v10465_v33  ;;  %v4202_v45 = vmul.f32 %v4194_v11, %v10467_v7  ;;  %v4589_v22 = vld [vmem:[%s10844_s13 + $0x4] sm:$0xf]  ;;  %v10520_v7 = vld [vmem:[%s10844_s13] sm:$0xf] }
 0x82b   : > { %6099 = vmatprep.mubr.msk.f32.mxu1 %vm3597_vm5, %v4195_v41  ;;  %v4613_v32 = vrot.slane %v10506_v42, 1  ;;  %v4614_v51 = vrot.slane %v10508_v46, 1  ;;  %6111 = vmatprep.subr.msk.mxu0 %vm4227_vm15, %v4589_v22 }
 0x82c   : > { %6100 = vmatmul.mubr.msk.f32.vlgmr.msra.gmra.mrb[36].mxu1 %vm3597_vm5, %v4196_v35  ;;  %6112 = vmatpush3.msk.msra.mxu0 %vm4227_vm15, %v4589_v22 }
 0x82d   : > { %6102 = vmatprep.mubr.msk.f32.mxu1 %vm3597_vm5, %v4197_v54  ;;  %v4615_v33 = vsel %vm3195_vm0, %v4613_v32, %v4614_v51  ;;  %6119 = vmatprep.subr.msk.mxu0 %vm4227_vm15, %v10520_v7 }
 0x82e   : > { %6113 = vmatprep.mubr.msk.f32.mxu0 %vm3597_vm5, %v4615_v33 }
 0x830   : > { %6103 = vmatmul.mubr.msk.f32.gmra.mrb[38].mxu1 %vm3597_vm5, %v4198_v61 }
 0x831   : > { %6105 = vmatprep.mubr.msk.f32.mxu1 %vm3597_vm5, %v4199_v38  ;;  %v12026_v38 = vld [vmem:[#allocation78_spill] sm:$0xff] }
 0x834   : > { %6106 = vmatmul.mubr.msk.f32.gmra.mrb[40].mxu1 %vm3597_vm5, %v4200_v44 }
 0x835   : > { %6108 = vmatprep.mubr.msk.f32.mxu1 %vm3597_vm5, %v4201_v14 }
 0x838   : > { %6109 = vmatmul.mubr.msk.f32.gmra.mrb[42].mxu1 %vm3597_vm5, %v4202_v45 }
 0x8ff   : > { %v6101_v3 = vpop.f32.mrb[36].mxu1 }
 0x900   : > { %v4337_v48 = vadd.f32 %v6101_v3, %v10017_v13  ;;  %v4297_v12 = vpop.f32.mrb[37].mxu1 }
 0x901   : > { %v4336_v1 = vadd.f32 %v4297_v12, %v12021_v6  ;;  %v12027_v6 = vld [vmem:[#allocation82_spill] sm:$0xff] }
 0x902   : > { %v4353_v8 = vmul.f32 0.70710677, %v4337_v48  ;;  %v10552_v20 = vmul.f32 0.5, %v4337_v48 }
 0x903   : > { %v4352_v0 = vmul.f32 0.70710677, %v4336_v1  ;;  %v6104_v58 = vpop.f32.mrb[38].mxu1  ;;  %v10557_v23 = vmul.f32 0.5, %v4336_v1 }
 0x904   : > { %v4377_v27 = vand.u32 2147483647, %v4353_v8  ;;  %v4339_v36 = vadd.f32 %v6104_v58, %v12022_v24  ;;  %v4307_v37 = vpop.f32.mrb[39].mxu1  ;;  %vm4361_vm3 = vcmp.lt.f32.partialorder %v4353_v8, 0.0 }
 0x905   : > { %v4376_v2 = vand.u32 2147483647, %v4352_v0  ;;  %v10530_v43 = vadd.f32 %v4307_v37, %v12023_v30  ;;  %vm4360_vm4 = vcmp.lt.f32.partialorder %v4352_v0, 0.0  ;;  %v10555_v52 = vsel %vm4361_vm3, -1.0, %v11884_v55 }
 0x906   : > { %v4385_v9 = vmul.f32 0.3275911, %v4377_v27  ;;  %v10532_v15 = vmul.f32 0.70710677, %v4339_v36  ;;  %v4489_v57 = vsub.f32 0.0, %v4377_v27  ;;  %v10561_v39 = vsel %vm4360_vm4, -1.0, %v11884_v55 }
 0x907   : > { %v4384_v56 = vmul.f32 0.3275911, %v4376_v2  ;;  %v10535_v13 = vmul.f32 0.70710677, %v10530_v43  ;;  %v6107_v31 = vpop.f32.mrb[40].mxu1  ;;  %v4488_v26 = vsub.f32 0.0, %v4376_v2 }
 0x908   : > { %v4393_v63 = vadd.f32 1.0, %v4385_v9  ;;  %v4379_v29 = vand.u32 2147483647, %v10532_v15  ;;  %v4317_v50 = vpop.f32.mrb[41].mxu1  ;;  %v10540_v62 = vadd.f32 %v6107_v31, %v12024_v59  ;;  %v4497_v5 = vmul.f32 %v4489_v57, %v4377_v27 }
 0x909   : > { %v4392_v53 = vadd.f32 1.0, %v4384_v56  ;;  %v4378_v34 = vand.u32 2147483647, %v10535_v13  ;;  %v10543_v21 = vadd.f32 %v4317_v50, %v12025_v10  ;;  %v10563_v11 = vmul.f32 0.5, %v4339_v36 }
 0x90a   : > { %6480 = vrcp.f32 %v4393_v63  ;;  %v4387_v25 = vmul.f32 0.3275911, %v4379_v29  ;;  %v10546_v4 = vmul.f32 0.70710677, %v10540_v62  ;;  %v4491_v17 = vsub.f32 0.0, %v4379_v29 }
 0x90b   : > { %6482 = vrcp.f32 %v4392_v53  ;;  %v6110_v47 = vpop.f32.mrb[42].mxu1  ;;  %v4386_v40 = vmul.f32 0.3275911, %v4378_v34  ;;  %v10549_v28 = vmul.f32 0.70710677, %v10543_v21  ;;  %v4496_v35 = vmul.f32 %v4488_v26, %v4376_v2 }
 0x90c   : > { %v4327_v18 = vpop.f32.mrb[43].mxu1  ;;  %v4395_v19 = vadd.f32 1.0, %v4387_v25  ;;  %v4381_v16 = vand.u32 2147483647, %v10546_v4  ;;  %v4490_v54 = vsub.f32 0.0, %v4378_v34  ;;  %v10566_v44 = vadd.f32 %v6110_v47, %v12026_v38 }
 0x90d   : > { %v4394_v60 = vadd.f32 1.0, %v4386_v40  ;;  %v4380_v49 = vand.u32 2147483647, %v10549_v28  ;;  %v4506_v45 = vmul.f32 1.442695, %v4497_v5  ;;  %v4499_v32 = vmul.f32 %v4491_v17, %v4379_v29 }
 0x90e   : > { %6484 = vrcp.f32 %v4395_v19  ;;  %v4389_v41 = vmul.f32 0.3275911, %v4381_v16  ;;  %v4493_v22 = vsub.f32 0.0, %v4381_v16  ;;  %v10574_v1 = vadd.f32 %v4327_v18, %v12027_v6 }
 0x90f   : > { %6486 = vrcp.f32 %v4394_v60  ;;  %v4388_v61 = vmul.f32 0.3275911, %v4380_v49  ;;  %v4492_v12 = vsub.f32 0.0, %v4380_v49  ;;  %vm4363_vm6 = vcmp.lt.f32.partialorder %v10532_v15, 0.0 }
 0x910   : > { %v4397_v51 = vadd.f32 1.0, %v4389_v41  ;;  %v10579_v0 = vmul.f32 0.70710677, %v10566_v44  ;;  %v4504_v27 = vmul.f32 1.442695, %v4496_v35  ;;  %v4498_v24 = vmul.f32 %v4490_v54, %v4378_v34 }
 0x911   : > { %v4396_v48 = vadd.f32 1.0, %v4388_v61  ;;  %v4510_v37 = vmul.f32 1.442695, %v4499_v32  ;;  %v4501_v56 = vmul.f32 %v4493_v22, %v4381_v16  ;;  %v4500_v63 = vmul.f32 %v4492_v12, %v4380_v49 }
 0x912   : > { %6488 = vrcp.f32 %v4397_v51  ;;  %v4383_v2 = vand.u32 2147483647, %v10579_v0  ;;  %v10586_v31 = vmul.f32 0.70710677, %v10574_v1  ;;  %v4508_v57 = vmul.f32 1.442695, %v4498_v24 }
 0x913   : > { %6490 = vrcp.f32 %v4396_v48  ;;  %v4514_v17 = vmul.f32 1.442695, %v4501_v56  ;;  %v4512_v41 = vmul.f32 1.442695, %v4500_v63  ;;  %v10600_v54 = vsel %vm4363_vm6, -1.0, %v11884_v55 }
 0x914   : > { %v10568_v14 = vpop.eup %6480  ;;  %6492 = vpow2.f32 %v4506_v45  ;;  %v4391_v50 = vmul.f32 0.3275911, %v4383_v2  ;;  %v4495_v25 = vsub.f32 0.0, %v4383_v2  ;;  %v4382_v34 = vand.u32 2147483647, %v10586_v31 }
 0x915   : > { %v10570_v33 = vpop.eup %6482  ;;  %v4417_v3 = vmul.f32 1.0614054, %v10568_v14  ;;  %6494 = vpow2.f32 %v4504_v27  ;;  %vm4362_vm7 = vcmp.lt.f32.partialorder %v10535_v13, 0.0  ;;  %vm4365_vm2 = vcmp.lt.f32.partialorder %v10546_v4, 0.0 }
 0x916   : > { %v4416_v8 = vmul.f32 1.0614054, %v10570_v33  ;;  %v4399_v10 = vadd.f32 1.0, %v4391_v50  ;;  %v4503_v40 = vmul.f32 %v4495_v25, %v4383_v2  ;;  %v4390_v60 = vmul.f32 0.3275911, %v4382_v34 }
 0x917   : > { %v4425_v58 = vadd.f32 -1.4531521, %v4417_v3  ;;  %v4494_v24 = vsub.f32 0.0, %v4382_v34  ;;  %vm4364_vm8 = vcmp.lt.f32.partialorder %v10549_v28, 0.0  ;;  %vm4367_vm9 = vcmp.lt.f32.partialorder %v10579_v0, 0.0 }
 0x918   : > { %v4424_v36 = vadd.f32 -1.4531521, %v4416_v8  ;;  %v10582_v30 = vpop.eup %6484  ;;  %6496 = vrcp.f32 %v4399_v10  ;;  %v4398_v38 = vadd.f32 1.0, %v4390_v60  ;;  %v4518_v22 = vmul.f32 1.442695, %v4503_v40 }
 0x919   : > { %v4433_v9 = vmul.f32 %v10568_v14, %v4425_v58  ;;  %v4419_v29 = vmul.f32 1.0614054, %v10582_v30  ;;  %v10591_v59 = vpop.eup %6486  ;;  %6498 = vpow2.f32 %v4510_v37  ;;  %v4502_v10 = vmul.f32 %v4494_v24, %v4382_v34 }
 0x91a   : > { %v4432_v53 = vmul.f32 %v10570_v33, %v4424_v36  ;;  %v4418_v5 = vmul.f32 1.0614054, %v10591_v59  ;;  %6500 = vrcp.f32 %v4398_v38  ;;  %v4372_v28 = vsel %vm4364_vm8, -1.0, %v11884_v55 }
 0x91b   : > { %v4441_v47 = vadd.f32 1.4214138, %v4433_v9  ;;  %v4427_v19 = vadd.f32 -1.4531521, %v4419_v29  ;;  %6502 = vpow2.f32 %v4508_v57  ;;  %v4375_v0 = vsel %vm4367_vm9, -1.0, %v11884_v55 }
 0x91c   : > { %v4440_v18 = vadd.f32 1.4214138, %v4432_v53  ;;  %v4426_v61 = vadd.f32 -1.4531521, %v4418_v5  ;;  %v10602_v45 = vpop.eup %6488  ;;  %6504 = vpow2.f32 %v4514_v17  ;;  %vm4366_vm10 = vcmp.lt.f32.partialorder %v10586_v31, 0.0 }
 0x91d   : > { %v4449_v26 = vmul.f32 %v10568_v14, %v4441_v47  ;;  %v4435_v49 = vmul.f32 %v10582_v30, %v4427_v19  ;;  %v10604_v3 = vpop.eup %6490  ;;  %v4421_v6 = vmul.f32 1.0614054, %v10602_v45  ;;  %6506 = vpow2.f32 %v4512_v41 }
 0x91e   : > { %v4448_v16 = vmul.f32 %v10570_v33, %v4440_v18  ;;  %v4434_v12 = vmul.f32 %v10591_v59, %v4426_v61  ;;  %v6493_v15 = vpop.eup %6492  ;;  %v4420_v27 = vmul.f32 1.0614054, %v10604_v3  ;;  %6508 = vpow2.f32 %v4518_v22 }
 0x91f   : > { %v4457_v35 = vadd.f32 -0.28449672, %v4449_v26  ;;  %v4443_v51 = vadd.f32 1.4214138, %v4435_v49  ;;  %v4429_v2 = vadd.f32 -1.4531521, %v4421_v6  ;;  %v6495_v53 = vpop.eup %6494 }
 0x920   : > { %v4456_v32 = vadd.f32 -0.28449672, %v4448_v16  ;;  %v4442_v37 = vadd.f32 1.4214138, %v4434_v12  ;;  %v4428_v63 = vadd.f32 -1.4531521, %v4420_v27 }
 0x921   : > { %v4465_v48 = vmul.f32 %v10568_v14, %v4457_v35  ;;  %v4451_v58 = vmul.f32 %v10582_v30, %v4443_v51  ;;  %v4437_v25 = vmul.f32 %v10602_v45, %v4429_v2  ;;  %v4516_v41 = vmul.f32 1.442695, %v4502_v10 }
 0x922   : > { %v4464_v8 = vmul.f32 %v10570_v33, %v4456_v32  ;;  %v4450_v50 = vmul.f32 %v10591_v59, %v4442_v37  ;;  %v4436_v19 = vmul.f32 %v10604_v3, %v4428_v63  ;;  %v10619_v5 = vpop.eup %6496 }
 0x923   : > { %v4473_v36 = vadd.f32 0.2548296, %v4465_v48  ;;  %v4459_v56 = vadd.f32 -0.28449672, %v4451_v58  ;;  %v4445_v26 = vadd.f32 1.4214138, %v4437_v25  ;;  %v6499_v61 = vpop.eup %6498  ;;  %6510 = vpow2.f32 %v4516_v41 }
 0x924   : > { %v4472_v9 = vadd.f32 0.2548296, %v4464_v8  ;;  %v4458_v57 = vadd.f32 -0.28449672, %v4450_v50  ;;  %v4444_v16 = vadd.f32 1.4214138, %v4436_v19  ;;  %v10626_v51 = vpop.eup %6500 }
 0x925   : > { %v4481_v29 = vmul.f32 %v10568_v14, %v4473_v36  ;;  %v4467_v18 = vmul.f32 %v10582_v30, %v4459_v56  ;;  %v4453_v49 = vmul.f32 %v10602_v45, %v4445_v26  ;;  %v4423_v35 = vmul.f32 1.0614054, %v10619_v5  ;;  %v6503_v2 = vpop.eup %6502 }
 0x926   : > { %v4480_v47 = vmul.f32 %v10570_v33, %v4472_v9  ;;  %v4466_v33 = vmul.f32 %v10591_v59, %v4458_v57  ;;  %v4452_v32 = vmul.f32 %v10604_v3, %v4444_v16  ;;  %v4422_v27 = vmul.f32 1.0614054, %v10626_v51 }
 0x927   : > { %v4521_v40 = vmul.f32 %v6493_v15, %v4481_v29  ;;  %v4475_v60 = vadd.f32 0.2548296, %v4467_v18  ;;  %v4461_v22 = vadd.f32 -0.28449672, %v4453_v49  ;;  %v4431_v6 = vadd.f32 -1.4531521, %v4423_v35 }
 0x928   : > { %v4520_v14 = vmul.f32 %v6495_v53, %v4480_v47  ;;  %v4474_v12 = vadd.f32 0.2548296, %v4466_v33  ;;  %v4460_v58 = vadd.f32 -0.28449672, %v4452_v32  ;;  %v4430_v63 = vadd.f32 -1.4531521, %v4422_v27  ;;  %v6505_v53 = vpop.eup %6504 }
 0x929   : > { %v4529_v17 = vsub.f32 1.0, %v4521_v40  ;;  %v4483_v34 = vmul.f32 %v10582_v30, %v4475_v60  ;;  %v4469_v30 = vmul.f32 %v10602_v45, %v4461_v22  ;;  %v4439_v37 = vmul.f32 %v10619_v5, %v4431_v6  ;;  %v6507_v10 = vpop.eup %6506 }
 0x92a   : > { %v4528_v38 = vsub.f32 1.0, %v4520_v14  ;;  %v4482_v36 = vmul.f32 %v10591_v59, %v4474_v12  ;;  %v4438_v19 = vmul.f32 %v10626_v51, %v4430_v63  ;;  %v4370_v40 = vsel %vm4362_vm7, -1.0, %v11884_v55  ;;  %v6509_v14 = vpop.eup %6508 }
 0x92b   : > { %v4537_v48 = vmul.f32 %v4529_v17, %v10555_v52  ;;  %v4523_v8 = vmul.f32 %v6499_v61, %v4483_v34  ;;  %v4468_v52 = vmul.f32 %v10604_v3, %v4460_v58  ;;  %v4477_v50 = vadd.f32 0.2548296, %v4469_v30 }
 0x92c   : > { %v4536_v15 = vmul.f32 %v4528_v38, %v10561_v39  ;;  %v4522_v29 = vmul.f32 %v6503_v2, %v4482_v36  ;;  %v4447_v25 = vadd.f32 1.4214138, %v4439_v37  ;;  %v4446_v60 = vadd.f32 1.4214138, %v4438_v19 }
 0x92d   : > { %v4545_v24 = vadd.f32 1.0, %v4537_v48  ;;  %v4531_v56 = vsub.f32 1.0, %v4523_v8  ;;  %v4476_v18 = vadd.f32 0.2548296, %v4468_v52  ;;  %v4346_v35 = vmul.f32 0.5, %v10530_v43 }
 0x92e   : > { %v4544_v9 = vadd.f32 1.0, %v4536_v15  ;;  %v4530_v57 = vsub.f32 1.0, %v4522_v29  ;;  %v4455_v26 = vmul.f32 %v10619_v5, %v4447_v25  ;;  %v4454_v49 = vmul.f32 %v10626_v51, %v4446_v60  ;;  %v4591_v60 = vld [vmem:[%s10844_s13 + $0xc] sm:$0xf] }
 0x92f   : > { %v4553_v39 = vmul.f32 %v4545_v24, %v10552_v20  ;;  %v4539_v59 = vmul.f32 %v4531_v56, %v10600_v54  ;;  %v4485_v20 = vmul.f32 %v10602_v45, %v4477_v50  ;;  %v4484_v54 = vmul.f32 %v10604_v3, %v4476_v18 }
 0x930   : > { %v4552_v47 = vmul.f32 %v4544_v9, %v10557_v23  ;;  %v4538_v16 = vmul.f32 %v4530_v57, %v4370_v40  ;;  %v4463_v33 = vadd.f32 -0.28449672, %v4455_v26  ;;  %v4373_v3 = vsel %vm4365_vm2, -1.0, %v11884_v55 }
 0x931   : > { %4581 = vst.msk [vmem:[#allocation3 + $0x21] sm:$0xff] %vm3597_vm5, %v4553_v39  ;;  %v4547_v23 = vadd.f32 1.0, %v4539_v59  ;;  %v4525_v17 = vmul.f32 %v6505_v53, %v4485_v20  ;;  %v4524_v45 = vmul.f32 %v6507_v10, %v4484_v54  ;;  %v4462_v41 = vadd.f32 -0.28449672, %v4454_v49 }
 0x932   : > { %4580 = vst.msk [vmem:[#allocation3 + $0x11] sm:$0xff] %vm3597_vm5, %v4552_v47  ;;  %v4546_v61 = vadd.f32 1.0, %v4538_v16  ;;  %v4471_v34 = vmul.f32 %v10619_v5, %v4463_v33  ;;  %v4349_v22 = vmul.f32 0.5, %v10540_v62  ;;  %v4348_v36 = vmul.f32 0.5, %v10543_v21  ;;  %v6511_v21 = vpop.eup %6510 }
 0x933   : > { %v4555_v13 = vmul.f32 %v4547_v23, %v10563_v11  ;;  %v4533_v38 = vsub.f32 1.0, %v4525_v17  ;;  %v4532_v32 = vsub.f32 1.0, %v4524_v45  ;;  %v4470_v6 = vmul.f32 %v10626_v51, %v4462_v41  ;;  %v4593_v41 = vld [vmem:[%s10844_s13 + $0x14] sm:$0xf] }
 0x934   : > { %v4554_v11 = vmul.f32 %v4546_v61, %v4346_v35  ;;  %v4479_v12 = vadd.f32 0.2548296, %v4471_v34  ;;  %v4351_v18 = vmul.f32 0.5, %v10566_v44  ;;  %v4350_v40 = vmul.f32 0.5, %v10574_v1  ;;  %v4592_v35 = vld [vmem:[%s10844_s13 + $0x10] sm:$0xf] }
 0x935   : > { %4583 = vst.msk [vmem:[#allocation3 + $0x41] sm:$0xff] %vm3597_vm5, %v4555_v13  ;;  %v4541_v48 = vmul.f32 %v4533_v38, %v4373_v3  ;;  %v4540_v43 = vmul.f32 %v4532_v32, %v4372_v28  ;;  %v4478_v62 = vadd.f32 0.2548296, %v4470_v6  ;;  %v4817_v44 = vrot.slane %v10506_v42, 2 }
 0x936   : > { %4582 = vst.msk [vmem:[#allocation3 + $0x31] sm:$0xff] %vm3597_vm5, %v4554_v11  ;;  %v4487_v58 = vmul.f32 %v10619_v5, %v4479_v12  ;;  %v4590_v5 = vld [vmem:[%s10844_s13 + $0x8] sm:$0xf]  ;;  %v4818_v1 = vrot.slane %v10508_v46, 2 }
 0x937   : > { %v4549_v4 = vadd.f32 1.0, %v4541_v48  ;;  %v4548_v30 = vadd.f32 1.0, %v4540_v43  ;;  %v4486_v52 = vmul.f32 %v10626_v51, %v4478_v62 }
 0x938   : > { %v10660_v15 = vld [vmem:[#allocation3 + $0x20] sm:$0xff]  ;;  %v10662_v8 = vld [vmem:[#allocation3 + $0x28] sm:$0x3]  ;;  %v4527_v2 = vmul.f32 %v6509_v14, %v4487_v58  ;;  %v4819_v16 = vsel %vm3268_vm1, %v4817_v44, %v4818_v1 }
 0x939   : > { %v4616_v27 = vrot.slane %v10660_v15, 1  ;;  %v4617_v24 = vrot.slane %v10662_v8, 1  ;;  %v4557_v37 = vmul.f32 %v4549_v4, %v4349_v22  ;;  %v4556_v56 = vmul.f32 %v4548_v30, %v4348_v36  ;;  %v4929_v34 = vld [vmem:[#allocation3 + $0x10] sm:$0xff]  ;;  %v4930_v3 = vld [vmem:[#allocation3 + $0x18] sm:$0x3] }
 0x93a   : > { %v4535_v63 = vsub.f32 1.0, %v4527_v2  ;;  %v4526_v29 = vmul.f32 %v6511_v21, %v4486_v52  ;;  %v4821_v46 = vrot.slane %v10662_v8, 2  ;;  %v5045_v11 = vrot.slane %v4929_v34, 1  ;;  %v4594_v2 = vld [vmem:[%s10844_s13 + $0x18] sm:$0xf] }
 0x93b   : > { %v4618_v9 = vsel %vm3195_vm0, %v4616_v27, %v4617_v24  ;;  %4585 = vst.msk [vmem:[#allocation3 + $0x61] sm:$0xff] %vm3597_vm5, %v4557_v37  ;;  %4584 = vst.msk [vmem:[#allocation3 + $0x51] sm:$0xff] %vm3597_vm5, %v4556_v56  ;;  %v5046_v28 = vrot.slane %v4930_v3, 1  ;;  %v5158_v56 = vrot.slane %v4930_v3, 2 }
 0x93c   : > { %6114 = vmatmul.mubr.msk.f32.vlgmr.msra.gmra.mrb[12].mxu0 %vm3597_vm5, %v4618_v9  ;;  %v10680_v53 = vld [vmem:[#allocation3 + $0x40] sm:$0xff]  ;;  %v4602_v39 = vld [vmem:[#allocation3 + $0x48] sm:$0x3]  ;;  %v4543_v25 = vmul.f32 %v4535_v63, %v4375_v0  ;;  %v4534_v47 = vsub.f32 1.0, %v4526_v29  ;;  %v5157_v9 = vrot.slane %v4929_v34, 2 }
 0x93d   : > { %6120 = vmatpush3.msk.msra.mxu0 %vm4227_vm15, %v10520_v7  ;;  %v4619_v51 = vrot.slane %v10680_v53, 1  ;;  %v4620_v50 = vrot.slane %v4602_v39, 1  ;;  %v4374_v7 = vsel %vm4366_vm10, -1.0, %v11884_v55  ;;  %v4823_v17 = vrot.slane %v10680_v53, 2  ;;  %v4931_v32 = vld [vmem:[#allocation3 + $0x30] sm:$0xff] }
 0x93e   : > { %6127 = vmatprep.subr.msk.mxu0 %vm4227_vm15, %v4590_v5  ;;  %v4551_v19 = vadd.f32 1.0, %v4543_v25  ;;  %v4542_v31 = vmul.f32 %v4534_v47, %v4374_v7  ;;  %v4824_v33 = vrot.slane %v4602_v39, 2  ;;  %v4932_v12 = vld [vmem:[#allocation3 + $0x38] sm:$0x3]  ;;  %v5048_v43 = vrot.slane %v4931_v32, 1 }
 0x93f   : > { %v4621_v59 = vsel %vm3195_vm0, %v4619_v51, %v4620_v50  ;;  %v5049_v8 = vrot.slane %v4932_v12, 1  ;;  %v5047_v58 = vsel %vm3195_vm0, %v5045_v11, %v5046_v28  ;;  %v5160_v52 = vrot.slane %v4931_v32, 2  ;;  %v5270_v7 = vld [vmem:[#allocation3 + $0x28] sm:$0x3] }
 0x940   : > { %6116 = vmatprep.mubr.msk.f32.mxu0 %vm3597_vm5, %v4621_v59  ;;  %v4559_v10 = vmul.f32 %v4551_v19, %v4351_v18  ;;  %v4550_v57 = vadd.f32 1.0, %v4542_v31  ;;  %v4825_v61 = vsel %vm3268_vm1, %v4823_v17, %v4824_v33  ;;  %v5161_v0 = vrot.slane %v4932_v12, 2  ;;  %v4595_v59 = vld [vmem:[%s10844_s13 + $0x1c] sm:$0xf]  ;;  %v4596_v31 = vld [vmem:[%s10844_s13 + $0x20] sm:$0xf] }
 0x941   : > { %v5050_v62 = vsel %vm3195_vm0, %v5048_v43, %v5049_v8  ;;  %v5159_v39 = vsel %vm3268_vm1, %v5157_v9, %v5158_v56  ;;  %v5498_v33 = vrot.slane %v5270_v7, 2 }
 0x942   : > { %v10695_v20 = vld [vmem:[#allocation3 + $0x60] sm:$0xff]  ;;  %v4604_v26 = vld [vmem:[#allocation3 + $0x68] sm:$0x3]  ;;  %4587 = vst.msk [vmem:[#allocation3 + $0x81] sm:$0xff] %vm3597_vm5, %v4559_v10  ;;  %v4558_v54 = vmul.f32 %v4550_v57, %v4350_v40  ;;  %v4933_v48 = vld [vmem:[#allocation3 + $0x50] sm:$0xff]  ;;  %v5162_v25 = vsel %vm3268_vm1, %v5160_v52, %v5161_v0  ;;  %v5386_v10 = vrot.slane %v5270_v7, 1 }
 0x943   : > { %v4622_v14 = vrot.slane %v10695_v20, 1  ;;  %v4623_v23 = vrot.slane %v4604_v26, 1  ;;  %v4826_v45 = vrot.slane %v10695_v20, 2  ;;  %v4827_v49 = vrot.slane %v4604_v26, 2  ;;  %v4934_v22 = vld [vmem:[#allocation3 + $0x58] sm:$0x3] }
 0x944   : > { %4586 = vst.msk [vmem:[#allocation3 + $0x71] sm:$0xff] %vm3597_vm5, %v4558_v54  ;;  %v5051_v4 = vrot.slane %v4933_v48, 1  ;;  %v5052_v24 = vrot.slane %v4934_v22, 1  ;;  %v5163_v63 = vrot.slane %v4933_v48, 2  ;;  %v5164_v29 = vrot.slane %v4934_v22, 2 }
 0x945   : > { %v4624_v55 = vsel %vm3195_vm0, %v4622_v14, %v4623_v23  ;;  %v4828_v38 = vsel %vm3268_vm1, %v4826_v45, %v4827_v49  ;;  %v5272_v40 = vld [vmem:[#allocation3 + $0x48] sm:$0x3]  ;;  %v5387_v54 = vsel %vm3195_vm0, %v4616_v27, %v5386_v10 }
 0x946   : > { %6117 = vmatmul.mubr.msk.f32.gmra.mrb[14].mxu0 %vm3597_vm5, %v4624_v55  ;;  %v5165_v18 = vsel %vm3268_vm1, %v5163_v63, %v5164_v29  ;;  %v5274_v57 = vld [vmem:[#allocation3 + $0x68] sm:$0x3]  ;;  %v5389_v23 = vrot.slane %v5272_v40, 1 }
 0x947   : > { %6121 = vmatprep.mubr.msk.f32.mxu0 %vm3597_vm5, %v10506_v42  ;;  %v4820_v42 = vrot.slane %v10660_v15, 2  ;;  %v5392_v55 = vrot.slane %v5274_v57, 1  ;;  %v5504_v49 = vrot.slane %v5274_v57, 2 }
 0x949   : > { %v4822_v13 = vsel %vm3268_vm1, %v4820_v42, %v4821_v46  ;;  %v5275_v26 = vld [vmem:[#allocation3 + $0x80] sm:$0xff]  ;;  %v5276_v44 = vld [vmem:[#allocation3 + $0x88] sm:$0x3]  ;;  %v5393_v46 = vsel %vm3195_vm0, %v4622_v14, %v5392_v55 }
 0x94a   : > { %6122 = vmatmul.mubr.msk.f32.vlgmr.msra.gmra.mrb[12].mxu0 %vm3597_vm5, %v10660_v15  ;;  %v5394_v1 = vrot.slane %v5275_v26, 1 }
 0x94b   : > { %6124 = vmatprep.mubr.msk.f32.mxu0 %vm3597_vm5, %v10680_v53  ;;  %6128 = vmatpush3.msk.msra.mxu0 %vm4227_vm15, %v4590_v5  ;;  %v4935_v6 = vld [vmem:[#allocation3 + $0x70] sm:$0xff]  ;;  %v4936_v36 = vld [vmem:[#allocation3 + $0x78] sm:$0x3]  ;;  %v5053_v5 = vsel %vm3195_vm0, %v5051_v4, %v5052_v24 }
 0x94c   : > { %6135 = vmatprep.subr.msk.mxu0 %vm4227_vm15, %v4591_v60  ;;  %v5054_v30 = vrot.slane %v4935_v6, 1  ;;  %v5055_v37 = vrot.slane %v4936_v36, 1  ;;  %v5166_v50 = vrot.slane %v4935_v6, 2  ;;  %v5167_v47 = vrot.slane %v4936_v36, 2 }
 0x94e   : > { %6125 = vmatmul.mubr.msk.f32.gmra.mrb[14].mxu0 %vm3597_vm5, %v10695_v20  ;;  %v5056_v21 = vsel %vm3195_vm0, %v5054_v30, %v5055_v37  ;;  %v5168_v19 = vsel %vm3268_vm1, %v5166_v50, %v5167_v47 }
 0x94f   : > { %6129 = vmatprep.mubr.msk.f32.mxu0 %vm3597_vm5, %v4819_v16  ;;  %v5395_v16 = vrot.slane %v5276_v44, 1 }
 0x951   : > { %v5396_v27 = vsel %vm3195_vm0, %v5394_v1, %v5395_v16 }
 0x952   : > { %6130 = vmatmul.mubr.msk.f32.vlgmr.msra.gmra.mrb[12].mxu0 %vm3597_vm5, %v4822_v13  ;;  %v5501_v13 = vrot.slane %v5272_v40, 2 }
 0x953   : > { %6132 = vmatprep.mubr.msk.f32.mxu0 %vm3597_vm5, %v4825_v61  ;;  %6136 = vmatpush3.msk.msra.mxu0 %vm4227_vm15, %v4591_v60  ;;  %v5390_v60 = vsel %vm3195_vm0, %v4619_v51, %v5389_v23  ;;  %v5499_v51 = vsel %vm3268_vm1, %v4820_v42, %v5498_v33  ;;  %v5507_v61 = vrot.slane %v5276_v44, 2  ;;  %v5609_v42 = vld [vmem:[%s10833_s2] sm:$0xff]  ;;  %vm5613_vm0 = vcmask 261120  }
 0x954   : > { %6143 = vmatprep.subr.msk.mxu0 %vm4227_vm15, %v4592_v35  ;;  %v5502_v14 = vsel %vm3268_vm1, %v4823_v17, %v5501_v13  ;;  %6191 = vmatprep.mubr.msk.f32.mxu1 %vm5613_vm0, %v5609_v42 }
 0x956   : > { %6133 = vmatmul.mubr.msk.f32.gmra.mrb[14].mxu0 %vm3597_vm5, %v4828_v38  ;;  %v5505_v38 = vsel %vm3268_vm1, %v4826_v45, %v5504_v49 }
 0x957   : > { %6137 = vmatprep.mubr.msk.f32.mxu0 %vm3597_vm5, %v4929_v34 }
 0x95a   : > { %6138 = vmatmul.mubr.msk.f32.vlgmr.msra.gmra.mrb[12].mxu0 %vm3597_vm5, %v4931_v32  ;;  %v5610_v32 = vld [vmem:[%s10833_s2 + $0x8] sm:$0xff] }
 0x95b   : > { %6140 = vmatprep.mubr.msk.f32.mxu0 %vm3597_vm5, %v4933_v48  ;;  %6144 = vmatpush3.msk.msra.mxu0 %vm4227_vm15, %v4592_v35  ;;  %v5506_v35 = vrot.slane %v5275_v26, 2 }
 0x95c   : > { %6151 = vmatprep.subr.msk.mxu0 %vm4227_vm15, %v4593_v41 }
 0x95e   : > { %6141 = vmatmul.mubr.msk.f32.gmra.mrb[14].mxu0 %vm3597_vm5, %v4935_v6 }
 0x95f   : > { %6145 = vmatprep.mubr.msk.f32.mxu0 %vm3597_vm5, %v5047_v58 }
 0x962   : > { %6146 = vmatmul.mubr.msk.f32.vlgmr.msra.gmra.mrb[12].mxu0 %vm3597_vm5, %v5050_v62 }
 0x963   : > { %6148 = vmatprep.mubr.msk.f32.mxu0 %vm3597_vm5, %v5053_v5  ;;  %6152 = vmatpush3.msk.msra.mxu0 %vm4227_vm15, %v4593_v41  ;;  %v5612_v41 = vstv %s5611_s29 }
 0x964   : > { %6159 = vmatprep.subr.msk.mxu0 %vm4227_vm15, %v4594_v2 }
 0x966   : > { %6149 = vmatmul.mubr.msk.f32.gmra.mrb[14].mxu0 %vm3597_vm5, %v5056_v21 }
 0x967   : > { %6153 = vmatprep.mubr.msk.f32.mxu0 %vm3597_vm5, %v5159_v39 }
 0x96a   : > { %6154 = vmatmul.mubr.msk.f32.vlgmr.msra.gmra.mrb[12].mxu0 %vm3597_vm5, %v5162_v25 }
 0x96b   : > { %6156 = vmatprep.mubr.msk.f32.mxu0 %vm3597_vm5, %v5165_v18  ;;  %6160 = vmatpush3.msk.msra.mxu0 %vm4227_vm15, %v4594_v2 }
 0x96c   : > { %6167 = vmatprep.subr.msk.mxu0 %vm4227_vm15, %v4595_v59 }
 0x96e   : > { %6157 = vmatmul.mubr.msk.f32.gmra.mrb[14].mxu0 %vm3597_vm5, %v5168_v19 }
 0x96f   : > { %6161 = vmatprep.mubr.msk.f32.mxu0 %vm3597_vm5, %v10660_v15  ;;  %v5508_v15 = vsel %vm3268_vm1, %v5506_v35, %v5507_v61  ;;  %vm5695_vm1 = vcmask 7168  }
 0x972   : > { %6162 = vmatmul.mubr.msk.f32.vlgmr.msra.gmra.mrb[12].mxu0 %vm3597_vm5, %v10680_v53 }
 0x973   : > { %6164 = vmatprep.mubr.msk.f32.mxu0 %vm3597_vm5, %v10695_v20  ;;  %6168 = vmatpush3.msk.msra.mxu0 %vm4227_vm15, %v4595_v59 }
 0x974   : > { %6175 = vmatprep.subr.msk.mxu0 %vm4227_vm15, %v4596_v31 }
 0x976   : > { %6165 = vmatmul.mubr.msk.f32.gmra.mrb[14].mxu0 %vm3597_vm5, %v5275_v26 }
 0x977   : > { %6169 = vmatprep.mubr.msk.f32.mxu0 %vm3597_vm5, %v5387_v54 }
 0x97a   : > { %6170 = vmatmul.mubr.msk.f32.vlgmr.msra.gmra.mrb[12].mxu0 %vm3597_vm5, %v5390_v60 }
 0x97b   : > { %6172 = vmatprep.mubr.msk.f32.mxu0 %vm3597_vm5, %v5393_v46  ;;  %6176 = vmatpush3.msk.msra.mxu0 %vm4227_vm15, %v4596_v31 }
 0x97e   : > { %6173 = vmatmul.mubr.msk.f32.gmra.mrb[14].mxu0 %vm3597_vm5, %v5396_v27 }
 0x97f   : > { %6177 = vmatprep.mubr.msk.f32.mxu0 %vm3597_vm5, %v5499_v51 }
 0x982   : > { %6178 = vmatmul.mubr.msk.f32.vlgmr.msra.gmra.mrb[12].mxu0 %vm3597_vm5, %v5502_v14 }
 0x983   : > { %6180 = vmatprep.mubr.msk.f32.mxu0 %vm3597_vm5, %v5505_v38 }
 0x986   : > { %6181 = vmatmul.mubr.msk.f32.gmra.mrb[14].mxu0 %vm3597_vm5, %v5508_v15 }
 0xa55   : > { %v6179_v53 = vpop.f32.mrb[12].mxu0 }
 0xa56   : > { %v5586_v17 = vpop.f32.mrb[13].mxu0 }
 0xa57   : > { %v6226_v34 = vpack.c.bf16 %v6179_v53, %v5586_v17 }
 0xa59   : > { %v6182_v3 = vpop.f32.mrb[14].mxu0  ;;  %6227 = vmatprep.subr.bf16.mxu1 %v6226_v34 }
 0xa5a   : > { %v5596_v20 = vpop.f32.mrb[15].mxu0  ;;  %6229 = vmatpush3.bf16.msra.mxu1 %v6226_v34 }
 0xa5b   : > { %v6230_v45 = vpack.c.bf16 %v6182_v3, %v5596_v20 }
 0xa5d   : > { %6231 = vmatprep.subr.bf16.mxu1 %v6230_v45 }
 0xa5e   : > { %6233 = vmatpush3.bf16.msra.mxu1 %v6230_v45 }
 0xa61   : > { %6192 = vmatmul.mubr.msk.f32.vlgmr.msra.gmra.mrb[44].mxu1 %vm5613_vm0, %v5610_v32 }
 0xb34   : > { %v6193_v11 = vpop.f32.mrb[44].mxu1 }
 0xb35   : > { %v5692_v48 = vadd.f32 %v6193_v11, %v5612_v41  ;;  %v5686_v28 = vpop.f32.mrb[45].mxu1 }
 0xb36   : > { %v5687_v12 = vadd.f32 %v5686_v28, %v5612_v41 }
 0xb37   : > { %5697 = vst.msk [vmem:[%s495_s18 + $0x8] sm:$0xff] %vm5695_vm1, %v5692_v48 }
 0xb38   : > { %5696 = vst.msk [vmem:[%s495_s18] sm:$0xff] %vm5695_vm1, %v5687_v12 }
 0xb39 PF: > { %s26_s20 = sadd.s32 1, %s6519_s20  }
 0xb3a   : > { %p23_p4 = scmp.ge.s32.totalorder %s26_s20, 4  }
 0xb3c   :  { %25 = sbr.rel (!%p23_p4) target bundleno = 2 (0x2), region = 114 }

</bundles_post_ra>
